<compile_context>
chip_gen: v7x
topology: tpu7x:2x2x1
jax: 0.10.0
libtpu: 0.0.40
codegen_flags: <defaults>
</compile_context>

<pallas_src>
import jax
import jax.numpy as jnp
from jax import lax
from jax.experimental import pallas as pl
from jax.experimental.pallas import tpu as pltpu

_BN_EPS = 1e-5


def _vmem_limit_bytes():
    """Generation-aware scoped-VMEM budget (128 MiB parts vs 64 MiB v7x)."""
    cap = 64 * 1024 * 1024
    try:
        info = pltpu.get_tpu_info()
        for attr in ("vmem_capacity_bytes", "vmem_size_bytes", "vmem_bytes"):
            v = getattr(info, attr, None)
            if v:
                cap = int(v)
                break
    except Exception:
        pass
    return max(32 * 1024 * 1024, min((cap * 3) // 4, 96 * 1024 * 1024))


def _pick_tile(extent, bytes_per_unit, budget_bytes, cap=256):
    """Largest divisor of `extent` (<= cap) whose block stays under budget."""
    best = 1
    for t in range(1, min(extent, cap) + 1):
        if extent % t == 0 and t * bytes_per_unit <= budget_bytes:
            best = t
    return best


def _pick_cout_tile(cout):
    """Cout tile: whole Cout when small, else an MXU-width multiple of 128."""
    if cout <= 256:
        return cout
    for t in (256, 128):
        if cout % t == 0:
            return t
    return cout


# ---------------------------------------------------------------------------
# Conv pass: 3x3 SAME conv (bias-free) as a single im2col matmul per tile,
# in-kernel zero padding, optional fused pre-BN+ReLU on the input, and
# per-batch partial per-channel sum / sum-of-squares for BatchNorm stats.
# ---------------------------------------------------------------------------
def _conv_stats(x, w2d, cout, *, pre_scale=None, pre_shift=None):
    """x: (N, H, W, Cin) NHWC; w2d: (9*Cin, Cout) bf16, rows ordered (kh,kw,cin).
    If pre_scale/pre_shift are given, relu(x*scale+shift) is applied to the
    input tile in-kernel (fusing the previous layer's BN+ReLU epilogue).
    Returns raw (N,H,W,Cout) bf16 and per-batch stats (N,1,Cout) f32 x2."""
    n, h, w, cin = x.shape
    pre = pre_scale is not None
    tcout = _pick_cout_tile(cout)
    # Per-row VMEM footprint: im2col patch + band + f32 acc + bf16 raw block x2.
    bytes_per_row = w * (9 * cin * 2 + cin * 2 + tcout * 4 + tcout * 2 * 2)
    th = _pick_tile(h, bytes_per_row, 6 * 1024 * 1024, cap=128)
    grid = (n, cout // tcout, h // th)

    def kernel(*refs):
        if pre:
            x_ref, w_ref, sc_ref, sh_ref = refs[:4]
            raw_ref, s_ref, ss_ref, band_ref = refs[4:]
        else:
            x_ref, w_ref = refs[:2]
            raw_ref, s_ref, ss_ref, band_ref = refs[2:]

        hi = pl.program_id(2)
        n_h = pl.num_programs(2)
        row0 = pl.multiple_of(hi * th, th)

        if pre:
            sc = sc_ref[...]  # (1, cin) f32
            sh = sh_ref[...]

        def prep(v):
            if pre:
                v = jnp.maximum(v.astype(jnp.float32) * sc + sh, 0.0)
            return v.astype(jnp.bfloat16)

        # Build the zero-padded (th+2, W+2, Cin) band in VMEM: SAME padding is
        # handled here (no HBM jnp.pad), and for layer 2 the previous layer's
        # BN+ReLU is applied while copying (halo ring stays zero).
        band_ref[...] = jnp.zeros_like(band_ref)
        band_ref[1:th + 1, 1:w + 1, :] = prep(x_ref[0, pl.ds(row0, th), :, :])

        @pl.when(hi > 0)
        def _():
            band_ref[0:1, 1:w + 1, :] = prep(x_ref[0, pl.ds(row0 - 1, 1), :, :])

        @pl.when(hi < n_h - 1)
        def _():
            band_ref[th + 1:th + 2, 1:w + 1, :] = prep(
                x_ref[0, pl.ds(row0 + th, 1), :, :])

        # im2col in VMEM: 9 shifted static views -> one (th*W, 9*Cin) operand,
        # a single MXU matmul with full contraction depth K = 9*Cin.
        patch = jnp.concatenate(
            [band_ref[kh:kh + th, kw:kw + w, :].reshape(th * w, cin)
             for kh in range(3) for kw in range(3)],
            axis=-1)
        acc = jnp.dot(patch, w_ref[...], preferred_element_type=jnp.float32)

        raw_ref[...] = acc.reshape(1, th, w, tcout).astype(raw_ref.dtype)

        @pl.when(hi == 0)
        def _():
            s_ref[...] = jnp.zeros_like(s_ref)
            ss_ref[...] = jnp.zeros_like(ss_ref)

        s_ref[...] += jnp.sum(acc, axis=0).reshape(1, 1, tcout)
        ss_ref[...] += jnp.sum(acc * acc, axis=0).reshape(1, 1, tcout)

    in_specs = [
        # Full image per batch item stays resident; re-DMA'd only when ni
        # changes.  TODO(synk): row-band blocking with halo for huge images.
        pl.BlockSpec((1, h, w, cin), lambda ni, ci, hi: (ni, 0, 0, 0)),
        pl.BlockSpec((9 * cin, tcout), lambda ni, ci, hi: (0, ci)),
    ]
    args = [x, w2d]
    if pre:
        in_specs += [
            pl.BlockSpec((1, cin), lambda ni, ci, hi: (0, 0)),
            pl.BlockSpec((1, cin), lambda ni, ci, hi: (0, 0)),
        ]
        args += [pre_scale.reshape(1, cin).astype(jnp.float32),
                 pre_shift.reshape(1, cin).astype(jnp.float32)]

    raw, s, ss = pl.pallas_call(
        kernel,
        grid=grid,
        in_specs=in_specs,
        out_specs=(
            pl.BlockSpec((1, th, w, tcout), lambda ni, ci, hi: (ni, hi, 0, ci)),
            pl.BlockSpec((1, 1, tcout), lambda ni, ci, hi: (ni, 0, ci)),
            pl.BlockSpec((1, 1, tcout), lambda ni, ci, hi: (ni, 0, ci)),
        ),
        out_shape=(
            jax.ShapeDtypeStruct((n, h, w, cout), jnp.bfloat16),  # bf16 intermediate
            jax.ShapeDtypeStruct((n, 1, cout), jnp.float32),
            jax.ShapeDtypeStruct((n, 1, cout), jnp.float32),
        ),
        scratch_shapes=[pltpu.VMEM((th + 2, w + 2, cin), jnp.bfloat16)],
        compiler_params=pltpu.CompilerParams(
            # Per-batch partial stats -> the batch axis is megacore-shardable;
            # the stats blocks are revisited only along the (arbitrary) row axis.
            dimension_semantics=("parallel", "arbitrary", "arbitrary"),
            vmem_limit_bytes=_vmem_limit_bytes(),
        ),
    )(*args)
    return raw, s, ss


def _bn_scale_shift(s, ss, gamma, beta, count):
    """Fold training-mode BN (biased variance) into per-channel scale/shift.
    Per-batch partials from the conv pass are reduced here in plain JAX."""
    # TODO(synk): E[x^2]-E[x]^2 in f32 cancels for very large counts with
    # nonzero means; switch to a Welford-style combine of the partials then.
    total = jnp.sum(s, axis=(0, 1))
    total_sq = jnp.sum(ss, axis=(0, 1))
    mean = total / count
    var = total_sq / count - mean * mean
    scale = gamma * lax.rsqrt(var + _BN_EPS)
    shift = beta - mean * scale
    return scale, shift


# ---------------------------------------------------------------------------
# Epilogue: normalize + ReLU with the 2x2/stride-2 max-pool fused in.
# Consumes the bf16 raw conv output reshaped (free) to (N, H/2, 2, W/2, 2*C)
# so the four pool-window corners are reachable with static slices only.
# ---------------------------------------------------------------------------
def _norm_relu_pool(raw, scale, shift):
    n, h, w, c = raw.shape
    ho, wo = h // 2, w // 2
    raw_g = raw.reshape(n, ho, 2, wo, 2 * c)               # row-major, free
    sc2 = jnp.tile(scale, 2).reshape(1, 1, 1, 1, 2 * c).astype(jnp.float32)
    sh2 = jnp.tile(shift, 2).reshape(1, 1, 1, 1, 2 * c).astype(jnp.float32)
    bytes_per_row = 2 * wo * 2 * c * (2 + 2 * 4) + wo * c * 4 * 2
    tho = _pick_tile(ho, bytes_per_row, 8 * 1024 * 1024, cap=512)
    grid = (n, ho // tho)

    def kernel(r_ref, sc_ref, sh_ref, skip_ref, pool_ref):
        y = jnp.maximum(
            r_ref[...].astype(jnp.float32) * sc_ref[...] + sh_ref[...], 0.0)
        skip_ref[...] = y.astype(skip_ref.dtype)
        # H-corners live on the size-2 axis, W-corners in the two C-halves of
        # the last axis -> pool is two jnp.maximum of static slices.
        hmax = jnp.maximum(y[:, :, 0:1], y[:, :, 1:2])      # (1, tho, 1, wo, 2c)
        pool_ref[...] = jnp.maximum(hmax[..., :c], hmax[..., c:]).astype(pool_ref.dtype)

    skip_g, pooled = pl.pallas_call(
        kernel,
        grid=grid,
        in_specs=[
            pl.BlockSpec((1, tho, 2, wo, 2 * c), lambda ni, hi: (ni, hi, 0, 0, 0)),
            pl.BlockSpec((1, 1, 1, 1, 2 * c), lambda ni, hi: (0, 0, 0, 0, 0)),
            pl.BlockSpec((1, 1, 1, 1, 2 * c), lambda ni, hi: (0, 0, 0, 0, 0)),
        ],
        out_specs=(
            pl.BlockSpec((1, tho, 2, wo, 2 * c), lambda ni, hi: (ni, hi, 0, 0, 0)),
            pl.BlockSpec((1, tho, 1, wo, c), lambda ni, hi: (ni, hi, 0, 0, 0)),
        ),
        out_shape=(
            jax.ShapeDtypeStruct((n, ho, 2, wo, 2 * c), jnp.float32),
            jax.ShapeDtypeStruct((n, ho, 1, wo, c), jnp.float32),
        ),
        compiler_params=pltpu.CompilerParams(
            dimension_semantics=("parallel", "parallel"),
            vmem_limit_bytes=_vmem_limit_bytes(),
        ),
    )(raw_g, sc2, sh2)
    return skip_g.reshape(n, h, w, c), pooled.reshape(n, ho, wo, c)


# ---------------------------------------------------------------------------
# Wrappers
# ---------------------------------------------------------------------------
def _prep_weight(w_pt):
    """PyTorch (Cout, Cin, 3, 3) -> (9*Cin, Cout) bf16, row order (kh, kw, cin)."""
    cout, cin = w_pt.shape[0], w_pt.shape[1]
    return jnp.transpose(w_pt, (2, 3, 1, 0)).reshape(9 * cin, cout).astype(jnp.bfloat16)


def init_encoder_block_params(key, in_channels, out_channels):
    """Deterministic synthetic parameters matching the module's shapes."""
    k1, k2, k3, k4, k5, k6 = jax.random.split(key, 6)

    def conv_params(kw, kg, kb, cin, cout):
        return dict(
            w=jax.random.normal(kw, (cout, cin, 3, 3), jnp.float32) * 0.1,
            gamma=1.0 + 0.1 * jax.random.normal(kg, (cout,), jnp.float32),
            beta=0.1 * jax.random.normal(kb, (cout,), jnp.float32),
        )

    return (conv_params(k1, k2, k3, in_channels, out_channels),
            conv_params(k4, k5, k6, out_channels, out_channels))


@jax.jit
def encoder_block_forward(x_nchw, params):
    """EncoderBlock.forward: skip = ConvBlock(x); x = MaxPool2d(2,2)(skip)."""
    p1, p2 = params
    x = jnp.transpose(x_nchw, (0, 2, 3, 1)).astype(jnp.bfloat16)   # NCHW -> NHWC
    n, h, w, _ = x.shape
    assert h % 2 == 0 and w % 2 == 0, "MaxPool2d(2,2) fusion needs even H, W"
    c1, c2 = p1["w"].shape[0], p2["w"].shape[0]

    # Layer 1: conv + global BN stats (normalize/ReLU deferred into layer 2).
    raw1, s1, ss1 = _conv_stats(x, _prep_weight(p1["w"]), c1)
    scale1, shift1 = _bn_scale_shift(s1, ss1, p1["gamma"], p1["beta"], n * h * w)

    # Layer 2: conv consumes raw1 and fuses layer-1's BN+ReLU + zero padding
    # in-kernel, so the intermediate activation never round-trips HBM again.
    raw2, s2, ss2 = _conv_stats(raw1, _prep_weight(p2["w"]), c2,
                                pre_scale=scale1, pre_shift=shift1)
    scale2, shift2 = _bn_scale_shift(s2, ss2, p2["gamma"], p2["beta"], n * h * w)

    # Epilogue: normalize + ReLU + fused 2x2 max-pool (skip & pooled from one pass).
    skip, pooled = _norm_relu_pool(raw2, scale2, shift2)
    return (jnp.transpose(skip, (0, 3, 1, 2)),                     # back to NCHW
            jnp.transpose(pooled, (0, 3, 1, 2)))


# ---------------------------------------------------------------------------
# Pure-JAX f32 reference (for the correctness check only)
# ---------------------------------------------------------------------------
def _ref_forward(x_nchw, params):
    x = jnp.transpose(x_nchw, (0, 2, 3, 1)).astype(jnp.float32)
    for p in params:
        wt = jnp.transpose(p["w"], (2, 3, 1, 0))                   # HWIO
        y = lax.conv_general_dilated(
            x, wt, (1, 1), "SAME",
            dimension_numbers=("NHWC", "HWIO", "NHWC"))
        mean = jnp.mean(y, axis=(0, 1, 2), keepdims=True)
        var = jnp.mean((y - mean) ** 2, axis=(0, 1, 2), keepdims=True)
        y = (y - mean) * lax.rsqrt(var + _BN_EPS) * p["gamma"] + p["beta"]
        x = jnp.maximum(y, 0.0)
    n, h, w, c = x.shape
    pooled = x.reshape(n, h // 2, 2, w // 2, 2, c).max(axis=(2, 4))
    return jnp.transpose(x, (0, 3, 1, 2)), jnp.transpose(pooled, (0, 3, 1, 2))


if __name__ == "__main__":
    key = jax.random.PRNGKey(0)
    kx, kp = jax.random.split(key)

    in_channels, out_channels = 4, 8
    x = jax.random.normal(kx, (2, in_channels, 16, 16), jnp.float32)   # NCHW
    params = init_encoder_block_params(kp, in_channels, out_channels)

    skip, pooled = encoder_block_forward(x, params)
    jax.block_until_ready((skip, pooled))

    assert skip.shape == (2, out_channels, 16, 16)
    assert pooled.shape == (2, out_channels, 8, 8)

    ref_skip, ref_pooled = _ref_forward(x, params)
    # Tolerance accounts for bf16 MXU operands and the bf16 raw-intermediate
    # storage (all accumulation / BN / ReLU math is f32).
    assert jnp.allclose(skip, ref_skip, rtol=4e-2, atol=4e-2), \
        f"skip max err {jnp.max(jnp.abs(skip - ref_skip))}"
    assert jnp.allclose(pooled, ref_pooled, rtol=4e-2, atol=4e-2), \
        f"pooled max err {jnp.max(jnp.abs(pooled - ref_pooled))}"

    print("KERNEL_OK")
</pallas_src>

<mosaic_0001>
module attributes {stable_mosaic.version = 11 : i64} {
  func.func @kernel(%arg0: i32, %arg1: i32, %arg2: i32, %arg3: memref<1x16x16x8xbf16, #tpu.memory_space<vmem>>, %arg4: memref<72x8xbf16, #tpu.memory_space<vmem>>, %arg5: memref<1x8xf32, #tpu.memory_space<vmem>>, %arg6: memref<1x8xf32, #tpu.memory_space<vmem>>, %arg7: memref<1x16x16x8xbf16, #tpu.memory_space<vmem>>, %arg8: memref<1x1x8xf32, #tpu.memory_space<vmem>>, %arg9: memref<1x1x8xf32, #tpu.memory_space<vmem>>, %arg10: memref<18x18x8xbf16, #tpu.memory_space<vmem>>) attributes {dimension_semantics = [#tpu.dimension_semantics<parallel>, #tpu.dimension_semantics<arbitrary>, #tpu.dimension_semantics<arbitrary>], iteration_bounds = array<i64: 2, 1, 1>, scalar_prefetch = 0 : i64, scratch_operands = 1 : i64, tpu.core_type = #tpu.core_type<tc>, window_params = [{transform_indices = @transform_0, window_bounds = array<i64: 1, 16, 16, 8>}, {transform_indices = @transform_1, window_bounds = array<i64: 72, 8>}, {pipeline_mode = #tpu.pipeline_mode<synchronous>, transform_indices = @transform_2, window_bounds = array<i64: 1, 8>}, {pipeline_mode = #tpu.pipeline_mode<synchronous>, transform_indices = @transform_3, window_bounds = array<i64: 1, 8>}, {transform_indices = @transform_4, window_bounds = array<i64: 1, 16, 16, 8>}, {transform_indices = @transform_5, window_bounds = array<i64: 1, 1, 8>}, {transform_indices = @transform_6, window_bounds = array<i64: 1, 1, 8>}]} {
    %c16_i32 = arith.constant 16 : i32
    %0 = arith.muli %arg2, %c16_i32 : i32
    %1 = tpu.assume_multiple %0, 16 : i32
    %c0 = arith.constant 0 : index
    %c0_0 = arith.constant 0 : index
    %2 = vector.load %arg5[%c0, %c0_0] : memref<1x8xf32, #tpu.memory_space<vmem>>, vector<1x8xf32>
    %c0_1 = arith.constant 0 : index
    %c0_2 = arith.constant 0 : index
    %3 = vector.load %arg6[%c0_1, %c0_2] : memref<1x8xf32, #tpu.memory_space<vmem>>, vector<1x8xf32>
    %cst = arith.constant 0.000000e+00 : bf16
    %4 = vector.broadcast %cst : bf16 to vector<18x18x8xbf16>
    %c0_3 = arith.constant 0 : index
    %c0_4 = arith.constant 0 : index
    %c0_5 = arith.constant 0 : index
    %5 = vector.load %arg10[%c0_3, %c0_4, %c0_5] : memref<18x18x8xbf16, #tpu.memory_space<vmem>>, vector<18x18x8xbf16>
    tpu.vector_store %arg10[%c0_3, %c0_4, %c0_5], %4 {strides = array<i32>} : memref<18x18x8xbf16, #tpu.memory_space<vmem>>, vector<18x18x8xbf16>,
    %c0_6 = arith.constant 0 : index
    %6 = arith.index_cast %1 : i32 to index
    %c0_7 = arith.constant 0 : index
    %c0_8 = arith.constant 0 : index
    %7 = vector.load %arg3[%c0_6, %6, %c0_7, %c0_8] : memref<1x16x16x8xbf16, #tpu.memory_space<vmem>>, vector<1x16x16x8xbf16>
    %8 = vector.shape_cast %7 : vector<1x16x16x8xbf16> to vector<16x16x8xbf16>
    %9 = arith.extf %8 : vector<16x16x8xbf16> to vector<16x16x8xf32>
    %10 = vector.shape_cast %2 : vector<1x8xf32> to vector<1x1x8xf32>
    %11 = vector.broadcast %10 : vector<1x1x8xf32> to vector<16x16x8xf32>
    %12 = arith.mulf %9, %11 : vector<16x16x8xf32>
    %13 = vector.shape_cast %3 : vector<1x8xf32> to vector<1x1x8xf32>
    %14 = vector.broadcast %13 : vector<1x1x8xf32> to vector<16x16x8xf32>
    %15 = arith.addf %12, %14 : vector<16x16x8xf32>
    %cst_9 = arith.constant 0.000000e+00 : f32
    %16 = vector.broadcast %cst_9 : f32 to vector<16x16x8xf32>
    %17 = arith.maximumf %15, %16 : vector<16x16x8xf32>
    %18 = arith.truncf %17 : vector<16x16x8xf32> to vector<16x16x8xbf16>
    %c1 = arith.constant 1 : index
    %c1_10 = arith.constant 1 : index
    %c0_11 = arith.constant 0 : index
    %19 = vector.load %arg10[%c1, %c1_10, %c0_11] : memref<18x18x8xbf16, #tpu.memory_space<vmem>>, vector<16x16x8xbf16>
    tpu.vector_store %arg10[%c1, %c1_10, %c0_11], %18 {strides = array<i32>} : memref<18x18x8xbf16, #tpu.memory_space<vmem>>, vector<16x16x8xbf16>,
    %c0_i32 = arith.constant 0 : i32
    %20 = arith.cmpi sgt, %arg2, %c0_i32 : i32
    %21 = arith.extui %20 : i1 to i32
    %c0_i32_12 = arith.constant 0 : i32
    %22 = arith.cmpi ne, %21, %c0_i32_12 : i32
    scf.if %22 {
      %c1_i32 = arith.constant 1 : i32
      %64 = arith.subi %1, %c1_i32 : i32
      %c0_64 = arith.constant 0 : index
      %65 = arith.index_cast %64 : i32 to index
      %c0_65 = arith.constant 0 : index
      %c0_66 = arith.constant 0 : index
      %66 = vector.load %arg3[%c0_64, %65, %c0_65, %c0_66] : memref<1x16x16x8xbf16, #tpu.memory_space<vmem>>, vector<1x1x16x8xbf16>
      %67 = vector.shape_cast %66 : vector<1x1x16x8xbf16> to vector<1x16x8xbf16>
      %68 = arith.extf %67 : vector<1x16x8xbf16> to vector<1x16x8xf32>
      %69 = vector.shape_cast %2 : vector<1x8xf32> to vector<1x1x8xf32>
      %70 = vector.broadcast %69 : vector<1x1x8xf32> to vector<1x16x8xf32>
      %71 = arith.mulf %68, %70 : vector<1x16x8xf32>
      %72 = vector.shape_cast %3 : vector<1x8xf32> to vector<1x1x8xf32>
      %73 = vector.broadcast %72 : vector<1x1x8xf32> to vector<1x16x8xf32>
      %74 = arith.addf %71, %73 : vector<1x16x8xf32>
      %cst_67 = arith.constant 0.000000e+00 : f32
      %75 = vector.broadcast %cst_67 : f32 to vector<1x16x8xf32>
      %76 = arith.maximumf %74, %75 : vector<1x16x8xf32>
      %77 = arith.truncf %76 : vector<1x16x8xf32> to vector<1x16x8xbf16>
      %c0_68 = arith.constant 0 : index
      %c1_69 = arith.constant 1 : index
      %c0_70 = arith.constant 0 : index
      %78 = vector.load %arg10[%c0_68, %c1_69, %c0_70] : memref<18x18x8xbf16, #tpu.memory_space<vmem>>, vector<1x16x8xbf16>
      tpu.vector_store %arg10[%c0_68, %c1_69, %c0_70], %77 {strides = array<i32>} : memref<18x18x8xbf16, #tpu.memory_space<vmem>>, vector<1x16x8xbf16>,
    } else {
    }
    %c0_i32_13 = arith.constant 0 : i32
    %23 = arith.cmpi slt, %arg2, %c0_i32_13 : i32
    %24 = arith.extui %23 : i1 to i32
    %c0_i32_14 = arith.constant 0 : i32
    %25 = arith.cmpi ne, %24, %c0_i32_14 : i32
    scf.if %25 {
      %c16_i32_64 = arith.constant 16 : i32
      %64 = arith.addi %1, %c16_i32_64 : i32
      %c0_65 = arith.constant 0 : index
      %65 = arith.index_cast %64 : i32 to index
      %c0_66 = arith.constant 0 : index
      %c0_67 = arith.constant 0 : index
      %66 = vector.load %arg3[%c0_65, %65, %c0_66, %c0_67] : memref<1x16x16x8xbf16, #tpu.memory_space<vmem>>, vector<1x1x16x8xbf16>
      %67 = vector.shape_cast %66 : vector<1x1x16x8xbf16> to vector<1x16x8xbf16>
      %68 = arith.extf %67 : vector<1x16x8xbf16> to vector<1x16x8xf32>
      %69 = vector.shape_cast %2 : vector<1x8xf32> to vector<1x1x8xf32>
      %70 = vector.broadcast %69 : vector<1x1x8xf32> to vector<1x16x8xf32>
      %71 = arith.mulf %68, %70 : vector<1x16x8xf32>
      %72 = vector.shape_cast %3 : vector<1x8xf32> to vector<1x1x8xf32>
      %73 = vector.broadcast %72 : vector<1x1x8xf32> to vector<1x16x8xf32>
      %74 = arith.addf %71, %73 : vector<1x16x8xf32>
      %cst_68 = arith.constant 0.000000e+00 : f32
      %75 = vector.broadcast %cst_68 : f32 to vector<1x16x8xf32>
      %76 = arith.maximumf %74, %75 : vector<1x16x8xf32>
      %77 = arith.truncf %76 : vector<1x16x8xf32> to vector<1x16x8xbf16>
      %c17 = arith.constant 17 : index
      %c1_69 = arith.constant 1 : index
      %c0_70 = arith.constant 0 : index
      %78 = vector.load %arg10[%c17, %c1_69, %c0_70] : memref<18x18x8xbf16, #tpu.memory_space<vmem>>, vector<1x16x8xbf16>
      tpu.vector_store %arg10[%c17, %c1_69, %c0_70], %77 {strides = array<i32>} : memref<18x18x8xbf16, #tpu.memory_space<vmem>>, vector<1x16x8xbf16>,
    } else {
    }
    %c0_15 = arith.constant 0 : index
    %c0_16 = arith.constant 0 : index
    %c0_17 = arith.constant 0 : index
    %26 = vector.load %arg10[%c0_15, %c0_16, %c0_17] : memref<18x18x8xbf16, #tpu.memory_space<vmem>>, vector<16x16x8xbf16>
    %27 = vector.shape_cast %26 : vector<16x16x8xbf16> to vector<256x8xbf16>
    %c0_18 = arith.constant 0 : index
    %c1_19 = arith.constant 1 : index
    %c0_20 = arith.constant 0 : index
    %28 = vector.load %arg10[%c0_18, %c1_19, %c0_20] : memref<18x18x8xbf16, #tpu.memory_space<vmem>>, vector<16x16x8xbf16>
    %29 = vector.shape_cast %28 : vector<16x16x8xbf16> to vector<256x8xbf16>
    %c0_21 = arith.constant 0 : index
    %c2 = arith.constant 2 : index
    %c0_22 = arith.constant 0 : index
    %30 = vector.load %arg10[%c0_21, %c2, %c0_22] : memref<18x18x8xbf16, #tpu.memory_space<vmem>>, vector<16x16x8xbf16>
    %31 = vector.shape_cast %30 : vector<16x16x8xbf16> to vector<256x8xbf16>
    %c1_23 = arith.constant 1 : index
    %c0_24 = arith.constant 0 : index
    %c0_25 = arith.constant 0 : index
    %32 = vector.load %arg10[%c1_23, %c0_24, %c0_25] : memref<18x18x8xbf16, #tpu.memory_space<vmem>>, vector<16x16x8xbf16>
    %33 = vector.shape_cast %32 : vector<16x16x8xbf16> to vector<256x8xbf16>
    %c1_26 = arith.constant 1 : index
    %c1_27 = arith.constant 1 : index
    %c0_28 = arith.constant 0 : index
    %34 = vector.load %arg10[%c1_26, %c1_27, %c0_28] : memref<18x18x8xbf16, #tpu.memory_space<vmem>>, vector<16x16x8xbf16>
    %35 = vector.shape_cast %34 : vector<16x16x8xbf16> to vector<256x8xbf16>
    %c1_29 = arith.constant 1 : index
    %c2_30 = arith.constant 2 : index
    %c0_31 = arith.constant 0 : index
    %36 = vector.load %arg10[%c1_29, %c2_30, %c0_31] : memref<18x18x8xbf16, #tpu.memory_space<vmem>>, vector<16x16x8xbf16>
    %37 = vector.shape_cast %36 : vector<16x16x8xbf16> to vector<256x8xbf16>
    %c2_32 = arith.constant 2 : index
    %c0_33 = arith.constant 0 : index
    %c0_34 = arith.constant 0 : index
    %38 = vector.load %arg10[%c2_32, %c0_33, %c0_34] : memref<18x18x8xbf16, #tpu.memory_space<vmem>>, vector<16x16x8xbf16>
    %39 = vector.shape_cast %38 : vector<16x16x8xbf16> to vector<256x8xbf16>
    %c2_35 = arith.constant 2 : index
    %c1_36 = arith.constant 1 : index
    %c0_37 = arith.constant 0 : index
    %40 = vector.load %arg10[%c2_35, %c1_36, %c0_37] : memref<18x18x8xbf16, #tpu.memory_space<vmem>>, vector<16x16x8xbf16>
    %41 = vector.shape_cast %40 : vector<16x16x8xbf16> to vector<256x8xbf16>
    %c2_38 = arith.constant 2 : index
    %c2_39 = arith.constant 2 : index
    %c0_40 = arith.constant 0 : index
    %42 = vector.load %arg10[%c2_38, %c2_39, %c0_40] : memref<18x18x8xbf16, #tpu.memory_space<vmem>>, vector<16x16x8xbf16>
    %43 = vector.shape_cast %42 : vector<16x16x8xbf16> to vector<256x8xbf16>
    %44 = tpu.concatenate %27, %29, %31, %33, %35, %37, %39, %41, %43 in 1 : vector<256x8xbf16>, vector<256x8xbf16>, vector<256x8xbf16>, vector<256x8xbf16>, vector<256x8xbf16>, vector<256x8xbf16>, vector<256x8xbf16>, vector<256x8xbf16>, vector<256x8xbf16> -> vector<256x72xbf16>
    %c0_41 = arith.constant 0 : index
    %c0_42 = arith.constant 0 : index
    %45 = vector.load %arg4[%c0_41, %c0_42] : memref<72x8xbf16, #tpu.memory_space<vmem>>, vector<72x8xbf16>
    %cst_43 = arith.constant dense<0.000000e+00> : vector<256x8xf32>
    %46 = tpu.matmul %44, %45, %cst_43 {dimension_numbers = #tpu.dot_dimension_numbers<[1], [0], [0], [1], [0, 0, 1, 1], [], []>} : vector<256x72xbf16>, vector<72x8xbf16>, vector<256x8xf32> -> vector<256x8xf32>
    %47 = vector.shape_cast %46 : vector<256x8xf32> to vector<1x16x16x8xf32>
    %48 = arith.truncf %47 : vector<1x16x16x8xf32> to vector<1x16x16x8xbf16>
    %c0_44 = arith.constant 0 : index
    %c0_45 = arith.constant 0 : index
    %c0_46 = arith.constant 0 : index
    %c0_47 = arith.constant 0 : index
    %49 = vector.load %arg7[%c0_44, %c0_45, %c0_46, %c0_47] : memref<1x16x16x8xbf16, #tpu.memory_space<vmem>>, vector<1x16x16x8xbf16>
    tpu.vector_store %arg7[%c0_44, %c0_45, %c0_46, %c0_47], %48 {strides = array<i32>} : memref<1x16x16x8xbf16, #tpu.memory_space<vmem>>, vector<1x16x16x8xbf16>,
    %c0_i32_48 = arith.constant 0 : i32
    %50 = arith.cmpi eq, %arg2, %c0_i32_48 : i32
    %51 = arith.extui %50 : i1 to i32
    %c0_i32_49 = arith.constant 0 : i32
    %52 = arith.cmpi ne, %51, %c0_i32_49 : i32
    scf.if %52 {
      %cst_64 = arith.constant 0.000000e+00 : f32
      %64 = vector.broadcast %cst_64 : f32 to vector<1x1x8xf32>
      %c0_65 = arith.constant 0 : index
      %c0_66 = arith.constant 0 : index
      %c0_67 = arith.constant 0 : index
      %65 = vector.load %arg8[%c0_65, %c0_66, %c0_67] : memref<1x1x8xf32, #tpu.memory_space<vmem>>, vector<1x1x8xf32>
      tpu.vector_store %arg8[%c0_65, %c0_66, %c0_67], %64 {strides = array<i32>} : memref<1x1x8xf32, #tpu.memory_space<vmem>>, vector<1x1x8xf32>,
      %cst_68 = arith.constant 0.000000e+00 : f32
      %66 = vector.broadcast %cst_68 : f32 to vector<1x1x8xf32>
      %c0_69 = arith.constant 0 : index
      %c0_70 = arith.constant 0 : index
      %c0_71 = arith.constant 0 : index
      %67 = vector.load %arg9[%c0_69, %c0_70, %c0_71] : memref<1x1x8xf32, #tpu.memory_space<vmem>>, vector<1x1x8xf32>
      tpu.vector_store %arg9[%c0_69, %c0_70, %c0_71], %66 {strides = array<i32>} : memref<1x1x8xf32, #tpu.memory_space<vmem>>, vector<1x1x8xf32>,
    } else {
    }
    %c0_50 = arith.constant 0 : index
    %c0_51 = arith.constant 0 : index
    %c0_52 = arith.constant 0 : index
    %53 = vector.load %arg8[%c0_50, %c0_51, %c0_52] : memref<1x1x8xf32, #tpu.memory_space<vmem>>, vector<1x1x8xf32>
    %cst_53 = arith.constant dense<0.000000e+00> : vector<8xf32>
    %54 = vector.multi_reduction <add>, %46, %cst_53 [0] : vector<256x8xf32> to vector<8xf32>
    %55 = vector.shape_cast %54 : vector<8xf32> to vector<1x1x8xf32>
    %56 = arith.addf %53, %55 : vector<1x1x8xf32>
    %c0_54 = arith.constant 0 : index
    %c0_55 = arith.constant 0 : index
    %c0_56 = arith.constant 0 : index
    %57 = vector.load %arg8[%c0_54, %c0_55, %c0_56] : memref<1x1x8xf32, #tpu.memory_space<vmem>>, vector<1x1x8xf32>
    tpu.vector_store %arg8[%c0_54, %c0_55, %c0_56], %56 {strides = array<i32>} : memref<1x1x8xf32, #tpu.memory_space<vmem>>, vector<1x1x8xf32>,
    %c0_57 = arith.constant 0 : index
    %c0_58 = arith.constant 0 : index
    %c0_59 = arith.constant 0 : index
    %58 = vector.load %arg9[%c0_57, %c0_58, %c0_59] : memref<1x1x8xf32, #tpu.memory_space<vmem>>, vector<1x1x8xf32>
    %59 = arith.mulf %46, %46 : vector<256x8xf32>
    %cst_60 = arith.constant dense<0.000000e+00> : vector<8xf32>
    %60 = vector.multi_reduction <add>, %59, %cst_60 [0] : vector<256x8xf32> to vector<8xf32>
    %61 = vector.shape_cast %60 : vector<8xf32> to vector<1x1x8xf32>
    %62 = arith.addf %58, %61 : vector<1x1x8xf32>
    %c0_61 = arith.constant 0 : index
    %c0_62 = arith.constant 0 : index
    %c0_63 = arith.constant 0 : index
    %63 = vector.load %arg9[%c0_61, %c0_62, %c0_63] : memref<1x1x8xf32, #tpu.memory_space<vmem>>, vector<1x1x8xf32>
    tpu.vector_store %arg9[%c0_61, %c0_62, %c0_63], %62 {strides = array<i32>} : memref<1x1x8xf32, #tpu.memory_space<vmem>>, vector<1x1x8xf32>,
    return
  }
  func.func @transform_0(%arg0: i32, %arg1: i32, %arg2: i32) -> (i32, i32, i32, i32) {
    %c0_i32 = arith.constant 0 : i32
    %c0_i32_0 = arith.constant 0 : i32
    %c0_i32_1 = arith.constant 0 : i32
    %c0_i32_2 = arith.constant 0 : i32
    return %arg0, %c0_i32, %c0_i32_0, %c0_i32_1 : i32, i32, i32, i32
  }
  func.func @transform_1(%arg0: i32, %arg1: i32, %arg2: i32) -> (i32, i32) {
    %c0_i32 = arith.constant 0 : i32
    %c0_i32_0 = arith.constant 0 : i32
    return %c0_i32, %arg1 : i32, i32
  }
  func.func @transform_2(%arg0: i32, %arg1: i32, %arg2: i32) -> (i32, i32) {
    %c0_i32 = arith.constant 0 : i32
    %c0_i32_0 = arith.constant 0 : i32
    %c0_i32_1 = arith.constant 0 : i32
    return %c0_i32, %c0_i32_0 : i32, i32
  }
  func.func @transform_3(%arg0: i32, %arg1: i32, %arg2: i32) -> (i32, i32) {
    %c0_i32 = arith.constant 0 : i32
    %c0_i32_0 = arith.constant 0 : i32
    %c0_i32_1 = arith.constant 0 : i32
    return %c0_i32, %c0_i32_0 : i32, i32
  }
  func.func @transform_4(%arg0: i32, %arg1: i32, %arg2: i32) -> (i32, i32, i32, i32) {
    %c0_i32 = arith.constant 0 : i32
    %c0_i32_0 = arith.constant 0 : i32
    return %arg0, %arg2, %c0_i32, %arg1 : i32, i32, i32, i32
  }
  func.func @transform_5(%arg0: i32, %arg1: i32, %arg2: i32) -> (i32, i32, i32) {
    %c0_i32 = arith.constant 0 : i32
    %c0_i32_0 = arith.constant 0 : i32
    return %arg0, %c0_i32, %arg1 : i32, i32, i32
  }
  func.func @transform_6(%arg0: i32, %arg1: i32, %arg2: i32) -> (i32, i32, i32) {
    %c0_i32 = arith.constant 0 : i32
    %c0_i32_0 = arith.constant 0 : i32
    return %arg0, %c0_i32, %arg1 : i32, i32, i32
  }
}

module attributes {stable_mosaic.version = 11 : i64} {
  func.func @kernel(%arg0: i32, %arg1: i32, %arg2: i32, %arg3: memref<1x16x16x4xbf16, #tpu.memory_space<vmem>>, %arg4: memref<36x8xbf16, #tpu.memory_space<vmem>>, %arg5: memref<1x16x16x8xbf16, #tpu.memory_space<vmem>>, %arg6: memref<1x1x8xf32, #tpu.memory_space<vmem>>, %arg7: memref<1x1x8xf32, #tpu.memory_space<vmem>>, %arg8: memref<18x18x4xbf16, #tpu.memory_space<vmem>>) attributes {dimension_semantics = [#tpu.dimension_semantics<parallel>, #tpu.dimension_semantics<arbitrary>, #tpu.dimension_semantics<arbitrary>], iteration_bounds = array<i64: 2, 1, 1>, scalar_prefetch = 0 : i64, scratch_operands = 1 : i64, tpu.core_type = #tpu.core_type<tc>, window_params = [{transform_indices = @transform_0, window_bounds = array<i64: 1, 16, 16, 4>}, {transform_indices = @transform_1, window_bounds = array<i64: 36, 8>}, {transform_indices = @transform_2, window_bounds = array<i64: 1, 16, 16, 8>}, {transform_indices = @transform_3, window_bounds = array<i64: 1, 1, 8>}, {transform_indices = @transform_4, window_bounds = array<i64: 1, 1, 8>}]} {
    %c16_i32 = arith.constant 16 : i32
    %0 = arith.muli %arg2, %c16_i32 : i32
    %1 = tpu.assume_multiple %0, 16 : i32
    %cst = arith.constant 0.000000e+00 : bf16
    %2 = vector.broadcast %cst : bf16 to vector<18x18x4xbf16>
    %c0 = arith.constant 0 : index
    %c0_0 = arith.constant 0 : index
    %c0_1 = arith.constant 0 : index
    %3 = vector.load %arg8[%c0, %c0_0, %c0_1] : memref<18x18x4xbf16, #tpu.memory_space<vmem>>, vector<18x18x4xbf16>
    tpu.vector_store %arg8[%c0, %c0_0, %c0_1], %2 {strides = array<i32>} : memref<18x18x4xbf16, #tpu.memory_space<vmem>>, vector<18x18x4xbf16>,
    %c0_2 = arith.constant 0 : index
    %4 = arith.index_cast %1 : i32 to index
    %c0_3 = arith.constant 0 : index
    %c0_4 = arith.constant 0 : index
    %5 = vector.load %arg3[%c0_2, %4, %c0_3, %c0_4] : memref<1x16x16x4xbf16, #tpu.memory_space<vmem>>, vector<1x16x16x4xbf16>
    %6 = vector.shape_cast %5 : vector<1x16x16x4xbf16> to vector<16x16x4xbf16>
    %c1 = arith.constant 1 : index
    %c1_5 = arith.constant 1 : index
    %c0_6 = arith.constant 0 : index
    %7 = vector.load %arg8[%c1, %c1_5, %c0_6] : memref<18x18x4xbf16, #tpu.memory_space<vmem>>, vector<16x16x4xbf16>
    tpu.vector_store %arg8[%c1, %c1_5, %c0_6], %6 {strides = array<i32>} : memref<18x18x4xbf16, #tpu.memory_space<vmem>>, vector<16x16x4xbf16>,
    %c0_i32 = arith.constant 0 : i32
    %8 = arith.cmpi sgt, %arg2, %c0_i32 : i32
    %9 = arith.extui %8 : i1 to i32
    %c0_i32_7 = arith.constant 0 : i32
    %10 = arith.cmpi ne, %9, %c0_i32_7 : i32
    scf.if %10 {
      %c1_i32 = arith.constant 1 : i32
      %52 = arith.subi %1, %c1_i32 : i32
      %c0_59 = arith.constant 0 : index
      %53 = arith.index_cast %52 : i32 to index
      %c0_60 = arith.constant 0 : index
      %c0_61 = arith.constant 0 : index
      %54 = vector.load %arg3[%c0_59, %53, %c0_60, %c0_61] : memref<1x16x16x4xbf16, #tpu.memory_space<vmem>>, vector<1x1x16x4xbf16>
      %55 = vector.shape_cast %54 : vector<1x1x16x4xbf16> to vector<1x16x4xbf16>
      %c0_62 = arith.constant 0 : index
      %c1_63 = arith.constant 1 : index
      %c0_64 = arith.constant 0 : index
      %56 = vector.load %arg8[%c0_62, %c1_63, %c0_64] : memref<18x18x4xbf16, #tpu.memory_space<vmem>>, vector<1x16x4xbf16>
      tpu.vector_store %arg8[%c0_62, %c1_63, %c0_64], %55 {strides = array<i32>} : memref<18x18x4xbf16, #tpu.memory_space<vmem>>, vector<1x16x4xbf16>,
    } else {
    }
    %c0_i32_8 = arith.constant 0 : i32
    %11 = arith.cmpi slt, %arg2, %c0_i32_8 : i32
    %12 = arith.extui %11 : i1 to i32
    %c0_i32_9 = arith.constant 0 : i32
    %13 = arith.cmpi ne, %12, %c0_i32_9 : i32
    scf.if %13 {
      %c16_i32_59 = arith.constant 16 : i32
      %52 = arith.addi %1, %c16_i32_59 : i32
      %c0_60 = arith.constant 0 : index
      %53 = arith.index_cast %52 : i32 to index
      %c0_61 = arith.constant 0 : index
      %c0_62 = arith.constant 0 : index
      %54 = vector.load %arg3[%c0_60, %53, %c0_61, %c0_62] : memref<1x16x16x4xbf16, #tpu.memory_space<vmem>>, vector<1x1x16x4xbf16>
      %55 = vector.shape_cast %54 : vector<1x1x16x4xbf16> to vector<1x16x4xbf16>
      %c17 = arith.constant 17 : index
      %c1_63 = arith.constant 1 : index
      %c0_64 = arith.constant 0 : index
      %56 = vector.load %arg8[%c17, %c1_63, %c0_64] : memref<18x18x4xbf16, #tpu.memory_space<vmem>>, vector<1x16x4xbf16>
      tpu.vector_store %arg8[%c17, %c1_63, %c0_64], %55 {strides = array<i32>} : memref<18x18x4xbf16, #tpu.memory_space<vmem>>, vector<1x16x4xbf16>,
    } else {
    }
    %c0_10 = arith.constant 0 : index
    %c0_11 = arith.constant 0 : index
    %c0_12 = arith.constant 0 : index
    %14 = vector.load %arg8[%c0_10, %c0_11, %c0_12] : memref<18x18x4xbf16, #tpu.memory_space<vmem>>, vector<16x16x4xbf16>
    %15 = vector.shape_cast %14 : vector<16x16x4xbf16> to vector<256x4xbf16>
    %c0_13 = arith.constant 0 : index
    %c1_14 = arith.constant 1 : index
    %c0_15 = arith.constant 0 : index
    %16 = vector.load %arg8[%c0_13, %c1_14, %c0_15] : memref<18x18x4xbf16, #tpu.memory_space<vmem>>, vector<16x16x4xbf16>
    %17 = vector.shape_cast %16 : vector<16x16x4xbf16> to vector<256x4xbf16>
    %c0_16 = arith.constant 0 : index
    %c2 = arith.constant 2 : index
    %c0_17 = arith.constant 0 : index
    %18 = vector.load %arg8[%c0_16, %c2, %c0_17] : memref<18x18x4xbf16, #tpu.memory_space<vmem>>, vector<16x16x4xbf16>
    %19 = vector.shape_cast %18 : vector<16x16x4xbf16> to vector<256x4xbf16>
    %c1_18 = arith.constant 1 : index
    %c0_19 = arith.constant 0 : index
    %c0_20 = arith.constant 0 : index
    %20 = vector.load %arg8[%c1_18, %c0_19, %c0_20] : memref<18x18x4xbf16, #tpu.memory_space<vmem>>, vector<16x16x4xbf16>
    %21 = vector.shape_cast %20 : vector<16x16x4xbf16> to vector<256x4xbf16>
    %c1_21 = arith.constant 1 : index
    %c1_22 = arith.constant 1 : index
    %c0_23 = arith.constant 0 : index
    %22 = vector.load %arg8[%c1_21, %c1_22, %c0_23] : memref<18x18x4xbf16, #tpu.memory_space<vmem>>, vector<16x16x4xbf16>
    %23 = vector.shape_cast %22 : vector<16x16x4xbf16> to vector<256x4xbf16>
    %c1_24 = arith.constant 1 : index
    %c2_25 = arith.constant 2 : index
    %c0_26 = arith.constant 0 : index
    %24 = vector.load %arg8[%c1_24, %c2_25, %c0_26] : memref<18x18x4xbf16, #tpu.memory_space<vmem>>, vector<16x16x4xbf16>
    %25 = vector.shape_cast %24 : vector<16x16x4xbf16> to vector<256x4xbf16>
    %c2_27 = arith.constant 2 : index
    %c0_28 = arith.constant 0 : index
    %c0_29 = arith.constant 0 : index
    %26 = vector.load %arg8[%c2_27, %c0_28, %c0_29] : memref<18x18x4xbf16, #tpu.memory_space<vmem>>, vector<16x16x4xbf16>
    %27 = vector.shape_cast %26 : vector<16x16x4xbf16> to vector<256x4xbf16>
    %c2_30 = arith.constant 2 : index
    %c1_31 = arith.constant 1 : index
    %c0_32 = arith.constant 0 : index
    %28 = vector.load %arg8[%c2_30, %c1_31, %c0_32] : memref<18x18x4xbf16, #tpu.memory_space<vmem>>, vector<16x16x4xbf16>
    %29 = vector.shape_cast %28 : vector<16x16x4xbf16> to vector<256x4xbf16>
    %c2_33 = arith.constant 2 : index
    %c2_34 = arith.constant 2 : index
    %c0_35 = arith.constant 0 : index
    %30 = vector.load %arg8[%c2_33, %c2_34, %c0_35] : memref<18x18x4xbf16, #tpu.memory_space<vmem>>, vector<16x16x4xbf16>
    %31 = vector.shape_cast %30 : vector<16x16x4xbf16> to vector<256x4xbf16>
    %32 = tpu.concatenate %15, %17, %19, %21, %23, %25, %27, %29, %31 in 1 : vector<256x4xbf16>, vector<256x4xbf16>, vector<256x4xbf16>, vector<256x4xbf16>, vector<256x4xbf16>, vector<256x4xbf16>, vector<256x4xbf16>, vector<256x4xbf16>, vector<256x4xbf16> -> vector<256x36xbf16>
    %c0_36 = arith.constant 0 : index
    %c0_37 = arith.constant 0 : index
    %33 = vector.load %arg4[%c0_36, %c0_37] : memref<36x8xbf16, #tpu.memory_space<vmem>>, vector<36x8xbf16>
    %cst_38 = arith.constant dense<0.000000e+00> : vector<256x8xf32>
    %34 = tpu.matmul %32, %33, %cst_38 {dimension_numbers = #tpu.dot_dimension_numbers<[1], [0], [0], [1], [0, 0, 1, 1], [], []>} : vector<256x36xbf16>, vector<36x8xbf16>, vector<256x8xf32> -> vector<256x8xf32>
    %35 = vector.shape_cast %34 : vector<256x8xf32> to vector<1x16x16x8xf32>
    %36 = arith.truncf %35 : vector<1x16x16x8xf32> to vector<1x16x16x8xbf16>
    %c0_39 = arith.constant 0 : index
    %c0_40 = arith.constant 0 : index
    %c0_41 = arith.constant 0 : index
    %c0_42 = arith.constant 0 : index
    %37 = vector.load %arg5[%c0_39, %c0_40, %c0_41, %c0_42] : memref<1x16x16x8xbf16, #tpu.memory_space<vmem>>, vector<1x16x16x8xbf16>
    tpu.vector_store %arg5[%c0_39, %c0_40, %c0_41, %c0_42], %36 {strides = array<i32>} : memref<1x16x16x8xbf16, #tpu.memory_space<vmem>>, vector<1x16x16x8xbf16>,
    %c0_i32_43 = arith.constant 0 : i32
    %38 = arith.cmpi eq, %arg2, %c0_i32_43 : i32
    %39 = arith.extui %38 : i1 to i32
    %c0_i32_44 = arith.constant 0 : i32
    %40 = arith.cmpi ne, %39, %c0_i32_44 : i32
    scf.if %40 {
      %cst_59 = arith.constant 0.000000e+00 : f32
      %52 = vector.broadcast %cst_59 : f32 to vector<1x1x8xf32>
      %c0_60 = arith.constant 0 : index
      %c0_61 = arith.constant 0 : index
      %c0_62 = arith.constant 0 : index
      %53 = vector.load %arg6[%c0_60, %c0_61, %c0_62] : memref<1x1x8xf32, #tpu.memory_space<vmem>>, vector<1x1x8xf32>
      tpu.vector_store %arg6[%c0_60, %c0_61, %c0_62], %52 {strides = array<i32>} : memref<1x1x8xf32, #tpu.memory_space<vmem>>, vector<1x1x8xf32>,
      %cst_63 = arith.constant 0.000000e+00 : f32
      %54 = vector.broadcast %cst_63 : f32 to vector<1x1x8xf32>
      %c0_64 = arith.constant 0 : index
      %c0_65 = arith.constant 0 : index
      %c0_66 = arith.constant 0 : index
      %55 = vector.load %arg7[%c0_64, %c0_65, %c0_66] : memref<1x1x8xf32, #tpu.memory_space<vmem>>, vector<1x1x8xf32>
      tpu.vector_store %arg7[%c0_64, %c0_65, %c0_66], %54 {strides = array<i32>} : memref<1x1x8xf32, #tpu.memory_space<vmem>>, vector<1x1x8xf32>,
    } else {
    }
    %c0_45 = arith.constant 0 : index
    %c0_46 = arith.constant 0 : index
    %c0_47 = arith.constant 0 : index
    %41 = vector.load %arg6[%c0_45, %c0_46, %c0_47] : memref<1x1x8xf32, #tpu.memory_space<vmem>>, vector<1x1x8xf32>
    %cst_48 = arith.constant dense<0.000000e+00> : vector<8xf32>
    %42 = vector.multi_reduction <add>, %34, %cst_48 [0] : vector<256x8xf32> to vector<8xf32>
    %43 = vector.shape_cast %42 : vector<8xf32> to vector<1x1x8xf32>
    %44 = arith.addf %41, %43 : vector<1x1x8xf32>
    %c0_49 = arith.constant 0 : index
    %c0_50 = arith.constant 0 : index
    %c0_51 = arith.constant 0 : index
    %45 = vector.load %arg6[%c0_49, %c0_50, %c0_51] : memref<1x1x8xf32, #tpu.memory_space<vmem>>, vector<1x1x8xf32>
    tpu.vector_store %arg6[%c0_49, %c0_50, %c0_51], %44 {strides = array<i32>} : memref<1x1x8xf32, #tpu.memory_space<vmem>>, vector<1x1x8xf32>,
    %c0_52 = arith.constant 0 : index
    %c0_53 = arith.constant 0 : index
    %c0_54 = arith.constant 0 : index
    %46 = vector.load %arg7[%c0_52, %c0_53, %c0_54] : memref<1x1x8xf32, #tpu.memory_space<vmem>>, vector<1x1x8xf32>
    %47 = arith.mulf %34, %34 : vector<256x8xf32>
    %cst_55 = arith.constant dense<0.000000e+00> : vector<8xf32>
    %48 = vector.multi_reduction <add>, %47, %cst_55 [0] : vector<256x8xf32> to vector<8xf32>
    %49 = vector.shape_cast %48 : vector<8xf32> to vector<1x1x8xf32>
    %50 = arith.addf %46, %49 : vector<1x1x8xf32>
    %c0_56 = arith.constant 0 : index
    %c0_57 = arith.constant 0 : index
    %c0_58 = arith.constant 0 : index
    %51 = vector.load %arg7[%c0_56, %c0_57, %c0_58] : memref<1x1x8xf32, #tpu.memory_space<vmem>>, vector<1x1x8xf32>
    tpu.vector_store %arg7[%c0_56, %c0_57, %c0_58], %50 {strides = array<i32>} : memref<1x1x8xf32, #tpu.memory_space<vmem>>, vector<1x1x8xf32>,
    return
  }
  func.func @transform_0(%arg0: i32, %arg1: i32, %arg2: i32) -> (i32, i32, i32, i32) {
    %c0_i32 = arith.constant 0 : i32
    %c0_i32_0 = arith.constant 0 : i32
    %c0_i32_1 = arith.constant 0 : i32
    %c0_i32_2 = arith.constant 0 : i32
    return %arg0, %c0_i32, %c0_i32_0, %c0_i32_1 : i32, i32, i32, i32
  }
  func.func @transform_1(%arg0: i32, %arg1: i32, %arg2: i32) -> (i32, i32) {
    %c0_i32 = arith.constant 0 : i32
    %c0_i32_0 = arith.constant 0 : i32
    return %c0_i32, %arg1 : i32, i32
  }
  func.func @transform_2(%arg0: i32, %arg1: i32, %arg2: i32) -> (i32, i32, i32, i32) {
    %c0_i32 = arith.constant 0 : i32
    %c0_i32_0 = arith.constant 0 : i32
    return %arg0, %arg2, %c0_i32, %arg1 : i32, i32, i32, i32
  }
  func.func @transform_3(%arg0: i32, %arg1: i32, %arg2: i32) -> (i32, i32, i32) {
    %c0_i32 = arith.constant 0 : i32
    %c0_i32_0 = arith.constant 0 : i32
    return %arg0, %c0_i32, %arg1 : i32, i32, i32
  }
  func.func @transform_4(%arg0: i32, %arg1: i32, %arg2: i32) -> (i32, i32, i32) {
    %c0_i32 = arith.constant 0 : i32
    %c0_i32_0 = arith.constant 0 : i32
    return %arg0, %c0_i32, %arg1 : i32, i32, i32
  }
}

module attributes {stable_mosaic.version = 11 : i64} {
  func.func @kernel(%arg0: i32, %arg1: i32, %arg2: memref<1x8x2x8x16xbf16, #tpu.memory_space<vmem>>, %arg3: memref<1x1x1x1x16xf32, #tpu.memory_space<vmem>>, %arg4: memref<1x1x1x1x16xf32, #tpu.memory_space<vmem>>, %arg5: memref<1x8x2x8x16xf32, #tpu.memory_space<vmem>>, %arg6: memref<1x8x1x8x8xf32, #tpu.memory_space<vmem>>) attributes {dimension_semantics = [#tpu.dimension_semantics<parallel>, #tpu.dimension_semantics<parallel>], iteration_bounds = array<i64: 2, 1>, scalar_prefetch = 0 : i64, scratch_operands = 0 : i64, tpu.core_type = #tpu.core_type<tc>, window_params = [{transform_indices = @transform_0, window_bounds = array<i64: 1, 8, 2, 8, 16>}, {pipeline_mode = #tpu.pipeline_mode<synchronous>, transform_indices = @transform_1, window_bounds = array<i64: 1, 1, 1, 1, 16>}, {pipeline_mode = #tpu.pipeline_mode<synchronous>, transform_indices = @transform_2, window_bounds = array<i64: 1, 1, 1, 1, 16>}, {transform_indices = @transform_3, window_bounds = array<i64: 1, 8, 2, 8, 16>}, {transform_indices = @transform_4, window_bounds = array<i64: 1, 8, 1, 8, 8>}]} {
    %c0 = arith.constant 0 : index
    %c0_0 = arith.constant 0 : index
    %c0_1 = arith.constant 0 : index
    %c0_2 = arith.constant 0 : index
    %c0_3 = arith.constant 0 : index
    %0 = vector.load %arg2[%c0, %c0_0, %c0_1, %c0_2, %c0_3] : memref<1x8x2x8x16xbf16, #tpu.memory_space<vmem>>, vector<1x8x2x8x16xbf16>
    %1 = arith.extf %0 : vector<1x8x2x8x16xbf16> to vector<1x8x2x8x16xf32>
    %c0_4 = arith.constant 0 : index
    %c0_5 = arith.constant 0 : index
    %c0_6 = arith.constant 0 : index
    %c0_7 = arith.constant 0 : index
    %c0_8 = arith.constant 0 : index
    %2 = vector.load %arg3[%c0_4, %c0_5, %c0_6, %c0_7, %c0_8] : memref<1x1x1x1x16xf32, #tpu.memory_space<vmem>>, vector<1x1x1x1x16xf32>
    %3 = vector.broadcast %2 : vector<1x1x1x1x16xf32> to vector<1x8x2x8x16xf32>
    %4 = arith.mulf %1, %3 : vector<1x8x2x8x16xf32>
    %c0_9 = arith.constant 0 : index
    %c0_10 = arith.constant 0 : index
    %c0_11 = arith.constant 0 : index
    %c0_12 = arith.constant 0 : index
    %c0_13 = arith.constant 0 : index
    %5 = vector.load %arg4[%c0_9, %c0_10, %c0_11, %c0_12, %c0_13] : memref<1x1x1x1x16xf32, #tpu.memory_space<vmem>>, vector<1x1x1x1x16xf32>
    %6 = vector.broadcast %5 : vector<1x1x1x1x16xf32> to vector<1x8x2x8x16xf32>
    %7 = arith.addf %4, %6 : vector<1x8x2x8x16xf32>
    %cst = arith.constant 0.000000e+00 : f32
    %8 = vector.broadcast %cst : f32 to vector<1x8x2x8x16xf32>
    %9 = arith.maximumf %7, %8 : vector<1x8x2x8x16xf32>
    %c0_14 = arith.constant 0 : index
    %c0_15 = arith.constant 0 : index
    %c0_16 = arith.constant 0 : index
    %c0_17 = arith.constant 0 : index
    %c0_18 = arith.constant 0 : index
    %10 = vector.load %arg5[%c0_14, %c0_15, %c0_16, %c0_17, %c0_18] : memref<1x8x2x8x16xf32, #tpu.memory_space<vmem>>, vector<1x8x2x8x16xf32>
    tpu.vector_store %arg5[%c0_14, %c0_15, %c0_16, %c0_17, %c0_18], %9 {strides = array<i32>} : memref<1x8x2x8x16xf32, #tpu.memory_space<vmem>>, vector<1x8x2x8x16xf32>,
    %11 = vector.extract_strided_slice %9 {offsets = [0, 0, 0, 0, 0], sizes = [1, 8, 1, 8, 16], strides = [1, 1, 1, 1, 1]} : vector<1x8x2x8x16xf32> to vector<1x8x1x8x16xf32>
    %12 = vector.extract_strided_slice %9 {offsets = [0, 0, 1, 0, 0], sizes = [1, 8, 1, 8, 16], strides = [1, 1, 1, 1, 1]} : vector<1x8x2x8x16xf32> to vector<1x8x1x8x16xf32>
    %13 = arith.maximumf %11, %12 : vector<1x8x1x8x16xf32>
    %14 = vector.extract_strided_slice %13 {offsets = [0, 0, 0, 0, 0], sizes = [1, 8, 1, 8, 8], strides = [1, 1, 1, 1, 1]} : vector<1x8x1x8x16xf32> to vector<1x8x1x8x8xf32>
    %15 = vector.extract_strided_slice %13 {offsets = [0, 0, 0, 0, 8], sizes = [1, 8, 1, 8, 8], strides = [1, 1, 1, 1, 1]} : vector<1x8x1x8x16xf32> to vector<1x8x1x8x8xf32>
    %16 = arith.maximumf %14, %15 : vector<1x8x1x8x8xf32>
    %c0_19 = arith.constant 0 : index
    %c0_20 = arith.constant 0 : index
    %c0_21 = arith.constant 0 : index
    %c0_22 = arith.constant 0 : index
    %c0_23 = arith.constant 0 : index
    %17 = vector.load %arg6[%c0_19, %c0_20, %c0_21, %c0_22, %c0_23] : memref<1x8x1x8x8xf32, #tpu.memory_space<vmem>>, vector<1x8x1x8x8xf32>
    tpu.vector_store %arg6[%c0_19, %c0_20, %c0_21, %c0_22, %c0_23], %16 {strides = array<i32>} : memref<1x8x1x8x8xf32, #tpu.memory_space<vmem>>, vector<1x8x1x8x8xf32>,
    return
  }
  func.func @transform_0(%arg0: i32, %arg1: i32) -> (i32, i32, i32, i32, i32) {
    %c0_i32 = arith.constant 0 : i32
    %c0_i32_0 = arith.constant 0 : i32
    %c0_i32_1 = arith.constant 0 : i32
    %c0_i32_2 = arith.constant 0 : i32
    return %arg0, %arg1, %c0_i32, %c0_i32_0, %c0_i32_1 : i32, i32, i32, i32, i32
  }
  func.func @transform_1(%arg0: i32, %arg1: i32) -> (i32, i32, i32, i32, i32) {
    %c0_i32 = arith.constant 0 : i32
    %c0_i32_0 = arith.constant 0 : i32
    %c0_i32_1 = arith.constant 0 : i32
    %c0_i32_2 = arith.constant 0 : i32
    %c0_i32_3 = arith.constant 0 : i32
    %c0_i32_4 = arith.constant 0 : i32
    return %c0_i32, %c0_i32_0, %c0_i32_1, %c0_i32_2, %c0_i32_3 : i32, i32, i32, i32, i32
  }
  func.func @transform_2(%arg0: i32, %arg1: i32) -> (i32, i32, i32, i32, i32) {
    %c0_i32 = arith.constant 0 : i32
    %c0_i32_0 = arith.constant 0 : i32
    %c0_i32_1 = arith.constant 0 : i32
    %c0_i32_2 = arith.constant 0 : i32
    %c0_i32_3 = arith.constant 0 : i32
    %c0_i32_4 = arith.constant 0 : i32
    return %c0_i32, %c0_i32_0, %c0_i32_1, %c0_i32_2, %c0_i32_3 : i32, i32, i32, i32, i32
  }
  func.func @transform_3(%arg0: i32, %arg1: i32) -> (i32, i32, i32, i32, i32) {
    %c0_i32 = arith.constant 0 : i32
    %c0_i32_0 = arith.constant 0 : i32
    %c0_i32_1 = arith.constant 0 : i32
    %c0_i32_2 = arith.constant 0 : i32
    return %arg0, %arg1, %c0_i32, %c0_i32_0, %c0_i32_1 : i32, i32, i32, i32, i32
  }
  func.func @transform_4(%arg0: i32, %arg1: i32) -> (i32, i32, i32, i32, i32) {
    %c0_i32 = arith.constant 0 : i32
    %c0_i32_0 = arith.constant 0 : i32
    %c0_i32_1 = arith.constant 0 : i32
    %c0_i32_2 = arith.constant 0 : i32
    return %arg0, %arg1, %c0_i32, %c0_i32_0, %c0_i32_1 : i32, i32, i32, i32, i32
  }
}

</mosaic_0001>

<bundles_post_ra>
// kernel: tile.18
= control target key start
LH: loop header
LB: loop body
LE: loop exit
PB: predicated region body
PF: predicated region fallthrough
CT: control target
= control target key end

     0   :  { %s22_s0 = inlined_call_operand.vmem [shape: f32[8], index: 0, kind: input, shape index: {}]   ;;  %s23_s1 = inlined_call_operand.vmem [shape: f32[2,8], index: 1, kind: output, shape index: {}]  }
   0x1   :  { %v4_v0 = vld [vmem:[%s22_s0] ss:$0 sm:$0xff] }
   0x2   :  { %5 = vst [vmem:[%s23_s1] sm:$0x3] %v4_v0 }

// kernel: tile.19
= control target key start
LH: loop header
LB: loop body
LE: loop exit
PB: predicated region body
PF: predicated region fallthrough
CT: control target
= control target key end

     0   :  { %vm7_vm0 = vcmask 64512   ;;  %vm13_vm1 = vcmask 130112   ;;  %s39_s0 = inlined_call_operand.vmem [shape: f32[2,8], index: 0, kind: input, shape index: {}]   ;;  %s40_s1 = inlined_call_operand.vmem [shape: f32[1,1,1,1,16], index: 1, kind: output, shape index: {}]  }
   0x1   :  { %v4_v0 = vld [vmem:[%s39_s0] sm:$0x3]  ;;  %s22_s0 = smov 8  }
   0x2   :  { %5 = vst [vmem:[#allocation1] sm:$0x3] %v4_v0 }
   0x9   :  { %v10_v1 = vld [vmem:[#allocation1 + $0x1] sm:$0x1]   ;;  %v6_v2 = vld [vmem:[#allocation1] sm:$0x1]  }
   0xa   :  { %11 = vrot.lane.b32.xlu0 %v10_v1, %s22_s0  ;;  %8 = vst.msk [vmem:[#allocation0] sm:$0x1] %vm7_vm0, %v6_v2  }
  0x7c   :  { %v12_v3 = vpop.permute.xlu0 %11  }
  0x7d   :  { %14 = vst.msk [vmem:[#allocation0] sm:$0x1] %vm13_vm1, %v12_v3  }
  0x84   :  { %v18_v4 = vld [vmem:[#allocation0] sm:$0x1] }
  0x85   :  { %20 = vst [vmem:[%s40_s1] sm:$0x1] %v18_v4 }

// kernel: encoder_block_forward.5
= control target key start
LH: loop header
LB: loop body
LE: loop exit
PB: predicated region body
PF: predicated region fallthrough
CT: control target
= control target key end

     0   :  { %s712_s15 = smov 0   ;;  %s714_s16 = smov 0   ;;  %s874_s0 = inlined_call_operand.vmem [shape: bf16[2,8,2,8,16], index: 0, kind: input, shape index: {}]   ;;  %s875_s1 = inlined_call_operand.vmem [shape: f32[1,1,1,1,16], index: 1, kind: input, shape index: {}]   ;;  %s876_s2 = inlined_call_operand.vmem [shape: f32[1,1,1,1,16], index: 2, kind: input, shape index: {}]   ;;  %s877_s3 = inlined_call_operand.vmem [shape: f32[2,8,2,8,16], index: 3, kind: output, shape index: {0}]   ;;  %s878_s4 = inlined_call_operand.vmem [shape: f32[2,8,1,8,8], index: 4, kind: output, shape index: {1}]  }
   0x1   :  { %s716_s17 = smov 0  }
   0x2 LB: > { %s27_s18 = sadd.s32 1, %s680_s16  ;;  %p584_p0 = scmp.ge.s32.totalorder %s684_s17, 1  ;;  %s684_s17 = sphi %s716_s17, %s15_s17   ;;  %s680_s16 = sphi %s714_s16, %s880_s16   ;;  %s676_s15 = sphi %s712_s15, %s879_s15  }
   0x3   : > { %p29_p1 = scmp.ge.s32.totalorder %s27_s18, 2  ;;  %p189_p2 = scmp.lt.s32.totalorder %s684_s17, 3 }
   0x5   : > { %s882_s18 = smov (%p29_p1, %s27_s18), 0  ;;  %p190_p3 = pnand %p584_p0, %p189_p2 }
   0x6   : > { %p235_p4 = scmp.lt.s32.totalorder (!%p190_p3), %s676_s15, 1  ;;  %v743_v0 = vld [vmem:[%s875_s1] ss:$0 sm:$0xff] (!%p190_p3)  ;;  %vm360_vm0 = vcmask (!%p190_p3), 130048   ;;  %s686_s5 = smov (!%p190_p3), 120   ;;  %vm425_vm1 = vcmask (!%p190_p3), 64512  }
   0x7   : > { %193 = sbr.rel (%p190_p3) target bundleno = 159 (0x9f), region = 32  ;;  %v752_v9 = vld [vmem:[%s876_s2] ss:$0 sm:$0xff] (!%p190_p3) }
   0xe   : > { %s884_s15 = smov (!%p235_p4, %s676_s15), 1 }
   0xf   : > { %s595_s19 = sshll.u32 %s884_s15, 6  ;;  %s596_s27 = sshll.u32 %s884_s15, 7 }
  0x10   : > { %s738_s22 = scalar_lea.vmem %s874_s0, %s595_s19  ;;  %s770_s30 = scalar_lea.vmem %s877_s3, %s596_s27 }
  0x11   : > { %v631_v1 = vld [vmem:[%s738_s22 + $0x10] sm:$0xff]   ;;  %v599_v2 = vld [vmem:[%s738_s22] sm:$0xff]   ;;  %v632_v3 = vld [vmem:[%s738_s22 + $0x18] sm:$0xff]   ;;  %s264_s8 = scalar_lea.vmem %s878_s4, %s595_s19 }
  0x12   : > { %v608_v4 = vunpack.c.l.bf16 %v631_v1  ;;  %v609_v5 = vunpack.c.h.bf16 %v631_v1  ;;  %v600_v6 = vunpack.c.l.bf16 %v599_v2  ;;  %v601_v7 = vunpack.c.h.bf16 %v599_v2  ;;  %v630_v8 = vld [vmem:[%s738_s22 + $0x8] sm:$0xff]   ;;  %v633_v35 = vld [vmem:[%s738_s22 + $0x20] sm:$0xff]   ;;  %v636_v40 = vld [vmem:[%s738_s22 + $0x38] sm:$0xff]  }
  0x13   : > { %v612_v10 = vunpack.c.l.bf16 %v632_v3  ;;  %v613_v11 = vunpack.c.h.bf16 %v632_v3  ;;  %v604_v12 = vunpack.c.l.bf16 %v630_v8  ;;  %v605_v13 = vunpack.c.h.bf16 %v630_v8  ;;  %v634_v30 = vld [vmem:[%s738_s22 + $0x28] sm:$0xff]   ;;  %v635_v45 = vld [vmem:[%s738_s22 + $0x30] sm:$0xff]  }
  0x14   : > { %v309_v14 = vmul.f32 %v608_v4, %v743_v0  ;;  %v310_v15 = vmul.f32 %v609_v5, %v743_v0  ;;  %v305_v16 = vmul.f32 %v600_v6, %v743_v0  ;;  %v306_v17 = vmul.f32 %v601_v7, %v743_v0 }
  0x15   : > { %v311_v18 = vmul.f32 %v612_v10, %v743_v0  ;;  %v312_v19 = vmul.f32 %v613_v11, %v743_v0  ;;  %v307_v20 = vmul.f32 %v604_v12, %v743_v0  ;;  %v308_v21 = vmul.f32 %v605_v13, %v743_v0 }
  0x16   : > { %v332_v22 = vadd.f32 %v752_v9, %v309_v14  ;;  %v333_v23 = vadd.f32 %v752_v9, %v310_v15  ;;  %v328_v24 = vadd.f32 %v752_v9, %v305_v16  ;;  %v329_v25 = vadd.f32 %v752_v9, %v306_v17 }
  0x17   : > { %v334_v26 = vadd.f32 %v752_v9, %v311_v18  ;;  %v335_v27 = vadd.f32 %v752_v9, %v312_v19  ;;  %v330_v28 = vadd.f32 %v752_v9, %v307_v20  ;;  %v331_v29 = vadd.f32 %v752_v9, %v308_v21 }
  0x18   : > { %v348_v31 = vmax.f32 %v332_v22, 0.0  ;;  %v349_v32 = vmax.f32 %v333_v23, 0.0  ;;  %v344_v33 = vmax.f32 %v328_v24, 0.0  ;;  %v345_v34 = vmax.f32 %v329_v25, 0.0 }
  0x19   : > { %v350_v36 = vmax.f32 %v334_v26, 0.0  ;;  %v351_v37 = vmax.f32 %v335_v27, 0.0  ;;  %v346_v38 = vmax.f32 %v330_v28, 0.0  ;;  %v347_v39 = vmax.f32 %v331_v29, 0.0 }
  0x1a   : > { %366 = vst.msk [vmem:[%s770_s30 + $0x28] sm:$0xff] %vm360_vm0, %v349_v32  ;;  %v781_v41 = vmax.f32 %v348_v31, %v349_v32  ;;  %365 = vst.msk [vmem:[%s770_s30 + $0x20] sm:$0xff] %vm360_vm0, %v348_v31  ;;  %v787_v42 = vmax.f32 %v344_v33, %v345_v34  ;;  %v620_v43 = vunpack.c.l.bf16 %v634_v30  ;;  %v621_v44 = vunpack.c.h.bf16 %v634_v30 }
  0x1b   : > { %362 = vst.msk [vmem:[%s770_s30 + $0x8] sm:$0xff] %vm360_vm0, %v345_v34  ;;  %361 = vst.msk [vmem:[%s770_s30] sm:$0xff] %vm360_vm0, %v344_v33  ;;  %v796_v46 = vmax.f32 %v350_v36, %v351_v37  ;;  %v802_v47 = vmax.f32 %v346_v38, %v347_v39  ;;  %v616_v48 = vunpack.c.l.bf16 %v633_v35  ;;  %v617_v49 = vunpack.c.h.bf16 %v633_v35 }
  0x1c   : > { %367 = vst.msk [vmem:[%s770_s30 + $0x30] sm:$0xff] %vm360_vm0, %v350_v36  ;;  %368 = vst.msk [vmem:[%s770_s30 + $0x38] sm:$0xff] %vm360_vm0, %v351_v37  ;;  %397 = vrot.lane.b32.xlu1 %v781_v41, %s686_s5  ;;  %393 = vrot.lane.b32.xlu0 %v787_v42, %s686_s5  ;;  %v315_v50 = vmul.f32 %v620_v43, %v743_v0  ;;  %v316_v51 = vmul.f32 %v621_v44, %v743_v0  ;;  %v628_v52 = vunpack.c.l.bf16 %v636_v40 }
  0x1d   : > { %363 = vst.msk [vmem:[%s770_s30 + $0x10] sm:$0xff] %vm360_vm0, %v346_v38  ;;  %364 = vst.msk [vmem:[%s770_s30 + $0x18] sm:$0xff] %vm360_vm0, %v347_v39  ;;  %v629_v53 = vunpack.c.h.bf16 %v636_v40  ;;  %v313_v54 = vmul.f32 %v616_v48, %v743_v0  ;;  %v314_v55 = vmul.f32 %v617_v49, %v743_v0  ;;  %v624_v56 = vunpack.c.l.bf16 %v635_v45 }
  0x1e   : > { %v625_v57 = vunpack.c.h.bf16 %v635_v45  ;;  %v338_v58 = vadd.f32 %v752_v9, %v315_v50  ;;  %v339_v59 = vadd.f32 %v752_v9, %v316_v51  ;;  %v319_v60 = vmul.f32 %v628_v52, %v743_v0 }
  0x1f   : > { %v320_v61 = vmul.f32 %v629_v53, %v743_v0  ;;  %v336_v62 = vadd.f32 %v752_v9, %v313_v54  ;;  %v337_v63 = vadd.f32 %v752_v9, %v314_v55  ;;  %v317_v1 = vmul.f32 %v624_v56, %v743_v0 }
  0x20   : > { %v318_v2 = vmul.f32 %v625_v57, %v743_v0  ;;  %399 = vrot.lane.b32.xlu1 %v796_v46, %s686_s5  ;;  %395 = vrot.lane.b32.xlu0 %v802_v47, %s686_s5  ;;  %v354_v3 = vmax.f32 %v338_v58, 0.0  ;;  %v355_v4 = vmax.f32 %v339_v59, 0.0  ;;  %v342_v5 = vadd.f32 %v752_v9, %v319_v60 }
  0x21   : > { %v343_v6 = vadd.f32 %v752_v9, %v320_v61  ;;  %v352_v7 = vmax.f32 %v336_v62, 0.0  ;;  %v353_v8 = vmax.f32 %v337_v63, 0.0  ;;  %v340_v0 = vadd.f32 %v752_v9, %v317_v1 }
  0x22   : > { %v341_v10 = vadd.f32 %v752_v9, %v318_v2  ;;  %371 = vst.msk [vmem:[%s770_s30 + $0x50] sm:$0xff] %vm360_vm0, %v354_v3  ;;  %372 = vst.msk [vmem:[%s770_s30 + $0x58] sm:$0xff] %vm360_vm0, %v355_v4  ;;  %v382_v11 = vmax.f32 %v354_v3, %v355_v4  ;;  %v358_v12 = vmax.f32 %v342_v5, 0.0 }
  0x23   : > { %v359_v13 = vmax.f32 %v343_v6, 0.0  ;;  %369 = vst.msk [vmem:[%s770_s30 + $0x40] sm:$0xff] %vm360_vm0, %v352_v7  ;;  %370 = vst.msk [vmem:[%s770_s30 + $0x48] sm:$0xff] %vm360_vm0, %v353_v8  ;;  %v381_v14 = vmax.f32 %v352_v7, %v353_v8  ;;  %v356_v15 = vmax.f32 %v340_v0, 0.0 }
  0x24   : > { %v357_v16 = vmax.f32 %v341_v10, 0.0  ;;  %403 = vrot.lane.b32.xlu1 %v382_v11, %s686_s5  ;;  %375 = vst.msk [vmem:[%s770_s30 + $0x70] sm:$0xff] %vm360_vm0, %v358_v12 }
  0x25   : > { %376 = vst.msk [vmem:[%s770_s30 + $0x78] sm:$0xff] %vm360_vm0, %v359_v13  ;;  %v384_v9 = vmax.f32 %v358_v12, %v359_v13  ;;  %401 = vrot.lane.b32.xlu0 %v381_v14, %s686_s5  ;;  %373 = vst.msk [vmem:[%s770_s30 + $0x60] sm:$0xff] %vm360_vm0, %v356_v15 }
  0x26   : > { %374 = vst.msk [vmem:[%s770_s30 + $0x68] sm:$0xff] %vm360_vm0, %v357_v16  ;;  %v383_v17 = vmax.f32 %v356_v15, %v357_v16 }
  0x28   : > { %407 = vrot.lane.b32.xlu1 %v384_v9, %s686_s5 }
  0x29   : > { %405 = vrot.lane.b32.xlu0 %v383_v17, %s686_s5 }
  0x8e   : > { %v398_v18 = vpop.permute.xlu1 %397  ;;  %v394_v19 = vpop.permute.xlu0 %393 }
  0x8f   : > { %v419_v20 = vmax.f32 %v781_v41, %v398_v18  ;;  %v417_v21 = vmax.f32 %v787_v42, %v394_v19 }
  0x91   : > { %428 = vst.msk [vmem:[%s264_s8 + $0x10] sm:$0xff] %vm425_vm1, %v419_v20  ;;  %426 = vst.msk [vmem:[%s264_s8] sm:$0xff] %vm425_vm1, %v417_v21 }
  0x92   : > { %v400_v22 = vpop.permute.xlu1 %399  ;;  %v396_v23 = vpop.permute.xlu0 %395 }
  0x93   : > { %v420_v24 = vmax.f32 %v796_v46, %v400_v22  ;;  %v418_v25 = vmax.f32 %v802_v47, %v396_v23 }
  0x95   : > { %429 = vst.msk [vmem:[%s264_s8 + $0x18] sm:$0xff] %vm425_vm1, %v420_v24  ;;  %427 = vst.msk [vmem:[%s264_s8 + $0x8] sm:$0xff] %vm425_vm1, %v418_v25 }
  0x96   : > { %v404_v26 = vpop.permute.xlu1 %403 }
  0x97   : > { %v422_v27 = vmax.f32 %v382_v11, %v404_v26  ;;  %v402_v28 = vpop.permute.xlu0 %401 }
  0x98   : > { %v421_v29 = vmax.f32 %v381_v14, %v402_v28 }
  0x99   : > { %431 = vst.msk [vmem:[%s264_s8 + $0x28] sm:$0xff] %vm425_vm1, %v422_v27 }
  0x9a   : > { %430 = vst.msk [vmem:[%s264_s8 + $0x20] sm:$0xff] %vm425_vm1, %v421_v29  ;;  %v408_v30 = vpop.permute.xlu1 %407 }
  0x9b   : > { %v424_v31 = vmax.f32 %v384_v9, %v408_v30  ;;  %v406_v32 = vpop.permute.xlu0 %405 }
  0x9c   : > { %v423_v33 = vmax.f32 %v383_v17, %v406_v32 }
  0x9d   : > { %433 = vst.msk [vmem:[%s264_s8 + $0x38] sm:$0xff] %vm425_vm1, %v424_v31 }
  0x9e   : > { %432 = vst.msk [vmem:[%s264_s8 + $0x30] sm:$0xff] %vm425_vm1, %v423_v33 }
  0x9f PF: > { %s15_s17 = sadd.s32 1, %s684_s17   ;;  %s879_s15 = smov %s680_s16 }
  0xa0   : > { %p12_p5 = scmp.ge.s32.totalorder %s15_s17, 4   ;;  %s880_s16 = smov %s882_s18 }
  0xa2   :  { %14 = sbr.rel (!%p12_p5) target bundleno = 2 (0x2), region = 74 }

// kernel: encoder_block_forward.3
= control target key start
LH: loop header
LB: loop body
LE: loop exit
PB: predicated region body
PF: predicated region fallthrough
CT: control target
= control target key end

     0   :  { %s5010_s15 = smov 0   ;;  %s5012_s16 = smov 0   ;;  %s6835_s0 = inlined_call_operand.vmem [shape: bf16[2,16,16,4], index: 0, kind: input, shape index: {}]   ;;  %s6836_s1 = inlined_call_operand.vmem [shape: bf16[36,8], index: 1, kind: input, shape index: {}]   ;;  %s6837_s2 = inlined_call_operand.vmem [shape: bf16[2,16,16,8], index: 2, kind: output, shape index: {0}]   ;;  %s6838_s3 = inlined_call_operand.vmem [shape: f32[2,1,8], index: 3, kind: output, shape index: {1}]   ;;  %s6839_s4 = inlined_call_operand.vmem [shape: f32[2,1,8], index: 4, kind: output, shape index: {2}]  }
   0x1   :  { %s5014_s17 = smov 0  }
   0x2 LB: > { %s34_s18 = sadd.s32 1, %s4969_s16  ;;  %p4505_p0 = scmp.ge.s32.totalorder %s4973_s17, 1  ;;  %s4973_s17 = sphi %s5014_s17, %s15_s17   ;;  %s4969_s16 = sphi %s5012_s16, %s6854_s16   ;;  %s4965_s15 = sphi %s5010_s15, %s6853_s15  }
   0x3   : > { %p36_p1 = scmp.ge.s32.totalorder %s34_s18, 2  ;;  %p203_p2 = scmp.lt.s32.totalorder %s4973_s17, 3 }
   0x5   : > { %s6856_s18 = smov (%p36_p1, %s34_s18), 0  ;;  %p204_p3 = pnand %p4505_p0, %p203_p2 }
   0x6   : > { %vm290_vm0 = vcmask (!%p204_p3), 27648   ;;  %vm293_vm1 = vcmask (!%p204_p3), 24576   ;;  %v4975_v0 = vmov (!%p204_p3), 0   ;;  %p253_p4 = scmp.lt.s32.totalorder (!%p204_p3), %s4965_s15, 1  ;;  %vm1396_vm2 = vcmask (!%p204_p3), 1042432   ;;  %s4976_s23 = smov (!%p204_p3), 8  }
   0x7   : > { %207 = sbr.rel (%p204_p3) target bundleno = 768 (0x300), region = 28  ;;  %291 = vst.msk [vmem:[#allocation2] sm:$0xf] (!%p204_p3), %vm290_vm0, %v4975_v0  ;;  %292 = vst.msk [vmem:[#allocation2 + $0x4] sm:$0xf] (!%p204_p3), %vm290_vm0, %v4975_v0  ;;  %vm1397_vm3 = vcmask (!%p204_p3), 1046532  }
   0x8   : > { %294 = vst.msk [vmem:[#allocation2 + $0x8] sm:$0x1] (!%p204_p3), %vm293_vm1, %v4975_v0  ;;  %297 = vst.msk [vmem:[#allocation2 + $0x14] sm:$0x1] (!%p204_p3), %vm293_vm1, %v4975_v0  ;;  %vm945_vm4 = vsmask.f32 (!%p204_p3), 3328 }
   0x9   : > { %295 = vst.msk [vmem:[#allocation2 + $0xc] sm:$0xf] (!%p204_p3), %vm290_vm0, %v4975_v0  ;;  %296 = vst.msk [vmem:[#allocation2 + $0x10] sm:$0xf] (!%p204_p3), %vm290_vm0, %v4975_v0  ;;  %vm946_vm5 = vsmask.f32 (!%p204_p3), 7440 }
   0xa   : > { %298 = vst.msk [vmem:[#allocation2 + $0x18] sm:$0xf] (!%p204_p3), %vm290_vm0, %v4975_v0  ;;  %299 = vst.msk [vmem:[#allocation2 + $0x1c] sm:$0xf] (!%p204_p3), %vm290_vm0, %v4975_v0  ;;  %vm381_vm6 = vsmask.f32 (!%p204_p3), 256 }
   0xb   : > { %300 = vst.msk [vmem:[#allocation2 + $0x20] sm:$0x1] (!%p204_p3), %vm293_vm1, %v4975_v0  ;;  %303 = vst.msk [vmem:[#allocation2 + $0x2c] sm:$0x1] (!%p204_p3), %vm293_vm1, %v4975_v0  ;;  %vm382_vm8 = vsmask.f32 (!%p204_p3), 4368 }
   0xc   : > { %301 = vst.msk [vmem:[#allocation2 + $0x24] sm:$0xf] (!%p204_p3), %vm290_vm0, %v4975_v0  ;;  %302 = vst.msk [vmem:[#allocation2 + $0x28] sm:$0xf] (!%p204_p3), %vm290_vm0, %v4975_v0  ;;  %vm706_vm9 = vsmask.f32 (!%p204_p3), 7938 }
   0xd   : > { %304 = vst.msk [vmem:[#allocation2 + $0x30] sm:$0xf] (!%p204_p3), %vm290_vm0, %v4975_v0  ;;  %305 = vst.msk [vmem:[#allocation2 + $0x34] sm:$0xf] (!%p204_p3), %vm290_vm0, %v4975_v0  ;;  %s4977_s24 = smov (!%p204_p3), 4   ;;  %s4978_s25 = smov (!%p204_p3), 12  }
   0xe   : > { %306 = vst.msk [vmem:[#allocation2 + $0x38] sm:$0x1] %vm293_vm1, %v4975_v0  ;;  %309 = vst.msk [vmem:[#allocation2 + $0x44] sm:$0x1] %vm293_vm1, %v4975_v0  ;;  %s6858_s15 = smov (!%p253_p4, %s4965_s15), 1  ;;  %s4979_s26 = smov 24  }
   0xf   : > { %307 = vst.msk [vmem:[#allocation2 + $0x3c] sm:$0xf] %vm290_vm0, %v4975_v0  ;;  %308 = vst.msk [vmem:[#allocation2 + $0x40] sm:$0xf] %vm290_vm0, %v4975_v0  ;;  %s4759_s19 = sshll.u32 %s6858_s15, 7  ;;  %s4980_s27 = smov 20  }
  0x10   : > { %310 = vst.msk [vmem:[#allocation2 + $0x48] sm:$0xf] %vm290_vm0, %v4975_v0  ;;  %311 = vst.msk [vmem:[#allocation2 + $0x4c] sm:$0xf] %vm290_vm0, %v4975_v0  ;;  %s5094_s22 = scalar_lea.vmem %s6835_s0, %s4759_s19  ;;  %v898_v3 = vld [vmem:[#allocation2 + $0x4] sm:$0xf]  ;;  %s6632_s13 = scalar_lea.vmem %s6837_s2, %s4759_s19 }
  0x11   : > { %312 = vst.msk [vmem:[#allocation2 + $0x50] sm:$0x1] %vm293_vm1, %v4975_v0  ;;  %315 = vst.msk [vmem:[#allocation2 + $0x5c] sm:$0x1] %vm293_vm1, %v4975_v0  ;;  %v351_v2 = vld [vmem:[%s5094_s22 + $0x8] sm:$0xf]  ;;  %s6744_s20 = scalar_lea.vmem %s6838_s3, %s6858_s15 }
  0x12   : > { %313 = vst.msk [vmem:[#allocation2 + $0x54] sm:$0xf] %vm290_vm0, %v4975_v0  ;;  %314 = vst.msk [vmem:[#allocation2 + $0x58] sm:$0xf] %vm290_vm0, %v4975_v0  ;;  %v929_v4 = vld [vmem:[#allocation2 + $0x8] sm:$0x1] }
  0x13   : > { %316 = vst.msk [vmem:[#allocation2 + $0x60] sm:$0xf] %vm290_vm0, %v4975_v0  ;;  %317 = vst.msk [vmem:[#allocation2 + $0x64] sm:$0xf] %vm290_vm0, %v4975_v0  ;;  %v1332_v5 = vld [vmem:[#allocation2] sm:$0xe] }
  0x14   : > { %318 = vst.msk [vmem:[#allocation2 + $0x68] sm:$0x1] %vm293_vm1, %v4975_v0  ;;  %321 = vst.msk [vmem:[#allocation2 + $0x74] sm:$0x1] %vm293_vm1, %v4975_v0  ;;  %v4514_v6 = vrot.slane %v1332_v5, 9  ;;  %v1401_v7 = vrot.slane %v898_v3, 5 }
  0x15   : > { %319 = vst.msk [vmem:[#allocation2 + $0x6c] sm:$0xf] %vm290_vm0, %v4975_v0  ;;  %320 = vst.msk [vmem:[#allocation2 + $0x70] sm:$0xf] %vm290_vm0, %v4975_v0  ;;  %v1404_v8 = vrot.slane %v929_v4, 5  ;;  %v958_v10 = vshll.u32 %v898_v3, 16 }
  0x16   : > { %322 = vst.msk [vmem:[#allocation2 + $0x78] sm:$0xf] %vm290_vm0, %v4975_v0  ;;  %323 = vst.msk [vmem:[#allocation2 + $0x7c] sm:$0xf] %vm290_vm0, %v4975_v0  ;;  %v897_v9 = vld [vmem:[#allocation2] sm:$0xf] }
  0x17   : > { %324 = vst.msk [vmem:[#allocation2 + $0x80] sm:$0x1] %vm293_vm1, %v4975_v0  ;;  %327 = vst.msk [vmem:[#allocation2 + $0x8c] sm:$0x1] %vm293_vm1, %v4975_v0  ;;  %v949_v11 = vshrl.u32 %v897_v9, 16  ;;  %v952_v12 = vshll.u32 %v897_v9, 16 }
  0x18   : > { %325 = vst.msk [vmem:[#allocation2 + $0x84] sm:$0xf] %vm290_vm0, %v4975_v0  ;;  %326 = vst.msk [vmem:[#allocation2 + $0x88] sm:$0xf] %vm290_vm0, %v4975_v0  ;;  %v962_v13 = vshrl.u32 %v898_v3, 16  ;;  %v968_v14 = vshll.u32 %v929_v4, 16 }
  0x19   : > { %328 = vst.msk [vmem:[#allocation2 + $0x90] sm:$0xf] %vm290_vm0, %v4975_v0  ;;  %329 = vst.msk [vmem:[#allocation2 + $0x94] sm:$0xf] %vm290_vm0, %v4975_v0  ;;  %v352_v15 = vld [vmem:[%s5094_s22 + $0xc] sm:$0xf] }
  0x1a   : > { %330 = vst.msk [vmem:[#allocation2 + $0x98] sm:$0x1] %vm293_vm1, %v4975_v0  ;;  %333 = vst.msk [vmem:[#allocation2 + $0xa4] sm:$0x1] %vm293_vm1, %v4975_v0  ;;  %v1403_v17 = vrot.slane %v1401_v7, 4  ;;  %v960_v18 = vrot.slane %v958_v10, 5 }
  0x1b   : > { %331 = vst.msk [vmem:[#allocation2 + $0x9c] sm:$0xf] %vm290_vm0, %v4975_v0  ;;  %332 = vst.msk [vmem:[#allocation2 + $0xa0] sm:$0xf] %vm290_vm0, %v4975_v0  ;;  %v402_v19 = vshrl.u32 %v351_v2, 16  ;;  %v951_v20 = vrot.slane %v949_v11, 4 }
  0x1c   : > { %334 = vst.msk [vmem:[#allocation2 + $0xa8] sm:$0xf] %vm290_vm0, %v4975_v0  ;;  %335 = vst.msk [vmem:[#allocation2 + $0xac] sm:$0xf] %vm290_vm0, %v4975_v0  ;;  %v954_v21 = vrot.slane %v952_v12, 5  ;;  %v964_v22 = vrot.slane %v962_v13, 4 }
  0x1d   : > { %336 = vst.msk [vmem:[#allocation2 + $0xb0] sm:$0x1] %vm293_vm1, %v4975_v0  ;;  %339 = vst.msk [vmem:[#allocation2 + $0xbc] sm:$0x1] %vm293_vm1, %v4975_v0  ;;  %v970_v23 = vrot.slane %v968_v14, 5  ;;  %v404_v26 = vrot.slane %v402_v19, 7 }
  0x1e   : > { %337 = vst.msk [vmem:[#allocation2 + $0xb4] sm:$0xf] %vm290_vm0, %v4975_v0  ;;  %338 = vst.msk [vmem:[#allocation2 + $0xb8] sm:$0xf] %vm290_vm0, %v4975_v0  ;;  %v349_v24 = vld [vmem:[%s5094_s22] sm:$0xf]  ;;  %v955_v31 = vor.u32 %v954_v21, %v951_v20  ;;  %v965_v32 = vor.u32 %v964_v22, %v960_v18 }
  0x1f   : > { %340 = vst.msk [vmem:[#allocation2 + $0xc0] sm:$0xf] %vm290_vm0, %v4975_v0  ;;  %341 = vst.msk [vmem:[#allocation2 + $0xc4] sm:$0xf] %vm290_vm0, %v4975_v0  ;;  %v405_v27 = vshll.u32 %v351_v2, 16  ;;  %v410_v28 = vshrl.u32 %v352_v15, 16 }
  0x20   : > { %342 = vst.msk [vmem:[#allocation2 + $0xc8] sm:$0x1] %vm293_vm1, %v4975_v0  ;;  %345 = vst.msk [vmem:[#allocation2 + $0xd4] sm:$0x1] %vm293_vm1, %v4975_v0  ;;  %v350_v29 = vld [vmem:[%s5094_s22 + $0x4] sm:$0xf] }
  0x21   : > { %343 = vst.msk [vmem:[#allocation2 + $0xcc] sm:$0xf] %vm290_vm0, %v4975_v0  ;;  %344 = vst.msk [vmem:[#allocation2 + $0xd0] sm:$0xf] %vm290_vm0, %v4975_v0  ;;  %v413_v33 = vshll.u32 %v352_v15, 16  ;;  %v407_v37 = vor.u32 %v405_v27, %v404_v26  ;;  %v408_v38 = vrot.slane %v404_v26, 4 }
  0x22   : > { %vm5096_vm7 = vmor %vm1396_vm2, %vm1397_vm3  ;;  %v717_v35 = vld [vmem:[#allocation2 + $0x18] sm:$0xf]  ;;  %v412_v39 = vrot.slane %v410_v28, 7  ;;  %v385_v40 = vshrl.u32 %v349_v24, 16  ;;  %v353_v41 = vld [vmem:[%s5094_s22 + $0x10] sm:$0xf] }
  0x23   : > { %v1402_v16 = vsel %vm5096_vm7, %v4514_v6, %v1401_v7  ;;  %v1405_v25 = vsel %vm5096_vm7, %v1403_v17, %v1404_v8  ;;  %vm5110_vm10 = vmand %vm290_vm0, %vm706_vm9  ;;  %v956_v42 = vrot.slane %v955_v31, 4  ;;  %v966_v43 = vrot.slane %v965_v32, 4  ;;  %v354_v51 = vld [vmem:[%s5094_s22 + $0x14] sm:$0xf]  ;;  %v708_v55 = vld [vmem:[#allocation2 + $0xc] sm:$0xf] }
  0x24   : > { %v4594_v30 = vcombine.low %v1402_v16, %v1405_v25  ;;  %vm5116_vm11 = vmor %vm945_vm4, %vm946_vm5  ;;  %v388_v45 = vshll.u32 %v349_v24, 16  ;;  %v393_v46 = vshrl.u32 %v350_v29, 16  ;;  %v415_v47 = vor.u32 %v413_v33, %v412_v39  ;;  %v714_v61 = vld [vmem:[#allocation2 + $0x14] sm:$0x1]  ;;  %v721_v62 = vld [vmem:[#allocation2 + $0x20] sm:$0x1] }
  0x25   : > { %vm5124_vm12 = vmor %vm381_vm6, %vm382_vm8  ;;  %v718_v48 = vsel %vm5110_vm10, %v407_v37, %v717_v35  ;;  %v387_v49 = vrot.slane %v385_v40, 7  ;;  %v396_v50 = vshll.u32 %v350_v29, 16  ;;  %v961_v52 = vsel %vm5116_vm11, %v956_v42, %v960_v18  ;;  %v5145_v5 = vld [vmem:[%s5094_s22 + $0x18] sm:$0xf]  ;;  %v724_v8 = vld [vmem:[#allocation2 + $0x24] sm:$0xf] }
  0x26   : > { %2920 = vrot.lane.b32.xlu1 %v4594_v30, %s4976_s23  ;;  %v971_v53 = vsel %vm5116_vm11, %v966_v43, %v970_v23  ;;  %719 = vst [vmem:[#allocation2 + $0x18] sm:$0xf] %v718_v48  ;;  %v395_v54 = vrot.slane %v393_v46, 7  ;;  %v419_v56 = vshrl.u32 %v353_v41, 16  ;;  %v416_v58 = vsel %vm5124_vm12, %v408_v38, %v415_v47  ;;  %vm5139_vm13 = vmand %vm293_vm1, %vm381_vm6  ;;  %v728_v21 = vld [vmem:[#allocation2 + $0x2c] sm:$0x1] }
  0x27   : > { %v4578_v57 = vcombine.low %v961_v52, %v971_v53  ;;  %v390_v59 = vor.u32 %v388_v45, %v387_v49  ;;  %v391_v60 = vrot.slane %v387_v49, 4  ;;  %720 = vst.msk [vmem:[#allocation2 + $0x1c] sm:$0xf] %vm290_vm0, %v416_v58  ;;  %v422_v3 = vshll.u32 %v353_v41, 16  ;;  %v5161_v22 = vld [vmem:[%s5094_s22 + $0x1c] sm:$0xf] }
  0x28   : > { %v398_v0 = vor.u32 %v396_v50, %v395_v54  ;;  %v421_v2 = vrot.slane %v419_v56, 7  ;;  %v427_v4 = vshrl.u32 %v354_v51, 16  ;;  %v430_v7 = vshll.u32 %v354_v51, 16  ;;  %s4981_s28 = smov 32   ;;  %s4982_s29 = smov 16  }
  0x29   : > { %2840 = vrot.lane.b32.xlu0 %v4578_v57, %s4977_s24  ;;  %v709_v6 = vsel %vm5110_vm10, %v390_v59, %v708_v55  ;;  %v400_v9 = vrot.slane %v395_v54, 4  ;;  %v417_v10 = vrot.slane %v412_v39, 4  ;;  %v436_v17 = vshrl.u32 %v5145_v5, 16  ;;  %s4983_s30 = smov 28  }
  0x2a   : > { %v399_v11 = vsel %vm5124_vm12, %v391_v60, %v398_v0  ;;  %710 = vst [vmem:[#allocation2 + $0xc] sm:$0xf] %v709_v6  ;;  %v424_v12 = vor.u32 %v422_v3, %v421_v2  ;;  %v425_v13 = vrot.slane %v421_v2, 4  ;;  %v429_v14 = vrot.slane %v427_v4, 7 }
  0x2b   : > { %711 = vst.msk [vmem:[#allocation2 + $0x10] sm:$0xf] %vm290_vm0, %v399_v11  ;;  %v715_v15 = vsel %vm5139_vm13, %v400_v9, %v714_v61  ;;  %v722_v16 = vsel %vm5139_vm13, %v417_v10, %v721_v62  ;;  %v439_v23 = vshll.u32 %v5145_v5, 16  ;;  %v444_v37 = vshrl.u32 %v5161_v22, 16 }
  0x2c   : > { %v432_v18 = vor.u32 %v430_v7, %v429_v14  ;;  %v725_v19 = vsel %vm5110_vm10, %v424_v12, %v724_v8  ;;  %716 = vst [vmem:[#allocation2 + $0x14] sm:$0x1] %v715_v15  ;;  %723 = vst [vmem:[#allocation2 + $0x20] sm:$0x1] %v722_v16  ;;  %v434_v20 = vrot.slane %v429_v14, 4  ;;  %vm3464_vm14 = vcmask 31744  }
  0x2d   : > { %v1513_v24 = vld [vmem:[#allocation2 + $0x18] sm:$0xf]  ;;  %726 = vst [vmem:[#allocation2 + $0x24] sm:$0xf] %v725_v19  ;;  %vm3513_vm15 = vcmask 64512   ;;  %vm3546_vm1 = vcmask 97280  }
  0x2e   : > { %v5164_v25 = vld [vmem:[#allocation2 + $0x18] sm:$0xf]  ;;  %v1584_v27 = vshrl.u32 %v1513_v24, 16  ;;  %v1587_v28 = vshll.u32 %v1513_v24, 16  ;;  %v433_v29 = vsel %vm5124_vm12, %v425_v13, %v432_v18  ;;  %v5169_v31 = vld [vmem:[#allocation2 + $0x1c] sm:$0xf]  ;;  %v729_v35 = vsel %vm5139_vm13, %v434_v20, %v728_v21 }
  0x2f   : > { %v2552_v26 = vld [vmem:[#allocation2 + $0x18] sm:$0xe]  ;;  %v2169_v30 = vshrl.u32 %v5164_v25, 16  ;;  %727 = vst.msk [vmem:[#allocation2 + $0x28] sm:$0xf] %vm290_vm0, %v433_v29  ;;  %v2172_v33 = vshll.u32 %v5164_v25, 16  ;;  %v4611_v38 = vcombine.low %v1513_v24, %v5169_v31 }
  0x30   : > { %v5172_v32 = vld [vmem:[#allocation2 + $0x1c] sm:$0xf]  ;;  %v5179_v39 = vrot.slane %v1584_v27, 4  ;;  %v5181_v40 = vrot.slane %v1587_v28, 5  ;;  %v4546_v41 = vrot.slane %v2552_v26, 9  ;;  %v1597_v42 = vshrl.u32 %v5169_v31, 16 }
  0x31   : > { %730 = vst [vmem:[#allocation2 + $0x2c] sm:$0x1] %v729_v35  ;;  %v1511_v43 = vld [vmem:[#allocation2 + $0xc] sm:$0xf]  ;;  %v5184_v45 = vrot.slane %v2169_v30, 4  ;;  %v5186_v46 = vrot.slane %v2172_v33, 5  ;;  %3018 = vrot.lane.b32.xlu1 %v4611_v38, %s4978_s25  ;;  %v4658_v51 = vcombine.low %v5164_v25, %v5172_v32 }
  0x32   : > { %v2182_v47 = vshrl.u32 %v5172_v32, 16  ;;  %v5190_v48 = vld [vmem:[#allocation2 + $0x10] sm:$0xf]  ;;  %v1560_v49 = vshrl.u32 %v1511_v43, 16  ;;  %v1563_v50 = vshll.u32 %v1511_v43, 16  ;;  %v1590_v57 = vor.u32 %v5181_v40, %v5179_v39 }
  0x33   : > { %v1943_v52 = vld [vmem:[#allocation2 + $0xc] sm:$0xe]  ;;  %v4610_v53 = vcombine.low %v1511_v43, %v5190_v48  ;;  %v5195_v54 = vld [vmem:[#allocation2 + $0x14] sm:$0x1]  ;;  %v2009_v56 = vrot.slane %v5190_v48, 5  ;;  %v2618_v62 = vrot.slane %v5172_v32, 5  ;;  %v2175_v14 = vor.u32 %v5186_v46, %v5184_v45 }
  0x34   : > { %v4530_v55 = vrot.slane %v1943_v52, 9  ;;  %v5200_v58 = vrot.slane %v1560_v49, 4  ;;  %v5202_v59 = vrot.slane %v1563_v50, 5  ;;  %v2122_v60 = vld [vmem:[#allocation2 + $0x24] sm:$0xf]  ;;  %v2012_v61 = vrot.slane %v5195_v54, 5 }
  0x35   : > { %v1944_v0 = vld [vmem:[#allocation2 + $0x18] sm:$0xe]  ;;  %v1573_v2 = vshrl.u32 %v5190_v48, 16  ;;  %3016 = vrot.lane.b32.xlu0 %v4610_v53, %s4978_s25  ;;  %v2193_v3 = vshrl.u32 %v2122_v60, 16  ;;  %v2196_v4 = vshll.u32 %v2122_v60, 16  ;;  %v2011_v6 = vrot.slane %v2009_v56, 4 }
  0x36   : > { %v5208_v7 = vld [vmem:[#allocation2 + $0x10] sm:$0xf]  ;;  %v2123_v8 = vld [vmem:[#allocation2 + $0x28] sm:$0xf]  ;;  %v2010_v9 = vsel %vm5096_vm7, %v4530_v55, %v2009_v56  ;;  %v5212_v10 = vld [vmem:[#allocation2 + $0x14] sm:$0x1]  ;;  %v2619_v12 = vsel %vm5096_vm7, %v4546_v41, %v2618_v62  ;;  %v1566_v13 = vor.u32 %v5202_v59, %v5200_v58 }
  0x37   : > { %v1333_v11 = vld [vmem:[#allocation2 + $0xc] sm:$0xe]  ;;  %v2195_v15 = vrot.slane %v2193_v3, 4  ;;  %v2198_v16 = vrot.slane %v2196_v4, 5  ;;  %v2206_v18 = vshrl.u32 %v2123_v8, 16  ;;  %v4659_v19 = vcombine.low %v2122_v60, %v2123_v8 }
  0x38   : > { %v5220_v20 = vld [vmem:[#allocation2 + $0x20] sm:$0x1]  ;;  %v2013_v21 = vsel %vm5096_vm7, %v2011_v6, %v2012_v61  ;;  %v4515_v24 = vrot.slane %v1333_v11, 9  ;;  %v1408_v25 = vrot.slane %v5208_v7, 5  ;;  %v1411_v26 = vrot.slane %v5212_v10, 5 }
  0x39   : > { %v1544_v27 = vld [vmem:[#allocation2 + $0x20] sm:$0x1]  ;;  %3274 = vrot.lane.b32.xlu1 %v4659_v19, %s4979_s26  ;;  %3272 = vrot.lane.b32.xlu0 %v4658_v51, %s4979_s26  ;;  %v4642_v28 = vcombine.low %v2010_v9, %v2013_v21  ;;  %v2620_v29 = vrot.slane %v2618_v62, 4  ;;  %v2621_v30 = vrot.slane %v5220_v20, 5  ;;  %v4531_v33 = vrot.slane %v1944_v0, 9 }
  0x3a   : > { %v2153_v35 = vld [vmem:[#allocation2 + $0x2c] sm:$0x1]  ;;  %v1409_v38 = vsel %vm5096_vm7, %v4515_v24, %v1408_v25  ;;  %v1410_v39 = vrot.slane %v1408_v25, 4  ;;  %v2016_v40 = vrot.slane %v5169_v31, 5  ;;  %v2019_v41 = vrot.slane %v1544_v27, 5 }
  0x3b   : > { %v2553_v43 = vld [vmem:[#allocation2 + $0x24] sm:$0xe]  ;;  %v2622_v49 = vsel %vm5096_vm7, %v2620_v29, %v2621_v30  ;;  %v2625_v52 = vrot.slane %v2123_v8, 5  ;;  %v2628_v51 = vrot.slane %v2153_v35, 5  ;;  %v1591_v3 = vrot.slane %v1590_v57, 4 }
  0x3c   : > { %v4547_v50 = vrot.slane %v2553_v43, 9  ;;  %v1412_v53 = vsel %vm5096_vm7, %v1410_v39, %v1411_v26  ;;  %v4690_v55 = vcombine.low %v2619_v12, %v2622_v49  ;;  %v2017_v56 = vsel %vm5096_vm7, %v4531_v33, %v2016_v40  ;;  %v899_v12 = vld [vmem:[#allocation2 + $0xc] sm:$0xf]  ;;  %v5256_v43 = vld [vmem:[#allocation2 + $0x1c] sm:$0xf] }
  0x3d   : > { %v2018_v60 = vrot.slane %v2016_v40, 4  ;;  %3176 = vrot.lane.b32.xlu0 %v4642_v28, %s4980_s27  ;;  %v4595_v61 = vcombine.low %v1409_v38, %v1412_v53  ;;  %v2627_v0 = vrot.slane %v2625_v52, 4  ;;  %v1593_v6 = vshll.u32 %v5169_v31, 16  ;;  %v1334_v46 = vld [vmem:[#allocation2 + $0x18] sm:$0xe] }
  0x3e   : > { %v2626_v62 = vsel %vm5096_vm7, %v4547_v50, %v2625_v52  ;;  %v1599_v9 = vrot.slane %v1597_v42, 4  ;;  %v1603_v11 = vshll.u32 %v1544_v27, 16  ;;  %v2199_v24 = vor.u32 %v2198_v16, %v2195_v15  ;;  %v901_v15 = vld [vmem:[#allocation2 + $0x18] sm:$0xf] }
  0x3f   : > { %v2020_v4 = vsel %vm5096_vm7, %v2018_v60, %v2019_v41  ;;  %2922 = vrot.lane.b32.xlu1 %v4595_v61, %s4976_s23  ;;  %v2629_v21 = vsel %vm5096_vm7, %v2627_v0, %v2628_v51  ;;  %v2202_v25 = vshll.u32 %v2123_v8, 16  ;;  %v1595_v57 = vrot.slane %v1593_v6, 5  ;;  %v5263_v0 = vld [vmem:[#allocation2 + $0x20] sm:$0x1] }
  0x40   : > { %v4643_v19 = vcombine.low %v2017_v56, %v2020_v4  ;;  %v4691_v26 = vcombine.low %v2626_v62, %v2629_v21  ;;  %v1605_v28 = vrot.slane %v1603_v11, 5  ;;  %v2208_v29 = vrot.slane %v2206_v18, 4 }
  0x41   : > { %3432 = vrot.lane.b32.xlu0 %v4690_v55, %s4981_s28  ;;  %v2200_v30 = vrot.slane %v2199_v24, 4  ;;  %v2204_v31 = vrot.slane %v2202_v25, 5  ;;  %v2212_v42 = vshll.u32 %v2153_v35, 16  ;;  %v973_v27 = vshrl.u32 %v899_v12, 16 }
  0x42   : > { %v1596_v33 = vsel %vm5116_vm11, %v1591_v3, %v1595_v57  ;;  %v1600_v38 = vor.u32 %v1599_v9, %v1595_v57  ;;  %v976_v39 = vshll.u32 %v899_v12, 16  ;;  %v982_v40 = vshll.u32 %v5208_v7, 16  ;;  %v903_v57 = vld [vmem:[#allocation2 + $0x24] sm:$0xf] }
  0x43   : > { %3178 = vrot.lane.b32.xlu1 %v4643_v19, %s4980_s27  ;;  %v2205_v8 = vsel %vm5116_vm11, %v2200_v30, %v2204_v31  ;;  %v2209_v16 = vor.u32 %v2208_v29, %v2204_v31  ;;  %v2214_v18 = vrot.slane %v2212_v42, 5  ;;  %v975_v41 = vrot.slane %v973_v27, 4 }
  0x44   : > { %v1601_v35 = vrot.slane %v1600_v38, 4  ;;  %v978_v49 = vrot.slane %v976_v39, 5  ;;  %v984_v50 = vrot.slane %v982_v40, 5  ;;  %v986_v52 = vshrl.u32 %v5208_v7, 16 }
  0x45   : > { %3434 = vrot.lane.b32.xlu0 %v4691_v26, %s4981_s28  ;;  %v2210_v51 = vrot.slane %v2209_v16, 4  ;;  %v992_v53 = vshll.u32 %v5212_v10, 16  ;;  %v997_v55 = vshrl.u32 %v901_v15, 16  ;;  %v1000_v56 = vshll.u32 %v901_v15, 16 }
  0x46   : > { %v1606_v60 = vsel %vm5116_vm11, %v1601_v35, %v1605_v28  ;;  %v979_v61 = vor.u32 %v978_v49, %v975_v41  ;;  %v988_v62 = vrot.slane %v986_v52, 4  ;;  %v1006_v3 = vshll.u32 %v5256_v43, 16 }
  0x47   : > { %v4627_v4 = vcombine.low %v1596_v33, %v1606_v60  ;;  %v2215_v7 = vsel %vm5116_vm11, %v2210_v51, %v2214_v18  ;;  %v994_v6 = vrot.slane %v992_v53, 5  ;;  %v999_v9 = vrot.slane %v997_v55, 4  ;;  %v932_v18 = vld [vmem:[#allocation2 + $0x2c] sm:$0x1] }
  0x48   : > { %v4675_v11 = vcombine.low %v2205_v8, %v2215_v7  ;;  %v980_v12 = vrot.slane %v979_v61, 4  ;;  %v989_v10 = vor.u32 %v988_v62, %v984_v50  ;;  %v1002_v19 = vrot.slane %v1000_v56, 5  ;;  %v1335_v7 = vld [vmem:[#allocation2 + $0x24] sm:$0xe] }
  0x49   : > { %3098 = vrot.lane.b32.xlu1 %v4627_v4, %s4982_s29  ;;  %v1008_v21 = vrot.slane %v1006_v3, 5  ;;  %v1010_v24 = vshrl.u32 %v5256_v43, 16  ;;  %v1016_v25 = vshll.u32 %v5263_v0, 16  ;;  %v1567_v26 = vrot.slane %v1566_v13, 4  ;;  %v904_v13 = vld [vmem:[#allocation2 + $0x28] sm:$0xf] }
  0x4a   : > { %v985_v28 = vsel %vm5116_vm11, %v980_v12, %v984_v50  ;;  %v990_v29 = vrot.slane %v989_v10, 4  ;;  %v1003_v30 = vor.u32 %v1002_v19, %v999_v9  ;;  %v1569_v31 = vshll.u32 %v5190_v48, 16 }
  0x4b   : > { %v1012_v42 = vrot.slane %v1010_v24, 4  ;;  %v1018_v27 = vrot.slane %v1016_v25, 5  ;;  %v1575_v33 = vrot.slane %v1573_v2, 4  ;;  %v1579_v38 = vshll.u32 %v5195_v54, 16 }
  0x4c   : > { %v995_v39 = vsel %vm5116_vm11, %v990_v29, %v994_v6  ;;  %v1004_v58 = vrot.slane %v1003_v30, 4  ;;  %v1571_v59 = vrot.slane %v1569_v31, 5  ;;  %v1021_v40 = vshrl.u32 %v903_v57, 16 }
  0x4d   : > { %3354 = vrot.lane.b32.xlu1 %v4675_v11, %s4983_s30  ;;  %v4579_v15 = vcombine.low %v985_v28, %v995_v39  ;;  %v1013_v8 = vor.u32 %v1012_v42, %v1008_v21  ;;  %v1581_v16 = vrot.slane %v1579_v38, 5  ;;  %v1024_v41 = vshll.u32 %v903_v57, 16 }
  0x4e   : > { %v1009_v48 = vsel %vm5116_vm11, %v1004_v58, %v1008_v21  ;;  %v1572_v54 = vsel %vm5116_vm11, %v1567_v26, %v1571_v59  ;;  %v1576_v2 = vor.u32 %v1575_v33, %v1571_v59  ;;  %v1023_v35 = vrot.slane %v1021_v40, 4  ;;  %v1515_v40 = vld [vmem:[#allocation2 + $0x24] sm:$0xf] }
  0x4f   : > { %2842 = vrot.lane.b32.xlu0 %v4579_v15, %s4977_s24  ;;  %v1014_v49 = vrot.slane %v1013_v8, 4  ;;  %v1026_v50 = vrot.slane %v1024_v41, 5  ;;  %v1030_v52 = vshll.u32 %v904_v13, 16  ;;  %v1034_v51 = vshrl.u32 %v904_v13, 16  ;;  %v1516_v15 = vld [vmem:[#allocation2 + $0x28] sm:$0xf] }
  0x50   : > { %v1577_v53 = vrot.slane %v1576_v2, 4  ;;  %v1040_v55 = vshll.u32 %v932_v18, 16  ;;  %v2176_v56 = vrot.slane %v2175_v14, 4  ;;  %v2178_v60 = vshll.u32 %v5172_v32, 16 }
  0x51   : > { %v1019_v61 = vsel %vm5116_vm11, %v1014_v49, %v1018_v27  ;;  %v1027_v62 = vor.u32 %v1026_v50, %v1023_v35  ;;  %v1032_v3 = vrot.slane %v1030_v52, 5  ;;  %v1036_v4 = vrot.slane %v1034_v51, 4  ;;  %v1945_v52 = vld [vmem:[#allocation2 + $0x24] sm:$0xe] }
  0x52   : > { %v4580_v6 = vcombine.low %v1009_v48, %v1019_v61  ;;  %v1582_v9 = vsel %vm5116_vm11, %v1577_v53, %v1581_v16  ;;  %v1042_v11 = vrot.slane %v1040_v55, 5  ;;  %v2180_v12 = vrot.slane %v2178_v60, 5  ;;  %v735_v55 = vld [vmem:[#allocation2 + $0x38] sm:$0x1] }
  0x53   : > { %v4626_v10 = vcombine.low %v1572_v54, %v1582_v9  ;;  %v1028_v19 = vrot.slane %v1027_v62, 4  ;;  %v1037_v21 = vor.u32 %v1036_v4, %v1032_v3  ;;  %v2184_v45 = vrot.slane %v2182_v47, 4  ;;  %v1545_v54 = vld [vmem:[#allocation2 + $0x2c] sm:$0x1]  ;;  %v357_v62 = vld [vmem:[%s5094_s22 + $0x20] sm:$0xf] }
  0x54   : > { %2844 = vrot.lane.b32.xlu1 %v4580_v6, %s4977_s24  ;;  %v2181_v14 = vsel %vm5116_vm11, %v2176_v56, %v2180_v12  ;;  %v2188_v24 = vshll.u32 %v5220_v20, 16  ;;  %v4517_v25 = vrot.slane %v1335_v7, 9  ;;  %v1422_v26 = vrot.slane %v904_v13, 5 }
  0x55   : > { %3096 = vrot.lane.b32.xlu0 %v4626_v10, %s4982_s29  ;;  %v1033_v57 = vsel %vm5116_vm11, %v1028_v19, %v1032_v3  ;;  %v1038_v28 = vrot.slane %v1037_v21, 4  ;;  %v2185_v29 = vor.u32 %v2184_v45, %v2180_v12  ;;  %v1425_v30 = vrot.slane %v932_v18, 5  ;;  %v731_v18 = vld [vmem:[#allocation2 + $0x30] sm:$0xf]  ;;  %v358_v19 = vld [vmem:[%s5094_s22 + $0x24] sm:$0xf] }
  0x56   : > { %v2190_v32 = vrot.slane %v2188_v24, 5  ;;  %v1423_v47 = vsel %vm5096_vm7, %v4517_v25, %v1422_v26  ;;  %v1424_v31 = vrot.slane %v1422_v26, 4  ;;  %v4516_v42 = vrot.slane %v1334_v46, 9  ;;  %v5339_v21 = vld [vmem:[%s5094_s22 + $0x28] sm:$0xf] }
  0x57   : > { %v1043_v27 = vsel %vm5116_vm11, %v1038_v28, %v1042_v11  ;;  %v2186_v20 = vrot.slane %v2185_v29, 4  ;;  %v1415_v33 = vrot.slane %v5256_v43, 5  ;;  %v1418_v38 = vrot.slane %v5263_v0, 5 }
  0x58   : > { %v4581_v39 = vcombine.low %v1033_v57, %v1043_v27  ;;  %v1426_v58 = vsel %vm5096_vm7, %v1424_v31, %v1425_v30  ;;  %v438_v59 = vrot.slane %v436_v17, 7  ;;  %v446_v13 = vrot.slane %v444_v37, 7 }
  0x59   : > { %v2191_v8 = vsel %vm5116_vm11, %v2186_v20, %v2190_v32  ;;  %v4597_v16 = vcombine.low %v1423_v47, %v1426_v58  ;;  %v1416_v43 = vsel %vm5096_vm7, %v4516_v42, %v1415_v33  ;;  %v1417_v0 = vrot.slane %v1415_v33, 4  ;;  %v738_v20 = vld [vmem:[#allocation2 + $0x3c] sm:$0xf] }
  0x5a   : > { %2846 = vrot.lane.b32.xlu1 %v4581_v39, %s4977_s24  ;;  %v4674_v41 = vcombine.low %v2181_v14, %v2191_v8  ;;  %v441_v17 = vor.u32 %v439_v23, %v438_v59  ;;  %v442_v48 = vrot.slane %v438_v59, 4  ;;  %v447_v37 = vshll.u32 %v5161_v22, 16 }
  0x5b   : > { %v1419_v2 = vsel %vm5096_vm7, %v1417_v0, %v1418_v38  ;;  %v1608_v35 = vshrl.u32 %v1515_v40, 16  ;;  %v1611_v49 = vshll.u32 %v1515_v40, 16  ;;  %v1621_v50 = vshrl.u32 %v1516_v15, 16 }
  0x5c   : > { %3352 = vrot.lane.b32.xlu0 %v4674_v41, %s4983_s30  ;;  %v4596_v51 = vcombine.low %v1416_v43, %v1419_v2  ;;  %v449_v53 = vor.u32 %v447_v37, %v446_v13  ;;  %v732_v5 = vsel %vm5110_vm10, %v441_v17, %v731_v18  ;;  %v4612_v23 = vcombine.low %v1515_v40, %v1516_v15 }
  0x5d   : > { %733 = vst [vmem:[#allocation2 + $0x30] sm:$0xf] %v732_v5  ;;  %v1610_v22 = vrot.slane %v1608_v35, 4  ;;  %v1613_v56 = vrot.slane %v1611_v49, 5  ;;  %v451_v60 = vrot.slane %v446_v13, 4  ;;  %v1617_v61 = vshll.u32 %v1516_v15, 16 }
  0x5e   : > { %2926 = vrot.lane.b32.xlu1 %v4597_v16, %s4976_s23  ;;  %v450_v3 = vsel %vm5124_vm12, %v442_v48, %v449_v53  ;;  %v1623_v4 = vrot.slane %v1621_v50, 4  ;;  %v1627_v7 = vshll.u32 %v1545_v54, 16  ;;  %v4532_v6 = vrot.slane %v1945_v52, 9 }
  0x5f   : > { %734 = vst.msk [vmem:[#allocation2 + $0x34] sm:$0xf] %vm290_vm0, %v450_v3  ;;  %v736_v9 = vsel %vm5139_vm13, %v451_v60, %v735_v55  ;;  %v1614_v11 = vor.u32 %v1613_v56, %v1610_v22  ;;  %v1619_v12 = vrot.slane %v1617_v61, 5  ;;  %v2023_v10 = vrot.slane %v1516_v15, 5 }
  0x60   : > { %2924 = vrot.lane.b32.xlu0 %v4596_v51, %s4976_s23  ;;  %737 = vst [vmem:[#allocation2 + $0x38] sm:$0x1] %v736_v9  ;;  %v1629_v45 = vrot.slane %v1627_v7, 5  ;;  %v2026_v46 = vrot.slane %v1545_v54, 5  ;;  %v453_v14 = vshrl.u32 %v357_v62, 16  ;;  %v456_v24 = vshll.u32 %v357_v62, 16 }
  0x61   : > { %v1615_v25 = vrot.slane %v1614_v11, 4  ;;  %v1624_v26 = vor.u32 %v1623_v4, %v1619_v12  ;;  %v2024_v57 = vsel %vm5096_vm7, %v4532_v6, %v2023_v10  ;;  %v2025_v28 = vrot.slane %v2023_v10, 4  ;;  %v742_v7 = vld [vmem:[#allocation2 + $0x44] sm:$0x1] }
  0x62   : > { %v455_v29 = vrot.slane %v453_v14, 7  ;;  %v461_v30 = vshrl.u32 %v358_v19, 16  ;;  %v464_v32 = vshll.u32 %v358_v19, 16  ;;  %v470_v47 = vshrl.u32 %v5339_v21, 16 }
  0x63   : > { %v1620_v31 = vsel %vm5116_vm11, %v1615_v25, %v1619_v12  ;;  %v1625_v42 = vrot.slane %v1624_v26, 4  ;;  %v2027_v27 = vsel %vm5096_vm7, %v2025_v28, %v2026_v46  ;;  %v473_v33 = vshll.u32 %v5339_v21, 16 }
  0x64   : > { %v1517_v38 = vld [vmem:[#allocation2 + $0x30] sm:$0xf]  ;;  %3020 = vrot.lane.b32.xlu0 %v4612_v23, %s4978_s25  ;;  %v4644_v58 = vcombine.low %v2024_v57, %v2027_v27  ;;  %v458_v59 = vor.u32 %v456_v24, %v455_v29  ;;  %v459_v13 = vrot.slane %v455_v29, 4  ;;  %v463_v40 = vrot.slane %v461_v30, 7 }
  0x65   : > { %v1946_v39 = vld [vmem:[#allocation2 + $0x30] sm:$0xe]  ;;  %v1632_v15 = vshrl.u32 %v1517_v38, 16  ;;  %v1635_v8 = vshll.u32 %v1517_v38, 16  ;;  %v1630_v16 = vsel %vm5116_vm11, %v1625_v42, %v1629_v45  ;;  %vm3579_vm2 = vcmask 130048  }
  0x66   : > { %v4533_v43 = vrot.slane %v1946_v39, 9  ;;  %v2124_v0 = vld [vmem:[#allocation2 + $0x30] sm:$0xf]  ;;  %v1518_v18 = vld [vmem:[#allocation2 + $0x34] sm:$0xf]  ;;  %v4628_v41 = vcombine.low %v1620_v31, %v1630_v16  ;;  %v466_v17 = vor.u32 %v464_v32, %v463_v40  ;;  %v739_v48 = vsel %vm5110_vm10, %v458_v59, %v738_v20 }
  0x67   : > { %v2217_v37 = vshrl.u32 %v2124_v0, 16  ;;  %v1634_v54 = vrot.slane %v1632_v15, 4  ;;  %v1637_v2 = vrot.slane %v1635_v8, 5  ;;  %v1645_v35 = vshrl.u32 %v1518_v18, 16  ;;  %v1546_v50 = vld [vmem:[#allocation2 + $0x38] sm:$0x1] }
  0x68   : > { %v4613_v49 = vcombine.low %v1517_v38, %v1518_v18  ;;  %740 = vst [vmem:[#allocation2 + $0x3c] sm:$0xf] %v739_v48  ;;  %v1641_v52 = vshll.u32 %v1518_v18, 16  ;;  %v1651_v51 = vshll.u32 %v1546_v50, 16  ;;  %3100 = vrot.lane.b32.xlu0 %v4628_v41, %s4982_s29  ;;  %v2030_v53 = vrot.slane %v1518_v18, 5  ;;  %v4910_v41 = vld [vmem:[%s6836_s1] sm:$0xff]  }
  0x69   : > { %v2033_v5 = vrot.slane %v1546_v50, 5  ;;  %v5356_v23 = vld [vmem:[#allocation2 + $0x34] sm:$0xf]  ;;  %v1638_v55 = vor.u32 %v1637_v2, %v1634_v54  ;;  %v1647_v22 = vrot.slane %v1645_v35, 4  ;;  %v467_v56 = vsel %vm5124_vm12, %v459_v13, %v466_v17  ;;  %v5368_v10 = vld [vmem:[#allocation2 + $0x38] sm:$0x1]  ;;  %4812 = vmatprep.subr.bf16.mxu0 %v4910_v41  ;;  %4850 = vmatprep.subr.bf16.mxu1 %v4910_v41 }
  0x6a   : > { %3022 = vrot.lane.b32.xlu1 %v4613_v49, %s4978_s25  ;;  %v2219_v60 = vrot.slane %v2217_v37, 4  ;;  %v1643_v61 = vrot.slane %v1641_v52, 5  ;;  %v1653_v62 = vrot.slane %v1651_v51, 5  ;;  %v5363_v3 = vsel %vm5096_vm7, %v4533_v43, %v2030_v53  ;;  %741 = vst.msk [vmem:[#allocation2 + $0x40] sm:$0xf] %vm290_vm0, %v467_v56  ;;  %4813 = vmatpush3.bf16.msra.mxu0 %v4910_v41 }
  0x6b   : > { %v2032_v4 = vrot.slane %v2030_v53, 4  ;;  %v1639_v6 = vrot.slane %v1638_v55, 4  ;;  %v2220_v9 = vshll.u32 %v2124_v0, 16  ;;  %v2230_v11 = vshrl.u32 %v5356_v23, 16  ;;  %v5374_v24 = vld [vmem:[#allocation2 + $0x30] sm:$0xf]  ;;  %4853 = vmatpush3.bf16.msra.mxu1 %v4910_v41 }
  0x6c   : > { %v4660_v12 = vcombine.low %v2124_v0, %v5356_v23  ;;  %v1648_v19 = vor.u32 %v1647_v22, %v1643_v61  ;;  %3180 = vrot.lane.b32.xlu0 %v4644_v58, %s4980_s27  ;;  %v468_v46 = vrot.slane %v463_v40, 4  ;;  %v2226_v14 = vshll.u32 %v5356_v23, 16  ;;  %v5390_v40 = vld [vmem:[#allocation2 + $0x34] sm:$0xf]  ;;  %v5405_v49 = vld [vmem:[#allocation2 + $0x38] sm:$0x1] }
  0x6d   : > { %v2034_v45 = vsel %vm5096_vm7, %v2032_v4, %v2033_v5  ;;  %v1644_v25 = vsel %vm5116_vm11, %v1639_v6, %v1643_v61  ;;  %v2222_v57 = vrot.slane %v2220_v9, 5  ;;  %v2232_v28 = vrot.slane %v2230_v11, 4  ;;  %v2554_v51 = vld [vmem:[#allocation2 + $0x30] sm:$0xe] }
  0x6e   : > { %v4645_v26 = vcombine.low %v5363_v3, %v2034_v45  ;;  %v1649_v29 = vrot.slane %v1648_v19, 4  ;;  %v743_v32 = vsel %vm5139_vm13, %v468_v46, %v742_v7  ;;  %v2228_v31 = vrot.slane %v2226_v14, 5 }
  0x6f   : > { %v5379_v30 = vld [vmem:[#allocation2 + $0x3c] sm:$0xf]  ;;  %v2236_v42 = vshll.u32 %v5368_v10, 16  ;;  %744 = vst [vmem:[#allocation2 + $0x44] sm:$0x1] %v743_v32  ;;  %v2223_v38 = vor.u32 %v2222_v57, %v2219_v60  ;;  %v1045_v39 = vshrl.u32 %v5374_v24, 16 }
  0x70   : > { %v2241_v27 = vshrl.u32 %v5379_v30, 16  ;;  %v2244_v20 = vshll.u32 %v5379_v30, 16  ;;  %v1654_v58 = vsel %vm5116_vm11, %v1649_v29, %v1653_v62  ;;  %3276 = vrot.lane.b32.xlu0 %v4660_v12, %s4979_s26  ;;  %v2233_v59 = vor.u32 %v2232_v28, %v2228_v31  ;;  %v5411_v3 = vld [vmem:[#allocation2 + $0x3c] sm:$0xf] }
  0x71   : > { %v2238_v13 = vrot.slane %v2236_v42, 5  ;;  %v1048_v15 = vshll.u32 %v5374_v24, 16  ;;  %v4629_v8 = vcombine.low %v1644_v25, %v1654_v58  ;;  %v5393_v16 = vld [vmem:[#allocation2 + $0x40] sm:$0xf]  ;;  %v2224_v18 = vrot.slane %v2223_v38, 4 }
  0x72   : > { %v2243_v43 = vrot.slane %v2241_v27, 4  ;;  %v2246_v0 = vrot.slane %v2244_v20, 5  ;;  %v2254_v17 = vshrl.u32 %v5393_v16, 16  ;;  %v4661_v48 = vcombine.low %v5379_v30, %v5393_v16  ;;  %v5421_v14 = vld [vmem:[#allocation2 + $0x40] sm:$0xf] }
  0x73   : > { %v2250_v37 = vshll.u32 %v5393_v16, 16  ;;  %v2234_v54 = vrot.slane %v2233_v59, 4  ;;  %3102 = vrot.lane.b32.xlu1 %v4629_v8, %s4982_s29  ;;  %v2229_v35 = vsel %vm5116_vm11, %v2224_v18, %v2228_v31  ;;  %v1047_v50 = vrot.slane %v1045_v39, 4  ;;  %v1337_v41 = vld [vmem:[#allocation2 + $0x3c] sm:$0xe] }
  0x74   : > { %v2247_v2 = vor.u32 %v2246_v0, %v2243_v43  ;;  %v1050_v52 = vrot.slane %v1048_v15, 5  ;;  %v2256_v5 = vrot.slane %v2254_v17, 4  ;;  %v1054_v22 = vshll.u32 %v5390_v40, 16  ;;  %v4911_v15 = vld [vmem:[%s6836_s1 + $0x8] sm:$0xff]   ;;  %v1947_v21 = vld [vmem:[#allocation2 + $0x3c] sm:$0xe] }
  0x75   : > { %v2252_v53 = vrot.slane %v2250_v37, 5  ;;  %v2239_v55 = vsel %vm5116_vm11, %v2234_v54, %v2238_v13  ;;  %v1058_v62 = vshrl.u32 %v5390_v40, 16  ;;  %v1064_v9 = vshll.u32 %v5405_v49, 16  ;;  %v2555_v13 = vld [vmem:[#allocation2 + $0x3c] sm:$0xe]  ;;  %4814 = vmatprep.subr.bf16.mxu0 %v4911_v15  ;;  %4851 = vmatprep.subr.bf16.mxu1 %v4911_v15 }
  0x76   : > { %v2248_v56 = vrot.slane %v2247_v2, 4  ;;  %v4676_v60 = vcombine.low %v2229_v35, %v2239_v55  ;;  %v1051_v61 = vor.u32 %v1050_v52, %v1047_v50  ;;  %v5413_v4 = vld [vmem:[#allocation2 + $0x44] sm:$0x1]  ;;  %v1056_v6 = vrot.slane %v1054_v22, 5  ;;  %4815 = vmatpush3.bf16.msra.mxu0 %v4911_v15  ;;  %4854 = vmatpush3.bf16.msra.mxu1 %v4911_v15 }
  0x77   : > { %v2257_v7 = vor.u32 %v2256_v5, %v2252_v53  ;;  %v4548_v11 = vrot.slane %v2554_v51, 9  ;;  %3182 = vrot.lane.b32.xlu1 %v4645_v26, %s4980_s27  ;;  %v2260_v19 = vshll.u32 %v5413_v4, 16  ;;  %v1060_v46 = vrot.slane %v1058_v62, 4  ;;  %v934_v20 = vld [vmem:[#allocation2 + $0x44] sm:$0x1] }
  0x78   : > { %v2253_v12 = vsel %vm5116_vm11, %v2248_v56, %v2252_v53  ;;  %3356 = vrot.lane.b32.xlu0 %v4676_v60, %s4983_s30  ;;  %v1052_v45 = vrot.slane %v1051_v61, 4  ;;  %v1066_v57 = vrot.slane %v1064_v9, 5  ;;  %v2632_v28 = vrot.slane %v5356_v23, 5  ;;  %v1336_v51 = vld [vmem:[#allocation2 + $0x30] sm:$0xe] }
  0x79   : > { %v2258_v25 = vrot.slane %v2257_v7, 4  ;;  %v2635_v29 = vrot.slane %v5368_v10, 5  ;;  %v2262_v30 = vrot.slane %v2260_v19, 5  ;;  %v1061_v32 = vor.u32 %v1060_v46, %v1056_v6  ;;  %v1519_v46 = vld [vmem:[#allocation2 + $0x3c] sm:$0xf] }
  0x7a   : > { %v1057_v26 = vsel %vm5116_vm11, %v1052_v45, %v1056_v6  ;;  %v1069_v31 = vshrl.u32 %v5411_v3, 16  ;;  %v2633_v42 = vsel %vm5096_vm7, %v4548_v11, %v2632_v28  ;;  %v2634_v27 = vrot.slane %v2632_v28, 4  ;;  %v360_v45 = vld [vmem:[%s5094_s22 + $0x2c] sm:$0xf] }
  0x7b   : > { %v1072_v38 = vshll.u32 %v5411_v3, 16  ;;  %v1078_v39 = vshll.u32 %v5421_v14, 16  ;;  %3278 = vrot.lane.b32.xlu1 %v4661_v48, %s4979_s26  ;;  %v2263_v23 = vsel %vm5116_vm11, %v2258_v25, %v2262_v30  ;;  %v1062_v10 = vrot.slane %v1061_v32, 4 }
  0x7c   : > { %v1071_v58 = vrot.slane %v1069_v31, 4  ;;  %v1082_v59 = vshrl.u32 %v5421_v14, 16  ;;  %v4677_v8 = vcombine.low %v2253_v12, %v2263_v23  ;;  %v2636_v43 = vsel %vm5096_vm7, %v2634_v27, %v2635_v29 }
  0x7d   : > { %v1074_v0 = vrot.slane %v1072_v38, 5  ;;  %v1080_v18 = vrot.slane %v1078_v39, 5  ;;  %v1067_v17 = vsel %vm5116_vm11, %v1062_v10, %v1066_v57  ;;  %v4692_v48 = vcombine.low %v2633_v42, %v2636_v43  ;;  %v1520_v42 = vld [vmem:[#allocation2 + $0x40] sm:$0xf]  ;;  %v745_v39 = vld [vmem:[#allocation2 + $0x48] sm:$0xf] }
  0x7e   : > { %v1084_v37 = vrot.slane %v1082_v59, 4  ;;  %v1088_v54 = vshll.u32 %v934_v20, 16  ;;  %v4582_v2 = vcombine.low %v1057_v26, %v1067_v17  ;;  %v4549_v50 = vrot.slane %v2555_v13, 9  ;;  %v749_v17 = vld [vmem:[#allocation2 + $0x50] sm:$0x1] }
  0x7f   : > { %v1075_v35 = vor.u32 %v1074_v0, %v1071_v58  ;;  %v2639_v52 = vrot.slane %v5393_v16, 5  ;;  %3358 = vrot.lane.b32.xlu1 %v4677_v8, %s4983_s30  ;;  %3436 = vrot.lane.b32.xlu0 %v4692_v48, %s4981_s28  ;;  %v2642_v55 = vrot.slane %v5413_v4, 5  ;;  %v4519_v22 = vrot.slane %v1337_v41, 9 }
  0x80   : > { %v1085_v53 = vor.u32 %v1084_v37, %v1080_v18  ;;  %v1090_v5 = vrot.slane %v1088_v54, 5  ;;  %v1436_v16 = vrot.slane %v5421_v14, 5  ;;  %v1439_v7 = vrot.slane %v934_v20, 5 }
  0x81   : > { %v1076_v56 = vrot.slane %v1075_v35, 4  ;;  %v2640_v60 = vsel %vm5096_vm7, %v4549_v50, %v2639_v52  ;;  %v2641_v61 = vrot.slane %v2639_v52, 4  ;;  %v4518_v6 = vrot.slane %v1336_v51, 9  ;;  %v361_v51 = vld [vmem:[%s5094_s22 + $0x30] sm:$0xf] }
  0x82   : > { %v1086_v62 = vrot.slane %v1085_v53, 4  ;;  %v1429_v9 = vrot.slane %v5390_v40, 5  ;;  %v1437_v4 = vsel %vm5096_vm7, %v4519_v22, %v1436_v16  ;;  %v1438_v19 = vrot.slane %v1436_v16, 4  ;;  %v362_v53 = vld [vmem:[%s5094_s22 + $0x34] sm:$0xf] }
  0x83   : > { %v1081_v11 = vsel %vm5116_vm11, %v1076_v56, %v1080_v18  ;;  %v2643_v12 = vsel %vm5096_vm7, %v2641_v61, %v2642_v55  ;;  %2848 = vrot.lane.b32.xlu1 %v4582_v2, %s4977_s24  ;;  %v1432_v32 = vrot.slane %v5405_v49, 5  ;;  %v472_v31 = vrot.slane %v470_v47, 7  ;;  %v1547_v49 = vld [vmem:[#allocation2 + $0x44] sm:$0x1] }
  0x84   : > { %v1091_v25 = vsel %vm5116_vm11, %v1086_v62, %v1090_v5  ;;  %v4693_v57 = vcombine.low %v2640_v60, %v2643_v12  ;;  %v1430_v28 = vsel %vm5096_vm7, %v4518_v6, %v1429_v9  ;;  %v1431_v29 = vrot.slane %v1429_v9, 4 }
  0x85   : > { %v4583_v30 = vcombine.low %v1081_v11, %v1091_v25  ;;  %v1440_v26 = vsel %vm5096_vm7, %v1438_v19, %v1439_v7  ;;  %v478_v20 = vshrl.u32 %v360_v45, 16  ;;  %v481_v38 = vshll.u32 %v360_v45, 16  ;;  %v5486_v7 = vld [vmem:[%s5094_s22 + $0x38] sm:$0xf] }
  0x86   : > { %3438 = vrot.lane.b32.xlu0 %v4693_v57, %s4981_s28  ;;  %v4599_v27 = vcombine.low %v1437_v4, %v1440_v26  ;;  %v1656_v23 = vshrl.u32 %v1519_v46, 16  ;;  %v1433_v10 = vsel %vm5096_vm7, %v1431_v29, %v1432_v32  ;;  %v475_v58 = vor.u32 %v473_v33, %v472_v31 }
  0x87   : > { %v476_v59 = vrot.slane %v472_v31, 4  ;;  %v1659_v13 = vshll.u32 %v1519_v46, 16  ;;  %2850 = vrot.lane.b32.xlu1 %v4583_v30, %s4977_s24  ;;  %v4598_v47 = vcombine.low %v1430_v28, %v1433_v10  ;;  %v480_v15 = vrot.slane %v478_v20, 7 }
  0x88   : > { %v1658_v8 = vrot.slane %v1656_v23, 4  ;;  %v1669_v43 = vshrl.u32 %v1520_v42, 16  ;;  %v746_v0 = vsel %vm5110_vm10, %v475_v58, %v745_v39  ;;  %v4614_v41 = vcombine.low %v1519_v46, %v1520_v42  ;;  %v752_v58 = vld [vmem:[#allocation2 + $0x54] sm:$0xf] }
  0x89   : > { %v1661_v18 = vrot.slane %v1659_v13, 5  ;;  %v1665_v48 = vshll.u32 %v1520_v42, 16  ;;  %v483_v33 = vor.u32 %v481_v38, %v480_v15  ;;  %747 = vst [vmem:[#allocation2 + $0x48] sm:$0xf] %v746_v0  ;;  %v485_v37 = vrot.slane %v480_v15, 4 }
  0x8a   : > { %2928 = vrot.lane.b32.xlu0 %v4598_v47, %s4976_s23  ;;  %v1671_v54 = vrot.slane %v1669_v43, 4  ;;  %v1675_v2 = vshll.u32 %v1547_v49, 16  ;;  %v2037_v52 = vrot.slane %v1520_v42, 5  ;;  %v4534_v56 = vrot.slane %v1947_v21, 9  ;;  %v5503_v43 = vld [vmem:[#allocation2 + $0x4] sm:$0xf] }
  0x8b   : > { %v1662_v35 = vor.u32 %v1661_v18, %v1658_v8  ;;  %v1667_v50 = vrot.slane %v1665_v48, 5  ;;  %2930 = vrot.lane.b32.xlu1 %v4599_v27, %s4976_s23  ;;  %v484_v5 = vsel %vm5124_vm12, %v476_v59, %v483_v33  ;;  %v750_v55 = vsel %vm5139_vm13, %v485_v37, %v749_v17  ;;  %v5505_v0 = vld [vmem:[#allocation2] sm:$0xf] }
  0x8c   : > { %v1677_v22 = vrot.slane %v1675_v2, 5  ;;  %748 = vst.msk [vmem:[#allocation2 + $0x4c] sm:$0xf] %vm290_vm0, %v484_v5  ;;  %751 = vst [vmem:[#allocation2 + $0x50] sm:$0x1] %v750_v55  ;;  %v2039_v16 = vrot.slane %v2037_v52, 4  ;;  %v2038_v26 = vsel %vm5096_vm7, %v4534_v56, %v2037_v52  ;;  %v4562_v18 = vcombine.low %v5505_v0, %v5503_v43 }
  0x8d   : > { %v1663_v60 = vrot.slane %v1662_v35, 4  ;;  %v1672_v61 = vor.u32 %v1671_v54, %v1667_v50  ;;  %v2040_v62 = vrot.slane %v1547_v49, 5  ;;  %v487_v6 = vshrl.u32 %v361_v51, 16 }
  0x8e   : > { %3024 = vrot.lane.b32.xlu0 %v4614_v41, %s4978_s25  ;;  %v495_v9 = vshrl.u32 %v362_v53, 16  ;;  %v490_v4 = vshll.u32 %v361_v51, 16  ;;  %v498_v19 = vshll.u32 %v362_v53, 16  ;;  %v504_v25 = vshrl.u32 %v5486_v7, 16 }
  0x8f   : > { %v1668_v11 = vsel %vm5116_vm11, %v1663_v60, %v1667_v50  ;;  %v1673_v12 = vrot.slane %v1672_v61, 4  ;;  %v489_v45 = vrot.slane %v487_v6, 7  ;;  %v507_v57 = vshll.u32 %v5486_v7, 16  ;;  %v756_v60 = vld [vmem:[#allocation2 + $0x5c] sm:$0x1] }
  0x90   : > { %v5491_v46 = vrot.slane %v495_v9, 7  ;;  %v1521_v28 = vld [vmem:[#allocation2 + $0x48] sm:$0xf]  ;;  %v2041_v32 = vsel %vm5096_vm7, %v2039_v16, %v2040_v62  ;;  %vm3612_vm3 = vcmask 162816   ;;  %vm3797_vm4 = vcmask 1041408  }
  0x91   : > { %v1678_v29 = vsel %vm5116_vm11, %v1673_v12, %v1677_v22  ;;  %v1948_v30 = vld [vmem:[#allocation2 + $0x48] sm:$0xe]  ;;  %v1680_v42 = vshrl.u32 %v1521_v28, 16  ;;  %v1683_v27 = vshll.u32 %v1521_v28, 16  ;;  %v492_v39 = vor.u32 %v490_v4, %v489_v45 }
  0x92   : > { %v2128_v31 = vld [vmem:[#allocation2 + $0x48] sm:$0xf]  ;;  %v4630_v20 = vcombine.low %v1668_v11, %v1678_v29  ;;  %v4535_v38 = vrot.slane %v1948_v30, 9  ;;  %v493_v23 = vrot.slane %v489_v45, 4  ;;  %v500_v10 = vor.u32 %v498_v19, %v5491_v46 }
  0x93   : > { %v2265_v59 = vshrl.u32 %v2128_v31, 16  ;;  %v1522_v13 = vld [vmem:[#allocation2 + $0x4c] sm:$0xf]  ;;  %v1682_v49 = vrot.slane %v1680_v42, 4  ;;  %v1685_v47 = vrot.slane %v1683_v27, 5  ;;  %v4646_v8 = vcombine.low %v2038_v26, %v2041_v32 }
  0x94   : > { %v1548_v15 = vld [vmem:[#allocation2 + $0x50] sm:$0x1]  ;;  %3104 = vrot.lane.b32.xlu0 %v4630_v20, %s4982_s29  ;;  %v1693_v41 = vshrl.u32 %v1522_v13, 16  ;;  %v4615_v17 = vcombine.low %v1521_v28, %v1522_v13  ;;  %v1689_v48 = vshll.u32 %v1522_v13, 16  ;;  %v2044_v37 = vrot.slane %v1522_v13, 5 }
  0x95   : > { %v1699_v21 = vshll.u32 %v1548_v15, 16  ;;  %v1686_v33 = vor.u32 %v1685_v47, %v1682_v49  ;;  %v2047_v54 = vrot.slane %v1548_v15, 5  ;;  %v501_v2 = vsel %vm5124_vm12, %v493_v23, %v500_v10  ;;  %v5511_v35 = vld [vmem:[#allocation2 + $0x4c] sm:$0xf]  ;;  %v5522_v9 = vld [vmem:[#allocation2 + $0x50] sm:$0x1] }
  0x96   : > { %3026 = vrot.lane.b32.xlu1 %v4615_v17, %s4978_s25  ;;  %v1691_v50 = vrot.slane %v1689_v48, 5  ;;  %v1695_v52 = vrot.slane %v1693_v41, 4  ;;  %v753_v53 = vsel %vm5110_vm10, %v492_v39, %v752_v58  ;;  %755 = vst.msk [vmem:[#allocation2 + $0x58] sm:$0xf] %vm290_vm0, %v501_v2  ;;  %v2045_v55 = vsel %vm5096_vm7, %v4535_v38, %v2044_v37  ;;  %v909_v11 = vld [vmem:[#allocation2 + $0x48] sm:$0xf] }
  0x97   : > { %v1701_v51 = vrot.slane %v1699_v21, 5  ;;  %v1687_v5 = vrot.slane %v1686_v33, 4  ;;  %v2046_v22 = vrot.slane %v2044_v37, 4  ;;  %754 = vst [vmem:[#allocation2 + $0x54] sm:$0xf] %v753_v53  ;;  %v2267_v56 = vrot.slane %v2265_v59, 4 }
  0x98   : > { %3184 = vrot.lane.b32.xlu0 %v4646_v8, %s4980_s27  ;;  %v1696_v61 = vor.u32 %v1695_v52, %v1691_v50  ;;  %v2268_v16 = vshll.u32 %v2128_v31, 16  ;;  %v2278_v62 = vshrl.u32 %v5511_v35, 16  ;;  %v4662_v6 = vcombine.low %v2128_v31, %v5511_v35  ;;  %v5530_v28 = vld [vmem:[#allocation2 + $0x4c] sm:$0xf]  ;;  %v5547_v52 = vld [vmem:[#allocation2 + $0x50] sm:$0x1] }
  0x99   : > { %v1692_v12 = vsel %vm5116_vm11, %v1687_v5, %v1691_v50  ;;  %v2048_v4 = vsel %vm5096_vm7, %v2046_v22, %v2047_v54  ;;  %v502_v19 = vrot.slane %v5491_v46, 4  ;;  %v2274_v45 = vshll.u32 %v5511_v35, 16  ;;  %v2556_v53 = vld [vmem:[#allocation2 + $0x48] sm:$0xe] }
  0x9a   : > { %v1697_v29 = vrot.slane %v1696_v61, 4  ;;  %v4647_v30 = vcombine.low %v2045_v55, %v2048_v4  ;;  %v2270_v26 = vrot.slane %v2268_v16, 5  ;;  %v2280_v32 = vrot.slane %v2278_v62, 4 }
  0x9b   : > { %v757_v31 = vsel %vm5139_vm13, %v502_v19, %v756_v60  ;;  %v2276_v42 = vrot.slane %v2274_v45, 5  ;;  %v2284_v27 = vshll.u32 %v5522_v9, 16  ;;  %v1093_v20 = vshrl.u32 %v909_v11, 16  ;;  %v5551_v60 = vpop.permute.xlu0 %2840 }
  0x9c   : > { %3280 = vrot.lane.b32.xlu0 %v4662_v6, %s4979_s26  ;;  %v1702_v46 = vsel %vm5116_vm11, %v1697_v29, %v1701_v51  ;;  %758 = vst [vmem:[#allocation2 + $0x5c] sm:$0x1] %v757_v31  ;;  %v2271_v38 = vor.u32 %v2270_v26, %v2267_v56  ;;  %v1096_v39 = vshll.u32 %v909_v11, 16  ;;  %v1102_v23 = vshll.u32 %v5530_v28, 16  ;;  %v5559_v26 = vpop.permute.xlu1 %2920 }
  0x9d   : > { %v4631_v10 = vcombine.low %v1692_v12, %v1702_v46  ;;  %v5539_v58 = vld [vmem:[#allocation2 + $0x58] sm:$0xf]  ;;  %v2281_v59 = vor.u32 %v2280_v32, %v2276_v42  ;;  %v2286_v13 = vrot.slane %v2284_v27, 5  ;;  %v1095_v49 = vrot.slane %v1093_v20, 4 }
  0x9e   : > { %v2130_v47 = vld [vmem:[#allocation2 + $0x54] sm:$0xf]  ;;  %v2302_v15 = vshrl.u32 %v5539_v58, 16  ;;  %v2298_v8 = vshll.u32 %v5539_v58, 16  ;;  %v2272_v41 = vrot.slane %v2271_v38, 4  ;;  %v1098_v17 = vrot.slane %v1096_v39, 5 }
  0x9f   : > { %3106 = vrot.lane.b32.xlu1 %v4631_v10, %s4982_s29  ;;  %v2289_v48 = vshrl.u32 %v2130_v47, 16  ;;  %v2292_v21 = vshll.u32 %v2130_v47, 16  ;;  %v4663_v33 = vcombine.low %v2130_v47, %v5539_v58  ;;  %v2282_v37 = vrot.slane %v2281_v59, 4  ;;  %v911_v11 = vld [vmem:[#allocation2 + $0x54] sm:$0xf] }
  0xa0   : > { %v2300_v54 = vrot.slane %v2298_v8, 5  ;;  %v2304_v2 = vrot.slane %v2302_v15, 4  ;;  %v2277_v50 = vsel %vm5116_vm11, %v2272_v41, %v2276_v42  ;;  %v1099_v51 = vor.u32 %v1098_v17, %v1095_v49 }
  0xa1   : > { %v2291_v5 = vrot.slane %v2289_v48, 4  ;;  %v2294_v55 = vrot.slane %v2292_v21, 5  ;;  %v2287_v22 = vsel %vm5116_vm11, %v2282_v37, %v2286_v13  ;;  %v1104_v56 = vrot.slane %v1102_v23, 5  ;;  %v2557_v13 = vld [vmem:[#allocation2 + $0x54] sm:$0xe] }
  0xa2   : > { %v2305_v61 = vor.u32 %v2304_v2, %v2300_v54  ;;  %v4678_v16 = vcombine.low %v2277_v50, %v2287_v22  ;;  %v1100_v62 = vrot.slane %v1099_v51, 4  ;;  %v1106_v6 = vshrl.u32 %v5530_v28, 16 }
  0xa3   : > { %3186 = vrot.lane.b32.xlu1 %v4647_v30, %s4980_s27  ;;  %v5555_v12 = vld [vmem:[#allocation2 + $0x5c] sm:$0x1]  ;;  %v2295_v4 = vor.u32 %v2294_v55, %v2291_v5  ;;  %v1112_v19 = vshll.u32 %v5547_v52, 16  ;;  %v4550_v45 = vrot.slane %v2556_v53, 9  ;;  %v2646_v29 = vrot.slane %v5511_v35, 5 }
  0xa4   : > { %v2306_v32 = vrot.slane %v2305_v61, 4  ;;  %v2308_v31 = vshll.u32 %v5555_v12, 16  ;;  %3360 = vrot.lane.b32.xlu0 %v4678_v16, %s4983_s30  ;;  %v1105_v42 = vsel %vm5116_vm11, %v1100_v62, %v1104_v56  ;;  %v1108_v27 = vrot.slane %v1106_v6, 4  ;;  %v912_v30 = vld [vmem:[#allocation2 + $0x58] sm:$0xf] }
  0xa5   : > { %v2296_v20 = vrot.slane %v2295_v4, 4  ;;  %v1114_v46 = vrot.slane %v1112_v19, 5  ;;  %v2647_v38 = vsel %vm5096_vm7, %v4550_v45, %v2646_v29  ;;  %v2648_v39 = vrot.slane %v2646_v29, 4  ;;  %v936_v47 = vld [vmem:[#allocation2 + $0x5c] sm:$0x1] }
  0xa6   : > { %v2310_v23 = vrot.slane %v2308_v31, 5  ;;  %v1109_v35 = vor.u32 %v1108_v27, %v1104_v56  ;;  %v2649_v10 = vrot.slane %v5522_v9, 5  ;;  %v1117_v59 = vshrl.u32 %v911_v11, 16  ;;  %v1339_v53 = vld [vmem:[#allocation2 + $0x54] sm:$0xe] }
  0xa7   : > { %3282 = vrot.lane.b32.xlu1 %v4663_v33, %s4979_s26  ;;  %v2301_v49 = vsel %vm5116_vm11, %v2296_v20, %v2300_v54  ;;  %v1120_v15 = vshll.u32 %v911_v11, 16  ;;  %v1126_v8 = vshll.u32 %v912_v30, 16  ;;  %v1130_v41 = vshrl.u32 %v912_v30, 16  ;;  %v5571_v17 = vpop.permute.xlu0 %3016  ;;  %v5577_v54 = vpop.permute.xlu1 %3018  ;;  %v1338_v11 = vld [vmem:[#allocation2 + $0x48] sm:$0xe] }
  0xa8   : > { %v2311_v48 = vsel %vm5116_vm11, %v2306_v32, %v2310_v23  ;;  %v1110_v21 = vrot.slane %v1109_v35, 4  ;;  %v2650_v9 = vsel %vm5096_vm7, %v2648_v39, %v2649_v10  ;;  %v1119_v37 = vrot.slane %v1117_v59, 4  ;;  %v364_v10 = vld [vmem:[%s5094_s22 + $0x3c] sm:$0xf] }
  0xa9   : > { %v4679_v2 = vcombine.low %v2301_v49, %v2311_v48  ;;  %v4694_v50 = vcombine.low %v2647_v38, %v2650_v9  ;;  %v1122_v33 = vrot.slane %v1120_v15, 5  ;;  %v1128_v51 = vrot.slane %v1126_v8, 5  ;;  %v1523_v8 = vld [vmem:[#allocation2 + $0x54] sm:$0xf]  ;;  %v759_v9 = vld [vmem:[#allocation2 + $0x60] sm:$0xf] }
  0xaa   : > { %v1115_v5 = vsel %vm5116_vm11, %v1110_v21, %v1114_v46  ;;  %v1132_v55 = vrot.slane %v1130_v41, 4  ;;  %v1136_v22 = vshll.u32 %v936_v47, 16  ;;  %v4551_v56 = vrot.slane %v2557_v13, 9  ;;  %v5607_v41 = vld [vmem:[#allocation2 + $0x58] sm:$0xf] }
  0xab   : > { %3362 = vrot.lane.b32.xlu1 %v4679_v2, %s4983_s30  ;;  %v4584_v61 = vcombine.low %v1105_v42, %v1115_v5  ;;  %3440 = vrot.lane.b32.xlu0 %v4694_v50, %s4981_s28  ;;  %v1123_v16 = vor.u32 %v1122_v33, %v1119_v37  ;;  %v2653_v62 = vrot.slane %v5539_v58, 5  ;;  %v2656_v6 = vrot.slane %v5555_v12, 5  ;;  %v5585_v4 = vpop.permute.xlu0 %3272  ;;  %v5599_v59 = vpop.permute.xlu1 %3274  ;;  %v5613_v37 = vld [vmem:[#allocation2 + $0x10] sm:$0xf]  ;;  %v5615_v2 = vld [vmem:[#allocation2 + $0xc] sm:$0xf] }
  0xac   : > { %v1133_v19 = vor.u32 %v1132_v55, %v1128_v51  ;;  %v1138_v45 = vrot.slane %v1136_v22, 5  ;;  %v4521_v29 = vrot.slane %v1339_v53, 9  ;;  %v1450_v32 = vrot.slane %v912_v30, 5 }
  0xad   : > { %v1124_v31 = vrot.slane %v1123_v16, 4  ;;  %v2654_v27 = vsel %vm5096_vm7, %v4551_v56, %v2653_v62  ;;  %v2655_v42 = vrot.slane %v2653_v62, 4  ;;  %v1453_v20 = vrot.slane %v936_v47, 5 }
  0xae   : > { %v1134_v46 = vrot.slane %v1133_v19, 4  ;;  %v1451_v58 = vsel %vm5096_vm7, %v4521_v29, %v1450_v32  ;;  %v1452_v38 = vrot.slane %v1450_v32, 4  ;;  %v4520_v12 = vrot.slane %v1338_v11, 9 }
  0xaf   : > { %2852 = vrot.lane.b32.xlu1 %v4584_v61, %s4977_s24  ;;  %v1129_v39 = vsel %vm5116_vm11, %v1124_v31, %v1128_v51  ;;  %v2657_v30 = vsel %vm5096_vm7, %v2655_v42, %v2656_v6  ;;  %v1443_v23 = vrot.slane %v5530_v28, 5  ;;  %v1446_v35 = vrot.slane %v5547_v52, 5  ;;  %v5609_v48 = vpop.permute.xlu0 %3176  ;;  %v5626_v61 = vld [vmem:[#allocation2 + $0x5c] sm:$0x1] }
  0xb0   : > { %v1139_v13 = vsel %vm5116_vm11, %v1134_v46, %v1138_v45  ;;  %v4695_v49 = vcombine.low %v2654_v27, %v2657_v30  ;;  %v1454_v47 = vsel %vm5096_vm7, %v1452_v38, %v1453_v20  ;;  %v506_v15 = vrot.slane %v504_v25, 7  ;;  %v763_v45 = vld [vmem:[#allocation2 + $0x68] sm:$0x1] }
  0xb1   : > { %v4585_v28 = vcombine.low %v1129_v39, %v1139_v13  ;;  %v1444_v52 = vsel %vm5096_vm7, %v4520_v12, %v1443_v23  ;;  %v1445_v21 = vrot.slane %v1443_v23, 4  ;;  %v4563_v50 = vcombine.low %v5615_v2, %v5613_v37  ;;  %v5631_v31 = vpop.permute.xlu1 %2922 }
  0xb2   : > { %3442 = vrot.lane.b32.xlu0 %v4695_v49, %s4981_s28  ;;  %v4601_v25 = vcombine.low %v1451_v58, %v1454_v47  ;;  %v509_v33 = vor.u32 %v507_v57, %v506_v15  ;;  %v512_v51 = vshrl.u32 %v364_v10, 16  ;;  %v515_v53 = vshll.u32 %v364_v10, 16  ;;  %v1949_v57 = vld [vmem:[#allocation2 + $0x54] sm:$0xe]  ;;  %v365_v58 = vld [vmem:[%s5094_s22 + $0x40] sm:$0xf] }
  0xb3   : > { %2854 = vrot.lane.b32.xlu1 %v4585_v28, %s4977_s24  ;;  %v1447_v5 = vsel %vm5096_vm7, %v1445_v21, %v1446_v35  ;;  %v1704_v55 = vshrl.u32 %v1523_v8, 16  ;;  %v1707_v22 = vshll.u32 %v1523_v8, 16  ;;  %v1717_v56 = vshrl.u32 %v5607_v41, 16  ;;  %v5637_v38 = vpop.permute.xlu0 %3432  ;;  %v366_v35 = vld [vmem:[%s5094_s22 + $0x44] sm:$0xf] }
  0xb4   : > { %v4600_v16 = vcombine.low %v1444_v52, %v1447_v5  ;;  %v510_v62 = vrot.slane %v506_v15, 4  ;;  %v514_v6 = vrot.slane %v512_v51, 7  ;;  %v760_v7 = vsel %vm5110_vm10, %v509_v33, %v759_v9  ;;  %v5649_v9 = vld [vmem:[#allocation2 + $0x18] sm:$0xf] }
  0xb5   : > { %761 = vst [vmem:[#allocation2 + $0x60] sm:$0xf] %v760_v7  ;;  %v1706_v11 = vrot.slane %v1704_v55, 4  ;;  %v1709_v19 = vrot.slane %v1707_v22, 5  ;;  %v1713_v29 = vshll.u32 %v5607_v41, 16  ;;  %v1719_v32 = vrot.slane %v1717_v56, 4  ;;  %v5657_v55 = vpop.permute.xlu1 %3178 }
  0xb6   : > { %2932 = vrot.lane.b32.xlu0 %v4600_v16, %s4976_s23  ;;  %v517_v27 = vor.u32 %v515_v53, %v514_v6  ;;  %v4616_v42 = vcombine.low %v1523_v8, %v5607_v41  ;;  %v519_v20 = vrot.slane %v514_v6, 4  ;;  %v1723_v46 = vshll.u32 %v5626_v61, 16  ;;  %v5659_v22 = vld [vmem:[#allocation2 + $0x24] sm:$0xf]  ;;  %v5661_v56 = vld [vmem:[#allocation2 + $0x28] sm:$0xf] }
  0xb7   : > { %2934 = vrot.lane.b32.xlu1 %v4601_v25, %s4976_s23  ;;  %v1710_v12 = vor.u32 %v1709_v19, %v1706_v11  ;;  %v1715_v39 = vrot.slane %v1713_v29, 5  ;;  %v4536_v30 = vrot.slane %v1949_v57, 9  ;;  %v2051_v23 = vrot.slane %v5607_v41, 5  ;;  %v5651_v25 = vld [vmem:[#allocation2 + $0x1c] sm:$0xf]  ;;  %v5674_v19 = vpop.permute.xlu0 %3434 }
  0xb8   : > { %v518_v10 = vsel %vm5124_vm12, %v510_v62, %v517_v27  ;;  %v764_v13 = vsel %vm5139_vm13, %v519_v20, %v763_v45  ;;  %v1725_v49 = vrot.slane %v1723_v46, 5  ;;  %v2054_v47 = vrot.slane %v5626_v61, 5  ;;  %v766_v11 = vld [vmem:[#allocation2 + $0x6c] sm:$0xf] }
  0xb9   : > { %762 = vst.msk [vmem:[#allocation2 + $0x64] sm:$0xf] %vm290_vm0, %v518_v10  ;;  %765 = vst [vmem:[#allocation2 + $0x68] sm:$0x1] %v764_v13  ;;  %v1711_v15 = vrot.slane %v1710_v12, 4  ;;  %v1720_v8 = vor.u32 %v1719_v32, %v1715_v39  ;;  %v2053_v28 = vrot.slane %v2051_v23, 4  ;;  %v4564_v33 = vcombine.low %v5649_v9, %v5651_v25 }
  0xba   : > { %3028 = vrot.lane.b32.xlu0 %v4616_v42, %s4978_s25  ;;  %v521_v41 = vshrl.u32 %v365_v58, 16  ;;  %v524_v52 = vshll.u32 %v365_v58, 16  ;;  %v529_v21 = vshrl.u32 %v366_v35, 16  ;;  %v532_v5 = vshll.u32 %v366_v35, 16 }
  0xbb   : > { %v1716_v51 = vsel %vm5116_vm11, %v1711_v15, %v1715_v39  ;;  %v1721_v53 = vrot.slane %v1720_v8, 4  ;;  %v2052_v62 = vsel %vm5096_vm7, %v4536_v30, %v2051_v23  ;;  %v3467_v6 = vsel %vm3464_vm14, %v4562_v18, %v5551_v60 }
  0xbc   : > { %v1525_v16 = vld [vmem:[#allocation2 + $0x60] sm:$0xf]  ;;  %v523_v7 = vrot.slane %v521_v41, 7  ;;  %v5672_v57 = vrot.slane %v529_v21, 7  ;;  %v2055_v42 = vsel %vm5096_vm7, %v2053_v28, %v2054_v47  ;;  %vm3645_vm5 = vcmask 195584  }
  0xbd   : > { %v1728_v45 = vshrl.u32 %v1525_v16, 16  ;;  %v1731_v29 = vshll.u32 %v1525_v16, 16  ;;  %v1726_v32 = vsel %vm5116_vm11, %v1721_v53, %v1725_v49  ;;  %v1950_v27 = vld [vmem:[#allocation2 + $0x60] sm:$0xe]  ;;  %v4648_v10 = vcombine.low %v2052_v62, %v2055_v42 }
  0xbe   : > { %v2132_v20 = vld [vmem:[#allocation2 + $0x60] sm:$0xf]  ;;  %v4632_v46 = vcombine.low %v1716_v51, %v1726_v32  ;;  %v526_v43 = vor.u32 %v524_v52, %v523_v7  ;;  %v527_v0 = vrot.slane %v523_v7, 4  ;;  %v534_v18 = vor.u32 %v532_v5, %v5672_v57  ;;  %v5689_v52 = vpop.permute.xlu1 %3098 }
  0xbf   : > { %v1730_v60 = vrot.slane %v1728_v45, 4  ;;  %v1733_v58 = vrot.slane %v1731_v29, 5  ;;  %v2313_v12 = vshrl.u32 %v2132_v20, 16  ;;  %v2316_v39 = vshll.u32 %v2132_v20, 16 }
  0xc0   : > { %v1526_v30 = vld [vmem:[#allocation2 + $0x64] sm:$0xf]  ;;  %v1550_v23 = vld [vmem:[#allocation2 + $0x68] sm:$0x1]  ;;  %3108 = vrot.lane.b32.xlu0 %v4632_v46, %s4982_s29  ;;  %v4537_v35 = vrot.slane %v1950_v27, 9  ;;  %v535_v13 = vsel %vm5124_vm12, %v527_v0, %v534_v18  ;;  %v767_v49 = vsel %vm5110_vm10, %v526_v43, %v766_v11  ;;  %vm3678_vm6 = vcmask 228352  }
  0xc1   : > { %v1741_v47 = vshrl.u32 %v1526_v30, 16  ;;  %v4617_v15 = vcombine.low %v1525_v16, %v1526_v30  ;;  %v1734_v8 = vor.u32 %v1733_v58, %v1730_v60  ;;  %v1737_v28 = vshll.u32 %v1526_v30, 16  ;;  %768 = vst [vmem:[#allocation2 + $0x6c] sm:$0xf] %v767_v49  ;;  %769 = vst.msk [vmem:[#allocation2 + $0x70] sm:$0xf] %vm290_vm0, %v535_v13  ;;  %v2843_v62 = vpop.permute.xlu0 %2842 }
  0xc2   : > { %v5687_v41 = vld [vmem:[#allocation2 + $0x64] sm:$0xf]  ;;  %v1747_v21 = vshll.u32 %v1550_v23, 16  ;;  %v2058_v51 = vrot.slane %v1526_v30, 5  ;;  %v2061_v53 = vrot.slane %v1550_v23, 5  ;;  %v2315_v5 = vrot.slane %v2313_v12, 4  ;;  %v5713_v13 = vpop.permute.xlu1 %3354 }
  0xc3   : > { %3030 = vrot.lane.b32.xlu1 %v4617_v15, %s4978_s25  ;;  %v1735_v7 = vrot.slane %v1734_v8, 4  ;;  %v1739_v11 = vrot.slane %v1737_v28, 5  ;;  %v1743_v45 = vrot.slane %v1741_v47, 4  ;;  %v2318_v16 = vrot.slane %v2316_v39, 5  ;;  %v770_v18 = vld [vmem:[#allocation2 + $0x74] sm:$0x1] }
  0xc4   : > { %v5694_v29 = vsel %vm5096_vm7, %v4537_v35, %v2058_v51  ;;  %v2060_v32 = vrot.slane %v2058_v51, 4  ;;  %3188 = vrot.lane.b32.xlu0 %v4648_v10, %s4980_s27  ;;  %v2326_v27 = vshrl.u32 %v5687_v41, 16  ;;  %v1749_v43 = vrot.slane %v1747_v21, 5  ;;  %v913_v10 = vld [vmem:[#allocation2 + $0x60] sm:$0xf] }
  0xc5   : > { %v1744_v46 = vor.u32 %v1743_v45, %v1739_v11  ;;  %v4664_v0 = vcombine.low %v2132_v20, %v5687_v41  ;;  %v1740_v60 = vsel %vm5116_vm11, %v1735_v7, %v1739_v11  ;;  %v536_v12 = vrot.slane %v5672_v57, 4 }
  0xc6   : > { %v2062_v58 = vsel %vm5096_vm7, %v2060_v32, %v2061_v53  ;;  %v5711_v35 = vsel %vm3513_vm15, %v3467_v6, %v5559_v26  ;;  %v2319_v20 = vor.u32 %v2318_v16, %v2315_v5  ;;  %v2322_v15 = vshll.u32 %v5687_v41, 16  ;;  %v5736_v5 = vld [vmem:[#allocation2 + $0x68] sm:$0x1] }
  0xc7   : > { %v1745_v30 = vrot.slane %v1744_v46, 4  ;;  %v4649_v23 = vcombine.low %v5694_v29, %v2062_v58  ;;  %v771_v57 = vsel %vm5139_vm13, %v536_v12, %v770_v18  ;;  %v2328_v8 = vrot.slane %v2326_v27, 4  ;;  %v5729_v6 = vpop.permute.xlu0 %3096  ;;  %v5747_v58 = vld [vmem:[#allocation2 + $0x68] sm:$0x1] }
  0xc8   : > { %v5715_v49 = vld [vmem:[#allocation2 + $0x6c] sm:$0xf]  ;;  %v5717_v47 = vld [vmem:[#allocation2 + $0x70] sm:$0xf]  ;;  %3284 = vrot.lane.b32.xlu0 %v4664_v0, %s4979_s26  ;;  %v5727_v26 = vsel %vm3464_vm14, %v4563_v50, %v2843_v62  ;;  %772 = vst [vmem:[#allocation2 + $0x74] sm:$0x1] %v771_v57 }
  0xc9   : > { %v1750_v28 = vsel %vm5116_vm11, %v1745_v30, %v1749_v43  ;;  %v2337_v21 = vshrl.u32 %v5715_v49, 16  ;;  %v2340_v51 = vshll.u32 %v5715_v49, 16  ;;  %v2350_v53 = vshrl.u32 %v5717_v47, 16  ;;  %v5741_v62 = vld [vmem:[#allocation2 + $0x64] sm:$0xf] }
  0xca   : > { %v4633_v7 = vcombine.low %v1740_v60, %v1750_v28  ;;  %v4665_v37 = vcombine.low %v5715_v49, %v5717_v47  ;;  %v2346_v2 = vshll.u32 %v5717_v47, 16  ;;  %v2320_v50 = vrot.slane %v2319_v20, 4  ;;  %v2558_v30 = vld [vmem:[#allocation2 + $0x60] sm:$0xe]  ;;  %v5750_v20 = vpop.permute.xlu1 %2844  ;;  %v916_v42 = vld [vmem:[#allocation2 + $0x70] sm:$0xf] }
  0xcb   : > { %v2339_v11 = vrot.slane %v2337_v21, 4  ;;  %v2342_v45 = vrot.slane %v2340_v51, 5  ;;  %v2352_v16 = vrot.slane %v2350_v53, 4  ;;  %v2324_v29 = vrot.slane %v2322_v15, 5 }
  0xcc   : > { %3110 = vrot.lane.b32.xlu1 %v4633_v7, %s4982_s29  ;;  %v2348_v32 = vrot.slane %v2346_v2, 5  ;;  %v2332_v27 = vshll.u32 %v5736_v5, 16  ;;  %v1141_v46 = vshrl.u32 %v913_v10, 16  ;;  %v1144_v43 = vshll.u32 %v913_v10, 16  ;;  %v915_v2 = vld [vmem:[#allocation2 + $0x6c] sm:$0xf] }
  0xcd   : > { %v2343_v0 = vor.u32 %v2342_v45, %v2339_v11  ;;  %v2325_v18 = vsel %vm5116_vm11, %v2320_v50, %v2324_v29  ;;  %v2329_v60 = vor.u32 %v2328_v8, %v2324_v29  ;;  %v1150_v12 = vshll.u32 %v5741_v62, 16 }
  0xce   : > { %v2353_v49 = vor.u32 %v2352_v16, %v2348_v32  ;;  %v2334_v57 = vrot.slane %v2332_v27, 5  ;;  %v1143_v15 = vrot.slane %v1141_v46, 4  ;;  %v1146_v28 = vrot.slane %v1144_v43, 5  ;;  %v5752_v21 = vpop.permute.xlu0 %3352 }
  0xcf   : > { %v2344_v51 = vrot.slane %v2343_v0, 4  ;;  %v2330_v10 = vrot.slane %v2329_v60, 4  ;;  %v1152_v53 = vrot.slane %v1150_v12, 5  ;;  %v1154_v7 = vshrl.u32 %v5741_v62, 16  ;;  %v5756_v8 = vld [vmem:[#allocation2 + $0x74] sm:$0x1] }
  0xd0   : > { %3190 = vrot.lane.b32.xlu1 %v4649_v23, %s4980_s27  ;;  %v2354_v50 = vrot.slane %v2353_v49, 4  ;;  %v1147_v11 = vor.u32 %v1146_v28, %v1143_v15  ;;  %v1160_v45 = vshll.u32 %v5747_v58, 16  ;;  %v4552_v16 = vrot.slane %v2558_v30, 9 }
  0xd1   : > { %v2349_v29 = vsel %vm5116_vm11, %v2344_v51, %v2348_v32  ;;  %v2356_v27 = vshll.u32 %v5756_v8, 16  ;;  %v2335_v46 = vsel %vm5116_vm11, %v2330_v10, %v2334_v57  ;;  %v1156_v43 = vrot.slane %v1154_v7, 4  ;;  %v5768_v32 = vpop.permute.xlu1 %2846  ;;  %v938_v51 = vld [vmem:[#allocation2 + $0x74] sm:$0x1] }
  0xd2   : > { %v4680_v0 = vcombine.low %v2325_v18, %v2335_v46  ;;  %v1148_v60 = vrot.slane %v1147_v11, 4  ;;  %v1162_v12 = vrot.slane %v1160_v45, 5  ;;  %v2660_v23 = vrot.slane %v5687_v41, 5  ;;  %v5765_v49 = vpop.permute.xlu0 %2924 }
  0xd3   : > { %v2358_v15 = vrot.slane %v2356_v27, 5  ;;  %v1157_v28 = vor.u32 %v1156_v43, %v1152_v53  ;;  %v2663_v30 = vrot.slane %v5736_v5, 5  ;;  %v1165_v39 = vshrl.u32 %v915_v2, 16  ;;  %v2559_v27 = vld [vmem:[#allocation2 + $0x6c] sm:$0xe] }
  0xd4   : > { %3286 = vrot.lane.b32.xlu1 %v4665_v37, %s4979_s26  ;;  %3364 = vrot.lane.b32.xlu0 %v4680_v0, %s4983_s30  ;;  %v1153_v18 = vsel %vm5116_vm11, %v1148_v60, %v1152_v53  ;;  %v2661_v41 = vsel %vm5096_vm7, %v4552_v16, %v2660_v23  ;;  %v2662_v57 = vrot.slane %v2660_v23, 4  ;;  %v1168_v10 = vshll.u32 %v915_v2, 16  ;;  %v1341_v53 = vld [vmem:[#allocation2 + $0x6c] sm:$0xe] }
  0xd5   : > { %v2359_v7 = vsel %vm5116_vm11, %v2354_v50, %v2358_v15  ;;  %v1158_v5 = vrot.slane %v1157_v28, 4  ;;  %v1167_v11 = vrot.slane %v1165_v39, 4  ;;  %v1174_v45 = vshll.u32 %v916_v42, 16  ;;  %v1340_v28 = vld [vmem:[#allocation2 + $0x60] sm:$0xe] }
  0xd6   : > { %v4681_v46 = vcombine.low %v2349_v29, %v2359_v7  ;;  %v2664_v37 = vsel %vm5096_vm7, %v2662_v57, %v2663_v30  ;;  %v1170_v43 = vrot.slane %v1168_v10, 5  ;;  %v1178_v0 = vshrl.u32 %v916_v42, 16  ;;  %v5780_v60 = vpop.permute.xlu0 %3020 }
  0xd7   : > { %v1163_v16 = vsel %vm5116_vm11, %v1158_v5, %v1162_v12  ;;  %v4696_v2 = vcombine.low %v2661_v41, %v2664_v37  ;;  %v1176_v23 = vrot.slane %v1174_v45, 5  ;;  %v1184_v61 = vshll.u32 %v938_v51, 16  ;;  %v5788_v12 = vpop.permute.xlu1 %2926  ;;  %v367_v37 = vld [vmem:[%s5094_s22 + $0x48] sm:$0xf] }
  0xd8   : > { %3366 = vrot.lane.b32.xlu1 %v4681_v46, %s4983_s30  ;;  %v4586_v39 = vcombine.low %v1153_v18, %v1163_v16  ;;  %v1171_v50 = vor.u32 %v1170_v43, %v1167_v11  ;;  %v1180_v15 = vrot.slane %v1178_v0, 4  ;;  %v4553_v29 = vrot.slane %v2559_v27, 9 }
  0xd9   : > { %3444 = vrot.lane.b32.xlu0 %v4696_v2, %s4981_s28  ;;  %v1186_v30 = vrot.slane %v1184_v61, 5  ;;  %v2667_v57 = vrot.slane %v5717_v47, 5  ;;  %v2670_v10 = vrot.slane %v5756_v8, 5  ;;  %v4523_v7 = vrot.slane %v1341_v53, 9  ;;  %v368_v2 = vld [vmem:[%s5094_s22 + $0x4c] sm:$0xf] }
  0xda   : > { %v1172_v41 = vrot.slane %v1171_v50, 4  ;;  %v1181_v5 = vor.u32 %v1180_v15, %v1176_v23  ;;  %v1464_v45 = vrot.slane %v916_v42, 5  ;;  %v1467_v18 = vrot.slane %v938_v51, 5  ;;  %v5790_v11 = vpop.permute.xlu0 %3100 }
  0xdb   : > { %v2668_v27 = vsel %vm5096_vm7, %v4553_v29, %v2667_v57  ;;  %v2669_v46 = vrot.slane %v2667_v57, 4  ;;  %v4522_v61 = vrot.slane %v1340_v28, 9  ;;  %v1457_v47 = vrot.slane %v5741_v62, 5  ;;  %v1527_v29 = vld [vmem:[#allocation2 + $0x6c] sm:$0xf] }
  0xdc   : > { %2856 = vrot.lane.b32.xlu1 %v4586_v39, %s4977_s24  ;;  %v1177_v8 = vsel %vm5116_vm11, %v1172_v41, %v1176_v23  ;;  %v1182_v43 = vrot.slane %v1181_v5, 4  ;;  %v1465_v42 = vsel %vm5096_vm7, %v4523_v7, %v1464_v45  ;;  %v1466_v51 = vrot.slane %v1464_v45, 4  ;;  %v5811_v28 = vld [vmem:[#allocation2 + $0x70] sm:$0xf]  ;;  %v5815_v5 = vpop.permute.xlu1 %3022 }
  0xdd   : > { %v2671_v0 = vsel %vm5096_vm7, %v2669_v46, %v2670_v10  ;;  %v1458_v53 = vsel %vm5096_vm7, %v4522_v61, %v1457_v47  ;;  %v1459_v16 = vrot.slane %v1457_v47, 4  ;;  %v1460_v62 = vrot.slane %v5747_v58, 5  ;;  %v773_v46 = vld [vmem:[#allocation2 + $0x78] sm:$0xf] }
  0xde   : > { %v1187_v39 = vsel %vm5116_vm11, %v1182_v43, %v1186_v30  ;;  %v4697_v50 = vcombine.low %v2668_v27, %v2671_v0  ;;  %v1468_v23 = vsel %vm5096_vm7, %v1466_v51, %v1467_v18  ;;  %v538_v15 = vshrl.u32 %v367_v37, 16  ;;  %v5817_v58 = vpop.permute.xlu0 %3180  ;;  %v777_v0 = vld [vmem:[#allocation2 + $0x80] sm:$0x1] }
  0xdf   : > { %v4587_v57 = vcombine.low %v1177_v8, %v1187_v39  ;;  %v4603_v10 = vcombine.low %v1465_v42, %v1468_v23  ;;  %v1461_v7 = vsel %vm5096_vm7, %v1459_v16, %v1460_v62  ;;  %v541_v41 = vshll.u32 %v367_v37, 16 }
  0xe0   : > { %3446 = vrot.lane.b32.xlu0 %v4697_v50, %s4981_s28  ;;  %v4602_v30 = vcombine.low %v1458_v53, %v1461_v7  ;;  %v540_v45 = vrot.slane %v538_v15, 7  ;;  %v546_v27 = vshrl.u32 %v368_v2, 16  ;;  %v549_v18 = vshll.u32 %v368_v2, 16  ;;  %v1551_v2 = vld [vmem:[#allocation2 + $0x74] sm:$0x1] }
  0xe1   : > { %2858 = vrot.lane.b32.xlu1 %v4587_v57, %s4977_s24  ;;  %v1752_v61 = vshrl.u32 %v1527_v29, 16  ;;  %v1755_v47 = vshll.u32 %v1527_v29, 16  ;;  %v1765_v8 = vshrl.u32 %v5811_v28, 16  ;;  %v4618_v43 = vcombine.low %v1527_v29, %v5811_v28 }
  0xe2   : > { %v543_v37 = vor.u32 %v541_v41, %v540_v45  ;;  %v544_v42 = vrot.slane %v540_v45, 4  ;;  %v548_v51 = vrot.slane %v546_v27, 7  ;;  %v3517_v53 = vsel %vm3513_vm15, %v5727_v26, %v5631_v31  ;;  %v1951_v41 = vld [vmem:[#allocation2 + $0x6c] sm:$0xe]  ;;  %v5838_v45 = vpop.permute.xlu0 %3276 }
  0xe3   : > { %v1754_v16 = vrot.slane %v1752_v61, 4  ;;  %v1757_v62 = vrot.slane %v1755_v47, 5  ;;  %v1761_v39 = vshll.u32 %v5811_v28, 16  ;;  %v3550_v15 = vsel %vm3546_vm1, %v3517_v53, %v5577_v54 }
  0xe4   : > { %2936 = vrot.lane.b32.xlu0 %v4602_v30, %s4976_s23  ;;  %v551_v50 = vor.u32 %v549_v18, %v548_v51  ;;  %v774_v23 = vsel %vm5110_vm10, %v543_v37, %v773_v46  ;;  %v553_v29 = vrot.slane %v548_v51, 4  ;;  %v3548_v57 = vsel %vm3546_vm1, %v5711_v35, %v5571_v17 }
  0xe5   : > { %2938 = vrot.lane.b32.xlu1 %v4603_v10, %s4976_s23  ;;  %775 = vst [vmem:[#allocation2 + $0x78] sm:$0xf] %v774_v23  ;;  %v1758_v31 = vor.u32 %v1757_v62, %v1754_v16  ;;  %v1763_v26 = vrot.slane %v1761_v39, 5  ;;  %v1767_v7 = vrot.slane %v1765_v8, 4  ;;  %v5836_v30 = vpop.permute.xlu1 %3102  ;;  %v3583_v54 = vsel %vm3579_vm2, %v3550_v15, %v5689_v52  ;;  %v369_v16 = vld [vmem:[%s5094_s22 + $0x50] sm:$0xf] }
  0xe6   : > { %v552_v27 = vsel %vm5124_vm12, %v544_v42, %v551_v50  ;;  %v778_v17 = vsel %vm5139_vm13, %v553_v29, %v777_v0  ;;  %v1771_v35 = vshll.u32 %v1551_v2, 16  ;;  %v4912_v10 = vld [vmem:[%s6836_s1 + $0x10] ss:$0 sps:$4 sm:$0x33]   ;;  %v3581_v61 = vsel %vm3579_vm2, %v3548_v57, %v5729_v6 }
  0xe7   : > { %776 = vst.msk [vmem:[#allocation2 + $0x7c] sm:$0xf] %vm290_vm0, %v552_v27  ;;  %779 = vst [vmem:[#allocation2 + $0x80] sm:$0x1] %v778_v17  ;;  %v1759_v18 = vrot.slane %v1758_v31, 4  ;;  %v1768_v46 = vor.u32 %v1767_v7, %v1763_v26  ;;  %v3614_v47 = vsel %vm3612_vm3, %v3581_v61, %v5609_v48  ;;  %v4538_v8 = vrot.slane %v1951_v41, 9  ;;  %4856 = vmatprep.subr.msk.bf16.mxu0 %vm3797_vm4, %v4912_v10 }
  0xe8   : > { %3032 = vrot.lane.b32.xlu0 %v4618_v43, %s4978_s25  ;;  %v1773_v52 = vrot.slane %v1771_v35, 5  ;;  %v2065_v37 = vrot.slane %v5811_v28, 5  ;;  %v2068_v0 = vrot.slane %v1551_v2, 5  ;;  %v5866_v6 = vsel %vm3464_vm14, %v4564_v33, %v5750_v20  ;;  %4857 = vmatprep.subr.msk.bf16.mxu1 %vm3797_vm4, %v4912_v10 }
  0xe9   : > { %v1764_v42 = vsel %vm5116_vm11, %v1759_v18, %v1763_v26  ;;  %v1769_v51 = vrot.slane %v1768_v46, 4  ;;  %v5859_v62 = vpop.permute.xlu1 %3182  ;;  %v6850_v53 = vcombine.low %v5659_v22, %v5661_v56  ;;  %v3647_v9 = vsel %vm3645_vm5, %v3614_v47, %v5585_v4  ;;  %v370_v46 = vld [vmem:[%s5094_s22 + $0x54] sm:$0xf]  ;;  %v780_v47 = vld [vmem:[#allocation2 + $0x84] sm:$0xf] }
  0xea   : > { %v2066_v48 = vsel %vm5096_vm7, %v4538_v8, %v2065_v37  ;;  %v2067_v28 = vrot.slane %v2065_v37, 4  ;;  %v3799_v25 = vsel %vm3797_vm4, %v4912_v10, 0  ;;  %v5879_v33 = vpop.permute.xlu0 %3356  ;;  %v555_v15 = vshrl.u32 %v369_v16, 16 }
  0xeb   : > { %v1774_v43 = vsel %vm5116_vm11, %v1769_v51, %v1773_v52  ;;  %v3476_v2 = vsel %vm3464_vm14, %v6850_v53, %v5768_v32  ;;  %4817 = vmatpush3.bf16.msra.mxu0 %v3799_v25  ;;  %4855 = vmatpush3.bf16.msra.mxu1 %v3799_v25  ;;  %v3680_v4 = vsel %vm3678_vm6, %v3647_v9, %v5752_v21  ;;  %v558_v41 = vshll.u32 %v369_v16, 16 }
  0xec   : > { %v1529_v20 = vld [vmem:[#allocation2 + $0x78] sm:$0xf]  ;;  %v4634_v39 = vcombine.low %v1764_v42, %v1774_v43  ;;  %v2069_v23 = vsel %vm5096_vm7, %v2067_v28, %v2068_v0  ;;  %v557_v7 = vrot.slane %v555_v15, 7  ;;  %v5890_v27 = vsel %vm3513_vm15, %v3476_v2, %v5788_v12 }
  0xed   : > { %v1952_v50 = vld [vmem:[#allocation2 + $0x78] sm:$0xe]  ;;  %v1776_v29 = vshrl.u32 %v1529_v20, 16  ;;  %v1779_v22 = vshll.u32 %v1529_v20, 16  ;;  %v5885_v32 = vpop.permute.xlu1 %3278  ;;  %v4650_v26 = vcombine.low %v2066_v48, %v2069_v23  ;;  %v3616_v8 = vsel %vm3612_vm3, %v3583_v54, %v5657_v55 }
  0xee   : > { %v4539_v56 = vrot.slane %v1952_v50, 9  ;;  %v1530_v57 = vld [vmem:[#allocation2 + $0x7c] sm:$0xf]  ;;  %v1552_v31 = vld [vmem:[#allocation2 + $0x80] sm:$0x1]  ;;  %3112 = vrot.lane.b32.xlu0 %v4634_v39, %s4982_s29  ;;  %v560_v0 = vor.u32 %v558_v41, %v557_v7  ;;  %v561_v53 = vrot.slane %v557_v7, 4 }
  0xef   : > { %v1778_v17 = vrot.slane %v1776_v29, 4  ;;  %v1781_v35 = vrot.slane %v1779_v22, 5  ;;  %v1789_v10 = vshrl.u32 %v1530_v57, 16  ;;  %v4619_v18 = vcombine.low %v1529_v20, %v1530_v57  ;;  %v2136_v12 = vld [vmem:[#allocation2 + $0x78] sm:$0xf] }
  0xf0   : > { %v1785_v61 = vshll.u32 %v1530_v57, 16  ;;  %v1795_v21 = vshll.u32 %v1552_v31, 16  ;;  %v2072_v52 = vrot.slane %v1530_v57, 5  ;;  %v2075_v51 = vrot.slane %v1552_v31, 5  ;;  %v5899_v2 = vld [vmem:[#allocation2 + $0x7c] sm:$0xf] }
  0xf1   : > { %3034 = vrot.lane.b32.xlu1 %v4619_v18, %s4978_s25  ;;  %v1782_v37 = vor.u32 %v1781_v35, %v1778_v17  ;;  %v1791_v42 = vrot.slane %v1789_v10, 4  ;;  %v5896_v16 = vpop.permute.xlu0 %3436  ;;  %v563_v25 = vshrl.u32 %v370_v46, 16  ;;  %v566_v55 = vshll.u32 %v370_v46, 16  ;;  %v5903_v20 = vpop.permute.xlu1 %3358  ;;  %v5915_v10 = vld [vmem:[#allocation2 + $0x80] sm:$0x1] }
  0xf2   : > { %v1787_v48 = vrot.slane %v1785_v61, 5  ;;  %v1797_v28 = vrot.slane %v1795_v21, 5  ;;  %v2074_v43 = vrot.slane %v2072_v52, 4  ;;  %3192 = vrot.lane.b32.xlu0 %v4650_v26, %s4980_s27  ;;  %v781_v54 = vsel %vm5110_vm10, %v560_v0, %v780_v47  ;;  %v784_v47 = vld [vmem:[#allocation2 + $0x8c] sm:$0x1] }
  0xf3   : > { %v1783_v9 = vrot.slane %v1782_v37, 4  ;;  %v2073_v50 = vsel %vm5096_vm7, %v4539_v56, %v2072_v52  ;;  %782 = vst [vmem:[#allocation2 + $0x84] sm:$0xf] %v781_v54  ;;  %v2361_v23 = vshrl.u32 %v2136_v12, 16  ;;  %v2364_v15 = vshll.u32 %v2136_v12, 16 }
  0xf4   : > { %v1792_v39 = vor.u32 %v1791_v42, %v1787_v48  ;;  %v2076_v22 = vsel %vm5096_vm7, %v2074_v43, %v2075_v51  ;;  %v565_v57 = vrot.slane %v563_v25, 7  ;;  %v2374_v31 = vshrl.u32 %v5899_v2, 16  ;;  %v917_v37 = vld [vmem:[#allocation2 + $0x78] sm:$0xf] }
  0xf5   : > { %v1788_v29 = vsel %vm5116_vm11, %v1783_v9, %v1787_v48  ;;  %v2363_v7 = vrot.slane %v2361_v23, 4  ;;  %v2366_v41 = vrot.slane %v2364_v15, 5  ;;  %v4666_v17 = vcombine.low %v2136_v12, %v5899_v2  ;;  %v5931_v0 = vpop.permute.xlu1 %2848  ;;  %v5937_v48 = vld [vmem:[#allocation2 + $0x7c] sm:$0xf]  ;;  %v5950_v23 = vld [vmem:[#allocation2 + $0x80] sm:$0x1] }
  0xf6   : > { %v1793_v26 = vrot.slane %v1792_v39, 4  ;;  %v568_v35 = vor.u32 %v566_v55, %v565_v57  ;;  %vm3711_vm8 = vcmask 261120   ;;  %vm3764_vm9 = vcmask 293888   ;;  %v4943_v1 = vld [vmem:[#allocation2 + $0x78] sm:$0xf] }
  0xf7   : > { %v3649_v56 = vsel %vm3645_vm5, %v3616_v8, %v5599_v59  ;;  %v4651_v61 = vcombine.low %v2073_v50, %v2076_v22  ;;  %3288 = vrot.lane.b32.xlu0 %v4666_v17, %s4979_s26  ;;  %v3713_v21 = vsel %vm3711_vm8, %v3680_v4, %v5637_v38  ;;  %v570_v51 = vrot.slane %v565_v57, 4  ;;  %v2560_v22 = vld [vmem:[#allocation2 + $0x78] sm:$0xe] }
  0xf8   : > { %v5917_v18 = vpop.permute.xlu0 %3438  ;;  %v1798_v46 = vsel %vm5116_vm11, %v1793_v26, %v1797_v28  ;;  %v3682_v52 = vsel %vm3678_vm6, %v3649_v56, %v5713_v13  ;;  %v569_v59 = vsel %vm5124_vm12, %v561_v53, %v568_v35  ;;  %4818 = vmatprep.mubr.msk.bf16.mxu0 %vm3764_vm9, %v3713_v21  ;;  %v2367_v38 = vor.u32 %v2366_v41, %v2363_v7 }
  0xf9   : > { %v4635_v42 = vcombine.low %v1788_v29, %v1798_v46  ;;  %v3715_v8 = vsel %vm3711_vm8, %v3682_v52, %v5674_v19  ;;  %783 = vst.msk [vmem:[#allocation2 + $0x88] sm:$0xf] %vm290_vm0, %v569_v59  ;;  %v2370_v13 = vshll.u32 %v5899_v2, 16  ;;  %v2376_v4 = vrot.slane %v2374_v31, 4  ;;  %v5960_v35 = vpop.permute.xlu1 %2850 }
  0xfa   : > { %4819 = vmatmul.mubr.msk.bf16.vlgmr.msra.gmra.mrb[0].mxu0 %vm3764_vm9, %v3715_v8  ;;  %v2380_v12 = vshll.u32 %v5915_v10, 16  ;;  %v2138_v28 = vld [vmem:[#allocation2 + $0x84] sm:$0xf]  ;;  %v3519_v19 = vsel %vm3513_vm15, %v5866_v6, %v5765_v49  ;;  %v785_v43 = vsel %vm5139_vm13, %v570_v51, %v784_v47  ;;  %v3554_v53 = vsel %vm3546_vm1, %v5890_v27, %v5815_v5 }
  0xfb   : > { %3114 = vrot.lane.b32.xlu1 %v4635_v42, %s4982_s29  ;;  %v1189_v9 = vshrl.u32 %v917_v37, 16  ;;  %v2385_v55 = vshrl.u32 %v2138_v28, 16  ;;  %v2388_v54 = vshll.u32 %v2138_v28, 16  ;;  %786 = vst [vmem:[#allocation2 + $0x8c] sm:$0x1] %v785_v43  ;;  %v2368_v39 = vrot.slane %v2367_v38, 4 }
  0xfc   : > { %v5948_v25 = vpop.permute.xlu0 %2928  ;;  %v2372_v50 = vrot.slane %v2370_v13, 5  ;;  %v3552_v49 = vsel %vm3546_vm1, %v3519_v19, %v5780_v60  ;;  %v1192_v15 = vshll.u32 %v917_v37, 16  ;;  %v1198_v29 = vshll.u32 %v5937_v48, 16 }
  0xfd   : > { %v1191_v6 = vrot.slane %v1189_v9, 4  ;;  %v2387_v57 = vrot.slane %v2385_v55, 4  ;;  %v2390_v5 = vrot.slane %v2388_v54, 5  ;;  %v2382_v31 = vrot.slane %v2380_v12, 5 }
  0xfe   : > { %v2377_v27 = vor.u32 %v2376_v4, %v2372_v50  ;;  %v1194_v26 = vrot.slane %v1192_v15, 5  ;;  %v5956_v7 = vrot.slane %v1198_v29, 5  ;;  %v1202_v41 = vshrl.u32 %v5937_v48, 16 }
  0xff   : > { %3194 = vrot.lane.b32.xlu1 %v4651_v61, %s4980_s27  ;;  %v1208_v17 = vshll.u32 %v5950_v23, 16  ;;  %v2391_v60 = vor.u32 %v2390_v5, %v2387_v57  ;;  %v2373_v56 = vsel %vm5116_vm11, %v2368_v39, %v2372_v50  ;;  %v4554_v21 = vrot.slane %v2560_v22, 9  ;;  %v5977_v57 = vpop.permute.xlu1 %2930 }
 0x100   : > { %v2378_v46 = vrot.slane %v2377_v27, 4  ;;  %v5964_v52 = vpop.permute.xlu0 %3024  ;;  %v2139_v47 = vld [vmem:[#allocation2 + $0x88] sm:$0xf]  ;;  %v1195_v37 = vor.u32 %v1194_v26, %v1191_v6  ;;  %v1204_v61 = vrot.slane %v1202_v41, 4  ;;  %v2674_v59 = vrot.slane %v5899_v2, 5 }
 0x101   : > { %v1210_v42 = vrot.slane %v1208_v17, 5  ;;  %v2398_v8 = vshrl.u32 %v2139_v47, 16  ;;  %v4667_v51 = vcombine.low %v2138_v28, %v2139_v47  ;;  %v2392_v38 = vrot.slane %v2391_v60, 4  ;;  %v919_v2 = vld [vmem:[#allocation2 + $0x84] sm:$0xf] }
 0x102   : > { %v2394_v13 = vshll.u32 %v2139_v47, 16  ;;  %v2161_v4 = vld [vmem:[#allocation2 + $0x8c] sm:$0x1]  ;;  %v2383_v12 = vsel %vm5116_vm11, %v2378_v46, %v2382_v31  ;;  %v1196_v19 = vrot.slane %v1195_v37, 4  ;;  %v1205_v43 = vor.u32 %v1204_v61, %v5956_v7  ;;  %v920_v22 = vld [vmem:[#allocation2 + $0x88] sm:$0xf] }
 0x103   : > { %v2677_v9 = vrot.slane %v5915_v10, 5  ;;  %3290 = vrot.lane.b32.xlu1 %v4667_v51, %s4979_s26  ;;  %v2400_v54 = vrot.slane %v2398_v8, 4  ;;  %v2404_v39 = vshll.u32 %v2161_v4, 16  ;;  %v4682_v50 = vcombine.low %v2373_v56, %v2383_v12  ;;  %v940_v26 = vld [vmem:[#allocation2 + $0x8c] sm:$0x1] }
 0x104   : > { %v2396_v55 = vrot.slane %v2394_v13, 5  ;;  %v1201_v28 = vsel %vm5116_vm11, %v1196_v19, %v5956_v7  ;;  %v1206_v6 = vrot.slane %v1205_v43, 4  ;;  %v2675_v15 = vsel %vm5096_vm7, %v4554_v21, %v2674_v59  ;;  %v2561_v46 = vld [vmem:[#allocation2 + $0x84] sm:$0xe] }
 0x105   : > { %v2676_v29 = vrot.slane %v2674_v59, 4  ;;  %v2406_v27 = vrot.slane %v2404_v39, 5  ;;  %3368 = vrot.lane.b32.xlu0 %v4682_v50, %s4983_s30  ;;  %v3587_v31 = vsel %vm3579_vm2, %v3554_v53, %v5836_v30  ;;  %v3585_v17 = vsel %vm3579_vm2, %v3552_v49, %v5790_v11  ;;  %v1343_v12 = vld [vmem:[#allocation2 + $0x84] sm:$0xe] }
 0x106   : > { %v2397_v10 = vsel %vm5116_vm11, %v2392_v38, %v2396_v55  ;;  %v2401_v5 = vor.u32 %v2400_v54, %v2396_v55  ;;  %v5984_v7 = vpop.permute.xlu0 %3104  ;;  %v1213_v60 = vshrl.u32 %v919_v2, 16  ;;  %v1216_v56 = vshll.u32 %v919_v2, 16 }
 0x107   : > { %v2678_v41 = vsel %vm5096_vm7, %v2676_v29, %v2677_v9  ;;  %v1211_v37 = vsel %vm5116_vm11, %v1206_v6, %v1210_v42  ;;  %v1222_v59 = vshll.u32 %v920_v22, 16  ;;  %v1226_v53 = vshrl.u32 %v920_v22, 16  ;;  %v1342_v42 = vld [vmem:[#allocation2 + $0x78] sm:$0xe] }
 0x108   : > { %v2402_v21 = vrot.slane %v2401_v5, 4  ;;  %v4698_v61 = vcombine.low %v2675_v15, %v2678_v41  ;;  %v1215_v8 = vrot.slane %v1213_v60, 4  ;;  %v1218_v30 = vrot.slane %v1216_v56, 5  ;;  %v5995_v54 = vpop.permute.xlu1 %3026 }
 0x109   : > { %v1232_v51 = vshll.u32 %v940_v26, 16  ;;  %v1224_v13 = vrot.slane %v1222_v59, 5  ;;  %v4555_v11 = vrot.slane %v2561_v46, 9  ;;  %v2681_v49 = vrot.slane %v2139_v47, 5 }
 0x10a   : > { %v2407_v38 = vsel %vm5116_vm11, %v2402_v21, %v2406_v27  ;;  %3448 = vrot.lane.b32.xlu0 %v4698_v61, %s4981_s28  ;;  %v4588_v43 = vcombine.low %v1201_v28, %v1211_v37  ;;  %v1219_v9 = vor.u32 %v1218_v30, %v1215_v8  ;;  %v1228_v55 = vrot.slane %v1226_v53, 4  ;;  %v5999_v15 = vpop.permute.xlu0 %3184  ;;  %v371_v37 = vld [vmem:[%s5094_s22 + $0x58] sm:$0xf] }
 0x10b   : > { %v4683_v19 = vcombine.low %v2397_v10, %v2407_v38  ;;  %v1234_v39 = vrot.slane %v1232_v51, 5  ;;  %v2682_v50 = vsel %vm5096_vm7, %v4555_v11, %v2681_v49  ;;  %v2683_v2 = vrot.slane %v2681_v49, 4 }
 0x10c   : > { %v2684_v6 = vrot.slane %v2161_v4, 5  ;;  %v1220_v47 = vrot.slane %v1219_v9, 4  ;;  %v1229_v29 = vor.u32 %v1228_v55, %v1224_v13  ;;  %v3620_v28 = vsel %vm3612_vm3, %v3587_v31, %v5859_v62 }
 0x10d   : > { %3370 = vrot.lane.b32.xlu1 %v4683_v19, %s4983_s30  ;;  %v4525_v10 = vrot.slane %v1343_v12, 9  ;;  %v1478_v27 = vrot.slane %v920_v22, 5  ;;  %v1481_v41 = vrot.slane %v940_v26, 5  ;;  %v4524_v60 = vrot.slane %v1342_v42, 9  ;;  %v372_v22 = vld [vmem:[%s5094_s22 + $0x5c] sm:$0xf] }
 0x10e   : > { %v2685_v5 = vsel %vm5096_vm7, %v2683_v2, %v2684_v6  ;;  %v1225_v4 = vsel %vm5116_vm11, %v1220_v47, %v1224_v13  ;;  %v1230_v56 = vrot.slane %v1229_v29, 4  ;;  %v1471_v21 = vrot.slane %v5937_v48, 5  ;;  %v1532_v13 = vld [vmem:[#allocation2 + $0x88] sm:$0xf]  ;;  %v6028_v11 = vpop.permute.xlu0 %3280  ;;  %v787_v2 = vld [vmem:[#allocation2 + $0x90] sm:$0xf] }
 0x10f   : > { %v4699_v46 = vcombine.low %v2682_v50, %v2685_v5  ;;  %v3618_v61 = vsel %vm3612_vm3, %v3585_v17, %v5817_v58  ;;  %v1479_v62 = vsel %vm5096_vm7, %v4525_v10, %v1478_v27  ;;  %v1480_v31 = vrot.slane %v1478_v27, 4  ;;  %v1531_v17 = vld [vmem:[#allocation2 + $0x84] sm:$0xf]  ;;  %v1553_v29 = vld [vmem:[#allocation2 + $0x8c] sm:$0x1] }
 0x110   : > { %v1474_v59 = vrot.slane %v5950_v23, 5  ;;  %v1235_v26 = vsel %vm5116_vm11, %v1230_v56, %v1234_v39  ;;  %v1472_v48 = vsel %vm5096_vm7, %v4524_v60, %v1471_v21  ;;  %v1473_v8 = vrot.slane %v1471_v21, 4  ;;  %v1953_v21 = vld [vmem:[#allocation2 + $0x84] sm:$0xe] }
 0x111   : > { %2860 = vrot.lane.b32.xlu1 %v4588_v43, %s4977_s24  ;;  %3450 = vrot.lane.b32.xlu0 %v4699_v46, %s4981_s28  ;;  %v3653_v58 = vsel %vm3645_vm5, %v3620_v28, %v5885_v32  ;;  %v6024_v30 = vpop.permute.xlu1 %3106  ;;  %v4589_v53 = vcombine.low %v1225_v4, %v1235_v26  ;;  %v1482_v23 = vsel %vm5096_vm7, %v1480_v31, %v1481_v41  ;;  %v572_v51 = vshrl.u32 %v371_v37, 16  ;;  %v791_v41 = vld [vmem:[#allocation2 + $0x98] sm:$0x1] }
 0x112   : > { %v575_v38 = vshll.u32 %v371_v37, 16  ;;  %v1475_v49 = vsel %vm5096_vm7, %v1473_v8, %v1474_v59  ;;  %v3651_v12 = vsel %vm3645_vm5, %v3618_v61, %v5838_v45  ;;  %v580_v19 = vshrl.u32 %v372_v22, 16  ;;  %v373_v8 = vld [vmem:[%s5094_s22 + $0x60] sm:$0xf] }
 0x113   : > { %v583_v32 = vshll.u32 %v372_v22, 16  ;;  %v4604_v43 = vcombine.low %v1472_v48, %v1475_v49  ;;  %v574_v9 = vrot.slane %v572_v51, 7  ;;  %v1800_v55 = vshrl.u32 %v1531_v17, 16  ;;  %v374_v51 = vld [vmem:[%s5094_s22 + $0x64] sm:$0xf] }
 0x114   : > { %v1803_v42 = vshll.u32 %v1531_v17, 16  ;;  %v4605_v39 = vcombine.low %v1479_v62, %v1482_v23  ;;  %v582_v50 = vrot.slane %v580_v19, 7  ;;  %v1813_v6 = vshrl.u32 %v1532_v13, 16 }
 0x115   : > { %2862 = vrot.lane.b32.xlu1 %v4589_v53, %s4977_s24  ;;  %v4620_v47 = vcombine.low %v1531_v17, %v1532_v13  ;;  %v6035_v28 = vpop.permute.xlu1 %3186  ;;  %2940 = vrot.lane.b32.xlu0 %v4604_v43, %s4976_s23  ;;  %v577_v10 = vor.u32 %v575_v38, %v574_v9  ;;  %v578_v45 = vrot.slane %v574_v9, 4  ;;  %v1802_v5 = vrot.slane %v1800_v55, 4 }
 0x116   : > { %v1805_v27 = vrot.slane %v1803_v42, 5  ;;  %v585_v60 = vor.u32 %v583_v32, %v582_v50  ;;  %v3686_v4 = vsel %vm3678_vm6, %v3653_v58, %v5903_v20  ;;  %v587_v56 = vrot.slane %v582_v50, 4  ;;  %v6042_v59 = vpop.permute.xlu0 %3360 }
 0x117   : > { %v1809_v46 = vshll.u32 %v1532_v13, 16  ;;  %v788_v37 = vsel %vm5110_vm10, %v577_v10, %v787_v2  ;;  %v1815_v62 = vrot.slane %v1813_v6, 4  ;;  %v1819_v31 = vshll.u32 %v1553_v29, 16 }
 0x118   : > { %v1806_v61 = vor.u32 %v1805_v27, %v1802_v5  ;;  %v586_v22 = vsel %vm5124_vm12, %v578_v45, %v585_v60  ;;  %789 = vst [vmem:[#allocation2 + $0x90] sm:$0xf] %v788_v37  ;;  %v3684_v20 = vsel %vm3678_vm6, %v3651_v12, %v5879_v33  ;;  %v792_v26 = vsel %vm5139_vm13, %v587_v56, %v791_v41 }
 0x119   : > { %2942 = vrot.lane.b32.xlu1 %v4605_v39, %s4976_s23  ;;  %v1811_v48 = vrot.slane %v1809_v46, 5  ;;  %790 = vst.msk [vmem:[#allocation2 + $0x94] sm:$0xf] %vm290_vm0, %v586_v22  ;;  %3036 = vrot.lane.b32.xlu0 %v4620_v47, %s4978_s25  ;;  %793 = vst [vmem:[#allocation2 + $0x98] sm:$0x1] %v792_v26  ;;  %v1821_v17 = vrot.slane %v1819_v31, 5  ;;  %v3717_v53 = vsel %vm3711_vm8, %v3684_v20, %v5896_v16  ;;  %v6063_v32 = vpop.permute.xlu1 %3282 }
 0x11a   : > { %v1807_v58 = vrot.slane %v1806_v61, 4  ;;  %v4540_v23 = vrot.slane %v1953_v21, 9  ;;  %v2079_v49 = vrot.slane %v1532_v13, 5  ;;  %v2082_v33 = vrot.slane %v1553_v29, 5  ;;  %4822 = vmatprep.mubr.msk.bf16.mxu0 %vm3764_vm9, %v3717_v53  ;;  %v794_v22 = vld [vmem:[#allocation2 + $0x9c] sm:$0xf] }
 0x11b   : > { %v1816_v38 = vor.u32 %v1815_v62, %v1811_v48  ;;  %v6851_v12 = vcombine.low %v5411_v3, %v5421_v14  ;;  %v3719_v16 = vsel %vm3711_vm8, %v3686_v4, %v5917_v18  ;;  %v589_v9 = vshrl.u32 %v373_v8, 16 }
 0x11c   : > { %v1812_v43 = vsel %vm5116_vm11, %v1807_v58, %v1811_v48  ;;  %v592_v55 = vshll.u32 %v373_v8, 16  ;;  %v2080_v42 = vsel %vm5096_vm7, %v4540_v23, %v2079_v49  ;;  %v2081_v39 = vrot.slane %v2079_v49, 4  ;;  %4823 = vmatmul.mubr.msk.bf16.gmra.mrb[4].mxu0 %vm3764_vm9, %v3719_v16 }
 0x11d   : > { %v3482_v19 = vsel %vm3464_vm14, %v6851_v12, %v5960_v35  ;;  %v1817_v13 = vrot.slane %v1816_v38, 4  ;;  %v597_v50 = vshrl.u32 %v374_v51, 16  ;;  %v6852_v3 = vcombine.low %v5374_v24, %v5390_v40  ;;  %v6079_v6 = vpop.permute.xlu0 %3440  ;;  %v6096_v37 = vpop.permute.xlu1 %3362 }
 0x11e   : > { %v591_v35 = vrot.slane %v589_v9, 7  ;;  %v600_v2 = vshll.u32 %v374_v51, 16  ;;  %v3525_v18 = vsel %vm3513_vm15, %v3482_v19, %v5977_v57  ;;  %v2083_v29 = vsel %vm5096_vm7, %v2081_v39, %v2082_v33 }
 0x11f   : > { %v3479_v14 = vsel %vm3464_vm14, %v6852_v3, %v5931_v0  ;;  %v1822_v47 = vsel %vm5116_vm11, %v1817_v13, %v1821_v17  ;;  %v6085_v10 = vrot.slane %v597_v50, 7  ;;  %v1533_v40 = vld [vmem:[#allocation2 + $0x90] sm:$0xf]  ;;  %v4652_v5 = vcombine.low %v2080_v42, %v2083_v29 }
 0x120   : > { %v6089_v24 = vsel %vm3513_vm15, %v3479_v14, %v5948_v25  ;;  %v4636_v0 = vcombine.low %v1812_v43, %v1822_v47  ;;  %v1954_v45 = vld [vmem:[#allocation2 + $0x90] sm:$0xe]  ;;  %v595_v27 = vrot.slane %v591_v35, 4  ;;  %v6093_v57 = vsel %vm3546_vm1, %v3525_v18, %v5995_v54  ;;  %v1534_v41 = vld [vmem:[#allocation2 + $0x94] sm:$0xf] }
 0x121   : > { %v1824_v60 = vshrl.u32 %v1533_v40, 16  ;;  %v1827_v4 = vshll.u32 %v1533_v40, 16  ;;  %v1554_v56 = vld [vmem:[#allocation2 + $0x98] sm:$0x1]  ;;  %v594_v46 = vor.u32 %v592_v55, %v591_v35  ;;  %v602_v21 = vor.u32 %v600_v2, %v6085_v10  ;;  %v2140_v8 = vld [vmem:[#allocation2 + $0x90] sm:$0xf]  ;;  %v6120_v35 = vpop.permute.xlu1 %2852 }
 0x122   : > { %v1837_v25 = vshrl.u32 %v1534_v41, 16  ;;  %v4621_v61 = vcombine.low %v1533_v40, %v1534_v41  ;;  %v1833_v62 = vshll.u32 %v1534_v41, 16  ;;  %v1843_v31 = vshll.u32 %v1554_v56, 16  ;;  %3116 = vrot.lane.b32.xlu0 %v4636_v0, %s4982_s29  ;;  %v6100_v51 = vld [vmem:[#allocation2 + $0x94] sm:$0xf] }
 0x123   : > { %v1826_v20 = vrot.slane %v1824_v60, 4  ;;  %v1829_v26 = vrot.slane %v1827_v4, 5  ;;  %v4541_v54 = vrot.slane %v1954_v45, 9  ;;  %v2086_v48 = vrot.slane %v1534_v41, 5  ;;  %v6118_v3 = vld [vmem:[#allocation2 + $0x98] sm:$0x1] }
 0x124   : > { %3038 = vrot.lane.b32.xlu1 %v4621_v61, %s4978_s25  ;;  %v1835_v58 = vrot.slane %v1833_v62, 5  ;;  %v1839_v17 = vrot.slane %v1837_v25, 4  ;;  %v1845_v53 = vrot.slane %v1843_v31, 5  ;;  %v2089_v23 = vrot.slane %v1554_v56, 5  ;;  %v6102_v38 = vpop.permute.xlu0 %3442  ;;  %v921_v14 = vld [vmem:[#allocation2 + $0x90] sm:$0xf] }
 0x125   : > { %v1830_v49 = vor.u32 %v1829_v26, %v1826_v20  ;;  %v6106_v33 = vsel %vm5096_vm7, %v4541_v54, %v2086_v48  ;;  %v2088_v12 = vrot.slane %v2086_v48, 4  ;;  %v603_v19 = vsel %vm5124_vm12, %v595_v27, %v602_v21  ;;  %v798_v40 = vld [vmem:[#allocation2 + $0xa4] sm:$0x1]  ;;  %v6127_v41 = vld [vmem:[#allocation2 + $0x94] sm:$0xf] }
 0x126   : > { %v1840_v43 = vor.u32 %v1839_v17, %v1835_v58  ;;  %3196 = vrot.lane.b32.xlu0 %v4652_v5, %s4980_s27  ;;  %v795_v16 = vsel %vm5110_vm10, %v594_v46, %v794_v22  ;;  %797 = vst.msk [vmem:[#allocation2 + $0xa0] sm:$0xf] %vm290_vm0, %v603_v19  ;;  %v2409_v9 = vshrl.u32 %v2140_v8, 16  ;;  %v2412_v55 = vshll.u32 %v2140_v8, 16  ;;  %v6133_v46 = vld [vmem:[#allocation2 + $0x98] sm:$0x1] }
 0x127   : > { %v1831_v13 = vrot.slane %v1830_v49, 4  ;;  %v2090_v42 = vsel %vm5096_vm7, %v2088_v12, %v2089_v23  ;;  %796 = vst [vmem:[#allocation2 + $0x9c] sm:$0xf] %v795_v16  ;;  %v2422_v39 = vshrl.u32 %v6100_v51, 16  ;;  %v4668_v50 = vcombine.low %v2140_v8, %v6100_v51  ;;  %v6145_v23 = vpop.permute.xlu1 %2854 }
 0x128   : > { %v1841_v2 = vrot.slane %v1840_v43, 4  ;;  %v4653_v18 = vcombine.low %v6106_v33, %v2090_v42  ;;  %v2411_v47 = vrot.slane %v2409_v9, 4  ;;  %v2414_v29 = vrot.slane %v2412_v55, 5  ;;  %v6135_v25 = vpop.permute.xlu0 %2932 }
 0x129   : > { %v1836_v0 = vsel %vm5116_vm11, %v1831_v13, %v1835_v58  ;;  %v604_v45 = vrot.slane %v6085_v10, 4  ;;  %v2418_v5 = vshll.u32 %v6100_v51, 16  ;;  %v2424_v27 = vrot.slane %v2422_v39, 4 }
 0x12a   : > { %v1846_v60 = vsel %vm5116_vm11, %v1841_v2, %v1845_v53  ;;  %3292 = vrot.lane.b32.xlu0 %v4668_v50, %s4979_s26  ;;  %v2415_v4 = vor.u32 %v2414_v29, %v2411_v47  ;;  %v2428_v56 = vshll.u32 %v6118_v3, 16  ;;  %v1237_v21 = vshrl.u32 %v921_v14, 16  ;;  %v2562_v2 = vld [vmem:[#allocation2 + $0x90] sm:$0xe] }
 0x12b   : > { %v4637_v61 = vcombine.low %v1836_v0, %v1846_v60  ;;  %v799_v10 = vsel %vm5139_vm13, %v604_v45, %v798_v40  ;;  %v2420_v62 = vrot.slane %v2418_v5, 5  ;;  %v1240_v31 = vshll.u32 %v921_v14, 16 }
 0x12c   : > { %800 = vst [vmem:[#allocation2 + $0xa4] sm:$0x1] %v799_v10  ;;  %v2416_v22 = vrot.slane %v2415_v4, 4  ;;  %v2430_v20 = vrot.slane %v2428_v56, 5  ;;  %v1239_v26 = vrot.slane %v1237_v21, 4  ;;  %v1246_v54 = vshll.u32 %v6127_v41, 16  ;;  %v6152_v47 = vpop.permute.xlu0 %3028 }
 0x12d   : > { %3118 = vrot.lane.b32.xlu1 %v4637_v61, %s4982_s29  ;;  %v6141_v48 = vld [vmem:[#allocation2 + $0xa0] sm:$0xf]  ;;  %v2425_v8 = vor.u32 %v2424_v27, %v2420_v62  ;;  %v1242_v58 = vrot.slane %v1240_v31, 5  ;;  %v1250_v17 = vshrl.u32 %v6127_v41, 16  ;;  %v1256_v53 = vshll.u32 %v6133_v46, 16 }
 0x12e   : > { %v2142_v49 = vld [vmem:[#allocation2 + $0x9c] sm:$0xf]  ;;  %v2446_v33 = vshrl.u32 %v6141_v48, 16  ;;  %v2442_v12 = vshll.u32 %v6141_v48, 16  ;;  %v2421_v19 = vsel %vm5116_vm11, %v2416_v22, %v2420_v62  ;;  %v1248_v43 = vrot.slane %v1246_v54, 5  ;;  %v6163_v62 = vpop.permute.xlu1 %2934 }
 0x12f   : > { %v2433_v16 = vshrl.u32 %v2142_v49, 16  ;;  %v2436_v9 = vshll.u32 %v2142_v49, 16  ;;  %v4669_v55 = vcombine.low %v2142_v49, %v6141_v48  ;;  %v2426_v13 = vrot.slane %v2425_v8, 4  ;;  %v923_v54 = vld [vmem:[#allocation2 + $0x9c] sm:$0xf] }
 0x130   : > { %v2444_v42 = vrot.slane %v2442_v12, 5  ;;  %v2448_v39 = vrot.slane %v2446_v33, 4  ;;  %v1243_v50 = vor.u32 %v1242_v58, %v1239_v26  ;;  %v1252_v14 = vrot.slane %v1250_v17, 4  ;;  %v924_v58 = vld [vmem:[#allocation2 + $0xa0] sm:$0xf] }
 0x131   : > { %3198 = vrot.lane.b32.xlu1 %v4653_v18, %s4980_s27  ;;  %v2435_v29 = vrot.slane %v2433_v16, 4  ;;  %v2438_v40 = vrot.slane %v2436_v9, 5  ;;  %v2431_v0 = vsel %vm5116_vm11, %v2426_v13, %v2430_v20  ;;  %v1258_v45 = vrot.slane %v1256_v53, 5 }
 0x132   : > { %v2449_v5 = vor.u32 %v2448_v39, %v2444_v42  ;;  %v4684_v27 = vcombine.low %v2421_v19, %v2431_v0  ;;  %v1244_v60 = vrot.slane %v1243_v50, 4  ;;  %v1253_v4 = vor.u32 %v1252_v14, %v1248_v43  ;;  %v6179_v19 = vpop.permute.xlu0 %3108 }
 0x133   : > { %v6157_v56 = vld [vmem:[#allocation2 + $0xa4] sm:$0x1]  ;;  %v2439_v21 = vor.u32 %v2438_v40, %v2435_v29  ;;  %v3556_v61 = vsel %vm3546_vm1, %v6089_v24, %v5964_v52  ;;  %v4556_v10 = vrot.slane %v2562_v2, 9  ;;  %v2688_v18 = vrot.slane %v6100_v51, 5  ;;  %v1345_v40 = vld [vmem:[#allocation2 + $0x9c] sm:$0xe] }
 0x134   : > { %v2450_v31 = vrot.slane %v2449_v5, 4  ;;  %v2452_v22 = vshll.u32 %v6157_v56, 16  ;;  %3372 = vrot.lane.b32.xlu0 %v4684_v27, %s4983_s30  ;;  %v1254_v20 = vrot.slane %v1253_v4, 4  ;;  %v1488_v26 = vrot.slane %v6133_v46, 5  ;;  %v942_v12 = vld [vmem:[#allocation2 + $0xa4] sm:$0x1] }
 0x135   : > { %3294 = vrot.lane.b32.xlu1 %v4669_v55, %s4979_s26  ;;  %v2440_v8 = vrot.slane %v2439_v21, 4  ;;  %v2689_v52 = vsel %vm5096_vm7, %v4556_v10, %v2688_v18  ;;  %v2690_v24 = vrot.slane %v2688_v18, 4  ;;  %v2691_v51 = vrot.slane %v6118_v3, 5  ;;  %v2563_v55 = vld [vmem:[#allocation2 + $0x9c] sm:$0xe] }
 0x136   : > { %v2454_v17 = vrot.slane %v2452_v22, 5  ;;  %v1249_v53 = vsel %vm5116_vm11, %v1244_v60, %v1248_v43  ;;  %v1259_v49 = vsel %vm5116_vm11, %v1254_v20, %v1258_v45  ;;  %v3591_v33 = vsel %vm3579_vm2, %v6093_v57, %v6024_v30  ;;  %v6197_v20 = vpop.permute.xlu0 %3188 }
 0x137   : > { %v2445_v16 = vsel %vm5116_vm11, %v2440_v8, %v2444_v42  ;;  %v2692_v3 = vsel %vm5096_vm7, %v2690_v24, %v2691_v51  ;;  %v3589_v9 = vsel %vm3579_vm2, %v3556_v61, %v5984_v7  ;;  %v1261_v43 = vshrl.u32 %v923_v54, 16  ;;  %v6189_v42 = vpop.permute.xlu1 %3030  ;;  %v1344_v61 = vld [vmem:[#allocation2 + $0x90] sm:$0xe] }
 0x138   : > { %v2455_v13 = vsel %vm5116_vm11, %v2450_v31, %v2454_v17  ;;  %v4700_v39 = vcombine.low %v2689_v52, %v2692_v3  ;;  %v1264_v50 = vshll.u32 %v923_v54, 16  ;;  %v1270_v30 = vshll.u32 %v924_v58, 16 }
 0x139   : > { %v4685_v57 = vcombine.low %v2445_v16, %v2455_v13  ;;  %v1263_v14 = vrot.slane %v1261_v43, 4  ;;  %v1274_v2 = vshrl.u32 %v924_v58, 16  ;;  %v1280_v29 = vshll.u32 %v942_v12, 16 }
 0x13a   : > { %v4590_v0 = vcombine.low %v1249_v53, %v1259_v49  ;;  %3452 = vrot.lane.b32.xlu0 %v4700_v39, %s4981_s28  ;;  %v1266_v45 = vrot.slane %v1264_v50, 5  ;;  %v1272_v7 = vrot.slane %v1270_v30, 5  ;;  %v4557_v5 = vrot.slane %v2563_v55, 9  ;;  %v375_v53 = vld [vmem:[%s5094_s22 + $0x68] sm:$0xf] }
 0x13b   : > { %3374 = vrot.lane.b32.xlu1 %v4685_v57, %s4983_s30  ;;  %v1276_v27 = vrot.slane %v1274_v2, 4  ;;  %v1495_v60 = vrot.slane %v942_v12, 5  ;;  %v2695_v4 = vrot.slane %v6141_v48, 5  ;;  %v2698_v21 = vrot.slane %v6157_v56, 5  ;;  %v1535_v39 = vld [vmem:[#allocation2 + $0x9c] sm:$0xf] }
 0x13c   : > { %v1267_v10 = vor.u32 %v1266_v45, %v1263_v14  ;;  %v1282_v18 = vrot.slane %v1280_v29, 5  ;;  %v3624_v31 = vsel %vm3612_vm3, %v3591_v33, %v6035_v28  ;;  %v4527_v22 = vrot.slane %v1345_v40, 9  ;;  %v6225_v50 = vld [vmem:[#allocation2 + $0xa0] sm:$0xf]  ;;  %v6234_v29 = vpop.permute.xlu0 %3284 }
 0x13d   : > { %v1277_v54 = vor.u32 %v1276_v27, %v1272_v7  ;;  %v2696_v8 = vsel %vm5096_vm7, %v4557_v5, %v2695_v4  ;;  %v2697_v52 = vrot.slane %v2695_v4, 4  ;;  %v1492_v24 = vrot.slane %v924_v58, 5  ;;  %v801_v27 = vld [vmem:[#allocation2 + $0xa8] sm:$0xf] }
 0x13e   : > { %v1268_v48 = vrot.slane %v1267_v10, 4  ;;  %v3622_v56 = vsel %vm3612_vm3, %v3589_v9, %v5999_v15  ;;  %v4526_v51 = vrot.slane %v1344_v61, 9  ;;  %v1485_v17 = vrot.slane %v6127_v41, 5  ;;  %v6212_v58 = vpop.permute.xlu1 %3110  ;;  %v376_v9 = vld [vmem:[%s5094_s22 + $0x6c] sm:$0xf] }
 0x13f   : > { %2864 = vrot.lane.b32.xlu1 %v4590_v0, %s4977_s24  ;;  %v1278_v28 = vrot.slane %v1277_v54, 4  ;;  %v2699_v49 = vsel %vm5096_vm7, %v2697_v52, %v2698_v21  ;;  %v1494_v33 = vrot.slane %v1492_v24, 4  ;;  %v6210_v12 = vsel %vm3645_vm5, %v3624_v31, %v6063_v32  ;;  %v805_v10 = vld [vmem:[#allocation2 + $0xb0] sm:$0x1] }
 0x140   : > { %v1273_v15 = vsel %vm5116_vm11, %v1268_v48, %v1272_v7  ;;  %v4701_v16 = vcombine.low %v2696_v8, %v2699_v49  ;;  %v1486_v41 = vsel %vm5096_vm7, %v4526_v51, %v1485_v17  ;;  %v1487_v3 = vrot.slane %v1485_v17, 4 }
 0x141   : > { %v1283_v43 = vsel %vm5116_vm11, %v1278_v28, %v1282_v18  ;;  %v1493_v55 = vsel %vm5096_vm7, %v4527_v22, %v1492_v24  ;;  %v1496_v32 = vsel %vm5096_vm7, %v1494_v33, %v1495_v60  ;;  %v606_v13 = vshrl.u32 %v375_v53, 16  ;;  %v1555_v18 = vld [vmem:[#allocation2 + $0xa4] sm:$0x1]  ;;  %v1955_v24 = vld [vmem:[#allocation2 + $0x9c] sm:$0xe] }
 0x142   : > { %v4591_v30 = vcombine.low %v1273_v15, %v1283_v43  ;;  %3454 = vrot.lane.b32.xlu0 %v4701_v16, %s4981_s28  ;;  %v1489_v57 = vsel %vm5096_vm7, %v1487_v3, %v1488_v26  ;;  %v3655_v14 = vsel %vm3645_vm5, %v3622_v56, %v6028_v11  ;;  %v609_v2 = vshll.u32 %v375_v53, 16  ;;  %v6239_v31 = vpop.permute.xlu1 %3190  ;;  %v4935_v33 = vld [vmem:[#allocation2 + $0x48] sm:$0xf]  ;;  %v4936_v15 = vld [vmem:[#allocation2 + $0x4c] sm:$0xf] }
 0x143   : > { %v4606_v40 = vcombine.low %v1486_v41, %v1489_v57  ;;  %v608_v0 = vrot.slane %v606_v13, 7  ;;  %v614_v45 = vshrl.u32 %v376_v9, 16  ;;  %v617_v7 = vshll.u32 %v376_v9, 16  ;;  %v378_v57 = vld [vmem:[%s5094_s22 + $0x74] sm:$0xf] }
 0x144   : > { %2866 = vrot.lane.b32.xlu1 %v4591_v30, %s4977_s24  ;;  %v4607_v5 = vcombine.low %v1493_v55, %v1496_v32  ;;  %v1848_v60 = vshrl.u32 %v1535_v39, 16  ;;  %v1851_v4 = vshll.u32 %v1535_v39, 16  ;;  %v1861_v46 = vshrl.u32 %v6225_v50, 16  ;;  %v377_v55 = vld [vmem:[%s5094_s22 + $0x70] sm:$0xf] }
 0x145   : > { %v611_v21 = vor.u32 %v609_v2, %v608_v0  ;;  %v612_v26 = vrot.slane %v608_v0, 4  ;;  %v616_v61 = vrot.slane %v614_v45, 7  ;;  %v4622_v11 = vcombine.low %v1535_v39, %v6225_v50  ;;  %v4937_v2 = vld [vmem:[#allocation2 + $0x54] sm:$0xf] }
 0x146   : > { %2944 = vrot.lane.b32.xlu0 %v4606_v40, %s4976_s23  ;;  %v1850_v22 = vrot.slane %v1848_v60, 4  ;;  %v1853_v54 = vrot.slane %v1851_v4, 5  ;;  %v3688_v8 = vsel %vm3678_vm6, %v3655_v14, %v6042_v59  ;;  %v1857_v52 = vshll.u32 %v6225_v50, 16  ;;  %v6248_v16 = vpop.permute.xlu0 %3364  ;;  %v4938_v40 = vld [vmem:[#allocation2 + $0x58] sm:$0xf] }
 0x147   : > { %v619_v48 = vor.u32 %v617_v7, %v616_v61  ;;  %v802_v56 = vsel %vm5110_vm10, %v611_v21, %v801_v27  ;;  %v621_v51 = vrot.slane %v616_v61, 4  ;;  %v1863_v17 = vrot.slane %v1861_v46, 4  ;;  %v6267_v7 = vpop.permute.xlu1 %3286 }
 0x148   : > { %2946 = vrot.lane.b32.xlu1 %v4607_v5, %s4976_s23  ;;  %803 = vst [vmem:[#allocation2 + $0xa8] sm:$0xf] %v802_v56  ;;  %v1854_v53 = vor.u32 %v1853_v54, %v1850_v22  ;;  %v1859_v28 = vrot.slane %v1857_v52, 5  ;;  %v1867_v49 = vshll.u32 %v1555_v18, 16  ;;  %v4568_v59 = vcombine.low %v4935_v33, %v4936_v15 }
 0x149   : > { %v620_v41 = vsel %vm5124_vm12, %v612_v26, %v619_v48  ;;  %v806_v3 = vsel %vm5139_vm13, %v621_v51, %v805_v10  ;;  %v3721_v9 = vsel %vm3711_vm8, %v3688_v8, %v6079_v6  ;;  %v4542_v43 = vrot.slane %v1955_v24, 9  ;;  %v808_v8 = vld [vmem:[#allocation2 + $0xb4] sm:$0xf] }
 0x14a   : > { %804 = vst.msk [vmem:[#allocation2 + $0xac] sm:$0xf] %vm290_vm0, %v620_v41  ;;  %3040 = vrot.lane.b32.xlu0 %v4622_v11, %s4978_s25  ;;  %v3690_v32 = vsel %vm3678_vm6, %v6210_v12, %v6096_v37  ;;  %807 = vst [vmem:[#allocation2 + $0xb0] sm:$0x1] %v806_v3  ;;  %v1855_v13 = vrot.slane %v1854_v53, 4  ;;  %v1864_v39 = vor.u32 %v1863_v17, %v1859_v28  ;;  %v1869_v30 = vrot.slane %v1867_v49, 5 }
 0x14b   : > { %4826 = vmatprep.mubr.msk.bf16.mxu0 %vm3764_vm9, %v3721_v9  ;;  %v2093_v14 = vrot.slane %v6225_v50, 5  ;;  %v2096_v6 = vrot.slane %v1555_v18, 5  ;;  %v4569_v0 = vcombine.low %v4937_v2, %v4938_v40  ;;  %v3723_v45 = vsel %vm3711_vm8, %v3690_v32, %v6102_v38  ;;  %v6282_v11 = vpop.permute.xlu0 %3444 }
 0x14c   : > { %v1860_v37 = vsel %vm5116_vm11, %v1855_v13, %v1859_v28  ;;  %v1865_v12 = vrot.slane %v1864_v39, 4  ;;  %v6273_v5 = vsel %vm3464_vm14, %v4568_v59, %v6120_v35  ;;  %v623_v27 = vshrl.u32 %v377_v55, 16  ;;  %4827 = vmatmul.mubr.msk.bf16.gmra.mrb[8].mxu0 %vm3764_vm9, %v3723_v45  ;;  %v6291_v59 = vpop.permute.xlu1 %3366 }
 0x14d   : > { %v2094_v50 = vsel %vm5096_vm7, %v4542_v43, %v2093_v14  ;;  %v2095_v60 = vrot.slane %v2093_v14, 4  ;;  %v626_v4 = vshll.u32 %v377_v55, 16  ;;  %v631_v46 = vshrl.u32 %v378_v57, 16 }
 0x14e   : > { %v1870_v38 = vsel %vm5116_vm11, %v1865_v12, %v1869_v30  ;;  %v3488_v21 = vsel %vm3464_vm14, %v4569_v0, %v6145_v23  ;;  %v625_v26 = vrot.slane %v623_v27, 7  ;;  %v634_v61 = vshll.u32 %v378_v57, 16  ;;  %v812_v12 = vld [vmem:[#allocation2 + $0xbc] sm:$0x1] }
 0x14f   : > { %v1537_v35 = vld [vmem:[#allocation2 + $0xa8] sm:$0xf]  ;;  %v4638_v10 = vcombine.low %v1860_v37, %v1870_v38  ;;  %v2097_v22 = vsel %vm5096_vm7, %v2095_v60, %v2096_v6  ;;  %v633_v54 = vrot.slane %v631_v46, 7  ;;  %v6288_v52 = vsel %vm3513_vm15, %v3488_v21, %v6163_v62 }
 0x150   : > { %v1956_v18 = vld [vmem:[#allocation2 + $0xa8] sm:$0xe]  ;;  %v1872_v24 = vshrl.u32 %v1537_v35, 16  ;;  %v1875_v48 = vshll.u32 %v1537_v35, 16  ;;  %v4654_v23 = vcombine.low %v2094_v50, %v2097_v22  ;;  %v628_v28 = vor.u32 %v626_v4, %v625_v26 }
 0x151   : > { %v4543_v56 = vrot.slane %v1956_v18, 9  ;;  %v2144_v51 = vld [vmem:[#allocation2 + $0xa8] sm:$0xf]  ;;  %v1538_v17 = vld [vmem:[#allocation2 + $0xac] sm:$0xf]  ;;  %3120 = vrot.lane.b32.xlu0 %v4638_v10, %s4982_s29  ;;  %v629_v49 = vrot.slane %v625_v26, 4  ;;  %v636_v33 = vor.u32 %v634_v61, %v633_v54  ;;  %v6321_v22 = vsel %vm3513_vm15, %v6273_v5, %v6135_v25 }
 0x152   : > { %v1556_v53 = vld [vmem:[#allocation2 + $0xb0] sm:$0x1]  ;;  %v2457_v15 = vshrl.u32 %v2144_v51, 16  ;;  %v1874_v41 = vrot.slane %v1872_v24, 4  ;;  %v1877_v3 = vrot.slane %v1875_v48, 5  ;;  %v1885_v9 = vshrl.u32 %v1538_v17, 16  ;;  %v6300_v2 = vpop.permute.xlu0 %3446 }
 0x153   : > { %v4623_v62 = vcombine.low %v1537_v35, %v1538_v17  ;;  %v1881_v43 = vshll.u32 %v1538_v17, 16  ;;  %v1891_v55 = vshll.u32 %v1556_v53, 16  ;;  %v2100_v32 = vrot.slane %v1538_v17, 5  ;;  %v6293_v39 = vld [vmem:[#allocation2 + $0xac] sm:$0xf]  ;;  %v6314_v35 = vpop.permute.xlu1 %2856 }
 0x154   : > { %v2103_v13 = vrot.slane %v1556_v53, 5  ;;  %v1878_v30 = vor.u32 %v1877_v3, %v1874_v41  ;;  %v1887_v57 = vrot.slane %v1885_v9, 4  ;;  %v637_v14 = vsel %vm5124_vm12, %v629_v49, %v636_v33  ;;  %v6309_v46 = vld [vmem:[#allocation2 + $0xb0] sm:$0x1]  ;;  %v6324_v24 = vld [vmem:[#allocation2 + $0xa8] sm:$0xf] }
 0x155   : > { %3042 = vrot.lane.b32.xlu1 %v4623_v62, %s4978_s25  ;;  %v809_v6 = vsel %vm5110_vm10, %v628_v28, %v808_v8  ;;  %v1883_v40 = vrot.slane %v1881_v43, 5  ;;  %v1893_v0 = vrot.slane %v1891_v55, 5  ;;  %v6304_v45 = vsel %vm5096_vm7, %v4543_v56, %v2100_v32  ;;  %3200 = vrot.lane.b32.xlu0 %v4654_v23, %s4980_s27  ;;  %811 = vst.msk [vmem:[#allocation2 + $0xb8] sm:$0xf] %vm290_vm0, %v637_v14 }
 0x156   : > { %v2102_v37 = vrot.slane %v2100_v32, 4  ;;  %810 = vst [vmem:[#allocation2 + $0xb4] sm:$0xf] %v809_v6  ;;  %v1879_v27 = vrot.slane %v1878_v30, 4  ;;  %v2459_v50 = vrot.slane %v2457_v15, 4  ;;  %v2460_v60 = vshll.u32 %v2144_v51, 16  ;;  %v6338_v28 = vpop.permute.xlu0 %2936 }
 0x157   : > { %v2470_v4 = vshrl.u32 %v6293_v39, 16  ;;  %v1888_v38 = vor.u32 %v1887_v57, %v1883_v40  ;;  %v4670_v26 = vcombine.low %v2144_v51, %v6293_v39  ;;  %v638_v61 = vrot.slane %v633_v54, 4  ;;  %v6330_v51 = vld [vmem:[#allocation2 + $0xac] sm:$0xf]  ;;  %v6349_v57 = vpop.permute.xlu1 %2858 }
 0x158   : > { %v2104_v21 = vsel %vm5096_vm7, %v2102_v37, %v2103_v13  ;;  %v1884_v10 = vsel %vm5116_vm11, %v1879_v27, %v1883_v40  ;;  %v2462_v18 = vrot.slane %v2460_v60, 5  ;;  %v2466_v8 = vshll.u32 %v6293_v39, 16  ;;  %v2564_v60 = vld [vmem:[#allocation2 + $0xa8] sm:$0xe] }
 0x159   : > { %v1889_v48 = vrot.slane %v1888_v38, 4  ;;  %3296 = vrot.lane.b32.xlu0 %v4670_v26, %s4979_s26  ;;  %v813_v54 = vsel %vm5139_vm13, %v638_v61, %v812_v12  ;;  %v2472_v56 = vrot.slane %v2470_v4, 4  ;;  %v2476_v23 = vshll.u32 %v6309_v46, 16 }
 0x15a   : > { %v4655_v17 = vcombine.low %v6304_v45, %v2104_v21  ;;  %814 = vst [vmem:[#allocation2 + $0xbc] sm:$0x1] %v813_v54  ;;  %v2463_v25 = vor.u32 %v2462_v18, %v2459_v50  ;;  %v2468_v5 = vrot.slane %v2466_v8, 5  ;;  %v6336_v53 = vsel %vm3546_vm1, %v6288_v52, %v6189_v42  ;;  %v6360_v61 = vpop.permute.xlu0 %3032 }
 0x15b   : > { %v1894_v49 = vsel %vm5116_vm11, %v1889_v48, %v1893_v0  ;;  %v2478_v33 = vrot.slane %v2476_v23, 5  ;;  %v1285_v15 = vshrl.u32 %v6324_v24, 16  ;;  %v1288_v41 = vshll.u32 %v6324_v24, 16  ;;  %v6355_v0 = vld [vmem:[#allocation2 + $0xb0] sm:$0x1] }
 0x15c   : > { %v4639_v3 = vcombine.low %v1884_v10, %v1894_v49  ;;  %v6344_v62 = vld [vmem:[#allocation2 + $0xb8] sm:$0xf]  ;;  %v2464_v43 = vrot.slane %v2463_v25, 4  ;;  %v2473_v55 = vor.u32 %v2472_v56, %v2468_v5  ;;  %v1294_v32 = vshll.u32 %v6330_v51, 16 }
 0x15d   : > { %v2146_v9 = vld [vmem:[#allocation2 + $0xb4] sm:$0xf]  ;;  %v2494_v13 = vshrl.u32 %v6344_v62, 16  ;;  %v2490_v14 = vshll.u32 %v6344_v62, 16  ;;  %v1287_v45 = vrot.slane %v1285_v15, 4  ;;  %v1290_v50 = vrot.slane %v1288_v41, 5 }
 0x15e   : > { %v2481_v42 = vshrl.u32 %v2146_v9, 16  ;;  %v2484_v52 = vshll.u32 %v2146_v9, 16  ;;  %v4671_v30 = vcombine.low %v2146_v9, %v6344_v62  ;;  %3122 = vrot.lane.b32.xlu1 %v4639_v3, %s4982_s29  ;;  %v2469_v6 = vsel %vm5116_vm11, %v2464_v43, %v2468_v5  ;;  %v6369_v3 = vpop.permute.xlu1 %2938 }
 0x15f   : > { %v2474_v40 = vrot.slane %v2473_v55, 4  ;;  %v2496_v27 = vrot.slane %v2494_v13, 4  ;;  %v2492_v4 = vrot.slane %v2490_v14, 5  ;;  %v1296_v21 = vrot.slane %v1294_v32, 5  ;;  %v6381_v14 = vld [vmem:[#allocation2 + $0xb8] sm:$0xf] }
 0x160   : > { %v2483_v37 = vrot.slane %v2481_v42, 4  ;;  %v2486_v12 = vrot.slane %v2484_v52, 5  ;;  %v1298_v26 = vshrl.u32 %v6330_v51, 16  ;;  %v1291_v48 = vor.u32 %v1290_v50, %v1287_v45  ;;  %v2565_v50 = vld [vmem:[#allocation2 + $0xb4] sm:$0xe] }
 0x161   : > { %v2479_v38 = vsel %vm5116_vm11, %v2474_v40, %v2478_v33  ;;  %v6362_v10 = vld [vmem:[#allocation2 + $0xbc] sm:$0x1]  ;;  %v1304_v54 = vshll.u32 %v6355_v0, 16  ;;  %v2497_v56 = vor.u32 %v2496_v27, %v2492_v4  ;;  %v4558_v5 = vrot.slane %v2564_v60, 9 }
 0x162   : > { %v2487_v18 = vor.u32 %v2486_v12, %v2483_v37  ;;  %v4686_v8 = vcombine.low %v2469_v6, %v2479_v38  ;;  %3202 = vrot.lane.b32.xlu1 %v4655_v17, %s4980_s27  ;;  %v2500_v23 = vshll.u32 %v6362_v10, 16  ;;  %v1300_v25 = vrot.slane %v1298_v26, 4  ;;  %v6372_v17 = vld [vmem:[#allocation2 + $0xb4] sm:$0xf] }
 0x163   : > { %v1292_v33 = vrot.slane %v1291_v48, 4  ;;  %v1306_v15 = vrot.slane %v1304_v54, 5  ;;  %v2702_v41 = vrot.slane %v6293_v39, 5  ;;  %v2498_v9 = vrot.slane %v2497_v56, 4 }
 0x164   : > { %v2488_v49 = vrot.slane %v2487_v18, 4  ;;  %3376 = vrot.lane.b32.xlu0 %v4686_v8, %s4983_s30  ;;  %v2502_v43 = vrot.slane %v2500_v23, 5  ;;  %v1301_v55 = vor.u32 %v1300_v25, %v1296_v21  ;;  %v2705_v32 = vrot.slane %v6309_v46, 5  ;;  %v6401_v8 = vpop.permute.xlu1 %3034  ;;  %v1347_v25 = vld [vmem:[#allocation2 + $0xb4] sm:$0xe] }
 0x165   : > { %v3560_v52 = vsel %vm3546_vm1, %v6321_v22, %v6152_v47  ;;  %v2703_v13 = vsel %vm5096_vm7, %v4558_v5, %v2702_v41  ;;  %v2704_v39 = vrot.slane %v2702_v41, 4  ;;  %v1297_v6 = vsel %vm5116_vm11, %v1292_v33, %v1296_v21  ;;  %v944_v47 = vld [vmem:[#allocation2 + $0xbc] sm:$0x1]  ;;  %v6391_v22 = vpop.permute.xlu0 %3112  ;;  %v1346_v41 = vld [vmem:[#allocation2 + $0xa8] sm:$0xe] }
 0x166   : > { %v2493_v42 = vsel %vm5116_vm11, %v2488_v49, %v2492_v4  ;;  %3298 = vrot.lane.b32.xlu1 %v4671_v30, %s4979_s26  ;;  %v2503_v46 = vsel %vm5116_vm11, %v2498_v9, %v2502_v43  ;;  %v1302_v40 = vrot.slane %v1301_v55, 4  ;;  %v3595_v45 = vsel %vm3579_vm2, %v6336_v53, %v6212_v58 }
 0x167   : > { %v4687_v37 = vcombine.low %v2493_v42, %v2503_v46  ;;  %v2706_v12 = vsel %vm5096_vm7, %v2704_v39, %v2705_v32  ;;  %v1309_v30 = vshrl.u32 %v6372_v17, 16  ;;  %v1312_v27 = vshll.u32 %v6372_v17, 16 }
 0x168   : > { %v1307_v60 = vsel %vm5116_vm11, %v1302_v40, %v1306_v15  ;;  %v4702_v4 = vcombine.low %v2703_v13, %v2706_v12  ;;  %v1318_v38 = vshll.u32 %v6381_v14, 16  ;;  %v1322_v58 = vshrl.u32 %v6381_v14, 16  ;;  %v379_v12 = vld [vmem:[%s5094_s22 + $0x78] sm:$0xf] }
 0x169   : > { %v4592_v53 = vcombine.low %v1297_v6, %v1307_v60  ;;  %v1311_v21 = vrot.slane %v1309_v30, 4  ;;  %v1314_v26 = vrot.slane %v1312_v27, 5  ;;  %v1328_v18 = vshll.u32 %v944_v47, 16  ;;  %v6413_v42 = vpop.permute.xlu0 %3192 }
 0x16a   : > { %3378 = vrot.lane.b32.xlu1 %v4687_v37, %s4983_s30  ;;  %3456 = vrot.lane.b32.xlu0 %v4702_v4, %s4981_s28  ;;  %v1320_v48 = vrot.slane %v1318_v38, 5  ;;  %v1324_v54 = vrot.slane %v1322_v58, 4  ;;  %v4559_v56 = vrot.slane %v2565_v50, 9  ;;  %v2709_v23 = vrot.slane %v6344_v62, 5  ;;  %v380_v4 = vld [vmem:[%s5094_s22 + $0x7c] sm:$0xf] }
 0x16b   : > { %v3593_v5 = vsel %vm3579_vm2, %v3560_v52, %v6179_v19  ;;  %v1315_v49 = vor.u32 %v1314_v26, %v1311_v21  ;;  %v1330_v33 = vrot.slane %v1328_v18, 5  ;;  %v2712_v15 = vrot.slane %v6362_v10, 5  ;;  %v1539_v38 = vld [vmem:[#allocation2 + $0xb4] sm:$0xf]  ;;  %v6440_v18 = vld [vmem:[#allocation2 + $0xb8] sm:$0xf] }
 0x16c   : > { %v1325_v9 = vor.u32 %v1324_v54, %v1320_v48  ;;  %v2710_v43 = vsel %vm5096_vm7, %v4559_v56, %v2709_v23  ;;  %v2711_v55 = vrot.slane %v2709_v23, 4  ;;  %v3628_v32 = vsel %vm3612_vm3, %v3595_v45, %v6239_v31 }
 0x16d   : > { %v1316_v62 = vrot.slane %v1315_v49, 4  ;;  %v4529_v13 = vrot.slane %v1347_v25, 9  ;;  %v1506_v19 = vrot.slane %v6381_v14, 5  ;;  %v1509_v52 = vrot.slane %v944_v47, 5  ;;  %v6425_v47 = vpop.permute.xlu1 %3114  ;;  %v6444_v23 = vpop.permute.xlu0 %3288 }
 0x16e   : > { %2868 = vrot.lane.b32.xlu1 %v4592_v53, %s4977_s24  ;;  %v1326_v10 = vrot.slane %v1325_v9, 4  ;;  %v2713_v39 = vsel %vm5096_vm7, %v2711_v55, %v2712_v15  ;;  %v4528_v46 = vrot.slane %v1346_v41, 9  ;;  %v1499_v6 = vrot.slane %v6330_v51, 5  ;;  %v6450_v9 = vld [vmem:[#allocation2 + $0xbc] sm:$0x1] }
 0x16f   : > { %v1321_v31 = vsel %vm5116_vm11, %v1316_v62, %v1320_v48  ;;  %v4703_v40 = vcombine.low %v2710_v43, %v2713_v39  ;;  %v1507_v45 = vsel %vm5096_vm7, %v4529_v13, %v1506_v19  ;;  %v1508_v37 = vrot.slane %v1506_v19, 4  ;;  %v815_v55 = vld [vmem:[#allocation2 + $0xc0] sm:$0xf]  ;;  %v819_v39 = vld [vmem:[#allocation2 + $0xc8] sm:$0x1] }
 0x170   : > { %v1331_v30 = vsel %vm5116_vm11, %v1326_v10, %v1330_v33  ;;  %v1500_v27 = vsel %vm5096_vm7, %v4528_v46, %v1499_v6  ;;  %v1501_v50 = vrot.slane %v1499_v6, 4  ;;  %v1502_v60 = vrot.slane %v6355_v0, 5 }
 0x171   : > { %v4593_v58 = vcombine.low %v1321_v31, %v1331_v30  ;;  %3458 = vrot.lane.b32.xlu0 %v4703_v40, %s4981_s28  ;;  %v3626_v53 = vsel %vm3612_vm3, %v3593_v5, %v6197_v20  ;;  %v1510_v21 = vsel %vm5096_vm7, %v1508_v37, %v1509_v52  ;;  %v3661_v26 = vsel %vm3645_vm5, %v3628_v32, %v6267_v7  ;;  %v6456_v19 = vpop.permute.xlu1 %3194  ;;  %v1957_v37 = vld [vmem:[#allocation2 + $0xb4] sm:$0xe] }
 0x172   : > { %v4609_v48 = vcombine.low %v1507_v45, %v1510_v21  ;;  %v1503_v0 = vsel %vm5096_vm7, %v1501_v50, %v1502_v60  ;;  %v640_v54 = vshrl.u32 %v379_v12, 16  ;;  %v643_v56 = vshll.u32 %v379_v12, 16 }
 0x173   : > { %2870 = vrot.lane.b32.xlu1 %v4593_v58, %s4977_s24  ;;  %v4608_v25 = vcombine.low %v1500_v27, %v1503_v0  ;;  %v648_v20 = vshrl.u32 %v380_v4, 16  ;;  %v651_v5 = vshll.u32 %v380_v4, 16  ;;  %v1896_v49 = vshrl.u32 %v1539_v38, 16  ;;  %v4940_v58 = vld [vmem:[#allocation2 + $0x64] sm:$0xf] }
 0x174   : > { %v3659_v33 = vsel %vm3645_vm5, %v3626_v53, %v6234_v29  ;;  %v642_v7 = vrot.slane %v640_v54, 7  ;;  %v1899_v15 = vshll.u32 %v1539_v38, 16  ;;  %v1909_v41 = vshrl.u32 %v6440_v18, 16  ;;  %v4941_v54 = vld [vmem:[#allocation2 + $0x6c] sm:$0xf] }
 0x175   : > { %2948 = vrot.lane.b32.xlu0 %v4608_v25, %s4976_s23  ;;  %v650_v43 = vrot.slane %v648_v20, 7  ;;  %v1898_v32 = vrot.slane %v1896_v49, 4  ;;  %v4624_v62 = vcombine.low %v1539_v38, %v6440_v18  ;;  %v3694_v13 = vsel %vm3678_vm6, %v3661_v26, %v6291_v59  ;;  %v4939_v38 = vld [vmem:[#allocation2 + $0x60] sm:$0xf]  ;;  %v6482_v20 = vpop.permute.xlu1 %3290 }
 0x176   : > { %v645_v52 = vor.u32 %v643_v56, %v642_v7  ;;  %v646_v29 = vrot.slane %v642_v7, 4  ;;  %v1901_v10 = vrot.slane %v1899_v15, 5  ;;  %v1905_v46 = vshll.u32 %v6440_v18, 16  ;;  %v4942_v56 = vld [vmem:[#allocation2 + $0x70] sm:$0xf] }
 0x177   : > { %2950 = vrot.lane.b32.xlu1 %v4609_v48, %s4976_s23  ;;  %v653_v6 = vor.u32 %v651_v5, %v650_v43  ;;  %v655_v31 = vrot.slane %v650_v43, 4  ;;  %v1911_v40 = vrot.slane %v1909_v41, 4  ;;  %v1915_v45 = vshll.u32 %v6450_v9, 16  ;;  %v6465_v50 = vpop.permute.xlu0 %3368  ;;  %v6489_v15 = vld [vmem:[#allocation2 + $0xd0] sm:$0xf]  ;;  %s6750_s23 = scalar_lea.vmem %s6839_s4, %s6858_s15 }
 0x178   : > { %v816_v12 = vsel %vm5110_vm10, %v645_v52, %v815_v55  ;;  %v3692_v59 = vsel %vm3678_vm6, %v3659_v33, %v6248_v16  ;;  %v1902_v30 = vor.u32 %v1901_v10, %v1898_v32  ;;  %v1907_v27 = vrot.slane %v1905_v46, 5  ;;  %v6474_v16 = vld [vmem:[#allocation2 + $0xcc] sm:$0xf] }
 0x179   : > { %v654_v60 = vsel %vm5124_vm12, %v646_v29, %v653_v6  ;;  %817 = vst [vmem:[#allocation2 + $0xc0] sm:$0xf] %v816_v12  ;;  %3044 = vrot.lane.b32.xlu0 %v4624_v62, %s4978_s25  ;;  %v820_v4 = vsel %vm5139_vm13, %v655_v31, %v819_v39  ;;  %v4570_v34 = vcombine.low %v4939_v38, %v4940_v58  ;;  %v1917_v26 = vrot.slane %v1915_v45, 5 }
 0x17a   : > { %v3725_v53 = vsel %vm3711_vm8, %v3692_v59, %v6282_v11  ;;  %818 = vst.msk [vmem:[#allocation2 + $0xc4] sm:$0xf] %vm290_vm0, %v654_v60  ;;  %821 = vst [vmem:[#allocation2 + $0xc8] sm:$0x1] %v820_v4  ;;  %v1903_v21 = vrot.slane %v1902_v30, 4  ;;  %v1912_v44 = vor.u32 %v1911_v40, %v1907_v27  ;;  %v4544_v48 = vrot.slane %v1957_v37, 9 }
 0x17b   : > { %4830 = vmatprep.mubr.msk.bf16.mxu0 %vm3764_vm9, %v3725_v53  ;;  %v2107_v63 = vrot.slane %v6440_v18, 5  ;;  %v2110_v0 = vrot.slane %v6450_v9, 5  ;;  %v4571_v25 = vcombine.low %v4941_v54, %v4942_v56  ;;  %v3727_v11 = vsel %vm3711_vm8, %v3694_v13, %v6300_v2 }
 0x17c   : > { %v1908_v5 = vsel %vm5116_vm11, %v1903_v21, %v1907_v27  ;;  %v1913_v49 = vrot.slane %v1912_v44, 4  ;;  %v2529_v33 = vshrl.u32 %v6474_v16, 16  ;;  %v2532_v7 = vshll.u32 %v6474_v16, 16  ;;  %4831 = vmatmul.mubr.msk.bf16.gmra.mrb[12].mxu0 %vm3764_vm9, %v3727_v11  ;;  %v6491_v41 = vpop.permute.xlu0 %3448 }
 0x17d   : > { %v2109_v18 = vrot.slane %v2107_v63, 4  ;;  %v2108_v9 = vsel %vm5096_vm7, %v4544_v48, %v2107_v63  ;;  %v3491_v62 = vsel %vm3464_vm14, %v4570_v34, %v6314_v35  ;;  %v3494_v52 = vsel %vm3464_vm14, %v4571_v25, %v6349_v57 }
 0x17e   : > { %v1918_v2 = vsel %vm5116_vm11, %v1913_v49, %v1917_v26  ;;  %v6497_v43 = vrot.slane %v2529_v33, 4  ;;  %v6499_v55 = vrot.slane %v2532_v7, 5  ;;  %v2542_v39 = vshrl.u32 %v6489_v15, 16  ;;  %v6529_v7 = vld [vmem:[#allocation2 + $0xd4] sm:$0x1] }
 0x17f   : > { %v4640_v32 = vcombine.low %v1908_v5, %v1918_v2  ;;  %v2111_v13 = vsel %vm5096_vm7, %v2109_v18, %v2110_v0  ;;  %v4673_v46 = vcombine.low %v6474_v16, %v6489_v15  ;;  %v3533_v6 = vsel %vm3513_vm15, %v3494_v52, %v6369_v3  ;;  %v6517_v59 = vpop.permute.xlu1 %3370 }
 0x180   : > { %v1541_v29 = vld [vmem:[#allocation2 + $0xc0] sm:$0xf]  ;;  %v3531_v31 = vsel %vm3513_vm15, %v3491_v62, %v6338_v28  ;;  %v4656_v57 = vcombine.low %v2108_v9, %v2111_v13  ;;  %v2535_v12 = vor.u32 %v6499_v55, %v6497_v43  ;;  %v3566_v63 = vsel %vm3546_vm1, %v3533_v6, %v6401_v8 }
 0x181   : > { %v1958_v10 = vld [vmem:[#allocation2 + $0xc0] sm:$0xe]  ;;  %v1542_v35 = vld [vmem:[#allocation2 + $0xc4] sm:$0xf]  ;;  %v1920_v40 = vshrl.u32 %v1541_v29, 16  ;;  %v1923_v45 = vshll.u32 %v1541_v29, 16  ;;  %3124 = vrot.lane.b32.xlu0 %v4640_v32, %s4982_s29  ;;  %v3564_v8 = vsel %vm3546_vm1, %v3531_v31, %v6360_v61 }
 0x182   : > { %v1558_v37 = vld [vmem:[#allocation2 + $0xc8] sm:$0x1]  ;;  %v1933_v30 = vshrl.u32 %v1542_v35, 16  ;;  %v4625_v27 = vcombine.low %v1541_v29, %v1542_v35  ;;  %v1929_v60 = vshll.u32 %v1542_v35, 16  ;;  %v2148_v3 = vld [vmem:[#allocation2 + $0xc0] sm:$0xf] }
 0x183   : > { %v1939_v4 = vshll.u32 %v1558_v37, 16  ;;  %v1922_v38 = vrot.slane %v1920_v40, 4  ;;  %v1925_v58 = vrot.slane %v1923_v45, 5  ;;  %v4545_v28 = vrot.slane %v1958_v10, 9  ;;  %v6519_v53 = vld [vmem:[#allocation2 + $0xc4] sm:$0xf]  ;;  %v6521_v21 = vpop.permute.xlu0 %3450  ;;  %v6535_v43 = vpop.permute.xlu1 %2860 }
 0x184   : > { %v2114_v34 = vrot.slane %v1542_v35, 5  ;;  %3046 = vrot.lane.b32.xlu1 %v4625_v27, %s4978_s25  ;;  %v1931_v44 = vrot.slane %v1929_v60, 5  ;;  %v1935_v26 = vrot.slane %v1933_v30, 4  ;;  %v2117_v48 = vrot.slane %v1558_v37, 5  ;;  %v2166_v52 = vld [vmem:[#allocation2 + $0xc8] sm:$0x1] }
 0x185   : > { %v1926_v0 = vor.u32 %v1925_v58, %v1922_v38  ;;  %v1941_v54 = vrot.slane %v1939_v4, 5  ;;  %3204 = vrot.lane.b32.xlu0 %v4656_v57, %s4980_s27  ;;  %v2505_v25 = vshrl.u32 %v2148_v3, 16  ;;  %v2508_v5 = vshll.u32 %v2148_v3, 16  ;;  %v2566_v4 = vld [vmem:[#allocation2 + $0xc0] sm:$0xe] }
 0x186   : > { %v2116_v56 = vrot.slane %v2114_v34, 4  ;;  %v1936_v11 = vor.u32 %v1935_v26, %v1931_v44  ;;  %v2518_v49 = vshrl.u32 %v6519_v53, 16  ;;  %v4672_v33 = vcombine.low %v2148_v3, %v6519_v53  ;;  %v2567_v26 = vld [vmem:[#allocation2 + $0xcc] sm:$0xe] }
 0x187   : > { %v1927_v18 = vrot.slane %v1926_v0, 4  ;;  %v2115_v2 = vsel %vm5096_vm7, %v4545_v28, %v2114_v34  ;;  %v2507_v9 = vrot.slane %v2505_v25, 4  ;;  %v2510_v62 = vrot.slane %v2508_v5, 5  ;;  %v6540_v29 = vpop.permute.xlu0 %2940  ;;  %v6553_v0 = vpop.permute.xlu1 %2862 }
 0x188   : > { %v1937_v55 = vrot.slane %v1936_v11, 4  ;;  %v2118_v32 = vsel %vm5096_vm7, %v2116_v56, %v2117_v48  ;;  %v2538_v13 = vshll.u32 %v6489_v15, 16  ;;  %v2544_v6 = vrot.slane %v2542_v39, 4 }
 0x189   : > { %v1932_v10 = vsel %vm5116_vm11, %v1927_v18, %v1931_v44  ;;  %3300 = vrot.lane.b32.xlu0 %v4672_v33, %s4979_s26  ;;  %v2548_v61 = vshll.u32 %v6529_v7, 16  ;;  %v2514_v31 = vshll.u32 %v6519_v53, 16  ;;  %v2511_v45 = vor.u32 %v2510_v62, %v2507_v9 }
 0x18a   : > { %v1942_v35 = vsel %vm5116_vm11, %v1937_v55, %v1941_v54  ;;  %v2540_v40 = vrot.slane %v2538_v13, 5  ;;  %v2520_v37 = vrot.slane %v2518_v49, 4  ;;  %v2536_v30 = vrot.slane %v2535_v12, 4 }
 0x18b   : > { %v4641_v57 = vcombine.low %v1932_v10, %v1942_v35  ;;  %v2516_v27 = vrot.slane %v2514_v31, 5  ;;  %v2524_v60 = vshll.u32 %v2166_v52, 16  ;;  %v4657_v3 = vcombine.low %v2115_v2, %v2118_v32  ;;  %v3037_v11 = vpop.permute.xlu0 %3036  ;;  %v2943_v10 = vpop.permute.xlu1 %2942 }
 0x18c   : > { %v2545_v38 = vor.u32 %v2544_v6, %v2540_v40  ;;  %v2512_v58 = vrot.slane %v2511_v45, 4  ;;  %v3599_v39 = vsel %vm3579_vm2, %v3566_v63, %v6425_v47  ;;  %v2550_v28 = vrot.slane %v2548_v61, 5 }
 0x18d   : > { %3126 = vrot.lane.b32.xlu1 %v4641_v57, %s4982_s29  ;;  %v2521_v34 = vor.u32 %v2520_v37, %v2516_v27  ;;  %v2526_v44 = vrot.slane %v2524_v60, 5  ;;  %v2723_v48 = vrot.slane %v6489_v15, 5  ;;  %v4560_v54 = vrot.slane %v2566_v4, 9 }
 0x18e   : > { %v2546_v12 = vrot.slane %v2545_v38, 4  ;;  %v2716_v56 = vrot.slane %v6519_v53, 5  ;;  %v3597_v25 = vsel %vm3579_vm2, %v3564_v8, %v6391_v22  ;;  %v2541_v47 = vsel %vm5116_vm11, %v2536_v30, %v2540_v40  ;;  %v4944_v40 = vld [vmem:[#allocation2 + $0x7c] sm:$0xf]  ;;  %v4946_v38 = vld [vmem:[#allocation2 + $0x88] sm:$0xf] }
 0x18f   : > { %v2517_v63 = vsel %vm5116_vm11, %v2512_v58, %v2516_v27  ;;  %v2522_v5 = vrot.slane %v2521_v34, 4  ;;  %v2719_v49 = vrot.slane %v2166_v52, 5  ;;  %v4561_v33 = vrot.slane %v2567_v26, 9 }
 0x190   : > { %v2725_v18 = vrot.slane %v2723_v48, 4  ;;  %v2726_v2 = vrot.slane %v6529_v7, 5  ;;  %v2718_v9 = vrot.slane %v2716_v56, 4  ;;  %v2551_v53 = vsel %vm5116_vm11, %v2546_v12, %v2550_v28 }
 0x191   : > { %3206 = vrot.lane.b32.xlu1 %v4657_v3, %s4980_s27  ;;  %v2527_v22 = vsel %vm5116_vm11, %v2522_v5, %v2526_v44  ;;  %v2717_v8 = vsel %vm5096_vm7, %v4560_v54, %v2716_v56  ;;  %v3632_v55 = vsel %vm3612_vm3, %v3599_v39, %v6456_v19  ;;  %v3630_v7 = vsel %vm3612_vm3, %v3597_v25, %v6413_v42  ;;  %v4945_v3 = vld [vmem:[#allocation2 + $0x84] sm:$0xf] }
 0x192   : > { %v4688_v32 = vcombine.low %v2517_v63, %v2527_v22  ;;  %v2720_v62 = vsel %vm5096_vm7, %v2718_v9, %v2719_v49  ;;  %v3665_v13 = vsel %vm3645_vm5, %v3632_v55, %v6482_v20  ;;  %v3663_v36 = vsel %vm3645_vm5, %v3630_v7, %v6444_v23 }
 0x193   : > { %v3698_v52 = vsel %vm3678_vm6, %v3665_v13, %v6517_v59  ;;  %v4704_v19 = vcombine.low %v2717_v8, %v2720_v62  ;;  %v3696_v6 = vsel %vm3678_vm6, %v3663_v36, %v6465_v50  ;;  %v4689_v23 = vcombine.low %v2541_v47, %v2551_v53 }
 0x194   : > { %3380 = vrot.lane.b32.xlu0 %v4688_v32, %s4983_s30  ;;  %v3731_v61 = vsel %vm3711_vm8, %v3698_v52, %v6521_v21  ;;  %v3117_v42 = vpop.permute.xlu0 %3116  ;;  %v3729_v20 = vsel %vm3711_vm8, %v3696_v6, %v6491_v41  ;;  %v4576_v59 = vcombine.low %v6324_v24, %v6330_v51  ;;  %v2724_v31 = vsel %vm5096_vm7, %v4561_v33, %v2723_v48 }
 0x195   : > { %3302 = vrot.lane.b32.xlu1 %v4673_v46, %s4979_s26  ;;  %v2727_v50 = vsel %vm5096_vm7, %v2725_v18, %v2726_v2  ;;  %4834 = vmatprep.mubr.msk.bf16.mxu1 %vm3764_vm9, %v3729_v20  ;;  %v4577_v21 = vcombine.low %v6372_v17, %v6381_v14  ;;  %v4572_v45 = vcombine.low %v4943_v1, %v4944_v40  ;;  %vm4090_vm0 = vcmask 60416   ;;  %v4948_v20 = vld [vmem:[#allocation2 + $0x94] sm:$0xf] }
 0x196   : > { %4835 = vmatmul.mubr.msk.bf16.vlgmr.msra.gmra.mrb[0].mxu1 %vm3764_vm9, %v3731_v61  ;;  %v4705_v16 = vcombine.low %v2724_v31, %v2727_v50  ;;  %v3039_v15 = vpop.permute.xlu1 %3038  ;;  %v4573_v58 = vcombine.low %v4945_v3, %v4946_v38  ;;  %vm4127_vm7 = vcmask 57344  }
 0x197   : > { %v3497_v57 = vsel %vm3464_vm14, %v4572_v45, %v6535_v43 }
 0x198   : > { %3460 = vrot.lane.b32.xlu0 %v4704_v19, %s4981_s28  ;;  %v3197_v41 = vpop.permute.xlu0 %3196  ;;  %v3535_v27 = vsel %vm3513_vm15, %v3497_v57, %v6540_v29  ;;  %v3500_v29 = vsel %vm3464_vm14, %v4573_v58, %v6553_v0 }
 0x199   : > { %3382 = vrot.lane.b32.xlu1 %v4689_v23, %s4983_s30  ;;  %v3568_v60 = vsel %vm3546_vm1, %v3535_v27, %v3037_v11  ;;  %v3537_v48 = vsel %vm3513_vm15, %v3500_v29, %v2943_v10  ;;  %v4947_v23 = vld [vmem:[#allocation2 + $0x90] sm:$0xf] }
 0x19a   : > { %v3601_v4 = vsel %vm3579_vm2, %v3568_v60, %v3117_v42  ;;  %v3570_v12 = vsel %vm3546_vm1, %v3537_v48, %v3039_v15  ;;  %v4574_v31 = vcombine.low %v4947_v23, %v4948_v20 }
 0x19b   : > { %v3634_v39 = vsel %vm3612_vm3, %v3601_v4, %v3197_v41 }
 0x19c   : > { %v3293_v35 = vpop.permute.xlu0 %3292 }
 0x19d   : > { %3462 = vrot.lane.b32.xlu1 %v4705_v16, %s4981_s28  ;;  %v3667_v34 = vsel %vm3645_vm5, %v3634_v39, %v3293_v35 }
 0x19f   : > { %v3119_v46 = vpop.permute.xlu1 %3118 }
 0x1a0   : > { %v3603_v54 = vsel %vm3579_vm2, %v3570_v12, %v3119_v46 }
 0x1a3   : > { %v3199_v37 = vpop.permute.xlu1 %3198 }
 0x1a4   : > { %v3636_v25 = vsel %vm3612_vm3, %v3603_v54, %v3199_v37 }
 0x1a6   : > { %v3373_v30 = vpop.permute.xlu0 %3372 }
 0x1a7   : > { %v3295_v28 = vpop.permute.xlu1 %3294  ;;  %v3700_v44 = vsel %vm3678_vm6, %v3667_v34, %v3373_v30  ;;  %v4950_v34 = vld [vmem:[#allocation2 + $0xa0] sm:$0xf] }
 0x1a8   : > { %v3669_v11 = vsel %vm3645_vm5, %v3636_v25, %v3295_v28  ;;  %v4949_v28 = vld [vmem:[#allocation2 + $0x9c] sm:$0xf] }
 0x1ac   : > { %v3453_v26 = vpop.permute.xlu0 %3452 }
 0x1ad   : > { %v3733_v43 = vsel %vm3711_vm8, %v3700_v44, %v3453_v26  ;;  %v3375_v56 = vpop.permute.xlu1 %3374  ;;  %v4575_v44 = vcombine.low %v4949_v28, %v4950_v34 }
 0x1ae   : > { %4838 = vmatprep.mubr.msk.bf16.mxu1 %vm3764_vm9, %v3733_v43  ;;  %v3702_v47 = vsel %vm3678_vm6, %v3669_v11, %v3375_v56 }
 0x1b1   : > { %v2865_v0 = vpop.permute.xlu1 %2864 }
 0x1b2   : > { %v3503_v30 = vsel %vm3464_vm14, %v4574_v31, %v2865_v0 }
 0x1b4   : > { %v3455_v63 = vpop.permute.xlu0 %3454 }
 0x1b5   : > { %v3735_v5 = vsel %vm3711_vm8, %v3702_v47, %v3455_v63 }
 0x1b6   : > { %4839 = vmatmul.mubr.msk.bf16.gmra.mrb[4].mxu1 %vm3764_vm9, %v3735_v5  ;;  %v2867_v18 = vpop.permute.xlu1 %2866 }
 0x1b7   : > { %v3506_v25 = vsel %vm3464_vm14, %v4575_v44, %v2867_v18 }
 0x1b8   : > { %v2945_v49 = vpop.permute.xlu0 %2944 }
 0x1b9   : > { %v3539_v3 = vsel %vm3513_vm15, %v3503_v30, %v2945_v49 }
 0x1ba   : > { %v2947_v9 = vpop.permute.xlu1 %2946 }
 0x1bb   : > { %v3541_v47 = vsel %vm3513_vm15, %v3506_v25, %v2947_v9 }
 0x1bc   : > { %v3041_v33 = vpop.permute.xlu0 %3040 }
 0x1bd   : > { %v3572_v58 = vsel %vm3546_vm1, %v3539_v3, %v3041_v33 }
 0x1c3   : > { %v3121_v2 = vpop.permute.xlu0 %3120 }
 0x1c4   : > { %v3605_v26 = vsel %vm3579_vm2, %v3572_v58, %v3121_v2 }
 0x1c7   : > { %v3201_v53 = vpop.permute.xlu0 %3200  ;;  %v3043_v22 = vpop.permute.xlu1 %3042 }
 0x1c8   : > { %v3638_v29 = vsel %vm3612_vm3, %v3605_v26, %v3201_v53  ;;  %v3574_v63 = vsel %vm3546_vm1, %v3541_v47, %v3043_v22 }
 0x1cb   : > { %v3297_v62 = vpop.permute.xlu0 %3296 }
 0x1cc   : > { %v3671_v12 = vsel %vm3645_vm5, %v3638_v29, %v3297_v62 }
 0x1cd   : > { %v4820_v8 = vpop.f32.mrb[0].mxu0 }
 0x1ce   : > { %v4763_v55 = vpack.c.bf16 %v4820_v8, %v4820_v8  ;;  %v3835_v32 = vpop.f32.mrb[1].mxu0  ;;  %v4206_v50 = vmul.f32 %v4820_v8, %v4820_v8  ;;  %v4134_v41 = vsel %vm3513_vm15, %v4820_v8, 0.0 }
 0x1cf   : > { %v4761_v7 = vpack.c.bf16 %v3835_v32, %v3835_v32  ;;  %v4821_v13 = vpop.f32.mrb[2].mxu0  ;;  %v4204_v52 = vmul.f32 %v3835_v32, %v3835_v32  ;;  %v4131_v6 = vsel %vm3513_vm15, %v3835_v32, 0.0 }
 0x1d0   : > { %v3123_v36 = vpop.permute.xlu1 %3122  ;;  %4093 = vst.msk [vmem:[%s6632_s13 + $0x8] sm:$0xf] %vm4090_vm0, %v4763_v55  ;;  %v4764_v10 = vpack.c.bf16 %v4821_v13, %v4821_v13  ;;  %v3838_v19 = vpop.f32.mrb[3].mxu0  ;;  %v4207_v1 = vmul.f32 %v4821_v13, %v4821_v13  ;;  %v4136_v37 = vsel %vm3513_vm15, %v4821_v13, 0.0  ;;  %v4239_v60 = vsel %vm3513_vm15, %v4206_v50, 0.0 }
 0x1d1   : > { %4091 = vst.msk [vmem:[%s6632_s13] sm:$0xf] %vm4090_vm0, %v4761_v7  ;;  %v4762_v61 = vpack.c.bf16 %v3838_v19, %v3838_v19  ;;  %v4132_v42 = vsel %vm3513_vm15, %v3838_v19, 0.0  ;;  %v4205_v15 = vmul.f32 %v3838_v19, %v3838_v19  ;;  %v4236_v35 = vsel %vm3513_vm15, %v4204_v52, 0.0 }
 0x1d2   : > { %4094 = vst.msk [vmem:[%s6632_s13 + $0xc] sm:$0xf] %vm4090_vm0, %v4764_v10  ;;  %v4133_v16 = vadd.f32 %v4132_v42, %v4131_v6  ;;  %v4241_v39 = vsel %vm3513_vm15, %v4207_v1, 0.0  ;;  %v3607_v5 = vsel %vm3579_vm2, %v3574_v63, %v3123_v36 }
 0x1d3   : > { %4092 = vst.msk [vmem:[%s6632_s13 + $0x4] sm:$0xf] %vm4090_vm0, %v4762_v61  ;;  %v4237_v45 = vsel %vm3513_vm15, %v4205_v15, 0.0 }
 0x1d4   : > { %v3203_v46 = vpop.permute.xlu1 %3202  ;;  %v4135_v40 = vadd.f32 %v4134_v41, %v4133_v16  ;;  %v4238_v57 = vadd.f32 %v4237_v45, %v4236_v35 }
 0x1d5   : > { %v3640_v49 = vsel %vm3612_vm3, %v3607_v5, %v3203_v46 }
 0x1d6   : > { %v3377_v27 = vpop.permute.xlu0 %3376  ;;  %v4137_v4 = vadd.f32 %v4136_v37, %v4135_v40  ;;  %v4240_v38 = vadd.f32 %v4239_v60, %v4238_v57 }
 0x1d7   : > { %v3704_v54 = vsel %vm3678_vm6, %v3671_v12, %v3377_v27 }
 0x1d8   : > { %v4242_v43 = vadd.f32 %v4241_v39, %v4240_v38  ;;  %v3299_v48 = vpop.permute.xlu1 %3298 }
 0x1d9   : > { %v3673_v33 = vsel %vm3645_vm5, %v3640_v49, %v3299_v48 }
 0x1dc   : > { %v3457_v56 = vpop.permute.xlu0 %3456  ;;  %v3379_v0 = vpop.permute.xlu1 %3378 }
 0x1dd   : > { %v3737_v11 = vsel %vm3711_vm8, %v3704_v54, %v3457_v56  ;;  %v3706_v2 = vsel %vm3678_vm6, %v3673_v33, %v3379_v0 }
 0x1de   : > { %4842 = vmatprep.mubr.msk.bf16.mxu1 %vm3764_vm9, %v3737_v11 }
 0x1e0   : > { %v2869_v9 = vpop.permute.xlu1 %2868 }
 0x1e1   : > { %v3509_v44 = vsel %vm3464_vm14, %v4576_v59, %v2869_v9 }
 0x1e3   : > { %v3459_v53 = vpop.permute.xlu0 %3458 }
 0x1e4   : > { %v3739_v18 = vsel %vm3711_vm8, %v3706_v2, %v3459_v53 }
 0x1e5   : > { %4843 = vmatmul.mubr.msk.bf16.gmra.mrb[8].mxu1 %vm3764_vm9, %v3739_v18  ;;  %v2871_v55 = vpop.permute.xlu1 %2870 }
 0x1e6   : > { %v3512_v56 = vsel %vm3464_vm14, %v4577_v21, %v2871_v55 }
 0x1e7   : > { %v2949_v8 = vpop.permute.xlu0 %2948 }
 0x1e8   : > { %v3543_v26 = vsel %vm3513_vm15, %v3509_v44, %v2949_v8 }
 0x1e9   : > { %v2951_v19 = vpop.permute.xlu1 %2950 }
 0x1ea   : > { %v3545_v24 = vsel %vm3513_vm15, %v3512_v56, %v2951_v19 }
 0x1eb   : > { %v3045_v22 = vpop.permute.xlu0 %3044 }
 0x1ef   : > { %v4824_v32 = vpop.f32.mrb[4].mxu0 }
 0x1f0   : > { %v4767_v62 = vpack.c.bf16 %v4824_v32, %v4824_v32  ;;  %v3851_v7 = vpop.f32.mrb[5].mxu0  ;;  %v4210_v50 = vmul.f32 %v4824_v32, %v4824_v32  ;;  %v4142_v35 = vsel %vm3513_vm15, %v4824_v32, 0.0 }
 0x1f1   : > { %v4765_v13 = vpack.c.bf16 %v3851_v7, %v3851_v7  ;;  %v4138_v36 = vsel %vm3513_vm15, %v3851_v7, 0.0  ;;  %v4208_v52 = vmul.f32 %v3851_v7, %v3851_v7  ;;  %v4825_v10 = vpop.f32.mrb[6].mxu0 }
 0x1f2   : > { %4097 = vst.msk [vmem:[%s6632_s13 + $0x18] sm:$0xf] %vm4090_vm0, %v4767_v62  ;;  %v4139_v6 = vadd.f32 %v4138_v36, %v4137_v4  ;;  %v4768_v61 = vpack.c.bf16 %v4825_v10, %v4825_v10  ;;  %v3854_v42 = vpop.f32.mrb[7].mxu0  ;;  %v4211_v1 = vmul.f32 %v4825_v10, %v4825_v10  ;;  %v4247_v30 = vsel %vm3513_vm15, %v4210_v50, 0.0 }
 0x1f3   : > { %v3125_v23 = vpop.permute.xlu0 %3124  ;;  %4095 = vst.msk [vmem:[%s6632_s13 + $0x10] sm:$0xf] %vm4090_vm0, %v4765_v13  ;;  %v4243_v20 = vsel %vm3513_vm15, %v4208_v52, 0.0  ;;  %v4766_v31 = vpack.c.bf16 %v3854_v42, %v3854_v42  ;;  %v4140_v15 = vsel %vm3513_vm15, %v3854_v42, 0.0  ;;  %v4209_v41 = vmul.f32 %v3854_v42, %v3854_v42 }
 0x1f4   : > { %v4244_v16 = vadd.f32 %v4243_v20, %v4242_v43  ;;  %4098 = vst.msk [vmem:[%s6632_s13 + $0x1c] sm:$0xf] %vm4090_vm0, %v4768_v61  ;;  %v4141_v46 = vadd.f32 %v4140_v15, %v4139_v6  ;;  %v4144_v27 = vsel %vm3513_vm15, %v4825_v10, 0.0  ;;  %v4249_v38 = vsel %vm3513_vm15, %v4211_v1, 0.0 }
 0x1f5   : > { %4096 = vst.msk [vmem:[%s6632_s13 + $0x14] sm:$0xf] %vm4090_vm0, %v4766_v31  ;;  %v4245_v40 = vsel %vm3513_vm15, %v4209_v41, 0.0  ;;  %v3576_v43 = vsel %vm3546_vm1, %v3543_v26, %v3045_v22 }
 0x1f6   : > { %v4143_v45 = vadd.f32 %v4142_v35, %v4141_v46  ;;  %v4246_v37 = vadd.f32 %v4245_v40, %v4244_v16  ;;  %v3047_v57 = vpop.permute.xlu1 %3046  ;;  %v3609_v48 = vsel %vm3579_vm2, %v3576_v43, %v3125_v23 }
 0x1f7   : > { %v3205_v60 = vpop.permute.xlu0 %3204  ;;  %v3578_v11 = vsel %vm3546_vm1, %v3545_v24, %v3047_v57 }
 0x1f8   : > { %v4248_v4 = vadd.f32 %v4247_v30, %v4246_v37  ;;  %v4145_v3 = vadd.f32 %v4144_v27, %v4143_v45  ;;  %v3642_v54 = vsel %vm3612_vm3, %v3609_v48, %v3205_v60 }
 0x1fa   : > { %v4250_v58 = vadd.f32 %v4249_v38, %v4248_v4 }
 0x1fb   : > { %v3301_v28 = vpop.permute.xlu0 %3300 }
 0x1fc   : > { %v3675_v25 = vsel %vm3645_vm5, %v3642_v54, %v3301_v28 }
 0x1ff   : > { %v3127_v39 = vpop.permute.xlu1 %3126 }
 0x200   : > { %v3611_v5 = vsel %vm3579_vm2, %v3578_v11, %v3127_v39 }
 0x203   : > { %v3207_v34 = vpop.permute.xlu1 %3206 }
 0x204   : > { %v3644_v17 = vsel %vm3612_vm3, %v3611_v5, %v3207_v34 }
 0x206   : > { %v3381_v29 = vpop.permute.xlu0 %3380 }
 0x207   : > { %v3303_v12 = vpop.permute.xlu1 %3302  ;;  %v3708_v51 = vsel %vm3678_vm6, %v3675_v25, %v3381_v29 }
 0x208   : > { %v3677_v14 = vsel %vm3645_vm5, %v3644_v17, %v3303_v12  ;;  %v4984_v17 = vmov 0.0  }
 0x209   : > { %4128 = vst.msk [vmem:[%s6744_s20] sm:$0x1] %vm4127_vm7, %v4984_v17  ;;  %4129 = vst.msk [vmem:[%s6750_s23] sm:$0x1] %vm4127_vm7, %v4984_v17 }
 0x20a   : > { %v3461_v59 = vpop.permute.xlu0 %3460 }
 0x20b   : > { %v3383_v47 = vpop.permute.xlu1 %3382  ;;  %v3741_v63 = vsel %vm3711_vm8, %v3708_v51, %v3461_v59 }
 0x20c   : > { %4846 = vmatprep.mubr.msk.bf16.mxu1 %vm3764_vm9, %v3741_v63  ;;  %v3710_v21 = vsel %vm3678_vm6, %v3677_v14, %v3383_v47 }
 0x20f   : > { %v3463_v0 = vpop.permute.xlu1 %3462 }
 0x210   : > { %v3743_v49 = vsel %vm3711_vm8, %v3710_v21, %v3463_v0 }
 0x211   : > { %4847 = vmatmul.mubr.msk.bf16.gmra.mrb[12].mxu1 %vm3764_vm9, %v3743_v49 }
 0x21f   : > { %v4828_v33 = vpop.f32.mrb[8].mxu0 }
 0x220   : > { %v4771_v2 = vpack.c.bf16 %v4828_v33, %v4828_v33  ;;  %v3867_v53 = vpop.f32.mrb[9].mxu0  ;;  %v4214_v52 = vmul.f32 %v4828_v33, %v4828_v33  ;;  %v4150_v61 = vsel %vm3513_vm15, %v4828_v33, 0.0 }
 0x221   : > { %v4769_v18 = vpack.c.bf16 %v3867_v53, %v3867_v53  ;;  %v4146_v9 = vsel %vm3513_vm15, %v3867_v53, 0.0  ;;  %v4212_v8 = vmul.f32 %v3867_v53, %v3867_v53  ;;  %v4829_v55 = vpop.f32.mrb[10].mxu0 }
 0x222   : > { %4101 = vst.msk [vmem:[%s6632_s13 + $0x28] sm:$0xf] %vm4090_vm0, %v4771_v2  ;;  %v4147_v22 = vadd.f32 %v4146_v9, %v4145_v3  ;;  %v4772_v32 = vpack.c.bf16 %v4829_v55, %v4829_v55  ;;  %v3870_v62 = vpop.f32.mrb[11].mxu0  ;;  %v4215_v42 = vmul.f32 %v4829_v55, %v4829_v55  ;;  %v4152_v31 = vsel %vm3513_vm15, %v4829_v55, 0.0 }
 0x223   : > { %4099 = vst.msk [vmem:[%s6632_s13 + $0x20] sm:$0xf] %vm4090_vm0, %v4769_v18  ;;  %v4251_v7 = vsel %vm3513_vm15, %v4212_v8, 0.0  ;;  %v4770_v13 = vpack.c.bf16 %v3870_v62, %v3870_v62  ;;  %v4148_v36 = vsel %vm3513_vm15, %v3870_v62, 0.0  ;;  %v4213_v6 = vmul.f32 %v3870_v62, %v3870_v62 }
 0x224   : > { %v4252_v10 = vadd.f32 %v4251_v7, %v4250_v58  ;;  %4102 = vst.msk [vmem:[%s6632_s13 + $0x2c] sm:$0xf] %vm4090_vm0, %v4772_v32  ;;  %v4149_v19 = vadd.f32 %v4148_v36, %v4147_v22  ;;  %v4255_v16 = vsel %vm3513_vm15, %v4214_v52, 0.0  ;;  %v4257_v46 = vsel %vm3513_vm15, %v4215_v42, 0.0 }
 0x225   : > { %4100 = vst.msk [vmem:[%s6632_s13 + $0x24] sm:$0xf] %vm4090_vm0, %v4770_v13  ;;  %v4253_v20 = vsel %vm3513_vm15, %v4213_v6, 0.0 }
 0x226   : > { %v4151_v23 = vadd.f32 %v4150_v61, %v4149_v19  ;;  %v4254_v50 = vadd.f32 %v4253_v20, %v4252_v10 }
 0x228   : > { %v4153_v15 = vadd.f32 %v4152_v31, %v4151_v23  ;;  %v4256_v41 = vadd.f32 %v4255_v16, %v4254_v50 }
 0x22a   : > { %v4258_v35 = vadd.f32 %v4257_v46, %v4256_v41 }
 0x24f   : > { %v4832_v1 = vpop.f32.mrb[12].mxu0 }
 0x250   : > { %v4775_v40 = vpack.c.bf16 %v4832_v1, %v4832_v1  ;;  %v3883_v45 = vpop.f32.mrb[13].mxu0  ;;  %v4218_v28 = vmul.f32 %v4832_v1, %v4832_v1  ;;  %v4158_v43 = vsel %vm3513_vm15, %v4832_v1, 0.0 }
 0x251   : > { %v4773_v37 = vpack.c.bf16 %v3883_v45, %v3883_v45  ;;  %v4154_v57 = vsel %vm3513_vm15, %v3883_v45, 0.0  ;;  %v4216_v30 = vmul.f32 %v3883_v45, %v3883_v45  ;;  %v4833_v27 = vpop.f32.mrb[14].mxu0 }
 0x252   : > { %4105 = vst.msk [vmem:[%s6632_s13 + $0x38] sm:$0xf] %vm4090_vm0, %v4775_v40  ;;  %v4155_v60 = vadd.f32 %v4154_v57, %v4153_v15  ;;  %v4776_v4 = vpack.c.bf16 %v4833_v27, %v4833_v27  ;;  %v3886_v3 = vpop.f32.mrb[15].mxu0  ;;  %v4219_v29 = vmul.f32 %v4833_v27, %v4833_v27  ;;  %v4160_v54 = vsel %vm3513_vm15, %v4833_v27, 0.0 }
 0x253   : > { %4103 = vst.msk [vmem:[%s6632_s13 + $0x30] sm:$0xf] %vm4090_vm0, %v4773_v37  ;;  %v4259_v38 = vsel %vm3513_vm15, %v4216_v30, 0.0  ;;  %v4774_v58 = vpack.c.bf16 %v3886_v3, %v3886_v3  ;;  %v4156_v39 = vsel %vm3513_vm15, %v3886_v3, 0.0  ;;  %v4217_v26 = vmul.f32 %v3886_v3, %v3886_v3 }
 0x254   : > { %v4260_v34 = vadd.f32 %v4259_v38, %v4258_v35  ;;  %4106 = vst.msk [vmem:[%s6632_s13 + $0x3c] sm:$0xf] %vm4090_vm0, %v4776_v4  ;;  %v4157_v44 = vadd.f32 %v4156_v39, %v4155_v60  ;;  %v4263_v25 = vsel %vm3513_vm15, %v4218_v28, 0.0  ;;  %v4265_v59 = vsel %vm3513_vm15, %v4219_v29, 0.0 }
 0x255   : > { %4104 = vst.msk [vmem:[%s6632_s13 + $0x34] sm:$0xf] %vm4090_vm0, %v4774_v58  ;;  %v4261_v12 = vsel %vm3513_vm15, %v4217_v26, 0.0 }
 0x256   : > { %v4159_v48 = vadd.f32 %v4158_v43, %v4157_v44  ;;  %v4262_v56 = vadd.f32 %v4261_v12, %v4260_v34 }
 0x258   : > { %v4161_v24 = vadd.f32 %v4160_v54, %v4159_v48  ;;  %v4264_v51 = vadd.f32 %v4263_v25, %v4262_v56 }
 0x25a   : > { %v4266_v11 = vadd.f32 %v4265_v59, %v4264_v51 }
 0x269   : > { %v4836_v47 = vpop.f32.mrb[0].mxu1 }
 0x26a   : > { %v4779_v63 = vpack.c.bf16 %v4836_v47, %v4836_v47  ;;  %v3899_v5 = vpop.f32.mrb[1].mxu1  ;;  %v4222_v55 = vmul.f32 %v4836_v47, %v4836_v47  ;;  %v4166_v7 = vsel %vm3513_vm15, %v4836_v47, 0.0 }
 0x26b   : > { %v4777_v14 = vpack.c.bf16 %v3899_v5, %v3899_v5  ;;  %v4162_v21 = vsel %vm3513_vm15, %v3899_v5, 0.0  ;;  %v4220_v0 = vmul.f32 %v3899_v5, %v3899_v5  ;;  %v4837_v49 = vpop.f32.mrb[2].mxu1 }
 0x26c   : > { %4109 = vst.msk [vmem:[%s6632_s13 + $0x48] sm:$0xf] %vm4090_vm0, %v4779_v63  ;;  %v4163_v33 = vadd.f32 %v4162_v21, %v4161_v24  ;;  %v4780_v2 = vpack.c.bf16 %v4837_v49, %v4837_v49  ;;  %v3902_v53 = vpop.f32.mrb[3].mxu1  ;;  %v4223_v13 = vmul.f32 %v4837_v49, %v4837_v49  ;;  %v4168_v10 = vsel %vm3513_vm15, %v4837_v49, 0.0 }
 0x26d   : > { %4107 = vst.msk [vmem:[%s6632_s13 + $0x40] sm:$0xf] %vm4090_vm0, %v4777_v14  ;;  %v4267_v18 = vsel %vm3513_vm15, %v4220_v0, 0.0  ;;  %v4778_v9 = vpack.c.bf16 %v3902_v53, %v3902_v53  ;;  %v4164_v8 = vsel %vm3513_vm15, %v3902_v53, 0.0  ;;  %v4221_v62 = vmul.f32 %v3902_v53, %v3902_v53 }
 0x26e   : > { %v4268_v22 = vadd.f32 %v4267_v18, %v4266_v11  ;;  %4110 = vst.msk [vmem:[%s6632_s13 + $0x4c] sm:$0xf] %vm4090_vm0, %v4780_v2  ;;  %v4165_v32 = vadd.f32 %v4164_v8, %v4163_v33  ;;  %v4271_v6 = vsel %vm3513_vm15, %v4222_v55, 0.0  ;;  %v4273_v23 = vsel %vm3513_vm15, %v4223_v13, 0.0 }
 0x26f   : > { %4108 = vst.msk [vmem:[%s6632_s13 + $0x44] sm:$0xf] %vm4090_vm0, %v4778_v9  ;;  %v4269_v52 = vsel %vm3513_vm15, %v4221_v62, 0.0 }
 0x270   : > { %v4167_v36 = vadd.f32 %v4166_v7, %v4165_v32  ;;  %v4270_v19 = vadd.f32 %v4269_v52, %v4268_v22 }
 0x272   : > { %v4169_v61 = vadd.f32 %v4168_v10, %v4167_v36  ;;  %v4272_v42 = vadd.f32 %v4271_v6, %v4270_v19 }
 0x274   : > { %v4274_v20 = vadd.f32 %v4273_v23, %v4272_v42 }
 0x289   : > { %v4840_v31 = vpop.f32.mrb[4].mxu1 }
 0x28a   : > { %v4783_v50 = vpack.c.bf16 %v4840_v31, %v4840_v31  ;;  %v3915_v16 = vpop.f32.mrb[5].mxu1  ;;  %v4226_v27 = vmul.f32 %v4840_v31, %v4840_v31  ;;  %v4174_v38 = vsel %vm3513_vm15, %v4840_v31, 0.0 }
 0x28b   : > { %v4781_v15 = vpack.c.bf16 %v3915_v16, %v3915_v16  ;;  %v4170_v41 = vsel %vm3513_vm15, %v3915_v16, 0.0  ;;  %v4224_v46 = vmul.f32 %v3915_v16, %v3915_v16  ;;  %v4841_v35 = vpop.f32.mrb[6].mxu1 }
 0x28c   : > { %4113 = vst.msk [vmem:[%s6632_s13 + $0x58] sm:$0xf] %vm4090_vm0, %v4783_v50  ;;  %v4171_v1 = vadd.f32 %v4170_v41, %v4169_v61  ;;  %v4784_v40 = vpack.c.bf16 %v4841_v35, %v4841_v35  ;;  %v3918_v45 = vpop.f32.mrb[7].mxu1  ;;  %v4227_v58 = vmul.f32 %v4841_v35, %v4841_v35  ;;  %v4176_v34 = vsel %vm3513_vm15, %v4841_v35, 0.0 }
 0x28d   : > { %4111 = vst.msk [vmem:[%s6632_s13 + $0x50] sm:$0xf] %vm4090_vm0, %v4781_v15  ;;  %v4275_v37 = vsel %vm3513_vm15, %v4224_v46, 0.0  ;;  %v4782_v57 = vpack.c.bf16 %v3918_v45, %v3918_v45  ;;  %v4172_v30 = vsel %vm3513_vm15, %v3918_v45, 0.0  ;;  %v4225_v3 = vmul.f32 %v3918_v45, %v3918_v45 }
 0x28e   : > { %v4276_v60 = vadd.f32 %v4275_v37, %v4274_v20  ;;  %4114 = vst.msk [vmem:[%s6632_s13 + $0x5c] sm:$0xf] %vm4090_vm0, %v4784_v40  ;;  %v4173_v4 = vadd.f32 %v4172_v30, %v4171_v1  ;;  %v4279_v26 = vsel %vm3513_vm15, %v4226_v27, 0.0  ;;  %v4281_v48 = vsel %vm3513_vm15, %v4227_v58, 0.0 }
 0x28f   : > { %4112 = vst.msk [vmem:[%s6632_s13 + $0x54] sm:$0xf] %vm4090_vm0, %v4782_v57  ;;  %v4277_v28 = vsel %vm3513_vm15, %v4225_v3, 0.0 }
 0x290   : > { %v4175_v39 = vadd.f32 %v4174_v38, %v4173_v4  ;;  %v4278_v44 = vadd.f32 %v4277_v28, %v4276_v60 }
 0x292   : > { %v4177_v43 = vadd.f32 %v4176_v34, %v4175_v39  ;;  %v4280_v29 = vadd.f32 %v4279_v26, %v4278_v44 }
 0x294   : > { %v4282_v12 = vadd.f32 %v4281_v48, %v4280_v29 }
 0x2b8   : > { %v4844_v54 = vpop.f32.mrb[8].mxu1 }
 0x2b9   : > { %v4787_v56 = vpack.c.bf16 %v4844_v54, %v4844_v54  ;;  %v3931_v25 = vpop.f32.mrb[9].mxu1  ;;  %v4230_v0 = vmul.f32 %v4844_v54, %v4844_v54  ;;  %v4182_v53 = vsel %vm3513_vm15, %v4844_v54, 0.0  ;;  %v4130_v54 = vld [vmem:[%s6744_s20] sm:$0x1] }
 0x2ba   : > { %v4785_v24 = vpack.c.bf16 %v3931_v25, %v3931_v25  ;;  %v4178_v51 = vsel %vm3513_vm15, %v3931_v25, 0.0  ;;  %v4228_v59 = vmul.f32 %v3931_v25, %v3931_v25  ;;  %v4845_v11 = vpop.f32.mrb[10].mxu1 }
 0x2bb   : > { %4117 = vst.msk [vmem:[%s6632_s13 + $0x68] sm:$0xf] %vm4090_vm0, %v4787_v56  ;;  %v4179_v47 = vadd.f32 %v4178_v51, %v4177_v43  ;;  %v4788_v63 = vpack.c.bf16 %v4845_v11, %v4845_v11  ;;  %v3934_v5 = vpop.f32.mrb[11].mxu1  ;;  %v4231_v18 = vmul.f32 %v4845_v11, %v4845_v11  ;;  %v4184_v55 = vsel %vm3513_vm15, %v4845_v11, 0.0 }
 0x2bc   : > { %4115 = vst.msk [vmem:[%s6632_s13 + $0x60] sm:$0xf] %vm4090_vm0, %v4785_v24  ;;  %v4283_v17 = vsel %vm3513_vm15, %v4228_v59, 0.0  ;;  %v4786_v14 = vpack.c.bf16 %v3934_v5, %v3934_v5  ;;  %v4180_v21 = vsel %vm3513_vm15, %v3934_v5, 0.0  ;;  %v4229_v2 = vmul.f32 %v3934_v5, %v3934_v5  ;;  %v4203_v59 = vld [vmem:[%s6750_s23] sm:$0x1] }
 0x2bd   : > { %v4284_v49 = vadd.f32 %v4283_v17, %v4282_v12  ;;  %4118 = vst.msk [vmem:[%s6632_s13 + $0x6c] sm:$0xf] %vm4090_vm0, %v4788_v63  ;;  %v4181_v33 = vadd.f32 %v4180_v21, %v4179_v47  ;;  %v4287_v32 = vsel %vm3513_vm15, %v4230_v0, 0.0  ;;  %v4289_v13 = vsel %vm3513_vm15, %v4231_v18, 0.0 }
 0x2be   : > { %4116 = vst.msk [vmem:[%s6632_s13 + $0x64] sm:$0xf] %vm4090_vm0, %v4786_v14  ;;  %v4285_v8 = vsel %vm3513_vm15, %v4229_v2, 0.0 }
 0x2bf   : > { %v4183_v9 = vadd.f32 %v4182_v53, %v4181_v33  ;;  %v4286_v22 = vadd.f32 %v4285_v8, %v4284_v49 }
 0x2c1   : > { %v4185_v62 = vadd.f32 %v4184_v55, %v4183_v9  ;;  %v4288_v7 = vadd.f32 %v4287_v32, %v4286_v22 }
 0x2c3   : > { %v4290_v36 = vadd.f32 %v4289_v13, %v4288_v7 }
 0x2e4   : > { %v4848_v52 = vpop.f32.mrb[12].mxu1 }
 0x2e5   : > { %v4791_v10 = vpack.c.bf16 %v4848_v52, %v4848_v52  ;;  %v3947_v19 = vpop.f32.mrb[13].mxu1  ;;  %v4234_v46 = vmul.f32 %v4848_v52, %v4848_v52  ;;  %v4190_v45 = vsel %vm3513_vm15, %v4848_v52, 0.0 }
 0x2e6   : > { %v4789_v6 = vpack.c.bf16 %v3947_v19, %v3947_v19  ;;  %v4186_v61 = vsel %vm3513_vm15, %v3947_v19, 0.0  ;;  %v4232_v42 = vmul.f32 %v3947_v19, %v3947_v19  ;;  %v4849_v23 = vpop.f32.mrb[14].mxu1 }
 0x2e7   : > { %4121 = vst.msk [vmem:[%s6632_s13 + $0x78] sm:$0xf] %vm4090_vm0, %v4791_v10  ;;  %v4187_v20 = vadd.f32 %v4186_v61, %v4185_v62  ;;  %v4792_v31 = vpack.c.bf16 %v4849_v23, %v4849_v23  ;;  %v3950_v50 = vpop.f32.mrb[15].mxu1  ;;  %v4235_v37 = vmul.f32 %v4849_v23, %v4849_v23  ;;  %v4192_v27 = vsel %vm3513_vm15, %v4849_v23, 0.0 }
 0x2e8   : > { %4119 = vst.msk [vmem:[%s6632_s13 + $0x70] sm:$0xf] %vm4090_vm0, %v4789_v6  ;;  %v4291_v16 = vsel %vm3513_vm15, %v4232_v42, 0.0  ;;  %v4790_v15 = vpack.c.bf16 %v3950_v50, %v3950_v50  ;;  %v4188_v41 = vsel %vm3513_vm15, %v3950_v50, 0.0  ;;  %v4233_v40 = vmul.f32 %v3950_v50, %v3950_v50 }
 0x2e9   : > { %v4292_v35 = vadd.f32 %v4291_v16, %v4290_v36  ;;  %4122 = vst.msk [vmem:[%s6632_s13 + $0x7c] sm:$0xf] %vm4090_vm0, %v4792_v31  ;;  %v4189_v1 = vadd.f32 %v4188_v41, %v4187_v20  ;;  %v4295_v4 = vsel %vm3513_vm15, %v4234_v46, 0.0  ;;  %v4297_v58 = vsel %vm3513_vm15, %v4235_v37, 0.0 }
 0x2ea   : > { %4120 = vst.msk [vmem:[%s6632_s13 + $0x74] sm:$0xf] %vm4090_vm0, %v4790_v15  ;;  %v4293_v30 = vsel %vm3513_vm15, %v4233_v40, 0.0 }
 0x2eb   : > { %v4191_v57 = vadd.f32 %v4190_v45, %v4189_v1  ;;  %v4294_v60 = vadd.f32 %v4293_v30, %v4292_v35 }
 0x2ed   : > { %v4193_v3 = vadd.f32 %v4192_v27, %v4191_v57  ;;  %v4296_v38 = vadd.f32 %v4295_v4, %v4294_v60 }
 0x2ef   : > { %v4194_v39 = vrot.slane %v4193_v3, 4  ;;  %v4298_v28 = vadd.f32 %v4297_v58, %v4296_v38 }
 0x2f1   : > { %v4195_v34 = vadd.f32 %v4194_v39, %v4193_v3  ;;  %v4299_v44 = vrot.slane %v4298_v28, 4 }
 0x2f3   : > { %v4196_v26 = vrot.slane %v4195_v34, 2  ;;  %v4300_v43 = vadd.f32 %v4299_v44, %v4298_v28 }
 0x2f5   : > { %v4197_v29 = vadd.f32 %v4196_v26, %v4195_v34  ;;  %v4301_v48 = vrot.slane %v4300_v43, 2 }
 0x2f7   : > { %v4198_v12 = vrot.slane %v4197_v29, 1  ;;  %v4302_v56 = vadd.f32 %v4301_v48, %v4300_v43 }
 0x2f9   : > { %v4199_v25 = vadd.f32 %v4198_v12, %v4197_v29  ;;  %v4303_v24 = vrot.slane %v4302_v56, 1 }
 0x2fb   : > { %v4200_v51 = vadd.f32 %v4199_v25, %v4130_v54  ;;  %v4304_v11 = vadd.f32 %v4303_v24, %v4302_v56 }
 0x2fd   : > { %4202 = vst.msk [vmem:[%s6744_s20] sm:$0x1] %vm4127_vm7, %v4200_v51  ;;  %v4305_v47 = vadd.f32 %v4304_v11, %v4203_v59 }
 0x2ff   : > { %4306 = vst.msk [vmem:[%s6750_s23] sm:$0x1] %vm4127_vm7, %v4305_v47 }
 0x300 PF: > { %s15_s17 = sadd.s32 1, %s4973_s17   ;;  %s6853_s15 = smov %s4969_s16 }
 0x301   : > { %p12_p5 = scmp.ge.s32.totalorder %s15_s17, 4   ;;  %s6854_s16 = smov %s6856_s18 }
 0x303   :  { %14 = sbr.rel (!%p12_p5) target bundleno = 2 (0x2), region = 103 }

// kernel: encoder_block_forward.4
= control target key start
LH: loop header
LB: loop body
LE: loop exit
PB: predicated region body
PF: predicated region fallthrough
CT: control target
= control target key end

     0   :  { %s5530_s21 = smov 0   ;;  %s5532_s22 = smov 0   ;;  %s7519_s0 = inlined_call_operand.vmem [shape: bf16[2,16,16,8], index: 0, kind: input, shape index: {}]   ;;  %s7520_s1 = inlined_call_operand.vmem [shape: bf16[72,8], index: 1, kind: input, shape index: {}]   ;;  %s7521_s2 = inlined_call_operand.vmem [shape: f32[1,8], index: 2, kind: input, shape index: {}]   ;;  %s7522_s3 = inlined_call_operand.vmem [shape: f32[1,8], index: 3, kind: input, shape index: {}]   ;;  %s7523_s4 = inlined_call_operand.vmem [shape: bf16[2,16,16,8], index: 4, kind: output, shape index: {0}]   ;;  %s7524_s5 = inlined_call_operand.vmem [shape: f32[2,1,8], index: 5, kind: output, shape index: {1}]   ;;  %s7525_s6 = inlined_call_operand.vmem [shape: f32[2,1,8], index: 6, kind: output, shape index: {2}]  }
   0x1   :  { %s5534_s23 = smov 0  }
   0x2 LB: > { %s36_s24 = sadd.s32 1, %s5479_s22  ;;  %p4838_p0 = scmp.ge.s32.totalorder %s5483_s23, 1  ;;  %s5483_s23 = sphi %s5534_s23, %s17_s23   ;;  %s5479_s22 = sphi %s5532_s22, %s7537_s22   ;;  %s5475_s21 = sphi %s5530_s21, %s7536_s21  }
   0x3   : > { %p38_p1 = scmp.ge.s32.totalorder %s36_s24, 2  ;;  %p253_p2 = scmp.lt.s32.totalorder %s5483_s23, 3 }
   0x5   : > { %s7539_s24 = smov (%p38_p1, %s36_s24), 0  ;;  %p254_p3 = pnand %p4838_p0, %p253_p2 }
   0x6   : > { %vm346_vm0 = vcmask (!%p254_p3), 60416   ;;  %vm349_vm1 = vcmask (!%p254_p3), 57344   ;;  %v5485_v0 = vmov (!%p254_p3), 0   ;;  %p307_p4 = scmp.lt.s32.totalorder (!%p254_p3), %s5475_s21, 1  ;;  %vm1716_vm2 = vcmask (!%p254_p3), 1042432   ;;  %s5486_s9 = smov (!%p254_p3), 16  }
   0x7   : > { %257 = sbr.rel (%p254_p3) target bundleno = 806 (0x326), region = 36  ;;  %347 = vst.msk [vmem:[#allocation2] sm:$0xf] (!%p254_p3), %vm346_vm0, %v5485_v0  ;;  %348 = vst.msk [vmem:[#allocation2 + $0x4] sm:$0xf] (!%p254_p3), %vm346_vm0, %v5485_v0  ;;  %vm1717_vm3 = vcmask (!%p254_p3), 1046532  }
   0x8   : > { %350 = vst.msk [vmem:[#allocation2 + $0x8] sm:$0x1] (!%p254_p3), %vm349_vm1, %v5485_v0  ;;  %353 = vst.msk [vmem:[#allocation2 + $0x14] sm:$0x1] (!%p254_p3), %vm349_vm1, %v5485_v0  ;;  %vm1265_vm5 = vsmask.f32 (!%p254_p3), 3328 }
   0x9   : > { %351 = vst.msk [vmem:[#allocation2 + $0xc] sm:$0xf] (!%p254_p3), %vm346_vm0, %v5485_v0  ;;  %352 = vst.msk [vmem:[#allocation2 + $0x10] sm:$0xf] (!%p254_p3), %vm346_vm0, %v5485_v0  ;;  %vm1266_vm6 = vsmask.f32 (!%p254_p3), 7440 }
   0xa   : > { %354 = vst.msk [vmem:[#allocation2 + $0x18] sm:$0xf] (!%p254_p3), %vm346_vm0, %v5485_v0  ;;  %355 = vst.msk [vmem:[#allocation2 + $0x1c] sm:$0xf] (!%p254_p3), %vm346_vm0, %v5485_v0  ;;  %v5623_v2 = vld [vmem:[%s7521_s2] ss:$0 sm:$0xff] (!%p254_p3) }
   0xb   : > { %356 = vst.msk [vmem:[#allocation2 + $0x20] sm:$0x1] (!%p254_p3), %vm349_vm1, %v5485_v0  ;;  %359 = vst.msk [vmem:[#allocation2 + $0x2c] sm:$0x1] (!%p254_p3), %vm349_vm1, %v5485_v0  ;;  %v5630_v21 = vld [vmem:[%s7522_s3] ss:$0 sm:$0xff] (!%p254_p3) }
   0xc   : > { %357 = vst.msk [vmem:[#allocation2 + $0x24] sm:$0xf] (!%p254_p3), %vm346_vm0, %v5485_v0  ;;  %358 = vst.msk [vmem:[#allocation2 + $0x28] sm:$0xf] (!%p254_p3), %vm346_vm0, %v5485_v0  ;;  %vm998_vm7 = vsmask.f32 (!%p254_p3), 7938 }
   0xd   : > { %360 = vst.msk [vmem:[#allocation2 + $0x30] sm:$0xf] (!%p254_p3), %vm346_vm0, %v5485_v0  ;;  %361 = vst.msk [vmem:[#allocation2 + $0x34] sm:$0xf] (!%p254_p3), %vm346_vm0, %v5485_v0  ;;  %vm673_vm8 = vsmask.f32 (!%p254_p3), 256 }
   0xe   : > { %362 = vst.msk [vmem:[#allocation2 + $0x38] sm:$0x1] %vm349_vm1, %v5485_v0  ;;  %365 = vst.msk [vmem:[#allocation2 + $0x44] sm:$0x1] %vm349_vm1, %v5485_v0  ;;  %s7541_s21 = smov (!%p307_p4, %s5475_s21), 1  ;;  %s5487_s10 = smov 8  }
   0xf   : > { %363 = vst.msk [vmem:[#allocation2 + $0x3c] sm:$0xf] %vm346_vm0, %v5485_v0  ;;  %364 = vst.msk [vmem:[#allocation2 + $0x40] sm:$0xf] %vm346_vm0, %v5485_v0  ;;  %s5132_s25 = sshll.u32 %s7541_s21, 7  ;;  %s5488_s11 = smov 24  }
  0x10   : > { %366 = vst.msk [vmem:[#allocation2 + $0x48] sm:$0xf] %vm346_vm0, %v5485_v0  ;;  %367 = vst.msk [vmem:[#allocation2 + $0x4c] sm:$0xf] %vm346_vm0, %v5485_v0  ;;  %s5618_s28 = scalar_lea.vmem %s7519_s0, %s5132_s25  ;;  %v1218_v5 = vld [vmem:[#allocation2 + $0x4] sm:$0xf] }
  0x11   : > { %368 = vst.msk [vmem:[#allocation2 + $0x50] sm:$0x1] %vm349_vm1, %v5485_v0  ;;  %371 = vst.msk [vmem:[#allocation2 + $0x5c] sm:$0x1] %vm349_vm1, %v5485_v0  ;;  %v5266_v3 = vld [vmem:[%s5618_s28 + $0x8] sm:$0xff]   ;;  %v5203_v4 = vld [vmem:[%s5618_s28] sm:$0xff]  }
  0x12   : > { %369 = vst.msk [vmem:[#allocation2 + $0x54] sm:$0xf] %vm346_vm0, %v5485_v0  ;;  %370 = vst.msk [vmem:[#allocation2 + $0x58] sm:$0xf] %vm346_vm0, %v5485_v0  ;;  %v1249_v6 = vld [vmem:[#allocation2 + $0x8] sm:$0x1]  ;;  %v5208_v8 = vunpack.c.l.bf16 %v5266_v3  ;;  %v5209_v9 = vunpack.c.h.bf16 %v5266_v3  ;;  %v5204_v10 = vunpack.c.l.bf16 %v5203_v4  ;;  %v5205_v11 = vunpack.c.h.bf16 %v5203_v4 }
  0x13   : > { %372 = vst.msk [vmem:[#allocation2 + $0x60] sm:$0xf] %vm346_vm0, %v5485_v0  ;;  %373 = vst.msk [vmem:[#allocation2 + $0x64] sm:$0xf] %vm346_vm0, %v5485_v0  ;;  %v1652_v7 = vld [vmem:[#allocation2] sm:$0xe] }
  0x14   : > { %374 = vst.msk [vmem:[#allocation2 + $0x68] sm:$0x1] %vm349_vm1, %v5485_v0  ;;  %377 = vst.msk [vmem:[#allocation2 + $0x74] sm:$0x1] %vm349_vm1, %v5485_v0  ;;  %v4885_v12 = vrot.slane %v1652_v7, 9  ;;  %v1721_v13 = vrot.slane %v1218_v5, 5  ;;  %v477_v25 = vmul.f32 %v5208_v8, %v5623_v2  ;;  %v478_v32 = vmul.f32 %v5209_v9, %v5623_v2 }
  0x15   : > { %375 = vst.msk [vmem:[#allocation2 + $0x6c] sm:$0xf] %vm346_vm0, %v5485_v0  ;;  %376 = vst.msk [vmem:[#allocation2 + $0x70] sm:$0xf] %vm346_vm0, %v5485_v0  ;;  %v1724_v14 = vrot.slane %v1249_v6, 5  ;;  %v1278_v16 = vshll.u32 %v1218_v5, 16  ;;  %v475_v34 = vmul.f32 %v5204_v10, %v5623_v2  ;;  %v476_v38 = vmul.f32 %v5205_v11, %v5623_v2 }
  0x16   : > { %378 = vst.msk [vmem:[#allocation2 + $0x78] sm:$0xf] %vm346_vm0, %v5485_v0  ;;  %379 = vst.msk [vmem:[#allocation2 + $0x7c] sm:$0xf] %vm346_vm0, %v5485_v0  ;;  %v1217_v15 = vld [vmem:[#allocation2] sm:$0xf]  ;;  %v515_v33 = vadd.f32 %v5630_v21, %v477_v25  ;;  %v516_v40 = vadd.f32 %v5630_v21, %v478_v32 }
  0x17   : > { %380 = vst.msk [vmem:[#allocation2 + $0x80] sm:$0x1] %vm349_vm1, %v5485_v0  ;;  %383 = vst.msk [vmem:[#allocation2 + $0x8c] sm:$0x1] %vm349_vm1, %v5485_v0  ;;  %v1269_v17 = vshrl.u32 %v1217_v15, 16  ;;  %v1272_v18 = vshll.u32 %v1217_v15, 16  ;;  %v513_v42 = vadd.f32 %v5630_v21, %v475_v34  ;;  %v514_v46 = vadd.f32 %v5630_v21, %v476_v38 }
  0x18   : > { %381 = vst.msk [vmem:[#allocation2 + $0x84] sm:$0xf] %vm346_vm0, %v5485_v0  ;;  %382 = vst.msk [vmem:[#allocation2 + $0x88] sm:$0xf] %vm346_vm0, %v5485_v0  ;;  %v1282_v19 = vshrl.u32 %v1218_v5, 16  ;;  %v1288_v20 = vshll.u32 %v1249_v6, 16 }
  0x19   : > { %384 = vst.msk [vmem:[#allocation2 + $0x90] sm:$0xf] %vm346_vm0, %v5485_v0  ;;  %385 = vst.msk [vmem:[#allocation2 + $0x94] sm:$0xf] %vm346_vm0, %v5485_v0  ;;  %v1723_v23 = vrot.slane %v1721_v13, 4  ;;  %v1280_v24 = vrot.slane %v1278_v16, 5 }
  0x1a   : > { %386 = vst.msk [vmem:[#allocation2 + $0x98] sm:$0x1] %vm349_vm1, %v5485_v0  ;;  %389 = vst.msk [vmem:[#allocation2 + $0xa4] sm:$0x1] %vm349_vm1, %v5485_v0  ;;  %v1271_v26 = vrot.slane %v1269_v17, 4  ;;  %v1274_v27 = vrot.slane %v1272_v18, 5 }
  0x1b   : > { %387 = vst.msk [vmem:[#allocation2 + $0x9c] sm:$0xf] %vm346_vm0, %v5485_v0  ;;  %388 = vst.msk [vmem:[#allocation2 + $0xa0] sm:$0xf] %vm346_vm0, %v5485_v0  ;;  %v1284_v28 = vrot.slane %v1282_v19, 4  ;;  %v1290_v29 = vrot.slane %v1288_v20, 5 }
  0x1c   : > { %390 = vst.msk [vmem:[#allocation2 + $0xa8] sm:$0xf] %vm346_vm0, %v5485_v0  ;;  %391 = vst.msk [vmem:[#allocation2 + $0xac] sm:$0xf] %vm346_vm0, %v5485_v0  ;;  %v5267_v30 = vld [vmem:[%s5618_s28 + $0x10] sm:$0xff]   ;;  %v1275_v36 = vor.u32 %v1274_v27, %v1271_v26  ;;  %v547_v41 = vmax.f32 %v515_v33, 0.0 }
  0x1d   : > { %392 = vst.msk [vmem:[#allocation2 + $0xb0] sm:$0x1] %vm349_vm1, %v5485_v0  ;;  %395 = vst.msk [vmem:[#allocation2 + $0xbc] sm:$0x1] %vm349_vm1, %v5485_v0  ;;  %vm674_vm9 = vsmask.f32 4368  ;;  %v1285_v37 = vor.u32 %v1284_v28, %v1280_v24  ;;  %v5212_v43 = vunpack.c.l.bf16 %v5267_v30  ;;  %v5213_v47 = vunpack.c.h.bf16 %v5267_v30 }
  0x1e   : > { %393 = vst.msk [vmem:[#allocation2 + $0xb4] sm:$0xf] %vm346_vm0, %v5485_v0  ;;  %394 = vst.msk [vmem:[#allocation2 + $0xb8] sm:$0xf] %vm346_vm0, %v5485_v0  ;;  %v1276_v44 = vrot.slane %v1275_v36, 4  ;;  %v548_v48 = vmax.f32 %v516_v40, 0.0  ;;  %v5136_v49 = vpack.c.bf16 %v547_v41, %v547_v41 }
  0x1f   : > { %396 = vst.msk [vmem:[#allocation2 + $0xc0] sm:$0xf] %vm346_vm0, %v5485_v0  ;;  %397 = vst.msk [vmem:[#allocation2 + $0xc4] sm:$0xf] %vm346_vm0, %v5485_v0  ;;  %v1286_v45 = vrot.slane %v1285_v37, 4  ;;  %v545_v50 = vmax.f32 %v513_v42, 0.0  ;;  %v479_v51 = vmul.f32 %v5212_v43, %v5623_v2  ;;  %v480_v55 = vmul.f32 %v5213_v47, %v5623_v2 }
  0x20   : > { %398 = vst.msk [vmem:[#allocation2 + $0xc8] sm:$0x1] %vm349_vm1, %v5485_v0  ;;  %401 = vst.msk [vmem:[#allocation2 + $0xd4] sm:$0x1] %vm349_vm1, %v5485_v0  ;;  %v546_v54 = vmax.f32 %v514_v46, 0.0  ;;  %v5268_v56 = vld [vmem:[%s5618_s28 + $0x18] sm:$0xff]   ;;  %v5137_v58 = vpack.c.bf16 %v548_v48, %v548_v48 }
  0x21   : > { %399 = vst.msk [vmem:[#allocation2 + $0xcc] sm:$0xf] %vm346_vm0, %v5485_v0  ;;  %400 = vst.msk [vmem:[#allocation2 + $0xd0] sm:$0xf] %vm346_vm0, %v5485_v0  ;;  %v694_v59 = vshrl.u32 %v5136_v49, 16  ;;  %v697_v60 = vshll.u32 %v5136_v49, 16  ;;  %v5134_v61 = vpack.c.bf16 %v545_v50, %v545_v50  ;;  %v517_v63 = vadd.f32 %v5630_v21, %v479_v51 }
  0x22   : > { %vm5609_vm4 = vmor %vm1716_vm2, %vm1717_vm3  ;;  %v5135_v62 = vpack.c.bf16 %v546_v54, %v546_v54  ;;  %v518_v0 = vadd.f32 %v5630_v21, %v480_v55  ;;  %v702_v4 = vshrl.u32 %v5137_v58, 16  ;;  %v705_v5 = vshll.u32 %v5137_v58, 16  ;;  %v1009_v8 = vld [vmem:[#allocation2 + $0x18] sm:$0xf]  ;;  %v1000_v25 = vld [vmem:[#allocation2 + $0xc] sm:$0xf] }
  0x23   : > { %v1722_v22 = vsel %vm5609_vm4, %v4885_v12, %v1721_v13  ;;  %v1725_v31 = vsel %vm5609_vm4, %v1723_v23, %v1724_v14  ;;  %vm5644_vm10 = vmor %vm1265_vm5, %vm1266_vm6  ;;  %v696_v3 = vrot.slane %v694_v59, 7  ;;  %v5216_v6 = vunpack.c.l.bf16 %v5268_v56  ;;  %v5269_v36 = vld [vmem:[%s5618_s28 + $0x20] sm:$0xff]   ;;  %v1006_v47 = vld [vmem:[#allocation2 + $0x14] sm:$0x1]  ;;  %s5489_s12 = smov 48   ;;  %s5490_s13 = smov 40  }
  0x24   : > { %v4965_v35 = vcombine.low %v1722_v22, %v1725_v31  ;;  %v1281_v52 = vsel %vm5644_vm10, %v1276_v44, %v1280_v24  ;;  %v1291_v53 = vsel %vm5644_vm10, %v1286_v45, %v1290_v29  ;;  %vm5664_vm11 = vmand %vm346_vm0, %vm998_vm7  ;;  %v677_v9 = vshrl.u32 %v5134_v61, 16  ;;  %v1013_v48 = vld [vmem:[#allocation2 + $0x20] sm:$0x1]  ;;  %v1016_v50 = vld [vmem:[#allocation2 + $0x24] sm:$0xf]  ;;  %s5491_s14 = smov 64  }
  0x25   : > { %v4949_v57 = vcombine.low %v1281_v52, %v1291_v53  ;;  %v680_v10 = vshll.u32 %v5134_v61, 16  ;;  %v685_v11 = vshrl.u32 %v5135_v62, 16  ;;  %v688_v12 = vshll.u32 %v5135_v62, 16  ;;  %vm5670_vm12 = vmor %vm673_vm8, %vm674_vm9  ;;  %v1020_v62 = vld [vmem:[#allocation2 + $0x2c] sm:$0x1]  ;;  %s5492_s15 = smov 32  }
  0x26   : > { %3240 = vrot.lane.b32.xlu1 %v4965_v35, %s5486_s9  ;;  %v699_v13 = vor.u32 %v697_v60, %v696_v3  ;;  %v700_v14 = vrot.slane %v696_v3, 4  ;;  %v704_v15 = vrot.slane %v702_v4, 7  ;;  %v549_v16 = vmax.f32 %v517_v63, 0.0  ;;  %vm5688_vm13 = vmand %vm349_vm1, %vm673_vm8  ;;  %s5493_s16 = smov 56  }
  0x27   : > { %3160 = vrot.lane.b32.xlu0 %v4949_v57, %s5487_s10  ;;  %v679_v18 = vrot.slane %v677_v9, 7  ;;  %v687_v19 = vrot.slane %v685_v11, 7  ;;  %v550_v20 = vmax.f32 %v518_v0, 0.0  ;;  %v5217_v22 = vunpack.c.h.bf16 %v5268_v56 }
  0x28   : > { %v707_v23 = vor.u32 %v705_v5, %v704_v15  ;;  %v1010_v24 = vsel %vm5664_vm11, %v699_v13, %v1009_v8  ;;  %v5138_v26 = vpack.c.bf16 %v549_v16, %v549_v16  ;;  %v481_v27 = vmul.f32 %v5216_v6, %v5623_v2 }
  0x29   : > { %1011 = vst [vmem:[#allocation2 + $0x18] sm:$0xf] %v1010_v24  ;;  %v682_v28 = vor.u32 %v680_v10, %v679_v18  ;;  %v683_v29 = vrot.slane %v679_v18, 4  ;;  %v690_v30 = vor.u32 %v688_v12, %v687_v19  ;;  %v5139_v31 = vpack.c.bf16 %v550_v20, %v550_v20 }
  0x2a   : > { %v708_v32 = vsel %vm5670_vm12, %v700_v14, %v707_v23  ;;  %v711_v33 = vshrl.u32 %v5138_v26, 16  ;;  %v714_v34 = vshll.u32 %v5138_v26, 16  ;;  %v482_v35 = vmul.f32 %v5217_v22, %v5623_v2 }
  0x2b   : > { %1012 = vst.msk [vmem:[#allocation2 + $0x1c] sm:$0xf] %vm346_vm0, %v708_v32  ;;  %v691_v37 = vsel %vm5670_vm12, %v683_v29, %v690_v30  ;;  %v1001_v38 = vsel %vm5664_vm11, %v682_v28, %v1000_v25  ;;  %v719_v40 = vshrl.u32 %v5139_v31, 16  ;;  %v722_v41 = vshll.u32 %v5139_v31, 16 }
  0x2c   : > { %1002 = vst [vmem:[#allocation2 + $0xc] sm:$0xf] %v1001_v38  ;;  %1003 = vst.msk [vmem:[#allocation2 + $0x10] sm:$0xf] %vm346_vm0, %v691_v37  ;;  %v713_v43 = vrot.slane %v711_v33, 7  ;;  %v519_v44 = vadd.f32 %v5630_v21, %v481_v27  ;;  %v520_v45 = vadd.f32 %v5630_v21, %v482_v35  ;;  %v692_v46 = vrot.slane %v687_v19, 4 }
  0x2d   : > { %v721_v49 = vrot.slane %v719_v40, 7  ;;  %v709_v51 = vrot.slane %v704_v15, 4  ;;  %v5220_v52 = vunpack.c.l.bf16 %v5269_v36  ;;  %v5221_v53 = vunpack.c.h.bf16 %v5269_v36  ;;  %v1023_v38 = vld [vmem:[#allocation2 + $0x30] sm:$0xf] }
  0x2e   : > { %v716_v54 = vor.u32 %v714_v34, %v713_v43  ;;  %v717_v55 = vrot.slane %v713_v43, 4  ;;  %v551_v56 = vmax.f32 %v519_v44, 0.0  ;;  %v552_v57 = vmax.f32 %v520_v45, 0.0 }
  0x2f   : > { %v724_v58 = vor.u32 %v722_v41, %v721_v49  ;;  %v1007_v59 = vsel %vm5688_vm13, %v692_v46, %v1006_v47  ;;  %v1014_v60 = vsel %vm5688_vm13, %v709_v51, %v1013_v48  ;;  %v726_v61 = vrot.slane %v721_v49, 4 }
  0x30   : > { %v1833_v63 = vld [vmem:[#allocation2 + $0x18] sm:$0xf]  ;;  %v1017_v0 = vsel %vm5664_vm11, %v716_v54, %v1016_v50  ;;  %v5140_v4 = vpack.c.bf16 %v551_v56, %v551_v56  ;;  %v5703_v5 = vpack.c.bf16 %v552_v57, %v552_v57  ;;  %1008 = vst [vmem:[#allocation2 + $0x14] sm:$0x1] %v1007_v59  ;;  %1015 = vst [vmem:[#allocation2 + $0x20] sm:$0x1] %v1014_v60 }
  0x31   : > { %v5701_v3 = vld [vmem:[#allocation2 + $0x18] sm:$0xf]  ;;  %v5706_v6 = vmul.f32 %v5220_v52, %v5623_v2  ;;  %v1904_v8 = vshrl.u32 %v1833_v63, 16  ;;  %v1907_v9 = vshll.u32 %v1833_v63, 16  ;;  %v725_v10 = vsel %vm5670_vm12, %v717_v55, %v724_v58  ;;  %1018 = vst [vmem:[#allocation2 + $0x24] sm:$0xf] %v1017_v0 }
  0x32   : > { %v2489_v11 = vshrl.u32 %v5701_v3, 16  ;;  %v5711_v12 = vld [vmem:[#allocation2 + $0x1c] sm:$0xf]  ;;  %1019 = vst.msk [vmem:[#allocation2 + $0x28] sm:$0xf] %vm346_vm0, %v725_v10  ;;  %v2492_v14 = vshll.u32 %v5701_v3, 16  ;;  %v1021_v16 = vsel %vm5688_vm13, %v726_v61, %v1020_v62  ;;  %v5720_v18 = vmul.f32 %v5221_v53, %v5623_v2 }
  0x33   : > { %v5714_v13 = vld [vmem:[#allocation2 + $0x1c] sm:$0xf]  ;;  %v728_v15 = vshrl.u32 %v5140_v4, 16  ;;  %v1917_v19 = vshrl.u32 %v5711_v12, 16  ;;  %v4982_v20 = vcombine.low %v1833_v63, %v5711_v12  ;;  %v5724_v22 = vrot.slane %v1904_v8, 4 }
  0x34   : > { %v5726_v23 = vrot.slane %v1907_v9, 5  ;;  %v1831_v24 = vld [vmem:[#allocation2 + $0xc] sm:$0xf]  ;;  %1022 = vst [vmem:[#allocation2 + $0x2c] sm:$0x1] %v1021_v16  ;;  %v5730_v28 = vrot.slane %v2489_v11, 4  ;;  %v5029_v32 = vcombine.low %v5701_v3, %v5714_v13 }
  0x35   : > { %v5728_v25 = vld [vmem:[#allocation2 + $0x10] sm:$0xf]  ;;  %v1880_v26 = vshrl.u32 %v1831_v24, 16  ;;  %v1883_v27 = vshll.u32 %v1831_v24, 16  ;;  %v5732_v29 = vrot.slane %v2492_v14, 5  ;;  %3338 = vrot.lane.b32.xlu1 %v4982_v20, %s5488_s11  ;;  %v2502_v31 = vshrl.u32 %v5714_v13, 16 }
  0x36   : > { %v1893_v2 = vshrl.u32 %v5728_v25, 16  ;;  %v4981_v30 = vcombine.low %v1831_v24, %v5728_v25  ;;  %v2263_v33 = vld [vmem:[#allocation2 + $0xc] sm:$0xe]  ;;  %v730_v36 = vrot.slane %v728_v15, 7  ;;  %v731_v37 = vshll.u32 %v5140_v4, 16 }
  0x37   : > { %v5740_v34 = vrot.slane %v1880_v26, 4  ;;  %v5742_v35 = vrot.slane %v1883_v27, 5  ;;  %v736_v40 = vshrl.u32 %v5703_v5, 16  ;;  %v739_v41 = vshll.u32 %v5703_v5, 16  ;;  %v5747_v43 = vld [vmem:[#allocation2 + $0x14] sm:$0x1] }
  0x38   : > { %3336 = vrot.lane.b32.xlu0 %v4981_v30, %s5488_s11  ;;  %v4901_v44 = vrot.slane %v2263_v33, 9  ;;  %v2329_v45 = vrot.slane %v5728_v25, 5  ;;  %v2442_v46 = vld [vmem:[#allocation2 + $0x24] sm:$0xf]  ;;  %v733_v47 = vor.u32 %v731_v37, %v730_v36  ;;  %v734_v48 = vrot.slane %v730_v36, 4 }
  0x39   : > { %v1835_v49 = vld [vmem:[#allocation2 + $0x24] sm:$0xf]  ;;  %v2332_v50 = vrot.slane %v5747_v43, 5  ;;  %v5751_v51 = vld [vmem:[#allocation2 + $0x10] sm:$0xf]  ;;  %v1910_v53 = vor.u32 %v5726_v23, %v5724_v22  ;;  %v2513_v55 = vshrl.u32 %v2442_v46, 16 }
  0x3a   : > { %v1653_v52 = vld [vmem:[#allocation2 + $0xc] sm:$0xe]  ;;  %v5755_v54 = vld [vmem:[#allocation2 + $0x28] sm:$0xf]  ;;  %v2516_v56 = vshll.u32 %v2442_v46, 16  ;;  %v5757_v57 = vrot.slane %v736_v40, 7  ;;  %v1024_v62 = vsel %vm5664_vm11, %v733_v47, %v1023_v38  ;;  %v2330_v16 = vsel %vm5609_vm4, %v4901_v44, %v2329_v45 }
  0x3b   : > { %v1928_v58 = vshrl.u32 %v1835_v49, 16  ;;  %v2872_v59 = vld [vmem:[#allocation2 + $0x18] sm:$0xe]  ;;  %v2526_v60 = vshrl.u32 %v5755_v54, 16  ;;  %v5030_v61 = vcombine.low %v2442_v46, %v5755_v54  ;;  %v5763_v63 = vld [vmem:[#allocation2 + $0x28] sm:$0xf] }
  0x3c   : > { %v1931_v0 = vshll.u32 %v1835_v49, 16  ;;  %v5765_v3 = vld [vmem:[#allocation2 + $0x14] sm:$0x1]  ;;  %v5767_v4 = vrot.slane %v2513_v55, 4  ;;  %v5769_v5 = vrot.slane %v2516_v56, 5  ;;  %3592 = vrot.lane.b32.xlu0 %v5029_v32, %s5489_s12  ;;  %v741_v8 = vor.u32 %v739_v41, %v5757_v57 }
  0x3d   : > { %1025 = vst [vmem:[#allocation2 + $0x30] sm:$0xf] %v1024_v62  ;;  %v5773_v9 = vrot.slane %v1928_v58, 4  ;;  %v5775_v10 = vld [vmem:[#allocation2 + $0x20] sm:$0x1]  ;;  %3594 = vrot.lane.b32.xlu1 %v5030_v61, %s5489_s12  ;;  %v1941_v14 = vshrl.u32 %v5763_v63, 16  ;;  %v4983_v15 = vcombine.low %v1835_v49, %v5763_v63 }
  0x3e   : > { %v5778_v11 = vrot.slane %v1931_v0, 5  ;;  %v2264_v20 = vld [vmem:[#allocation2 + $0x18] sm:$0xe]  ;;  %v742_v24 = vsel %vm5670_vm12, %v734_v48, %v741_v8  ;;  %v2331_v26 = vrot.slane %v2329_v45, 4  ;;  %v4886_v27 = vrot.slane %v1653_v52, 9 }
  0x3f   : > { %v1728_v30 = vrot.slane %v5751_v51, 5  ;;  %v5787_v32 = vld [vmem:[#allocation2 + $0x20] sm:$0x1]  ;;  %1026 = vst.msk [vmem:[#allocation2 + $0x34] sm:$0xf] %vm346_vm0, %v742_v24  ;;  %v1731_v33 = vrot.slane %v5765_v3, 5 }
  0x40   : > { %v4917_v36 = vrot.slane %v2872_v59, 9  ;;  %v2938_v37 = vrot.slane %v5714_v13, 5  ;;  %v2941_v38 = vrot.slane %v5775_v10, 5  ;;  %v2873_v40 = vld [vmem:[#allocation2 + $0x24] sm:$0xe]  ;;  %3340 = vrot.lane.b32.xlu0 %v4983_v15, %s5488_s11  ;;  %v2333_v41 = vsel %vm5609_vm4, %v2331_v26, %v2332_v50 }
  0x41   : > { %v5798_v44 = vsel %vm5609_vm4, %v4886_v27, %v1728_v30  ;;  %v1730_v45 = vrot.slane %v1728_v30, 4  ;;  %v4902_v46 = vrot.slane %v2264_v20, 9  ;;  %v5013_v47 = vcombine.low %v2330_v16, %v2333_v41  ;;  %v5803_v55 = vld [vmem:[#allocation2 + $0x2c] sm:$0x1]  ;;  %v5805_v56 = vld [vmem:[#allocation2 + $0x28] sm:$0xf] }
  0x42   : > { %v2939_v48 = vsel %vm5609_vm4, %v4917_v36, %v2938_v37  ;;  %v2940_v49 = vrot.slane %v2938_v37, 4  ;;  %v2336_v52 = vrot.slane %v5711_v12, 5  ;;  %v2339_v58 = vrot.slane %v5787_v32, 5  ;;  %v1655_v62 = vld [vmem:[#allocation2 + $0x24] sm:$0xe] }
  0x43   : > { %v1732_v50 = vsel %vm5609_vm4, %v1730_v45, %v1731_v33  ;;  %v4918_v59 = vrot.slane %v2873_v40, 9  ;;  %v2945_v61 = vrot.slane %v5755_v54, 5  ;;  %v5818_v24 = vld [vmem:[#allocation2 + $0x2c] sm:$0x1]  ;;  %v5823_v36 = vld [vmem:[#allocation2 + $0x1c] sm:$0xf] }
  0x44   : > { %v1837_v0 = vld [vmem:[#allocation2 + $0x30] sm:$0xf]  ;;  %v4966_v8 = vcombine.low %v5798_v44, %v1732_v50  ;;  %v2942_v15 = vsel %vm5609_vm4, %v2940_v49, %v2941_v38  ;;  %v5816_v16 = vsel %vm5609_vm4, %v4902_v46, %v2336_v52  ;;  %v2338_v20 = vrot.slane %v2336_v52, 4  ;;  %3496 = vrot.lane.b32.xlu0 %v5013_v47, %s5490_s13  ;;  %v5825_v37 = vld [vmem:[#allocation2 + $0x20] sm:$0x1] }
  0x45   : > { %v1952_v26 = vshrl.u32 %v1837_v0, 16  ;;  %v1955_v27 = vshll.u32 %v1837_v0, 16  ;;  %v5061_v30 = vcombine.low %v2939_v48, %v2942_v15  ;;  %v2946_v33 = vsel %vm5609_vm4, %v4918_v59, %v2945_v61  ;;  %v1654_v45 = vld [vmem:[#allocation2 + $0x18] sm:$0xe]  ;;  %v1219_v23 = vld [vmem:[#allocation2 + $0xc] sm:$0xf] }
  0x46   : > { %v2340_v38 = vsel %vm5609_vm4, %v2338_v20, %v2339_v58  ;;  %v2947_v40 = vrot.slane %v2945_v61, 4  ;;  %v2948_v41 = vrot.slane %v5803_v55, 5  ;;  %v4888_v44 = vrot.slane %v1655_v62, 9  ;;  %v5830_v46 = vld [vmem:[#allocation2 + $0x34] sm:$0xf] }
  0x47   : > { %v5832_v49 = vrot.slane %v1952_v26, 4  ;;  %v5834_v47 = vrot.slane %v1955_v27, 5  ;;  %v5014_v48 = vcombine.low %v5816_v16, %v2340_v38  ;;  %v1742_v52 = vrot.slane %v5805_v56, 5 }
  0x48   : > { %v1965_v50 = vshrl.u32 %v5830_v46, 16  ;;  %v4984_v59 = vcombine.low %v1837_v0, %v5830_v46  ;;  %v2949_v58 = vsel %vm5609_vm4, %v2947_v40, %v2948_v41  ;;  %v1745_v61 = vrot.slane %v5818_v24, 5  ;;  %3752 = vrot.lane.b32.xlu0 %v5061_v30, %s5491_s14 }
  0x49   : > { %v5062_v62 = vcombine.low %v2946_v33, %v2949_v58  ;;  %v1743_v15 = vsel %vm5609_vm4, %v4888_v44, %v1742_v52  ;;  %v1744_v20 = vrot.slane %v1742_v52, 4  ;;  %v4887_v16 = vrot.slane %v1654_v45, 9 }
  0x4a   : > { %3342 = vrot.lane.b32.xlu1 %v4984_v59, %s5488_s11  ;;  %v1735_v26 = vrot.slane %v5823_v36, 5  ;;  %v1738_v0 = vrot.slane %v5825_v37, 5  ;;  %v1911_v27 = vrot.slane %v1910_v53, 4  ;;  %v1913_v38 = vshll.u32 %v5711_v12, 16 }
  0x4b   : > { %v1746_v30 = vsel %vm5609_vm4, %v1744_v20, %v1745_v61  ;;  %v1919_v33 = vrot.slane %v1917_v19, 4  ;;  %v1923_v40 = vshll.u32 %v5787_v32, 16  ;;  %v2519_v41 = vor.u32 %v5769_v5, %v5767_v4 }
  0x4c   : > { %v4968_v44 = vcombine.low %v1743_v15, %v1746_v30  ;;  %v1736_v45 = vsel %vm5609_vm4, %v4887_v16, %v1735_v26  ;;  %v1737_v52 = vrot.slane %v1735_v26, 4  ;;  %v1915_v22 = vrot.slane %v1913_v38, 5  ;;  %3754 = vrot.lane.b32.xlu0 %v5062_v62, %s5491_s14 }
  0x4d   : > { %v1925_v53 = vrot.slane %v1923_v40, 5  ;;  %v2520_v59 = vrot.slane %v2519_v41, 4  ;;  %v2522_v58 = vshll.u32 %v5755_v54, 16  ;;  %v2528_v12 = vrot.slane %v2526_v60, 4 }
  0x4e   : > { %3242 = vrot.lane.b32.xlu1 %v4966_v8, %s5486_s9  ;;  %v1739_v19 = vsel %vm5609_vm4, %v1737_v52, %v1738_v0  ;;  %v1916_v4 = vsel %vm5644_vm10, %v1911_v27, %v1915_v22  ;;  %v1920_v5 = vor.u32 %v1919_v33, %v1915_v22  ;;  %v2532_v32 = vshll.u32 %v5803_v55, 16  ;;  %v1221_v8 = vld [vmem:[#allocation2 + $0x18] sm:$0xf] }
  0x4f   : > { %v4967_v61 = vcombine.low %v1736_v45, %v1739_v19  ;;  %v2524_v62 = vrot.slane %v2522_v58, 5  ;;  %v1293_v15 = vshrl.u32 %v1219_v23, 16  ;;  %v1296_v20 = vshll.u32 %v1219_v23, 16 }
  0x50   : > { %v1921_v16 = vrot.slane %v1920_v5, 4  ;;  %v2534_v26 = vrot.slane %v2532_v32, 5  ;;  %v1302_v54 = vshll.u32 %v5751_v51, 16  ;;  %v1306_v60 = vshrl.u32 %v5751_v51, 16 }
  0x51   : > { %3244 = vrot.lane.b32.xlu0 %v4967_v61, %s5486_s9  ;;  %v2525_v0 = vsel %vm5644_vm10, %v2520_v59, %v2524_v62  ;;  %v2529_v27 = vor.u32 %v2528_v12, %v2524_v62  ;;  %v1295_v38 = vrot.slane %v1293_v15, 4  ;;  %v1298_v30 = vrot.slane %v1296_v20, 5 }
  0x52   : > { %3498 = vrot.lane.b32.xlu1 %v5014_v48, %s5490_s13  ;;  %v1926_v55 = vsel %vm5644_vm10, %v1921_v16, %v1925_v53  ;;  %v1304_v33 = vrot.slane %v1302_v54, 5  ;;  %v1308_v40 = vrot.slane %v1306_v60, 4  ;;  %v1312_v41 = vshll.u32 %v5765_v3, 16 }
  0x53   : > { %v4998_v45 = vcombine.low %v1916_v4, %v1926_v55  ;;  %v2530_v51 = vrot.slane %v2529_v27, 4  ;;  %v1299_v52 = vor.u32 %v1298_v30, %v1295_v38  ;;  %v1317_v22 = vshrl.u32 %v1221_v8, 16 }
  0x54   : > { %v1309_v23 = vor.u32 %v1308_v40, %v1304_v33  ;;  %v1314_v58 = vrot.slane %v1312_v41, 5  ;;  %v1320_v19 = vshll.u32 %v1221_v8, 16  ;;  %v1326_v59 = vshll.u32 %v5823_v36, 16 }
  0x55   : > { %v2535_v12 = vsel %vm5644_vm10, %v2530_v51, %v2534_v26  ;;  %v1300_v48 = vrot.slane %v1299_v52, 4  ;;  %v1319_v5 = vrot.slane %v1317_v22, 4  ;;  %v1330_v53 = vshrl.u32 %v5823_v36, 16  ;;  %v1223_v26 = vld [vmem:[#allocation2 + $0x24] sm:$0xf] }
  0x56   : > { %3246 = vrot.lane.b32.xlu1 %v4968_v44, %s5486_s9  ;;  %v5046_v32 = vcombine.low %v2525_v0, %v2535_v12  ;;  %v1310_v3 = vrot.slane %v1309_v23, 4  ;;  %v1322_v4 = vrot.slane %v1320_v19, 5  ;;  %v1328_v61 = vrot.slane %v1326_v59, 5 }
  0x57   : > { %v1305_v62 = vsel %vm5644_vm10, %v1300_v48, %v1304_v33  ;;  %v1332_v15 = vrot.slane %v1330_v53, 4  ;;  %v1336_v20 = vshll.u32 %v5825_v37, 16  ;;  %v1886_v16 = vor.u32 %v5742_v35, %v5740_v34 }
  0x58   : > { %v1315_v54 = vsel %vm5644_vm10, %v1310_v3, %v1314_v58  ;;  %v1323_v36 = vor.u32 %v1322_v4, %v1319_v5  ;;  %v1889_v44 = vshll.u32 %v5728_v25, 16  ;;  %v1895_v60 = vrot.slane %v1893_v2, 4 }
  0x59   : > { %v4950_v8 = vcombine.low %v1305_v62, %v1315_v54  ;;  %v1333_v0 = vor.u32 %v1332_v15, %v1328_v61  ;;  %v1338_v27 = vrot.slane %v1336_v20, 5  ;;  %v1887_v38 = vrot.slane %v1886_v16, 4  ;;  %v1027_v16 = vld [vmem:[#allocation2 + $0x38] sm:$0x1] }
  0x5a   : > { %3418 = vrot.lane.b32.xlu1 %v4998_v45, %s5492_s15  ;;  %v1324_v37 = vrot.slane %v1323_v36, 4  ;;  %v1891_v30 = vrot.slane %v1889_v44, 5  ;;  %v1899_v34 = vshll.u32 %v5747_v43, 16  ;;  %v1341_v35 = vshrl.u32 %v1223_v26, 16  ;;  %v1865_v44 = vld [vmem:[#allocation2 + $0x2c] sm:$0x1] }
  0x5b   : > { %3162 = vrot.lane.b32.xlu0 %v4950_v8, %s5487_s10  ;;  %v1334_v55 = vrot.slane %v1333_v0, 4  ;;  %v1344_v33 = vshll.u32 %v1223_v26, 16  ;;  %v1350_v40 = vshll.u32 %v5805_v56, 16  ;;  %v1354_v25 = vshrl.u32 %v5805_v56, 16 }
  0x5c   : > { %v1329_v2 = vsel %vm5644_vm10, %v1324_v37, %v1328_v61  ;;  %v1892_v41 = vsel %vm5644_vm10, %v1887_v38, %v1891_v30  ;;  %v1896_v45 = vor.u32 %v1895_v60, %v1891_v30  ;;  %v1901_v51 = vrot.slane %v1899_v34, 5  ;;  %v2266_v60 = vld [vmem:[#allocation2 + $0x30] sm:$0xe] }
  0x5d   : > { %v1339_v43 = vsel %vm5644_vm10, %v1334_v55, %v1338_v27  ;;  %v1343_v52 = vrot.slane %v1341_v35, 4  ;;  %v1346_v22 = vrot.slane %v1344_v33, 5  ;;  %v1352_v23 = vrot.slane %v1350_v40, 5  ;;  %v2265_v33 = vld [vmem:[#allocation2 + $0x24] sm:$0xe] }
  0x5e   : > { %3674 = vrot.lane.b32.xlu1 %v5046_v32, %s5493_s16  ;;  %v4951_v58 = vcombine.low %v1329_v2, %v1339_v43  ;;  %v1897_v19 = vrot.slane %v1896_v45, 4  ;;  %v1356_v56 = vrot.slane %v1354_v25, 4  ;;  %v1360_v59 = vshll.u32 %v5818_v24, 16 }
  0x5f   : > { %v1347_v12 = vor.u32 %v1346_v22, %v1343_v52  ;;  %v2495_v48 = vor.u32 %v5732_v29, %v5730_v28  ;;  %v2498_v5 = vshll.u32 %v5714_v13, 16  ;;  %v2504_v53 = vrot.slane %v2502_v31, 4 }
  0x60   : > { %v1902_v3 = vsel %vm5644_vm10, %v1897_v19, %v1901_v51  ;;  %v1357_v4 = vor.u32 %v1356_v56, %v1352_v23  ;;  %v1362_v61 = vrot.slane %v1360_v59, 5  ;;  %v2508_v32 = vshll.u32 %v5775_v10, 16 }
  0x61   : > { %v4997_v62 = vcombine.low %v1892_v41, %v1902_v3  ;;  %v1348_v15 = vrot.slane %v1347_v12, 4  ;;  %v2496_v20 = vrot.slane %v2495_v48, 4  ;;  %v2500_v24 = vrot.slane %v2498_v5, 5 }
  0x62   : > { %3164 = vrot.lane.b32.xlu1 %v4951_v58, %s5487_s10  ;;  %v1358_v28 = vrot.slane %v1357_v4, 4  ;;  %v2510_v29 = vrot.slane %v2508_v32, 5  ;;  %v743_v26 = vrot.slane %v5757_v57, 4  ;;  %v1958_v13 = vor.u32 %v5834_v47, %v5832_v49 }
  0x63   : > { %3416 = vrot.lane.b32.xlu0 %v4997_v62, %s5492_s15  ;;  %v1353_v31 = vsel %vm5644_vm10, %v1348_v15, %v1352_v23  ;;  %v2501_v10 = vsel %vm5644_vm10, %v2496_v20, %v2500_v24  ;;  %v2505_v54 = vor.u32 %v2504_v53, %v2500_v24  ;;  %v1961_v36 = vshll.u32 %v5830_v46, 16  ;;  %v5950_v23 = vld [vmem:[#allocation2 + $0x34] sm:$0xf] }
  0x64   : > { %v1363_v8 = vsel %vm5644_vm10, %v1358_v28, %v1362_v61  ;;  %v1028_v57 = vsel %vm5688_vm13, %v743_v26, %v1027_v16  ;;  %v5931_v49 = vrot.slane %v1958_v13, 4  ;;  %v1967_v47 = vrot.slane %v1965_v50, 4 }
  0x65   : > { %v4952_v0 = vcombine.low %v1353_v31, %v1363_v8  ;;  %v2506_v27 = vrot.slane %v2505_v54, 4  ;;  %1029 = vst [vmem:[#allocation2 + $0x38] sm:$0x1] %v1028_v57  ;;  %v1963_v38 = vrot.slane %v1961_v36, 5  ;;  %v1934_v37 = vor.u32 %v5778_v11, %v5773_v9 }
  0x66   : > { %v1937_v30 = vshll.u32 %v5763_v63, 16  ;;  %v1943_v34 = vrot.slane %v1941_v14, 4  ;;  %v1947_v35 = vshll.u32 %v1865_v44, 16  ;;  %v4904_v55 = vrot.slane %v2266_v60, 9  ;;  %v5947_v14 = vld [vmem:[#allocation2 + $0x30] sm:$0xf] }
  0x67   : > { %3166 = vrot.lane.b32.xlu1 %v4952_v0, %s5487_s10  ;;  %v2511_v50 = vsel %vm5644_vm10, %v2506_v27, %v2510_v29  ;;  %v1964_v40 = vsel %vm5644_vm10, %v5931_v49, %v1963_v38  ;;  %v1968_v25 = vor.u32 %v1967_v47, %v1963_v38  ;;  %v1935_v2 = vrot.slane %v1934_v37, 4  ;;  %v1225_v49 = vld [vmem:[#allocation2 + $0x30] sm:$0xf] }
  0x68   : > { %v5045_v9 = vcombine.low %v2501_v10, %v2511_v50  ;;  %v1939_v11 = vrot.slane %v1937_v30, 5  ;;  %v1949_v41 = vrot.slane %v1947_v35, 5  ;;  %v2350_v45 = vrot.slane %v5830_v46, 5  ;;  %v1030_v30 = vld [vmem:[#allocation2 + $0x3c] sm:$0xf] }
  0x69   : > { %v1969_v51 = vrot.slane %v1968_v25, 4  ;;  %v4903_v43 = vrot.slane %v2265_v33, 9  ;;  %v2343_v52 = vrot.slane %v5763_v63, 5  ;;  %v2346_v22 = vrot.slane %v1865_v44, 5  ;;  %v1226_v25 = vld [vmem:[#allocation2 + $0x34] sm:$0xf] }
  0x6a   : > { %3672 = vrot.lane.b32.xlu0 %v5045_v9, %s5493_s16  ;;  %v1940_v58 = vsel %vm5644_vm10, %v1935_v2, %v1939_v11  ;;  %v1944_v19 = vor.u32 %v1943_v34, %v1939_v11  ;;  %v5957_v56 = vsel %vm5609_vm4, %v4904_v55, %v2350_v45  ;;  %v2352_v46 = vrot.slane %v2350_v45, 4 }
  0x6b   : > { %v2344_v59 = vsel %vm5609_vm4, %v4903_v43, %v2343_v52  ;;  %v2345_v12 = vrot.slane %v2343_v52, 4  ;;  %v521_v63 = vadd.f32 %v5630_v21, %v5706_v6  ;;  %v522_v48 = vadd.f32 %v5630_v21, %v5720_v18 }
  0x6c   : > { %v1866_v5 = vld [vmem:[#allocation2 + $0x38] sm:$0x1]  ;;  %v1945_v53 = vrot.slane %v1944_v19, 4  ;;  %v2537_v3 = vshrl.u32 %v5947_v14, 16  ;;  %v2540_v4 = vshll.u32 %v5947_v14, 16  ;;  %v2550_v61 = vshrl.u32 %v5950_v23, 16 }
  0x6d   : > { %v1971_v32 = vshll.u32 %v1866_v5, 16  ;;  %v2353_v62 = vrot.slane %v1866_v5, 5  ;;  %v2347_v15 = vsel %vm5609_vm4, %v2345_v12, %v2346_v22  ;;  %v553_v20 = vmax.f32 %v521_v63, 0.0  ;;  %v5977_v36 = vld [vmem:[#allocation2 + $0x38] sm:$0x1] }
  0x6e   : > { %v1950_v6 = vsel %vm5644_vm10, %v1945_v53, %v1949_v41  ;;  %v5015_v24 = vcombine.low %v2344_v59, %v2347_v15  ;;  %v554_v16 = vmax.f32 %v522_v48, 0.0  ;;  %v2539_v21 = vrot.slane %v2537_v3, 4  ;;  %v1034_v41 = vld [vmem:[#allocation2 + $0x44] sm:$0x1]  ;;  %v2874_v19 = vld [vmem:[#allocation2 + $0x30] sm:$0xe] }
  0x6f   : > { %v1973_v18 = vrot.slane %v1971_v32, 5  ;;  %v4999_v28 = vcombine.low %v1940_v58, %v1950_v6  ;;  %v2354_v29 = vsel %vm5609_vm4, %v2352_v46, %v2353_v62  ;;  %v5142_v26 = vpack.c.bf16 %v553_v20, %v553_v20  ;;  %v1656_v3 = vld [vmem:[#allocation2 + $0x30] sm:$0xe] }
  0x70   : > { %v5016_v13 = vcombine.low %v5957_v56, %v2354_v29  ;;  %v5143_v31 = vpack.c.bf16 %v554_v16, %v554_v16  ;;  %v2542_v10 = vrot.slane %v2540_v4, 5  ;;  %v5031_v54 = vcombine.low %v5947_v14, %v5950_v23  ;;  %v6001_v16 = vld [vmem:[%s5618_s28 + $0x28] sm:$0xff]  }
  0x71   : > { %v1974_v44 = vsel %vm5644_vm10, %v1969_v51, %v1973_v18  ;;  %3420 = vrot.lane.b32.xlu0 %v4999_v28, %s5492_s15  ;;  %v745_v60 = vshrl.u32 %v5142_v26, 16  ;;  %v748_v8 = vshll.u32 %v5142_v26, 16  ;;  %v2546_v57 = vshll.u32 %v5950_v23, 16  ;;  %v1253_v51 = vld [vmem:[#allocation2 + $0x38] sm:$0x1]  ;;  %v6005_v26 = vld [vmem:[%s5618_s28 + $0x30] sm:$0xff]  }
  0x72   : > { %v5000_v47 = vcombine.low %v1964_v40, %v1974_v44  ;;  %v753_v0 = vshrl.u32 %v5143_v31, 16  ;;  %v756_v27 = vshll.u32 %v5143_v31, 16  ;;  %v2543_v38 = vor.u32 %v2542_v10, %v2539_v21 }
  0x73   : > { %v747_v37 = vrot.slane %v745_v60, 7  ;;  %v2548_v34 = vrot.slane %v2546_v57, 5  ;;  %v2552_v35 = vrot.slane %v2550_v61, 4  ;;  %v2556_v55 = vshll.u32 %v5977_v36, 16 }
  0x74   : > { %3422 = vrot.lane.b32.xlu1 %v5000_v47, %s5492_s15  ;;  %v755_v33 = vrot.slane %v753_v0, 7  ;;  %v2544_v50 = vrot.slane %v2543_v38, 4  ;;  %v1365_v2 = vshrl.u32 %v1225_v49, 16  ;;  %v1368_v9 = vshll.u32 %v1225_v49, 16 }
  0x75   : > { %3500 = vrot.lane.b32.xlu0 %v5015_v24, %s5490_s13  ;;  %v750_v11 = vor.u32 %v748_v8, %v747_v37  ;;  %v751_v40 = vrot.slane %v747_v37, 4  ;;  %v2553_v45 = vor.u32 %v2552_v35, %v2548_v34  ;;  %v2558_v14 = vrot.slane %v2556_v55, 5 }
  0x76   : > { %v758_v43 = vor.u32 %v756_v27, %v755_v33  ;;  %v760_v52 = vrot.slane %v755_v33, 4  ;;  %v2549_v22 = vsel %vm5644_vm10, %v2544_v50, %v2548_v34  ;;  %v1367_v58 = vrot.slane %v1365_v2, 4 }
  0x77   : > { %v1031_v56 = vsel %vm5664_vm11, %v750_v11, %v1030_v30  ;;  %v2554_v46 = vrot.slane %v2553_v45, 4  ;;  %v1370_v59 = vrot.slane %v1368_v9, 5  ;;  %v1374_v12 = vshll.u32 %v1226_v25, 16  ;;  %v6028_v30 = vld [vmem:[%s7521_s2] ss:$0 sm:$0xff] }
  0x78   : > { %3502 = vrot.lane.b32.xlu1 %v5016_v13, %s5490_s13  ;;  %v759_v63 = vsel %vm5670_vm12, %v751_v40, %v758_v43  ;;  %1032 = vst [vmem:[#allocation2 + $0x3c] sm:$0xf] %v1031_v56  ;;  %v1035_v48 = vsel %vm5688_vm13, %v760_v52, %v1034_v41  ;;  %v1378_v5 = vshrl.u32 %v1226_v25, 16  ;;  %v1384_v53 = vshll.u32 %v1253_v51, 16 }
  0x79   : > { %1033 = vst.msk [vmem:[#allocation2 + $0x40] sm:$0xf] %vm346_vm0, %v759_v63  ;;  %3596 = vrot.lane.b32.xlu0 %v5031_v54, %s5489_s12  ;;  %1036 = vst [vmem:[#allocation2 + $0x44] sm:$0x1] %v1035_v48  ;;  %v2559_v4 = vsel %vm5644_vm10, %v2554_v46, %v2558_v14  ;;  %v1371_v61 = vor.u32 %v1370_v59, %v1367_v58  ;;  %v1376_v32 = vrot.slane %v1374_v12, 5  ;;  %v4919_v62 = vrot.slane %v2874_v19, 9 }
  0x7a   : > { %v5047_v15 = vcombine.low %v2549_v22, %v2559_v4  ;;  %v1380_v20 = vrot.slane %v1378_v5, 4  ;;  %v1386_v6 = vrot.slane %v1384_v53, 5  ;;  %v2952_v24 = vrot.slane %v5950_v23, 5 }
  0x7b   : > { %v1372_v21 = vrot.slane %v1371_v61, 4  ;;  %v2955_v18 = vrot.slane %v5977_v36, 5  ;;  %v4889_v28 = vrot.slane %v1656_v3, 9  ;;  %v1749_v29 = vrot.slane %v1226_v25, 5  ;;  %v5408_v3 = vld [vmem:[%s7520_s1] sm:$0xff]  }
  0x7c   : > { %v1381_v13 = vor.u32 %v1380_v20, %v1376_v32  ;;  %v2953_v31 = vsel %vm5609_vm4, %v4919_v62, %v2952_v24  ;;  %v2954_v10 = vrot.slane %v2952_v24, 4  ;;  %v1752_v54 = vrot.slane %v1253_v51, 5  ;;  %5302 = vmatprep.subr.bf16.mxu0 %v5408_v3  ;;  %5344 = vmatprep.subr.bf16.mxu1 %v5408_v3 }
  0x7d   : > { %3676 = vrot.lane.b32.xlu0 %v5047_v15, %s5493_s16  ;;  %v1377_v23 = vsel %vm5644_vm10, %v1372_v21, %v1376_v32  ;;  %v6014_v44 = vsel %vm5609_vm4, %v4889_v28, %v1749_v29  ;;  %v1751_v36 = vrot.slane %v1749_v29, 4  ;;  %v5224_v60 = vunpack.c.l.bf16 %v6001_v16  ;;  %5303 = vmatpush3.bf16.msra.mxu0 %v5408_v3 }
  0x7e   : > { %v1382_v8 = vrot.slane %v1381_v13, 4  ;;  %v2956_v57 = vsel %vm5609_vm4, %v2954_v10, %v2955_v18  ;;  %v5225_v49 = vunpack.c.h.bf16 %v6001_v16  ;;  %v5228_v47 = vunpack.c.l.bf16 %v6005_v26  ;;  %5349 = vmatpush3.bf16.msra.mxu1 %v5408_v3 }
  0x7f   : > { %v2446_v0 = vld [vmem:[#allocation2 + $0x3c] sm:$0xf]  ;;  %v5063_v27 = vcombine.low %v2953_v31, %v2956_v57  ;;  %v6023_v37 = vsel %vm5609_vm4, %v1751_v36, %v1752_v54  ;;  %v6031_v34 = vmul.f32 %v6028_v30, %v5224_v60  ;;  %v5229_v35 = vunpack.c.h.bf16 %v6005_v26 }
  0x80   : > { %v1227_v38 = vld [vmem:[#allocation2 + $0x3c] sm:$0xf]  ;;  %v2447_v55 = vld [vmem:[#allocation2 + $0x40] sm:$0xf]  ;;  %v2561_v33 = vshrl.u32 %v2446_v0, 16  ;;  %v2564_v50 = vshll.u32 %v2446_v0, 16  ;;  %v1387_v2 = vsel %vm5644_vm10, %v1382_v8, %v1386_v6  ;;  %v4969_v11 = vcombine.low %v6014_v44, %v6023_v37 }
  0x81   : > { %v2475_v25 = vld [vmem:[#allocation2 + $0x44] sm:$0x1]  ;;  %v2875_v9 = vld [vmem:[#allocation2 + $0x3c] sm:$0xe]  ;;  %v2574_v40 = vshrl.u32 %v2447_v55, 16  ;;  %v5032_v41 = vcombine.low %v2446_v0, %v2447_v55  ;;  %v2570_v45 = vshll.u32 %v2447_v55, 16  ;;  %3756 = vrot.lane.b32.xlu0 %v5063_v27, %s5491_s14  ;;  %v6039_v22 = vcombine.low %v1377_v23, %v1387_v2 }
  0x82   : > { %v2580_v14 = vshll.u32 %v2475_v25, 16  ;;  %v1228_v51 = vld [vmem:[#allocation2 + $0x40] sm:$0xf]  ;;  %v2563_v43 = vrot.slane %v2561_v33, 4  ;;  %v2566_v52 = vrot.slane %v2564_v50, 5  ;;  %v1389_v19 = vshrl.u32 %v1227_v38, 16 }
  0x83   : > { %v1254_v58 = vld [vmem:[#allocation2 + $0x44] sm:$0x1]  ;;  %3598 = vrot.lane.b32.xlu1 %v5032_v41, %s5489_s12  ;;  %v2572_v56 = vrot.slane %v2570_v45, 5  ;;  %v2576_v46 = vrot.slane %v2574_v40, 4  ;;  %v1392_v12 = vshll.u32 %v1227_v38, 16  ;;  %v1398_v5 = vshll.u32 %v1228_v51, 16 }
  0x84   : > { %v2582_v59 = vrot.slane %v2580_v14, 5  ;;  %v2567_v63 = vor.u32 %v2566_v52, %v2563_v43  ;;  %v1391_v48 = vrot.slane %v1389_v19, 4  ;;  %v1402_v53 = vshrl.u32 %v1228_v51, 16  ;;  %v1657_v21 = vld [vmem:[#allocation2 + $0x3c] sm:$0xe] }
  0x85   : > { %v2577_v4 = vor.u32 %v2576_v46, %v2572_v56  ;;  %v1394_v61 = vrot.slane %v1392_v12, 5  ;;  %v1408_v32 = vshll.u32 %v1254_v58, 16  ;;  %v4920_v62 = vrot.slane %v2875_v9, 9  ;;  %v6051_v0 = vld [vmem:[#allocation2 + $0x3c] sm:$0xf] }
  0x86   : > { %v2568_v15 = vrot.slane %v2567_v63, 4  ;;  %v1400_v20 = vrot.slane %v1398_v5, 5  ;;  %v1404_v6 = vrot.slane %v1402_v53, 4  ;;  %v2959_v24 = vrot.slane %v2447_v55, 5  ;;  %v1840_v50 = vld [vmem:[#allocation2 + $0x40] sm:$0xf] }
  0x87   : > { %v2578_v18 = vrot.slane %v2577_v4, 4  ;;  %v1395_v28 = vor.u32 %v1394_v61, %v1391_v48  ;;  %v1410_v29 = vrot.slane %v1408_v32, 5  ;;  %v2962_v13 = vrot.slane %v2475_v25, 5  ;;  %v6070_v14 = vld [vmem:[%s7522_s3] ss:$0 sm:$0xff] }
  0x88   : > { %v2573_v31 = vsel %vm5644_vm10, %v2568_v15, %v2572_v56  ;;  %v1405_v10 = vor.u32 %v1404_v6, %v1400_v20  ;;  %v2960_v54 = vsel %vm5609_vm4, %v4920_v62, %v2959_v24  ;;  %v2961_v23 = vrot.slane %v2959_v24, 4  ;;  %v2267_v56 = vld [vmem:[#allocation2 + $0x3c] sm:$0xe] }
  0x89   : > { %v2583_v36 = vsel %vm5644_vm10, %v2578_v18, %v2582_v59  ;;  %v1396_v60 = vrot.slane %v1395_v28, 4  ;;  %v4890_v8 = vrot.slane %v1657_v21, 9  ;;  %v1756_v57 = vrot.slane %v1228_v51, 5 }
  0x8a   : > { %v5048_v27 = vcombine.low %v2573_v31, %v2583_v36  ;;  %v1406_v38 = vrot.slane %v1405_v10, 4  ;;  %v2963_v55 = vsel %vm5609_vm4, %v2961_v23, %v2962_v13  ;;  %v1759_v33 = vrot.slane %v1254_v58, 5  ;;  %v5272_v36 = vld [vmem:[%s5618_s28 + $0x38] sm:$0xff]  }
  0x8b   : > { %v1401_v25 = vsel %vm5644_vm10, %v1396_v60, %v1400_v20  ;;  %v5064_v2 = vcombine.low %v2960_v54, %v2963_v55  ;;  %v6059_v9 = vsel %vm5609_vm4, %v4890_v8, %v1756_v57  ;;  %v1758_v40 = vrot.slane %v1756_v57, 4  ;;  %v1037_v60 = vld [vmem:[#allocation2 + $0x48] sm:$0xf] }
  0x8c   : > { %3678 = vrot.lane.b32.xlu1 %v5048_v27, %s5493_s16  ;;  %v1411_v41 = vsel %vm5644_vm10, %v1406_v38, %v1410_v29  ;;  %v486_v45 = vmul.f32 %v6028_v30, %v5225_v49  ;;  %v523_v51 = vadd.f32 %v6070_v14, %v6031_v34  ;;  %v1976_v43 = vshrl.u32 %v6051_v0, 16  ;;  %v1867_v49 = vld [vmem:[#allocation2 + $0x44] sm:$0x1]  ;;  %v5409_v34 = vld [vmem:[%s7520_s1 + $0x8] sm:$0xff]   ;;  %v5410_v29 = vld [vmem:[%s7520_s1 + $0x10] sm:$0xff]  }
  0x8d   : > { %v4954_v52 = vcombine.low %v1401_v25, %v1411_v41  ;;  %3758 = vrot.lane.b32.xlu0 %v5064_v2, %s5491_s14  ;;  %v1760_v58 = vsel %vm5609_vm4, %v1758_v40, %v1759_v33  ;;  %v1979_v16 = vshll.u32 %v6051_v0, 16  ;;  %v1989_v19 = vshrl.u32 %v1840_v50, 16  ;;  %5304 = vmatprep.subr.bf16.mxu0 %v5409_v34 }
  0x8e   : > { %v4970_v46 = vcombine.low %v6059_v9, %v1760_v58  ;;  %v524_v59 = vadd.f32 %v6070_v14, %v486_v45  ;;  %v555_v12 = vmax.f32 %v523_v51, 0.0  ;;  %v1978_v63 = vrot.slane %v1976_v43, 4  ;;  %5305 = vmatpush3.bf16.msra.mxu0 %v5409_v34  ;;  %5345 = vmatprep.subr.bf16.mxu1 %v5409_v34 }
  0x8f   : > { %v1981_v48 = vrot.slane %v1979_v16, 5  ;;  %v4985_v5 = vcombine.low %v6051_v0, %v1840_v50  ;;  %v1985_v53 = vshll.u32 %v1840_v50, 16  ;;  %v1991_v3 = vrot.slane %v1989_v19, 4  ;;  %5350 = vmatpush3.bf16.msra.mxu1 %v5409_v34  ;;  %5306 = vmatprep.subr.bf16.mxu0 %v5410_v29  ;;  %v5273_v19 = vld [vmem:[%s5618_s28 + $0x40] sm:$0xff]  }
  0x90   : > { %3168 = vrot.lane.b32.xlu1 %v6039_v22, %s5487_s10  ;;  %v556_v4 = vmax.f32 %v524_v59, 0.0  ;;  %v5144_v61 = vpack.c.bf16 %v555_v12, %v555_v12  ;;  %v1995_v32 = vshll.u32 %v1867_v49, 16  ;;  %v4905_v62 = vrot.slane %v2267_v56, 9  ;;  %5346 = vmatprep.subr.bf16.mxu1 %v5410_v29  ;;  %v5430_v59 = vld [vmem:[#allocation2] sm:$0xf] }
  0x91   : > { %3248 = vrot.lane.b32.xlu0 %v4969_v11, %s5486_s9  ;;  %v1982_v15 = vor.u32 %v1981_v48, %v1978_v63  ;;  %v1987_v20 = vrot.slane %v1985_v53, 5  ;;  %v2357_v6 = vrot.slane %v1840_v50, 5  ;;  %v2360_v24 = vrot.slane %v1867_v49, 5  ;;  %v1041_v50 = vld [vmem:[#allocation2 + $0x50] sm:$0x1]  ;;  %v5413_v53 = vld [vmem:[%s7520_s1 + $0x18] sm:$0xff]  }
  0x92   : > { %v5145_v21 = vpack.c.bf16 %v556_v4, %v556_v4  ;;  %v762_v18 = vshrl.u32 %v5144_v61, 16  ;;  %v765_v28 = vshll.u32 %v5144_v61, 16  ;;  %v1997_v22 = vrot.slane %v1995_v32, 5  ;;  %5307 = vmatpush3.bf16.msra.mxu0 %v5410_v29 }
  0x93   : > { %v1983_v13 = vrot.slane %v1982_v15, 4  ;;  %v1992_v31 = vor.u32 %v1991_v3, %v1987_v20  ;;  %v6096_v44 = vsel %vm5609_vm4, %v4905_v62, %v2357_v6  ;;  %v2359_v37 = vrot.slane %v2357_v6, 4  ;;  %5351 = vmatpush3.bf16.msra.mxu1 %v5410_v29  ;;  %5308 = vmatprep.subr.bf16.mxu0 %v5413_v53 }
  0x94   : > { %3170 = vrot.lane.b32.xlu1 %v4954_v52, %s5487_s10  ;;  %v764_v11 = vrot.slane %v762_v18, 7  ;;  %v770_v10 = vshrl.u32 %v5145_v21, 16  ;;  %v773_v54 = vshll.u32 %v5145_v21, 16  ;;  %v487_v23 = vmul.f32 %v6028_v30, %v5228_v47  ;;  %5347 = vmatprep.subr.bf16.mxu1 %v5413_v53 }
  0x95   : > { %3344 = vrot.lane.b32.xlu0 %v4985_v5, %s5488_s11  ;;  %v1988_v8 = vsel %vm5644_vm10, %v1983_v13, %v1987_v20  ;;  %v1993_v57 = vrot.slane %v1992_v31, 4  ;;  %v2361_v0 = vsel %vm5609_vm4, %v2359_v37, %v2360_v24  ;;  %v488_v27 = vmul.f32 %v6028_v30, %v5229_v35  ;;  %v6140_v13 = vld [vmem:[%s5618_s28 + $0x48] sm:$0xff]  }
  0x96   : > { %v767_v38 = vor.u32 %v765_v28, %v764_v11  ;;  %v768_v55 = vrot.slane %v764_v11, 4  ;;  %v772_v47 = vrot.slane %v770_v10, 7  ;;  %v5017_v33 = vcombine.low %v6096_v44, %v2361_v0  ;;  %5309 = vmatpush3.bf16.msra.mxu0 %v5413_v53  ;;  %v1044_v0 = vld [vmem:[#allocation2 + $0x54] sm:$0xf] }
  0x97   : > { %v1998_v25 = vsel %vm5644_vm10, %v1993_v57, %v1997_v22  ;;  %v525_v2 = vadd.f32 %v6070_v14, %v487_v23  ;;  %v526_v9 = vadd.f32 %v6070_v14, %v488_v27  ;;  %v5232_v40 = vunpack.c.l.bf16 %v5272_v36  ;;  %5352 = vmatpush3.bf16.msra.mxu1 %v5413_v53 }
  0x98   : > { %3250 = vrot.lane.b32.xlu1 %v4970_v46, %s5486_s9  ;;  %v775_v26 = vor.u32 %v773_v54, %v772_v47  ;;  %v1038_v35 = vsel %vm5664_vm11, %v767_v38, %v1037_v60  ;;  %v777_v41 = vrot.slane %v772_v47, 4  ;;  %v5001_v45 = vcombine.low %v1988_v8, %v1998_v25  ;;  %v5429_v46 = vld [vmem:[#allocation2 + $0x4] sm:$0xf]  ;;  %v3241_v20 = vpop.permute.xlu1 %3240 }
  0x99   : > { %1039 = vst [vmem:[#allocation2 + $0x48] sm:$0xf] %v1038_v35  ;;  %v557_v51 = vmax.f32 %v525_v2, 0.0  ;;  %v558_v43 = vmax.f32 %v526_v9, 0.0  ;;  %v5233_v52 = vunpack.c.h.bf16 %v5272_v36  ;;  %v489_v58 = vmul.f32 %v6028_v30, %v5232_v40  ;;  %v3161_v16 = vpop.permute.xlu0 %3160 }
  0x9a   : > { %v776_v49 = vsel %vm5670_vm12, %v768_v55, %v775_v26  ;;  %v1042_v56 = vsel %vm5688_vm13, %v777_v41, %v1041_v50  ;;  %3424 = vrot.lane.b32.xlu0 %v5001_v45, %s5492_s15  ;;  %v4933_v12 = vcombine.low %v5430_v59, %v5429_v46  ;;  %vm3784_vm14 = vcmask 64512   ;;  %v1048_v59 = vld [vmem:[#allocation2 + $0x5c] sm:$0x1] }
  0x9b   : > { %1040 = vst.msk [vmem:[#allocation2 + $0x4c] sm:$0xf] %vm346_vm0, %v776_v49  ;;  %1043 = vst [vmem:[#allocation2 + $0x50] sm:$0x1] %v1042_v56  ;;  %v5146_v63 = vpack.c.bf16 %v557_v51, %v557_v51  ;;  %v5147_v34 = vpack.c.bf16 %v558_v43, %v558_v43  ;;  %v490_v48 = vmul.f32 %v6028_v30, %v5233_v52  ;;  %v5236_v4 = vunpack.c.l.bf16 %v5273_v19 }
  0x9c   : > { %v527_v5 = vadd.f32 %v6070_v14, %v489_v58  ;;  %v3787_v3 = vsel %vm3784_vm14, %v4933_v12, %v3161_v16  ;;  %v5237_v61 = vunpack.c.h.bf16 %v5273_v19  ;;  %vm3833_vm15 = vcmask 130048  }
  0x9d   : > { %v779_v32 = vshrl.u32 %v5146_v63, 16  ;;  %v782_v62 = vshll.u32 %v5146_v63, 16  ;;  %v787_v15 = vshrl.u32 %v5147_v34, 16  ;;  %v790_v6 = vshll.u32 %v5147_v34, 16 }
  0x9e   : > { %3504 = vrot.lane.b32.xlu0 %v5017_v33, %s5490_s13  ;;  %v559_v24 = vmax.f32 %v527_v5, 0.0  ;;  %v491_v21 = vmul.f32 %v6028_v30, %v5236_v4  ;;  %v492_v18 = vmul.f32 %v6028_v30, %v5237_v61  ;;  %v6137_v29 = vadd.f32 %v6070_v14, %v490_v48 }
  0x9f   : > { %v781_v28 = vrot.slane %v779_v32, 7  ;;  %v789_v22 = vrot.slane %v787_v15, 7  ;;  %v6151_v23 = vsel %vm3833_vm15, %v3787_v3, %v3241_v20  ;;  %v5240_v50 = vunpack.c.l.bf16 %v6140_v13 }
  0xa0   : > { %v1841_v31 = vld [vmem:[#allocation2 + $0x48] sm:$0xf]  ;;  %v6142_v11 = vpack.c.bf16 %v559_v24, %v559_v24  ;;  %v6145_v10 = vadd.f32 %v6070_v14, %v491_v21  ;;  %v6148_v54 = vadd.f32 %v6070_v14, %v492_v18  ;;  %vm3866_vm2 = vcmask 195584  }
  0xa1   : > { %v2268_v44 = vld [vmem:[#allocation2 + $0x48] sm:$0xe]  ;;  %v2000_v36 = vshrl.u32 %v1841_v31, 16  ;;  %v2003_v60 = vshll.u32 %v1841_v31, 16  ;;  %v784_v57 = vor.u32 %v782_v62, %v781_v28  ;;  %v785_v55 = vrot.slane %v781_v28, 4 }
  0xa2   : > { %v2448_v37 = vld [vmem:[#allocation2 + $0x48] sm:$0xf]  ;;  %v4906_v8 = vrot.slane %v2268_v44, 9  ;;  %v1842_v27 = vld [vmem:[#allocation2 + $0x4c] sm:$0xf]  ;;  %v792_v47 = vor.u32 %v790_v6, %v789_v22  ;;  %v794_v61 = vrot.slane %v789_v22, 4 }
  0xa3   : > { %v1868_v38 = vld [vmem:[#allocation2 + $0x50] sm:$0x1]  ;;  %v2585_v33 = vshrl.u32 %v2448_v37, 16  ;;  %v2002_v25 = vrot.slane %v2000_v36, 4  ;;  %v2005_v2 = vrot.slane %v2003_v60, 5  ;;  %v2013_v9 = vshrl.u32 %v1842_v27, 16 }
  0xa4   : > { %v4986_v40 = vcombine.low %v1841_v31, %v1842_v27  ;;  %v2009_v26 = vshll.u32 %v1842_v27, 16  ;;  %v2019_v35 = vshll.u32 %v1868_v38, 16  ;;  %v2364_v41 = vrot.slane %v1842_v27, 5  ;;  %v6154_v51 = vld [vmem:[#allocation2 + $0x4c] sm:$0xf] }
  0xa5   : > { %v2367_v45 = vrot.slane %v1868_v38, 5  ;;  %v2006_v43 = vor.u32 %v2005_v2, %v2002_v25  ;;  %v2015_v52 = vrot.slane %v2013_v9, 4  ;;  %v793_v58 = vsel %vm5670_vm12, %v785_v55, %v792_v47  ;;  %v6167_v5 = vld [vmem:[#allocation2 + $0x50] sm:$0x1]  ;;  %v1229_v32 = vld [vmem:[#allocation2 + $0x48] sm:$0xf] }
  0xa6   : > { %3346 = vrot.lane.b32.xlu1 %v4986_v40, %s5488_s11  ;;  %v1045_v16 = vsel %vm5664_vm11, %v784_v57, %v1044_v0  ;;  %v2011_v19 = vrot.slane %v2009_v26, 5  ;;  %v2021_v49 = vrot.slane %v2019_v35, 5  ;;  %v6163_v56 = vsel %vm5609_vm4, %v4906_v8, %v2364_v41  ;;  %1047 = vst.msk [vmem:[#allocation2 + $0x58] sm:$0xf] %vm346_vm0, %v793_v58  ;;  %v6176_v24 = vld [vmem:[#allocation2 + $0x4c] sm:$0xf] }
  0xa7   : > { %v2366_v46 = vrot.slane %v2364_v41, 4  ;;  %1046 = vst [vmem:[#allocation2 + $0x54] sm:$0xf] %v1045_v16  ;;  %v2007_v12 = vrot.slane %v2006_v43, 4  ;;  %v2587_v63 = vrot.slane %v2585_v33, 4  ;;  %v2588_v34 = vshll.u32 %v2448_v37, 16 }
  0xa8   : > { %v2598_v48 = vshrl.u32 %v6154_v51, 16  ;;  %v2016_v53 = vor.u32 %v2015_v52, %v2011_v19  ;;  %v5033_v4 = vcombine.low %v2448_v37, %v6154_v51  ;;  %v2594_v6 = vshll.u32 %v6154_v51, 16  ;;  %v6192_v41 = vld [vmem:[#allocation2 + $0x50] sm:$0x1]  ;;  %v2876_v16 = vld [vmem:[#allocation2 + $0x48] sm:$0xe] }
  0xa9   : > { %v2368_v3 = vsel %vm5609_vm4, %v2366_v46, %v2367_v45  ;;  %v2012_v62 = vsel %vm5644_vm10, %v2007_v12, %v2011_v19  ;;  %v2590_v20 = vrot.slane %v2588_v34, 5  ;;  %v1049_v18 = vsel %vm5688_vm13, %v794_v61, %v1048_v59 }
  0xaa   : > { %v5018_v15 = vcombine.low %v6163_v56, %v2368_v3  ;;  %v2017_v21 = vrot.slane %v2016_v53, 4  ;;  %3600 = vrot.lane.b32.xlu0 %v5033_v4, %s5489_s12  ;;  %v2600_v28 = vrot.slane %v2598_v48, 4  ;;  %v2604_v22 = vshll.u32 %v6167_v5, 16  ;;  %1050 = vst [vmem:[#allocation2 + $0x5c] sm:$0x1] %v1049_v18  ;;  %v6182_v60 = vpop.permute.xlu0 %3336 }
  0xab   : > { %v2591_v31 = vor.u32 %v2590_v20, %v2587_v63  ;;  %v2596_v44 = vrot.slane %v2594_v6, 5  ;;  %v1413_v37 = vshrl.u32 %v1229_v32, 16  ;;  %v1416_v36 = vshll.u32 %v1229_v32, 16 }
  0xac   : > { %v2022_v8 = vsel %vm5644_vm10, %v2017_v21, %v2021_v49  ;;  %v2606_v57 = vrot.slane %v2604_v22, 5  ;;  %v1422_v0 = vshll.u32 %v6176_v24, 16  ;;  %v1426_v27 = vshrl.u32 %v6176_v24, 16 }
  0xad   : > { %v5002_v38 = vcombine.low %v2012_v62, %v2022_v8  ;;  %v6188_v47 = vld [vmem:[#allocation2 + $0x58] sm:$0xf]  ;;  %v2592_v33 = vrot.slane %v2591_v31, 4  ;;  %v2601_v25 = vor.u32 %v2600_v28, %v2596_v44  ;;  %v1415_v2 = vrot.slane %v1413_v37, 4 }
  0xae   : > { %v2450_v55 = vld [vmem:[#allocation2 + $0x54] sm:$0xf]  ;;  %v2622_v26 = vshrl.u32 %v6188_v47, 16  ;;  %v2618_v45 = vshll.u32 %v6188_v47, 16  ;;  %v1418_v58 = vrot.slane %v1416_v36, 5  ;;  %v6198_v19 = vpop.permute.xlu0 %3592  ;;  %v1424_v59 = vrot.slane %v1422_v0, 5 }
  0xaf   : > { %v2609_v9 = vshrl.u32 %v2450_v55, 16  ;;  %v2612_v40 = vshll.u32 %v2450_v55, 16  ;;  %v5034_v35 = vcombine.low %v2450_v55, %v6188_v47  ;;  %3426 = vrot.lane.b32.xlu1 %v5002_v38, %s5492_s15  ;;  %v2597_v43 = vsel %vm5644_vm10, %v2592_v33, %v2596_v44  ;;  %v1231_v18 = vld [vmem:[#allocation2 + $0x54] sm:$0xf]  ;;  %v1232_v36 = vld [vmem:[#allocation2 + $0x58] sm:$0xf] }
  0xb0   : > { %v2602_v52 = vrot.slane %v2601_v25, 4  ;;  %v2624_v46 = vrot.slane %v2622_v26, 4  ;;  %v2620_v12 = vrot.slane %v2618_v45, 5  ;;  %v1419_v34 = vor.u32 %v1418_v58, %v1415_v2 }
  0xb1   : > { %v2611_v49 = vrot.slane %v2609_v9, 4  ;;  %v2614_v56 = vrot.slane %v2612_v40, 5  ;;  %v1428_v48 = vrot.slane %v1426_v27, 4  ;;  %v6202_v53 = vld [vmem:[#allocation2 + $0x5c] sm:$0x1]  ;;  %v1432_v61 = vshll.u32 %v6192_v41, 16 }
  0xb2   : > { %v2607_v63 = vsel %vm5644_vm10, %v2602_v52, %v2606_v57  ;;  %v4921_v32 = vrot.slane %v2876_v16, 9  ;;  %v2625_v62 = vor.u32 %v2624_v46, %v2620_v12  ;;  %v2628_v20 = vshll.u32 %v6202_v53, 16  ;;  %v6207_v28 = vpop.permute.xlu0 %3340  ;;  %v1256_v25 = vld [vmem:[#allocation2 + $0x5c] sm:$0x1]  ;;  %v2877_v40 = vld [vmem:[#allocation2 + $0x54] sm:$0xe] }
  0xb3   : > { %v2615_v3 = vor.u32 %v2614_v56, %v2611_v49  ;;  %v5049_v4 = vcombine.low %v2597_v43, %v2607_v63  ;;  %3506 = vrot.lane.b32.xlu1 %v5018_v15, %s5490_s13  ;;  %v1420_v6 = vrot.slane %v1419_v34, 4  ;;  %v1429_v21 = vor.u32 %v1428_v48, %v1424_v59  ;;  %v1659_v16 = vld [vmem:[#allocation2 + $0x54] sm:$0xe] }
  0xb4   : > { %v1434_v31 = vrot.slane %v1432_v61, 5  ;;  %v2966_v44 = vrot.slane %v6154_v51, 5  ;;  %v2969_v37 = vrot.slane %v6167_v5, 5  ;;  %v2626_v8 = vrot.slane %v2625_v62, 4  ;;  %v6231_v62 = vpop.permute.xlu1 %3338 }
  0xb5   : > { %v2616_v22 = vrot.slane %v2615_v3, 4  ;;  %3680 = vrot.lane.b32.xlu0 %v5049_v4, %s5493_s16  ;;  %v2630_v57 = vrot.slane %v2628_v20, 5  ;;  %v1425_v15 = vsel %vm5644_vm10, %v1420_v6, %v1424_v59  ;;  %v1430_v0 = vrot.slane %v1429_v21, 4 }
  0xb6   : > { %v2967_v38 = vsel %vm5609_vm4, %v4921_v32, %v2966_v44  ;;  %v2968_v55 = vrot.slane %v2966_v44, 4  ;;  %v1437_v33 = vshrl.u32 %v1231_v18, 16  ;;  %v1440_v2 = vshll.u32 %v1231_v18, 16  ;;  %v6223_v26 = vpop.permute.xlu0 %3496  ;;  %v1658_v32 = vld [vmem:[#allocation2 + $0x48] sm:$0xe] }
  0xb7   : > { %v2621_v27 = vsel %vm5644_vm10, %v2616_v22, %v2620_v12  ;;  %3602 = vrot.lane.b32.xlu1 %v5034_v35, %s5489_s12  ;;  %v2631_v51 = vsel %vm5644_vm10, %v2626_v8, %v2630_v57  ;;  %v1435_v5 = vsel %vm5644_vm10, %v1430_v0, %v1434_v31  ;;  %v1446_v9 = vshll.u32 %v1232_v36, 16 }
  0xb8   : > { %v5050_v45 = vcombine.low %v2621_v27, %v2631_v51  ;;  %v4955_v43 = vcombine.low %v1425_v15, %v1435_v5  ;;  %v2970_v52 = vsel %vm5609_vm4, %v2968_v55, %v2969_v37  ;;  %v1439_v58 = vrot.slane %v1437_v33, 4  ;;  %v1843_v15 = vld [vmem:[#allocation2 + $0x54] sm:$0xf]  ;;  %v1844_v5 = vld [vmem:[#allocation2 + $0x58] sm:$0xf] }
  0xb9   : > { %v5065_v35 = vcombine.low %v2967_v38, %v2970_v52  ;;  %v1442_v49 = vrot.slane %v1440_v2, 5  ;;  %v1448_v56 = vrot.slane %v1446_v9, 5  ;;  %v1450_v46 = vshrl.u32 %v1232_v36, 16 }
  0xba   : > { %v1456_v59 = vshll.u32 %v1256_v25, 16  ;;  %v4922_v12 = vrot.slane %v2877_v40, 9  ;;  %v2973_v63 = vrot.slane %v6188_v47, 5  ;;  %v2976_v34 = vrot.slane %v6202_v53, 5  ;;  %v6236_v44 = vpop.permute.xlu0 %3752 }
  0xbb   : > { %3682 = vrot.lane.b32.xlu1 %v5050_v45, %s5493_s16  ;;  %3760 = vrot.lane.b32.xlu0 %v5065_v35, %s5491_s14  ;;  %v1443_v48 = vor.u32 %v1442_v49, %v1439_v58  ;;  %v1452_v3 = vrot.slane %v1450_v46, 4  ;;  %v4892_v4 = vrot.slane %v1659_v16, 9  ;;  %v1770_v61 = vrot.slane %v1232_v36, 5  ;;  %v6257_v45 = vpop.permute.xlu1 %3594  ;;  %v1051_v16 = vld [vmem:[#allocation2 + $0x60] sm:$0xf] }
  0xbc   : > { %v2974_v20 = vsel %vm5609_vm4, %v4922_v12, %v2973_v63  ;;  %v2975_v6 = vrot.slane %v2973_v63, 4  ;;  %v1773_v21 = vrot.slane %v1256_v25, 5  ;;  %v5241_v47 = vunpack.c.h.bf16 %v6140_v13 }
  0xbd   : > { %v1444_v18 = vrot.slane %v1443_v48, 4  ;;  %v1453_v53 = vor.u32 %v1452_v3, %v1448_v56  ;;  %v1458_v22 = vrot.slane %v1456_v59, 5  ;;  %v1772_v31 = vrot.slane %v1770_v61, 4  ;;  %v1869_v59 = vld [vmem:[#allocation2 + $0x5c] sm:$0x1] }
  0xbe   : > { %v2977_v37 = vsel %vm5609_vm4, %v2975_v6, %v2976_v34  ;;  %v4891_v36 = vrot.slane %v1658_v32, 9  ;;  %v1763_v8 = vrot.slane %v6176_v24, 5  ;;  %v1766_v57 = vrot.slane %v6192_v41, 5  ;;  %v6261_v12 = vpop.permute.xlu0 %3754  ;;  %v2269_v3 = vld [vmem:[#allocation2 + $0x54] sm:$0xe] }
  0xbf   : > { %3172 = vrot.lane.b32.xlu1 %v4955_v43, %s5487_s10  ;;  %v1449_v0 = vsel %vm5644_vm10, %v1444_v18, %v1448_v56  ;;  %v1454_v27 = vrot.slane %v1453_v53, 4  ;;  %v5066_v38 = vcombine.low %v2974_v20, %v2977_v37  ;;  %v1771_v55 = vsel %vm5609_vm4, %v4892_v4, %v1770_v61 }
  0xc0   : > { %v1774_v33 = vsel %vm5609_vm4, %v1772_v31, %v1773_v21  ;;  %v1764_v51 = vsel %vm5609_vm4, %v4891_v36, %v1763_v8  ;;  %v1765_v24 = vrot.slane %v1763_v8, 4  ;;  %v560_v41 = vmax.f32 %v6137_v29, 0.0  ;;  %v1055_v31 = vld [vmem:[#allocation2 + $0x68] sm:$0x1] }
  0xc1   : > { %v1459_v25 = vsel %vm5644_vm10, %v1454_v27, %v1458_v22  ;;  %3762 = vrot.lane.b32.xlu0 %v5066_v38, %s5491_s14  ;;  %v796_v2 = vshrl.u32 %v6142_v11, 16  ;;  %v799_v9 = vshll.u32 %v6142_v11, 16  ;;  %v2024_v40 = vshrl.u32 %v1843_v15, 16 }
  0xc2   : > { %v4956_v43 = vcombine.low %v1449_v0, %v1459_v25  ;;  %v1767_v52 = vsel %vm5609_vm4, %v1765_v24, %v1766_v57  ;;  %v5149_v58 = vpack.c.bf16 %v560_v41, %v560_v41  ;;  %v2027_v29 = vshll.u32 %v1843_v15, 16  ;;  %v6267_v57 = vpop.permute.xlu1 %3342 }
  0xc3   : > { %v4971_v35 = vcombine.low %v1764_v51, %v1767_v52  ;;  %v798_v49 = vrot.slane %v796_v2, 7  ;;  %v2026_v56 = vrot.slane %v2024_v40, 4  ;;  %v2037_v46 = vshrl.u32 %v1844_v5, 16  ;;  %v6272_v41 = vpop.permute.xlu0 %3244 }
  0xc4   : > { %3174 = vrot.lane.b32.xlu1 %v4956_v43, %s5487_s10  ;;  %v4972_v11 = vcombine.low %v1771_v55, %v1774_v33  ;;  %v804_v63 = vshrl.u32 %v5149_v58, 16  ;;  %v807_v34 = vshll.u32 %v5149_v58, 16  ;;  %v2029_v48 = vrot.slane %v2027_v29, 5 }
  0xc5   : > { %3252 = vrot.lane.b32.xlu0 %v4971_v35, %s5486_s9  ;;  %v801_v4 = vor.u32 %v799_v9, %v798_v49  ;;  %v4987_v61 = vcombine.low %v1843_v15, %v1844_v5  ;;  %v2033_v32 = vshll.u32 %v1844_v5, 16  ;;  %v2039_v20 = vrot.slane %v2037_v46, 4 }
  0xc6   : > { %v802_v6 = vrot.slane %v798_v49, 4  ;;  %v806_v21 = vrot.slane %v804_v63, 7  ;;  %v2030_v18 = vor.u32 %v2029_v48, %v2026_v56  ;;  %v2043_v53 = vshll.u32 %v1869_v59, 16  ;;  %v6299_v46 = vpop.permute.xlu1 %3242 }
  0xc7   : > { %v1052_v22 = vsel %vm5664_vm11, %v801_v4, %v1051_v16  ;;  %v2035_v37 = vrot.slane %v2033_v32, 5  ;;  %v4907_v36 = vrot.slane %v2269_v3, 9  ;;  %v2371_v8 = vrot.slane %v1844_v5, 5 }
  0xc8   : > { %3254 = vrot.lane.b32.xlu1 %v4972_v11, %s5486_s9  ;;  %v809_v0 = vor.u32 %v807_v34, %v806_v21  ;;  %1053 = vst [vmem:[#allocation2 + $0x60] sm:$0xf] %v1052_v22  ;;  %v811_v15 = vrot.slane %v806_v21, 4  ;;  %v2031_v27 = vrot.slane %v2030_v18, 4  ;;  %v2374_v38 = vrot.slane %v1869_v59, 5 }
  0xc9   : > { %3348 = vrot.lane.b32.xlu0 %v4987_v61, %s5488_s11  ;;  %v2040_v55 = vor.u32 %v2039_v20, %v2035_v37  ;;  %v2045_v33 = vrot.slane %v2043_v53, 5  ;;  %v2373_v51 = vrot.slane %v2371_v8, 4  ;;  %v561_v24 = vmax.f32 %v6145_v10, 0.0  ;;  %v5432_v34 = vld [vmem:[#allocation2 + $0xc] sm:$0xf] }
  0xca   : > { %v810_v5 = vsel %vm5670_vm12, %v802_v6, %v809_v0  ;;  %v1056_v25 = vsel %vm5688_vm13, %v811_v15, %v1055_v31  ;;  %v562_v2 = vmax.f32 %v6148_v54, 0.0  ;;  %v2036_v9 = vsel %vm5644_vm10, %v2031_v27, %v2035_v37  ;;  %v1058_v22 = vld [vmem:[#allocation2 + $0x6c] sm:$0xf] }
  0xcb   : > { %1054 = vst.msk [vmem:[#allocation2 + $0x64] sm:$0xf] %vm346_vm0, %v810_v5  ;;  %1057 = vst [vmem:[#allocation2 + $0x68] sm:$0x1] %v1056_v25  ;;  %v2041_v40 = vrot.slane %v2040_v55, 4  ;;  %v2372_v10 = vsel %vm5609_vm4, %v4907_v36, %v2371_v8  ;;  %v5150_v43 = vpack.c.bf16 %v561_v24, %v561_v24  ;;  %v2375_v52 = vsel %vm5609_vm4, %v2373_v51, %v2374_v38  ;;  %v6311_v24 = vpop.permute.xlu1 %3498 }
  0xcc   : > { %v5151_v58 = vpack.c.bf16 %v562_v2, %v562_v2  ;;  %v493_v54 = vmul.f32 %v6028_v30, %v5240_v50  ;;  %v494_v16 = vmul.f32 %v6028_v30, %v5241_v47  ;;  %v6297_v56 = vsel %vm3866_vm2, %v6151_v23, %v6182_v60  ;;  %v5431_v50 = vld [vmem:[#allocation2 + $0x10] sm:$0xf] }
  0xcd   : > { %v2046_v29 = vsel %vm5644_vm10, %v2041_v40, %v2045_v33  ;;  %v813_v35 = vshrl.u32 %v5150_v43, 16  ;;  %v816_v49 = vshll.u32 %v5150_v43, 16  ;;  %v4934_v13 = vcombine.low %v5432_v34, %v5431_v50  ;;  %v3163_v23 = vpop.permute.xlu0 %3162 }
  0xce   : > { %v5003_v59 = vcombine.low %v2036_v9, %v2046_v29  ;;  %v821_v11 = vshrl.u32 %v5151_v58, 16  ;;  %v824_v63 = vshll.u32 %v5151_v58, 16  ;;  %v5019_v47 = vcombine.low %v2372_v10, %v2375_v52 }
  0xcf   : > { %v1845_v48 = vld [vmem:[#allocation2 + $0x60] sm:$0xf]  ;;  %v815_v3 = vrot.slane %v813_v35, 7  ;;  %v6302_v4 = vadd.f32 %v6070_v14, %v493_v54  ;;  %v6305_v61 = vadd.f32 %v6070_v14, %v494_v16  ;;  %v6309_v14 = vsel %vm3784_vm14, %v4934_v13, %v3163_v23 }
  0xd0   : > { %v2270_v30 = vld [vmem:[#allocation2 + $0x60] sm:$0xe]  ;;  %v2048_v60 = vshrl.u32 %v1845_v48, 16  ;;  %v2051_v32 = vshll.u32 %v1845_v48, 16  ;;  %3428 = vrot.lane.b32.xlu0 %v5003_v59, %s5492_s15  ;;  %v823_v6 = vrot.slane %v821_v11, 7  ;;  %vm3899_vm3 = vcmask 261120  }
  0xd1   : > { %v4908_v20 = vrot.slane %v2270_v30, 9  ;;  %v2452_v21 = vld [vmem:[#allocation2 + $0x60] sm:$0xf]  ;;  %v818_v18 = vor.u32 %v816_v49, %v815_v3  ;;  %v819_v53 = vrot.slane %v815_v3, 4  ;;  %v1062_v49 = vld [vmem:[#allocation2 + $0x74] sm:$0x1] }
  0xd2   : > { %v2633_v31 = vshrl.u32 %v2452_v21, 16  ;;  %v2636_v37 = vshll.u32 %v2452_v21, 16  ;;  %v1846_v36 = vld [vmem:[#allocation2 + $0x64] sm:$0xf]  ;;  %v2050_v8 = vrot.slane %v2048_v60, 4  ;;  %v2053_v0 = vrot.slane %v2051_v32, 5 }
  0xd3   : > { %v1870_v15 = vld [vmem:[#allocation2 + $0x68] sm:$0x1]  ;;  %v826_v27 = vor.u32 %v824_v63, %v823_v6  ;;  %v2061_v38 = vshrl.u32 %v1846_v36, 16  ;;  %v4988_v55 = vcombine.low %v1845_v48, %v1846_v36  ;;  %v2057_v33 = vshll.u32 %v1846_v36, 16  ;;  %v6316_v40 = vld [vmem:[#allocation2 + $0x64] sm:$0xf] }
  0xd4   : > { %v2067_v51 = vshll.u32 %v1870_v15, 16  ;;  %v2054_v5 = vor.u32 %v2053_v0, %v2050_v8  ;;  %v2378_v25 = vrot.slane %v1846_v36, 5  ;;  %v2381_v2 = vrot.slane %v1870_v15, 5  ;;  %3508 = vrot.lane.b32.xlu0 %v5019_v47, %s5490_s13  ;;  %v6326_v34 = vld [vmem:[#allocation2 + $0x68] sm:$0x1] }
  0xd5   : > { %v827_v9 = vsel %vm5670_vm12, %v819_v53, %v826_v27  ;;  %3350 = vrot.lane.b32.xlu1 %v4988_v55, %s5488_s11  ;;  %v2059_v10 = vrot.slane %v2057_v33, 5  ;;  %v2063_v43 = vrot.slane %v2061_v38, 4  ;;  %v1059_v58 = vsel %vm5664_vm11, %v818_v18, %v1058_v22  ;;  %v1233_v13 = vld [vmem:[#allocation2 + $0x60] sm:$0xf]  ;;  %v6333_v23 = vld [vmem:[#allocation2 + $0x64] sm:$0xf]  ;;  %v6336_v18 = vpop.permute.xlu1 %3246 }
  0xd6   : > { %v2069_v52 = vrot.slane %v2067_v51, 5  ;;  %1061 = vst.msk [vmem:[#allocation2 + $0x70] sm:$0xf] %vm346_vm0, %v827_v9  ;;  %v2055_v54 = vrot.slane %v2054_v5, 4  ;;  %v2379_v16 = vsel %vm5609_vm4, %v4908_v20, %v2378_v25  ;;  %v2380_v29 = vrot.slane %v2378_v25, 4 }
  0xd7   : > { %1060 = vst [vmem:[#allocation2 + $0x6c] sm:$0xf] %v1059_v58  ;;  %v2635_v35 = vrot.slane %v2633_v31, 4  ;;  %v2064_v59 = vor.u32 %v2063_v43, %v2059_v10  ;;  %v2638_v11 = vrot.slane %v2636_v37, 5  ;;  %v2646_v63 = vshrl.u32 %v6316_v40, 16 }
  0xd8   : > { %v5035_v50 = vcombine.low %v2452_v21, %v6316_v40  ;;  %v2060_v48 = vsel %vm5644_vm10, %v2055_v54, %v2059_v10  ;;  %v2382_v30 = vsel %vm5609_vm4, %v2380_v29, %v2381_v2  ;;  %v828_v47 = vrot.slane %v823_v6, 4  ;;  %v6352_v54 = vld [vmem:[#allocation2 + $0x68] sm:$0x1] }
  0xd9   : > { %v2642_v3 = vshll.u32 %v6316_v40, 16  ;;  %v2065_v60 = vrot.slane %v2064_v59, 4  ;;  %v5020_v32 = vcombine.low %v2379_v16, %v2382_v30  ;;  %v2639_v20 = vor.u32 %v2638_v11, %v2635_v35  ;;  %v2878_v59 = vld [vmem:[#allocation2 + $0x60] sm:$0xe]  ;;  %v6354_v11 = vpop.permute.xlu1 %3418 }
  0xda   : > { %3604 = vrot.lane.b32.xlu0 %v5035_v50, %s5489_s12  ;;  %v2648_v21 = vrot.slane %v2646_v63, 4  ;;  %v1063_v53 = vsel %vm5688_vm13, %v828_v47, %v1062_v49  ;;  %v2652_v31 = vshll.u32 %v6326_v34, 16  ;;  %v1461_v37 = vshrl.u32 %v1233_v13, 16 }
  0xdb   : > { %v2644_v22 = vrot.slane %v2642_v3, 5  ;;  %v2070_v6 = vsel %vm5644_vm10, %v2065_v60, %v2069_v52  ;;  %1064 = vst [vmem:[#allocation2 + $0x74] sm:$0x1] %v1063_v53  ;;  %v2640_v36 = vrot.slane %v2639_v20, 4  ;;  %v1464_v8 = vshll.u32 %v1233_v13, 16 }
  0xdc   : > { %v1470_v0 = vshll.u32 %v6333_v23, 16  ;;  %v5004_v15 = vcombine.low %v2060_v48, %v2070_v6  ;;  %v2654_v55 = vrot.slane %v2652_v31, 5  ;;  %v1463_v33 = vrot.slane %v1461_v37, 4  ;;  %v6364_v6 = vpop.permute.xlu0 %3416 }
  0xdd   : > { %v6344_v27 = vld [vmem:[#allocation2 + $0x70] sm:$0xf]  ;;  %v2649_v38 = vor.u32 %v2648_v21, %v2644_v22  ;;  %v2645_v2 = vsel %vm5644_vm10, %v2640_v36, %v2644_v22  ;;  %v1466_v9 = vrot.slane %v1464_v8, 5  ;;  %v1474_v48 = vshrl.u32 %v6333_v23, 16 }
  0xde   : > { %v2454_v51 = vld [vmem:[#allocation2 + $0x6c] sm:$0xf]  ;;  %v2670_v5 = vshrl.u32 %v6344_v27, 16  ;;  %v2666_v25 = vshll.u32 %v6344_v27, 16  ;;  %3430 = vrot.lane.b32.xlu1 %v5004_v15, %s5492_s15  ;;  %v1472_v49 = vrot.slane %v1470_v0, 5  ;;  %v1480_v60 = vshll.u32 %v6352_v54, 16 }
  0xdf   : > { %v2657_v10 = vshrl.u32 %v2454_v51, 16  ;;  %v2660_v43 = vshll.u32 %v2454_v51, 16  ;;  %v5036_v52 = vcombine.low %v2454_v51, %v6344_v27  ;;  %v2650_v58 = vrot.slane %v2649_v38, 4  ;;  %v1235_v20 = vld [vmem:[#allocation2 + $0x6c] sm:$0xf] }
  0xe0   : > { %v2668_v16 = vrot.slane %v2666_v25, 5  ;;  %v2672_v29 = vrot.slane %v2670_v5, 4  ;;  %v1467_v35 = vor.u32 %v1466_v9, %v1463_v33  ;;  %v1476_v22 = vrot.slane %v1474_v48, 4  ;;  %v1236_v38 = vld [vmem:[#allocation2 + $0x70] sm:$0xf]  ;;  %v6373_v9 = vpop.permute.xlu1 %3674 }
  0xe1   : > { %v2659_v63 = vrot.slane %v2657_v10, 4  ;;  %v2662_v50 = vrot.slane %v2660_v43, 5  ;;  %v2655_v13 = vsel %vm5644_vm10, %v2650_v58, %v2654_v55  ;;  %v4923_v31 = vrot.slane %v2878_v59, 9 }
  0xe2   : > { %v2673_v30 = vor.u32 %v2672_v29, %v2668_v16  ;;  %v5051_v47 = vcombine.low %v2645_v2, %v2655_v13  ;;  %v1468_v3 = vrot.slane %v1467_v35, 4  ;;  %3510 = vrot.lane.b32.xlu1 %v5020_v32, %s5490_s13  ;;  %v6361_v21 = vld [vmem:[#allocation2 + $0x74] sm:$0x1]  ;;  %v2980_v37 = vrot.slane %v6316_v40, 5  ;;  %v1661_v13 = vld [vmem:[#allocation2 + $0x6c] sm:$0xe] }
  0xe3   : > { %v2663_v53 = vor.u32 %v2662_v50, %v2659_v63  ;;  %v2676_v8 = vshll.u32 %v6361_v21, 16  ;;  %v1482_v15 = vrot.slane %v1480_v60, 5  ;;  %v1477_v55 = vor.u32 %v1476_v22, %v1472_v49  ;;  %v1258_v58 = vld [vmem:[#allocation2 + $0x74] sm:$0x1]  ;;  %v2879_v50 = vld [vmem:[#allocation2 + $0x6c] sm:$0xe] }
  0xe4   : > { %v2674_v36 = vrot.slane %v2673_v30, 4  ;;  %3684 = vrot.lane.b32.xlu0 %v5051_v47, %s5493_s16  ;;  %v1473_v0 = vsel %vm5644_vm10, %v1468_v3, %v1472_v49  ;;  %v2981_v33 = vsel %vm5609_vm4, %v4923_v31, %v2980_v37  ;;  %v2982_v51 = vrot.slane %v2980_v37, 4  ;;  %v6384_v47 = vpop.permute.xlu0 %3672  ;;  %v1660_v22 = vld [vmem:[#allocation2 + $0x60] sm:$0xe] }
  0xe5   : > { %v2664_v32 = vrot.slane %v2663_v53, 4  ;;  %v2678_v5 = vrot.slane %v2676_v8, 5  ;;  %v2983_v40 = vrot.slane %v6326_v34, 5  ;;  %v1485_v25 = vshrl.u32 %v1235_v20, 16 }
  0xe6   : > { %v1488_v2 = vshll.u32 %v1235_v20, 16  ;;  %3606 = vrot.lane.b32.xlu1 %v5036_v52, %s5489_s12  ;;  %v1478_v43 = vrot.slane %v1477_v55, 4  ;;  %v1494_v29 = vshll.u32 %v1236_v38, 16  ;;  %v1498_v35 = vshrl.u32 %v1236_v38, 16 }
  0xe7   : > { %v2669_v10 = vsel %vm5644_vm10, %v2664_v32, %v2668_v16  ;;  %v2679_v49 = vsel %vm5644_vm10, %v2674_v36, %v2678_v5  ;;  %v2984_v59 = vsel %vm5609_vm4, %v2982_v51, %v2983_v40  ;;  %v1487_v34 = vrot.slane %v1485_v25, 4  ;;  %v6390_v51 = vpop.permute.xlu1 %3164 }
  0xe8   : > { %v1490_v63 = vrot.slane %v1488_v2, 5  ;;  %v5052_v48 = vcombine.low %v2669_v10, %v2679_v49  ;;  %v1483_v52 = vsel %vm5644_vm10, %v1478_v43, %v1482_v15  ;;  %v5067_v30 = vcombine.low %v2981_v33, %v2984_v59  ;;  %v6404_v49 = vpop.permute.xlu0 %3420 }
  0xe9   : > { %v1496_v16 = vrot.slane %v1494_v29, 5  ;;  %v4957_v3 = vcombine.low %v1473_v0, %v1483_v52  ;;  %v1500_v20 = vrot.slane %v1498_v35, 4  ;;  %v1504_v53 = vshll.u32 %v1258_v58, 16  ;;  %v1847_v35 = vld [vmem:[#allocation2 + $0x6c] sm:$0xf] }
  0xea   : > { %v1491_v60 = vor.u32 %v1490_v63, %v1487_v34  ;;  %3686 = vrot.lane.b32.xlu1 %v5052_v48, %s5493_s16  ;;  %3764 = vrot.lane.b32.xlu0 %v5067_v30, %s5491_s14  ;;  %v4924_v31 = vrot.slane %v2879_v50, 9  ;;  %v2987_v37 = vrot.slane %v6344_v27, 5  ;;  %v2990_v36 = vrot.slane %v6361_v21, 5 }
  0xeb   : > { %v4894_v8 = vrot.slane %v1661_v13, 9  ;;  %v1501_v32 = vor.u32 %v1500_v20, %v1496_v16  ;;  %v1506_v55 = vrot.slane %v1504_v53, 5  ;;  %v1784_v33 = vrot.slane %v1236_v38, 5  ;;  %v6411_v13 = vld [vmem:[#allocation2 + $0x70] sm:$0xf] }
  0xec   : > { %v1492_v15 = vrot.slane %v1491_v60, 4  ;;  %v2988_v0 = vsel %vm5609_vm4, %v4924_v31, %v2987_v37  ;;  %v2989_v5 = vrot.slane %v2987_v37, 4  ;;  %v1787_v40 = vrot.slane %v1258_v58, 5  ;;  %v6416_v60 = vpop.permute.xlu1 %3166 }
  0xed   : > { %v4893_v25 = vrot.slane %v1660_v22, 9  ;;  %v1502_v10 = vrot.slane %v1501_v32, 4  ;;  %v1785_v27 = vsel %vm5609_vm4, %v4894_v8, %v1784_v33  ;;  %v1786_v21 = vrot.slane %v1784_v33, 4  ;;  %v1871_v22 = vld [vmem:[#allocation2 + $0x74] sm:$0x1] }
  0xee   : > { %v1497_v2 = vsel %vm5644_vm10, %v1492_v15, %v1496_v16  ;;  %3176 = vrot.lane.b32.xlu1 %v4957_v3, %s5487_s10  ;;  %v2991_v38 = vsel %vm5609_vm4, %v2989_v5, %v2990_v36  ;;  %v1777_v43 = vrot.slane %v6333_v23, 5  ;;  %v1780_v29 = vrot.slane %v6352_v54, 5  ;;  %v2271_v32 = vld [vmem:[#allocation2 + $0x6c] sm:$0xe] }
  0xef   : > { %v563_v58 = vmax.f32 %v6302_v4, 0.0  ;;  %v1507_v59 = vsel %vm5644_vm10, %v1502_v10, %v1506_v55  ;;  %v5068_v34 = vcombine.low %v2988_v0, %v2991_v38  ;;  %v1788_v63 = vsel %vm5609_vm4, %v1786_v21, %v1787_v40  ;;  %v6424_v40 = vpop.permute.xlu0 %3500  ;;  %v1065_v21 = vld [vmem:[#allocation2 + $0x78] sm:$0xf]  ;;  %v1069_v38 = vld [vmem:[#allocation2 + $0x80] sm:$0x1] }
  0xf0   : > { %v564_v50 = vmax.f32 %v6305_v61, 0.0  ;;  %v4958_v48 = vcombine.low %v1497_v2, %v1507_v59  ;;  %v4974_v23 = vcombine.low %v1785_v27, %v1788_v63  ;;  %v1778_v54 = vsel %vm5609_vm4, %v4893_v25, %v1777_v43 }
  0xf1   : > { %v1779_v4 = vrot.slane %v1777_v43, 4  ;;  %3766 = vrot.lane.b32.xlu0 %v5068_v34, %s5491_s14  ;;  %v5152_v52 = vpack.c.bf16 %v563_v58, %v563_v58  ;;  %v2072_v16 = vshrl.u32 %v1847_v35, 16  ;;  %v2075_v3 = vshll.u32 %v1847_v35, 16 }
  0xf2   : > { %v5153_v30 = vpack.c.bf16 %v564_v50, %v564_v50  ;;  %3178 = vrot.lane.b32.xlu1 %v4958_v48, %s5487_s10  ;;  %v2085_v20 = vshrl.u32 %v6411_v13, 16  ;;  %v4989_v53 = vcombine.low %v1847_v35, %v6411_v13  ;;  %v2081_v31 = vshll.u32 %v6411_v13, 16  ;;  %v5275_v48 = vld [vmem:[%s5618_s28 + $0x50] sm:$0xff]  }
  0xf3   : > { %v1781_v61 = vsel %vm5609_vm4, %v1779_v4, %v1780_v29  ;;  %v830_v36 = vshrl.u32 %v5152_v52, 16  ;;  %v833_v8 = vshll.u32 %v5152_v52, 16  ;;  %v2074_v33 = vrot.slane %v2072_v16, 4 }
  0xf4   : > { %v4973_v37 = vcombine.low %v1778_v54, %v1781_v61  ;;  %v838_v15 = vshrl.u32 %v5153_v30, 16  ;;  %v841_v55 = vshll.u32 %v5153_v30, 16  ;;  %v2077_v0 = vrot.slane %v2075_v3, 5  ;;  %v6433_v54 = vpop.permute.xlu1 %3422 }
  0xf5   : > { %v2083_v5 = vrot.slane %v2081_v31, 5  ;;  %v832_v25 = vrot.slane %v830_v36, 7  ;;  %v2087_v10 = vrot.slane %v2085_v20, 4  ;;  %v2091_v27 = vshll.u32 %v1871_v22, 16  ;;  %v5433_v36 = vld [vmem:[#allocation2 + $0x1c] sm:$0xf] }
  0xf6   : > { %3256 = vrot.lane.b32.xlu0 %v4973_v37, %s5486_s9  ;;  %v840_v2 = vrot.slane %v838_v15, 7  ;;  %3258 = vrot.lane.b32.xlu1 %v4974_v23, %s5486_s9  ;;  %v2078_v43 = vor.u32 %v2077_v0, %v2074_v33  ;;  %v4909_v29 = vrot.slane %v2271_v32, 9  ;;  %v2385_v58 = vrot.slane %v6411_v13, 5  ;;  %v5414_v32 = vld [vmem:[%s7520_s1 + $0x20] ss:$0 sps:$4 sm:$0xff]  }
  0xf7   : > { %v3837_v35 = vsel %vm3833_vm15, %v6309_v14, %v6299_v46  ;;  %v835_v59 = vor.u32 %v833_v8, %v832_v25  ;;  %v836_v34 = vrot.slane %v832_v25, 4  ;;  %v2088_v52 = vor.u32 %v2087_v10, %v2083_v5  ;;  %v5434_v8 = vld [vmem:[#allocation2 + $0x18] sm:$0xf]  ;;  %v6461_v0 = vld [vmem:[%s7521_s2] ss:$0 sm:$0xff] }
  0xf8   : > { %v843_v63 = vor.u32 %v841_v55, %v840_v2  ;;  %v845_v50 = vrot.slane %v840_v2, 4  ;;  %v2079_v4 = vrot.slane %v2078_v43, 4  ;;  %v2093_v23 = vrot.slane %v2091_v27, 5  ;;  %v6470_v27 = vpop.permute.xlu1 %3502 }
  0xf9   : > { %v2388_v30 = vrot.slane %v1871_v22, 5  ;;  %v1066_v13 = vsel %vm5664_vm11, %v835_v59, %v1065_v21  ;;  %v2387_v14 = vrot.slane %v2385_v58, 4  ;;  %v2089_v61 = vrot.slane %v2088_v52, 4  ;;  %v6445_v22 = vpop.permute.xlu0 %3596 }
  0xfa   : > { %v844_v16 = vsel %vm5670_vm12, %v836_v34, %v843_v63  ;;  %3352 = vrot.lane.b32.xlu0 %v4989_v53, %s5488_s11  ;;  %v1070_v46 = vsel %vm5688_vm13, %v845_v50, %v1069_v38  ;;  %1067 = vst [vmem:[#allocation2 + $0x78] sm:$0xf] %v1066_v13  ;;  %v2084_v3 = vsel %vm5644_vm10, %v2079_v4, %v2083_v5  ;;  %v5244_v20 = vunpack.c.l.bf16 %v5275_v48  ;;  %v6477_v38 = vld [vmem:[%s7522_s3] ss:$0 sm:$0xff] }
  0xfb   : > { %1068 = vst.msk [vmem:[#allocation2 + $0x7c] sm:$0xf] %vm346_vm0, %v844_v16  ;;  %1071 = vst [vmem:[#allocation2 + $0x80] sm:$0x1] %v1070_v46  ;;  %v2386_v31 = vsel %vm5609_vm4, %v4909_v29, %v2385_v58  ;;  %v3870_v53 = vsel %vm3866_vm2, %v3837_v35, %v6231_v62  ;;  %v5245_v37 = vunpack.c.h.bf16 %v5275_v48  ;;  %v4935_v15 = vcombine.low %v5434_v8, %v5433_v36 }
  0xfc   : > { %v2094_v55 = vsel %vm5644_vm10, %v2089_v61, %v2093_v23  ;;  %v2389_v33 = vsel %vm5609_vm4, %v2387_v14, %v2388_v30  ;;  %v495_v62 = vmul.f32 %v6461_v0, %v5244_v20  ;;  %vm3932_vm5 = vcmask 326656  }
  0xfd   : > { %v5005_v5 = vcombine.low %v2084_v3, %v2094_v55  ;;  %v496_v25 = vmul.f32 %v6461_v0, %v5245_v37  ;;  %v3793_v2 = vsel %vm3784_vm14, %v4935_v15, %v6390_v51  ;;  %v3901_v10 = vsel %vm3899_vm3, %v6297_v56, %v6364_v6  ;;  %v5438_v6 = vld [vmem:[#allocation2 + $0x24] sm:$0xf] }
  0xfe   : > { %v3903_v21 = vsel %vm3899_vm3, %v3870_v53, %v6354_v11  ;;  %v533_v43 = vadd.f32 %v6477_v38, %v495_v62  ;;  %v3934_v29 = vsel %vm3932_vm5, %v3901_v10, %v6223_v26  ;;  %vm4133_vm6 = vcmask 1043456   ;;  %v5437_v11 = vld [vmem:[#allocation2 + $0x28] sm:$0xf]  ;;  %v6489_v26 = vpop.permute.xlu0 %3676 }
  0xff   : > { %3432 = vrot.lane.b32.xlu0 %v5005_v5, %s5492_s15  ;;  %v5021_v51 = vcombine.low %v2386_v31, %v2389_v33  ;;  %v6485_v56 = vsel %vm3833_vm15, %v3793_v2, %v6272_v41  ;;  %5354 = vmatprep.subr.msk.bf16.mxu0 %vm4133_vm6, %v5414_v32  ;;  %v4936_v58 = vcombine.low %v5438_v6, %v5437_v11  ;;  %vm3965_vm7 = vcmask 392192  }
 0x100   : > { %v565_v35 = vmax.f32 %v533_v43, 0.0  ;;  %v3967_v59 = vsel %vm3965_vm7, %v3934_v29, %v6198_v19  ;;  %vm3998_vm8 = vcmask 457728   ;;  %v4135_v34 = vsel %vm4133_vm6, %v5414_v32, 0  ;;  %5355 = vmatprep.subr.msk.bf16.mxu1 %vm4133_vm6, %v5414_v32 }
 0x101   : > { %v1849_v63 = vld [vmem:[#allocation2 + $0x78] sm:$0xf]  ;;  %v534_v41 = vadd.f32 %v6477_v38, %v496_v25  ;;  %v6494_v4 = vsel %vm3784_vm14, %v4936_v58, %v6416_v60  ;;  %v6498_v52 = vsel %vm3998_vm8, %v3967_v59, %v6384_v47  ;;  %5311 = vmatpush3.bf16.msra.mxu0 %v4135_v34  ;;  %v6502_v19 = vsel %vm3932_vm5, %v3903_v21, %v6311_v24  ;;  %v6505_v47 = vpop.permute.xlu1 %3598 }
 0x102   : > { %v1850_v50 = vld [vmem:[#allocation2 + $0x7c] sm:$0xf]  ;;  %v1872_v48 = vld [vmem:[#allocation2 + $0x80] sm:$0x1]  ;;  %v2096_v23 = vshrl.u32 %v1849_v63, 16  ;;  %v2099_v30 = vshll.u32 %v1849_v63, 16  ;;  %5353 = vmatpush3.bf16.msra.mxu1 %v4135_v34  ;;  %v5154_v5 = vpack.c.bf16 %v565_v35, %v565_v35  ;;  %v6514_v2 = vpop.permute.xlu0 %3756 }
 0x103   : > { %v2109_v16 = vshrl.u32 %v1850_v50, 16  ;;  %v4990_v13 = vcombine.low %v1849_v63, %v1850_v50  ;;  %v2272_v46 = vld [vmem:[#allocation2 + $0x78] sm:$0xe]  ;;  %v2105_v14 = vshll.u32 %v1850_v50, 16  ;;  %v2115_v3 = vshll.u32 %v1872_v48, 16  ;;  %3512 = vrot.lane.b32.xlu0 %v5021_v51, %s5490_s13 }
 0x104   : > { %v4910_v61 = vrot.slane %v2272_v46, 9  ;;  %v2392_v60 = vrot.slane %v1850_v50, 5  ;;  %v2456_v20 = vld [vmem:[#allocation2 + $0x78] sm:$0xf]  ;;  %v2098_v31 = vrot.slane %v2096_v23, 4  ;;  %v2101_v53 = vrot.slane %v2099_v30, 5 }
 0x105   : > { %3354 = vrot.lane.b32.xlu1 %v4990_v13, %s5488_s11  ;;  %v2111_v24 = vrot.slane %v2109_v16, 4  ;;  %v2395_v37 = vrot.slane %v1872_v48, 5  ;;  %v6508_v36 = vld [vmem:[#allocation2 + $0x7c] sm:$0xf]  ;;  %v2107_v8 = vrot.slane %v2105_v14, 5  ;;  %v2117_v15 = vrot.slane %v2115_v3, 5  ;;  %v6520_v35 = vpop.permute.xlu1 %3678 }
 0x106   : > { %v6512_v32 = vsel %vm5609_vm4, %v4910_v61, %v2392_v60  ;;  %v2394_v55 = vrot.slane %v2392_v60, 4  ;;  %v2102_v33 = vor.u32 %v2101_v53, %v2098_v31  ;;  %v566_v62 = vmax.f32 %v534_v41, 0.0  ;;  %v6524_v16 = vld [vmem:[#allocation2 + $0x80] sm:$0x1]  ;;  %v1072_v46 = vld [vmem:[#allocation2 + $0x84] sm:$0xf] }
 0x107   : > { %v2681_v25 = vshrl.u32 %v2456_v20, 16  ;;  %v2112_v10 = vor.u32 %v2111_v24, %v2107_v8  ;;  %v2684_v43 = vshll.u32 %v2456_v20, 16  ;;  %v2694_v29 = vshrl.u32 %v6508_v36, 16 }
 0x108   : > { %v2396_v21 = vsel %vm5609_vm4, %v2394_v55, %v2395_v37  ;;  %v2103_v51 = vrot.slane %v2102_v33, 4  ;;  %v5155_v6 = vpack.c.bf16 %v566_v62, %v566_v62  ;;  %v847_v58 = vshrl.u32 %v5154_v5, 16  ;;  %v1076_v37 = vld [vmem:[#allocation2 + $0x8c] sm:$0x1] }
 0x109   : > { %v5022_v11 = vcombine.low %v6512_v32, %v2396_v21  ;;  %v2113_v59 = vrot.slane %v2112_v10, 4  ;;  %v850_v34 = vshll.u32 %v5154_v5, 16  ;;  %v2683_v63 = vrot.slane %v2681_v25, 4  ;;  %v6530_v32 = vpop.permute.xlu0 %3758 }
 0x10a   : > { %v2686_v50 = vrot.slane %v2684_v43, 5  ;;  %v2108_v48 = vsel %vm5644_vm10, %v2103_v51, %v2107_v8  ;;  %v849_v41 = vrot.slane %v847_v58, 7  ;;  %v855_v23 = vshrl.u32 %v5155_v6, 16  ;;  %v1237_v8 = vld [vmem:[#allocation2 + $0x78] sm:$0xf] }
 0x10b   : > { %v858_v30 = vshll.u32 %v5155_v6, 16  ;;  %v2118_v13 = vsel %vm5644_vm10, %v2113_v59, %v2117_v15  ;;  %v5037_v14 = vcombine.low %v2456_v20, %v6508_v36  ;;  %v2690_v61 = vshll.u32 %v6508_v36, 16  ;;  %v6534_v20 = vld [vmem:[#allocation2 + $0x7c] sm:$0xf]  ;;  %v6542_v43 = vld [vmem:[#allocation2 + $0x80] sm:$0x1] }
 0x10c   : > { %v2687_v3 = vor.u32 %v2686_v50, %v2683_v63  ;;  %v5006_v60 = vcombine.low %v2108_v48, %v2118_v13  ;;  %v852_v31 = vor.u32 %v850_v34, %v849_v41  ;;  %v853_v53 = vrot.slane %v849_v41, 4  ;;  %v2880_v59 = vld [vmem:[#allocation2 + $0x78] sm:$0xe]  ;;  %v6546_v34 = vpop.permute.xlu1 %3168 }
 0x10d   : > { %v857_v24 = vrot.slane %v855_v23, 7  ;;  %vm4031_vm9 = vcmask 523264   ;;  %3608 = vrot.lane.b32.xlu0 %v5037_v14, %s5489_s12  ;;  %v2692_v33 = vrot.slane %v2690_v61, 5  ;;  %v2696_v15 = vrot.slane %v2694_v29, 4  ;;  %v6560_v61 = vpop.permute.xlu0 %3248 }
 0x10e   : > { %v2688_v55 = vrot.slane %v2687_v3, 4  ;;  %v2700_v62 = vshll.u32 %v6524_v16, 16  ;;  %3434 = vrot.lane.b32.xlu1 %v5006_v60, %s5492_s15  ;;  %v1073_v25 = vsel %vm5664_vm11, %v852_v31, %v1072_v46  ;;  %v3841_v21 = vsel %vm3833_vm15, %v6494_v4, %v6336_v18 }
 0x10f   : > { %v860_v5 = vor.u32 %v858_v30, %v857_v24  ;;  %v862_v10 = vrot.slane %v857_v24, 4  ;;  %1074 = vst [vmem:[#allocation2 + $0x84] sm:$0xf] %v1073_v25  ;;  %v2697_v51 = vor.u32 %v2696_v15, %v2692_v33  ;;  %v1509_v58 = vshrl.u32 %v1237_v8, 16 }
 0x110   : > { %v2693_v29 = vsel %vm5644_vm10, %v2688_v55, %v2692_v33  ;;  %v2702_v6 = vrot.slane %v2700_v62, 5  ;;  %v1512_v48 = vshll.u32 %v1237_v8, 16  ;;  %v1518_v18 = vshll.u32 %v6534_v20, 16  ;;  %v6576_v15 = vpop.permute.xlu1 %3170 }
 0x111   : > { %v861_v63 = vsel %vm5670_vm12, %v853_v53, %v860_v5  ;;  %v1077_v50 = vsel %vm5688_vm13, %v862_v10, %v1076_v37  ;;  %v2698_v4 = vrot.slane %v2697_v51, 4  ;;  %v1511_v41 = vrot.slane %v1509_v58, 4 }
 0x112   : > { %1075 = vst.msk [vmem:[#allocation2 + $0x88] sm:$0xf] %vm346_vm0, %v861_v63  ;;  %1078 = vst [vmem:[#allocation2 + $0x8c] sm:$0x1] %v1077_v50  ;;  %v1522_v23 = vshrl.u32 %v6534_v20, 16  ;;  %v1528_v30 = vshll.u32 %v6542_v43, 16  ;;  %3514 = vrot.lane.b32.xlu1 %v5022_v11, %s5490_s13  ;;  %v3872_v24 = vsel %vm3866_vm2, %v6485_v56, %v6207_v28  ;;  %v4033_v33 = vsel %vm4031_vm9, %v6498_v52, %v6236_v44 }
 0x113   : > { %v1514_v13 = vrot.slane %v1512_v48, 5  ;;  %v6557_v46 = vrot.slane %v1518_v18, 5  ;;  %v4925_v14 = vrot.slane %v2880_v59, 9  ;;  %v2994_v3 = vrot.slane %v6508_v36, 5 }
 0x114   : > { %v2703_v60 = vsel %vm5644_vm10, %v2698_v4, %v2702_v6  ;;  %v1524_v31 = vrot.slane %v1522_v23, 4  ;;  %v2997_v53 = vrot.slane %v6524_v16, 5  ;;  %vm4100_vm6 = vcmask 588800  }
 0x115   : > { %v5053_v37 = vcombine.low %v2693_v29, %v2703_v60  ;;  %v1515_v11 = vor.u32 %v1514_v13, %v1511_v41  ;;  %v2995_v8 = vsel %vm5609_vm4, %v4925_v14, %v2994_v3  ;;  %v2996_v55 = vrot.slane %v2994_v3, 4  ;;  %5312 = vmatprep.mubr.msk.bf16.mxu0 %vm4100_vm6, %v4033_v33  ;;  %v6607_v60 = vpop.permute.xlu1 %3250 }
 0x116   : > { %v1525_v36 = vor.u32 %v1524_v31, %v6557_v46  ;;  %v3874_v16 = vsel %vm3866_vm2, %v3841_v21, %v6267_v57  ;;  %v2458_v62 = vld [vmem:[#allocation2 + $0x84] sm:$0xf]  ;;  %v1530_v56 = vrot.slane %v1528_v30, 5  ;;  %v3969_v44 = vsel %vm3965_vm7, %v6502_v19, %v6257_v45  ;;  %v6594_v19 = vpop.permute.xlu0 %3344 }
 0x117   : > { %3688 = vrot.lane.b32.xlu0 %v5053_v37, %s5493_s16  ;;  %v1516_v28 = vrot.slane %v1515_v11, 4  ;;  %v2998_v5 = vsel %vm5609_vm4, %v2996_v55, %v2997_v53  ;;  %v2705_v52 = vshrl.u32 %v2458_v62, 16  ;;  %v2708_v25 = vshll.u32 %v2458_v62, 16  ;;  %v1239_v45 = vld [vmem:[#allocation2 + $0x84] sm:$0xf] }
 0x118   : > { %v1526_v10 = vrot.slane %v1525_v36, 4  ;;  %v5069_v57 = vcombine.low %v2995_v8, %v2998_v5  ;;  %v3907_v6 = vsel %vm3899_vm3, %v3874_v16, %v6433_v54  ;;  %v4002_v58 = vsel %vm3998_vm8, %v3969_v44, %v6373_v9  ;;  %v2881_v3 = vld [vmem:[#allocation2 + $0x84] sm:$0xe] }
 0x119   : > { %v2459_v21 = vld [vmem:[#allocation2 + $0x88] sm:$0xf]  ;;  %v2481_v29 = vld [vmem:[#allocation2 + $0x8c] sm:$0x1]  ;;  %v1521_v51 = vsel %vm5644_vm10, %v1516_v28, %v6557_v46  ;;  %v3905_v59 = vsel %vm3899_vm3, %v3872_v24, %v6404_v49  ;;  %v2707_v63 = vrot.slane %v2705_v52, 4  ;;  %v2710_v50 = vrot.slane %v2708_v25, 5 }
 0x11a   : > { %v2718_v48 = vshrl.u32 %v2459_v21, 16  ;;  %v5038_v18 = vcombine.low %v2458_v62, %v2459_v21  ;;  %v1240_v4 = vld [vmem:[#allocation2 + $0x88] sm:$0xf]  ;;  %v2714_v41 = vshll.u32 %v2459_v21, 16  ;;  %v2724_v23 = vshll.u32 %v2481_v29, 16  ;;  %v6610_v28 = vpop.permute.xlu0 %3424 }
 0x11b   : > { %3768 = vrot.lane.b32.xlu0 %v5069_v57, %s5491_s14  ;;  %v4035_v54 = vsel %vm4031_vm9, %v4002_v58, %v6261_v12  ;;  %v6599_v30 = vld [vmem:[#allocation2 + $0x8c] sm:$0x1]  ;;  %v3940_v9 = vsel %vm3932_vm5, %v3907_v6, %v6470_v27  ;;  %v2711_v49 = vor.u32 %v2710_v50, %v2707_v63  ;;  %v1531_v46 = vsel %vm5644_vm10, %v1526_v10, %v1530_v56  ;;  %v1663_v62 = vld [vmem:[#allocation2 + $0x84] sm:$0xe]  ;;  %v1662_v58 = vld [vmem:[#allocation2 + $0x78] sm:$0xe] }
 0x11c   : > { %3610 = vrot.lane.b32.xlu1 %v5038_v18, %s5489_s12  ;;  %v2720_v13 = vrot.slane %v2718_v48, 4  ;;  %5313 = vmatmul.mubr.msk.bf16.vlgmr.msra.gmra.mrb[0].mxu0 %vm4100_vm6, %v4035_v54  ;;  %v1533_v14 = vshrl.u32 %v1239_v45, 16  ;;  %v2716_v31 = vrot.slane %v2714_v41, 5  ;;  %v2726_v12 = vrot.slane %v2724_v23, 5  ;;  %v6616_v18 = vpop.permute.xlu1 %3346 }
 0x11d   : > { %v1536_v53 = vshll.u32 %v1239_v45, 16  ;;  %v1542_v24 = vshll.u32 %v1240_v4, 16  ;;  %v2712_v37 = vrot.slane %v2711_v49, 4  ;;  %v1546_v27 = vshrl.u32 %v1240_v4, 16 }
 0x11e   : > { %v1535_v11 = vrot.slane %v1533_v14, 4  ;;  %v1552_v8 = vshll.u32 %v6599_v30, 16  ;;  %v2721_v55 = vor.u32 %v2720_v13, %v2716_v31  ;;  %v4926_v16 = vrot.slane %v2881_v3, 9 }
 0x11f   : > { %v1538_v36 = vrot.slane %v1536_v53, 5  ;;  %v1544_v33 = vrot.slane %v1542_v24, 5  ;;  %v2717_v56 = vsel %vm5644_vm10, %v2712_v37, %v2716_v31  ;;  %v4959_v5 = vcombine.low %v1521_v51, %v1531_v46  ;;  %v5276_v46 = vld [vmem:[%s5618_s28 + $0x58] sm:$0xff]  }
 0x120   : > { %v1548_v44 = vrot.slane %v1546_v27, 4  ;;  %v3001_v52 = vrot.slane %v2459_v21, 5  ;;  %v2722_v25 = vrot.slane %v2721_v55, 4  ;;  %v1554_v57 = vrot.slane %v1552_v8, 5  ;;  %v6639_v27 = vld [vmem:[#allocation2 + $0x88] sm:$0xf] }
 0x121   : > { %v1539_v10 = vor.u32 %v1538_v36, %v1535_v11  ;;  %v3004_v6 = vrot.slane %v2481_v29, 5  ;;  %v4896_v48 = vrot.slane %v1663_v62, 9  ;;  %v1798_v23 = vrot.slane %v1240_v4, 5  ;;  %v1851_v11 = vld [vmem:[#allocation2 + $0x84] sm:$0xf] }
 0x122   : > { %v1549_v45 = vor.u32 %v1548_v44, %v1544_v33  ;;  %v3002_v63 = vsel %vm5609_vm4, %v4926_v16, %v3001_v52  ;;  %v3003_v50 = vrot.slane %v3001_v52, 4  ;;  %v2727_v41 = vsel %vm5644_vm10, %v2722_v25, %v2726_v12  ;;  %v6628_v12 = vpop.permute.xlu0 %3504  ;;  %v6650_v16 = vpop.permute.xlu1 %3426 }
 0x123   : > { %v1540_v51 = vrot.slane %v1539_v10, 4  ;;  %v1801_v21 = vrot.slane %v6599_v30, 5  ;;  %v5054_v54 = vcombine.low %v2717_v56, %v2727_v41  ;;  %v4895_v13 = vrot.slane %v1662_v58, 9  ;;  %v6660_v10 = vld [vmem:[#allocation2 + $0x8c] sm:$0x1] }
 0x124   : > { %v1550_v49 = vrot.slane %v1549_v45, 4  ;;  %v3005_v29 = vsel %vm5609_vm4, %v3003_v50, %v3004_v6  ;;  %v3938_v31 = vsel %vm3932_vm5, %v3905_v59, %v6424_v40  ;;  %v1800_v53 = vrot.slane %v1798_v23, 4 }
 0x125   : > { %v1545_v14 = vsel %vm5644_vm10, %v1540_v51, %v1544_v33  ;;  %v5070_v3 = vcombine.low %v3002_v63, %v3005_v29  ;;  %3690 = vrot.lane.b32.xlu1 %v5054_v54, %s5493_s16  ;;  %v6635_v30 = vsel %vm5609_vm4, %v4896_v48, %v1798_v23  ;;  %v1791_v24 = vrot.slane %v6534_v20, 5  ;;  %v2273_v51 = vld [vmem:[#allocation2 + $0x84] sm:$0xe]  ;;  %v5440_v29 = vld [vmem:[#allocation2 + $0x34] sm:$0xf] }
 0x126   : > { %v1555_v4 = vsel %vm5644_vm10, %v1550_v49, %v1554_v57  ;;  %v1794_v37 = vrot.slane %v6542_v43, 5  ;;  %v1802_v59 = vsel %vm5609_vm4, %v1800_v53, %v1801_v21  ;;  %v3973_v8 = vsel %vm3965_vm7, %v3940_v9, %v6505_v47  ;;  %v6663_v63 = vpop.permute.xlu0 %3600  ;;  %v5439_v49 = vld [vmem:[#allocation2 + $0x30] sm:$0xf] }
 0x127   : > { %v4960_v40 = vcombine.low %v1545_v14, %v1555_v4  ;;  %3770 = vrot.lane.b32.xlu0 %v5070_v3, %s5491_s14  ;;  %v5248_v55 = vunpack.c.l.bf16 %v5276_v46  ;;  %v1792_v36 = vsel %vm5609_vm4, %v4895_v13, %v1791_v24  ;;  %v1793_v33 = vrot.slane %v1791_v24, 4 }
 0x128   : > { %v3971_v20 = vsel %vm3965_vm7, %v3938_v31, %v6445_v22  ;;  %v5249_v43 = vunpack.c.h.bf16 %v5276_v46  ;;  %v2120_v56 = vshrl.u32 %v1851_v11, 16  ;;  %v2123_v44 = vshll.u32 %v1851_v11, 16  ;;  %v6676_v31 = vpop.permute.xlu1 %3506 }
 0x129   : > { %v497_v62 = vmul.f32 %v6461_v0, %v5248_v55  ;;  %v2133_v52 = vshrl.u32 %v6639_v27, 16  ;;  %3180 = vrot.lane.b32.xlu1 %v4959_v5, %s5487_s10  ;;  %v4976_v47 = vcombine.low %v6635_v30, %v1802_v59  ;;  %v1795_v9 = vsel %vm5609_vm4, %v1793_v33, %v1794_v37 }
 0x12a   : > { %v498_v25 = vmul.f32 %v6461_v0, %v5249_v43  ;;  %v4991_v22 = vcombine.low %v1851_v11, %v6639_v27  ;;  %v4975_v57 = vcombine.low %v1792_v36, %v1795_v9  ;;  %v2122_v58 = vrot.slane %v2120_v56, 4  ;;  %v5277_v36 = vld [vmem:[%s5618_s28 + $0x60] sm:$0xff]   ;;  %v6687_v33 = vpop.permute.xlu0 %3680 }
 0x12b   : > { %v535_v6 = vadd.f32 %v6477_v38, %v497_v62  ;;  %v2125_v45 = vrot.slane %v2123_v44, 5  ;;  %v4004_v50 = vsel %vm3998_vm8, %v3971_v20, %v6489_v26  ;;  %v2129_v48 = vshll.u32 %v6639_v27, 16  ;;  %v5442_v56 = vld [vmem:[#allocation2 + $0x40] sm:$0xf] }
 0x12c   : > { %v536_v5 = vadd.f32 %v6477_v38, %v498_v25  ;;  %v2135_v41 = vrot.slane %v2133_v52, 4  ;;  %3260 = vrot.lane.b32.xlu0 %v4975_v57, %s5486_s9  ;;  %v2139_v54 = vshll.u32 %v6660_v10, 16  ;;  %v4937_v13 = vcombine.low %v5439_v49, %v5440_v29 }
 0x12d   : > { %v567_v23 = vmax.f32 %v535_v6, 0.0  ;;  %v2126_v21 = vor.u32 %v2125_v45, %v2122_v58  ;;  %3182 = vrot.lane.b32.xlu1 %v4960_v40, %s5487_s10  ;;  %v4006_v14 = vsel %vm3998_vm8, %v3973_v8, %v6520_v35  ;;  %v2131_v26 = vrot.slane %v2129_v48, 5  ;;  %v3603_v58 = vpop.permute.xlu1 %3602 }
 0x12e   : > { %v568_v46 = vmax.f32 %v536_v5, 0.0  ;;  %v4037_v3 = vsel %vm4031_vm9, %v4004_v50, %v6514_v2  ;;  %v2141_v30 = vrot.slane %v2139_v54, 5  ;;  %v4911_v24 = vrot.slane %v2273_v51, 9  ;;  %v1083_v50 = vld [vmem:[#allocation2 + $0x98] sm:$0x1]  ;;  %v5278_v54 = vld [vmem:[%s5618_s28 + $0x68] sm:$0xff]  }
 0x12f   : > { %v5156_v53 = vpack.c.bf16 %v567_v23, %v567_v23  ;;  %v2127_v4 = vrot.slane %v2126_v21, 4  ;;  %5316 = vmatprep.mubr.msk.bf16.mxu0 %vm4100_vm6, %v4037_v3  ;;  %v2136_v11 = vor.u32 %v2135_v41, %v2131_v26  ;;  %v3799_v40 = vsel %vm3784_vm14, %v4937_v13, %v6546_v34  ;;  %v5441_v34 = vld [vmem:[#allocation2 + $0x3c] sm:$0xf] }
 0x130   : > { %v5157_v37 = vpack.c.bf16 %v568_v46, %v568_v46  ;;  %v2399_v35 = vrot.slane %v6639_v27, 5  ;;  %3356 = vrot.lane.b32.xlu0 %v4991_v22, %s5488_s11  ;;  %v2402_v55 = vrot.slane %v6660_v10, 5  ;;  %v4938_v27 = vcombine.low %v5441_v34, %v5442_v56  ;;  %v1079_v10 = vld [vmem:[#allocation2 + $0x90] sm:$0xf] }
 0x131   : > { %v864_v59 = vshrl.u32 %v5156_v53, 16  ;;  %v867_v8 = vshll.u32 %v5156_v53, 16  ;;  %v2132_v2 = vsel %vm5644_vm10, %v2127_v4, %v2131_v26  ;;  %3262 = vrot.lane.b32.xlu1 %v4976_v47, %s5486_s9  ;;  %v2137_v62 = vrot.slane %v2136_v11, 4 }
 0x132   : > { %v872_v20 = vshrl.u32 %v5157_v37, 16  ;;  %v875_v43 = vshll.u32 %v5157_v37, 16  ;;  %v2400_v52 = vsel %vm5609_vm4, %v4911_v24, %v2399_v35  ;;  %v2401_v9 = vrot.slane %v2399_v35, 4 }
 0x133   : > { %v866_v44 = vrot.slane %v864_v59, 7  ;;  %v4039_v25 = vsel %vm4031_vm9, %v4006_v14, %v6530_v32  ;;  %v2142_v47 = vsel %vm5644_vm10, %v2137_v62, %v2141_v30  ;;  %v5252_v57 = vunpack.c.l.bf16 %v5277_v36  ;;  %v3761_v14 = vpop.permute.xlu0 %3760 }
 0x134   : > { %v874_v22 = vrot.slane %v872_v20, 7  ;;  %v5253_v6 = vunpack.c.h.bf16 %v5277_v36  ;;  %5317 = vmatmul.mubr.msk.bf16.gmra.mrb[4].mxu0 %vm4100_vm6, %v4039_v25  ;;  %v5007_v48 = vcombine.low %v2132_v2, %v2142_v47  ;;  %v2403_v41 = vsel %vm5609_vm4, %v2401_v9, %v2402_v55  ;;  %v6746_v9 = vld [vmem:[#allocation2 + $0x48] sm:$0xf]  ;;  %v6748_v25 = vld [vmem:[#allocation2 + $0x4c] sm:$0xf] }
 0x135   : > { %v869_v45 = vor.u32 %v867_v8, %v866_v44  ;;  %v870_v5 = vrot.slane %v866_v44, 4  ;;  %v3802_v23 = vsel %vm3784_vm14, %v4938_v27, %v6576_v15  ;;  %v499_v21 = vmul.f32 %v6461_v0, %v5252_v57 }
 0x136   : > { %v877_v51 = vor.u32 %v875_v43, %v874_v22  ;;  %v879_v32 = vrot.slane %v874_v22, 4  ;;  %3436 = vrot.lane.b32.xlu0 %v5007_v48, %s5492_s15  ;;  %v5023_v29 = vcombine.low %v2400_v52, %v2403_v41  ;;  %v500_v13 = vmul.f32 %v6461_v0, %v5253_v6  ;;  %v6753_v6 = vld [vmem:[#allocation2 + $0x54] sm:$0xf] }
 0x137   : > { %v1080_v49 = vsel %vm5664_vm11, %v869_v45, %v1079_v10  ;;  %v3845_v46 = vsel %vm3833_vm15, %v3802_v23, %v6607_v60  ;;  %v537_v3 = vadd.f32 %v6477_v38, %v499_v21  ;;  %v3843_v53 = vsel %vm3833_vm15, %v3799_v40, %v6560_v61  ;;  %v3683_v40 = vpop.permute.xlu1 %3682 }
 0x138   : > { %v878_v26 = vsel %vm5670_vm12, %v870_v5, %v877_v51  ;;  %1081 = vst [vmem:[#allocation2 + $0x90] sm:$0xf] %v1080_v49  ;;  %v1084_v15 = vsel %vm5688_vm13, %v879_v32, %v1083_v50  ;;  %v538_v4 = vadd.f32 %v6477_v38, %v500_v13  ;;  %v3878_v60 = vsel %vm3866_vm2, %v3845_v46, %v6616_v18 }
 0x139   : > { %1082 = vst.msk [vmem:[#allocation2 + $0x94] sm:$0xf] %vm346_vm0, %v878_v26  ;;  %1085 = vst [vmem:[#allocation2 + $0x98] sm:$0x1] %v1084_v15  ;;  %v3876_v30 = vsel %vm3866_vm2, %v3843_v53, %v6594_v19  ;;  %v5256_v24 = vunpack.c.l.bf16 %v5278_v54  ;;  %v569_v37 = vmax.f32 %v537_v3, 0.0  ;;  %v3911_v11 = vsel %vm3899_vm3, %v3878_v60, %v6650_v16 }
 0x13a   : > { %v3909_v35 = vsel %vm3899_vm3, %v3876_v30, %v6610_v28  ;;  %v5257_v61 = vunpack.c.h.bf16 %v5278_v54  ;;  %3516 = vrot.lane.b32.xlu0 %v5023_v29, %s5490_s13  ;;  %v570_v59 = vmax.f32 %v538_v4, 0.0  ;;  %v3944_v8 = vsel %vm3932_vm5, %v3911_v11, %v6676_v31  ;;  %v3763_v31 = vpop.permute.xlu0 %3762  ;;  %v1086_v53 = vld [vmem:[#allocation2 + $0x9c] sm:$0xf] }
 0x13b   : > { %v3942_v18 = vsel %vm3932_vm5, %v3909_v35, %v6628_v12  ;;  %v501_v19 = vmul.f32 %v6461_v0, %v5256_v24  ;;  %v5158_v2 = vpack.c.bf16 %v569_v37, %v569_v37  ;;  %v3977_v55 = vsel %vm3965_vm7, %v3944_v8, %v3603_v58  ;;  %v6755_v58 = vld [vmem:[#allocation2 + $0x58] sm:$0xf] }
 0x13c   : > { %v3975_v16 = vsel %vm3965_vm7, %v3942_v18, %v6663_v63  ;;  %v502_v28 = vmul.f32 %v6461_v0, %v5257_v61  ;;  %v5159_v36 = vpack.c.bf16 %v570_v59, %v570_v59  ;;  %v4010_v20 = vsel %vm3998_vm8, %v3977_v55, %v3683_v40  ;;  %v6771_v55 = vpop.permute.xlu1 %3172 }
 0x13d   : > { %v4008_v43 = vsel %vm3998_vm8, %v3975_v16, %v6687_v33  ;;  %v881_v62 = vshrl.u32 %v5158_v2, 16  ;;  %v884_v34 = vshll.u32 %v5158_v2, 16  ;;  %v6740_v12 = vadd.f32 %v6477_v38, %v501_v19  ;;  %v1090_v2 = vld [vmem:[#allocation2 + $0xa4] sm:$0x1] }
 0x13e   : > { %v4041_v56 = vsel %vm4031_vm9, %v4008_v43, %v3761_v14  ;;  %v889_v52 = vshrl.u32 %v5159_v36, 16  ;;  %v892_v63 = vshll.u32 %v5159_v36, 16  ;;  %v6744_v0 = vadd.f32 %v6477_v38, %v502_v28 }
 0x13f   : > { %v1853_v27 = vld [vmem:[#allocation2 + $0x90] sm:$0xf]  ;;  %v4939_v33 = vcombine.low %v6746_v9, %v6748_v25  ;;  %5320 = vmatprep.mubr.msk.bf16.mxu0 %vm4100_vm6, %v4041_v56  ;;  %v4940_v38 = vcombine.low %v6753_v6, %v6755_v58  ;;  %v4043_v45 = vsel %vm4031_vm9, %v4010_v20, %v3763_v31  ;;  %v883_v3 = vrot.slane %v881_v62, 7  ;;  %v6923_v9 = vld [vmem:[%s7521_s2] ss:$0 sm:$0xff] }
 0x140   : > { %v2274_v44 = vld [vmem:[#allocation2 + $0x90] sm:$0xe]  ;;  %v1854_v22 = vld [vmem:[#allocation2 + $0x94] sm:$0xf]  ;;  %v2144_v10 = vshrl.u32 %v1853_v27, 16  ;;  %v2147_v47 = vshll.u32 %v1853_v27, 16  ;;  %5321 = vmatmul.mubr.msk.bf16.gmra.mrb[8].mxu0 %vm4100_vm6, %v4043_v45 }
 0x141   : > { %v1874_v57 = vld [vmem:[#allocation2 + $0x98] sm:$0x1]  ;;  %v2157_v5 = vshrl.u32 %v1854_v22, 16  ;;  %v4992_v50 = vcombine.low %v1853_v27, %v1854_v22  ;;  %v2153_v48 = vshll.u32 %v1854_v22, 16  ;;  %v4912_v23 = vrot.slane %v2274_v44, 9 }
 0x142   : > { %v2163_v41 = vshll.u32 %v1874_v57, 16  ;;  %v2146_v51 = vrot.slane %v2144_v10, 4  ;;  %v2149_v32 = vrot.slane %v2147_v47, 5  ;;  %v2406_v21 = vrot.slane %v1854_v22, 5  ;;  %v2460_v54 = vld [vmem:[#allocation2 + $0x90] sm:$0xf] }
 0x143   : > { %3358 = vrot.lane.b32.xlu1 %v4992_v50, %s5488_s11  ;;  %v2155_v49 = vrot.slane %v2153_v48, 5  ;;  %v2159_v29 = vrot.slane %v2157_v5, 4  ;;  %v2409_v46 = vrot.slane %v1874_v57, 5  ;;  %v891_v60 = vrot.slane %v889_v52, 7  ;;  %v6766_v30 = vld [vmem:[#allocation2 + $0x94] sm:$0xf]  ;;  %v6787_v52 = vpop.permute.xlu0 %3252 }
 0x144   : > { %v2165_v13 = vrot.slane %v2163_v41, 5  ;;  %v2150_v14 = vor.u32 %v2149_v32, %v2146_v51  ;;  %v6764_v26 = vsel %vm5609_vm4, %v4912_v23, %v2406_v21  ;;  %v2408_v15 = vrot.slane %v2406_v21, 4  ;;  %v6778_v43 = vld [vmem:[#allocation2 + $0x98] sm:$0x1]  ;;  %v1241_v31 = vld [vmem:[#allocation2 + $0x90] sm:$0xf] }
 0x145   : > { %v2160_v4 = vor.u32 %v2159_v29, %v2155_v49  ;;  %v2729_v24 = vshrl.u32 %v2460_v54, 16  ;;  %v2732_v37 = vshll.u32 %v2460_v54, 16  ;;  %v886_v61 = vor.u32 %v884_v34, %v883_v3  ;;  %v6785_v44 = vld [vmem:[#allocation2 + $0x94] sm:$0xf]  ;;  %v6791_v57 = vld [vmem:[#allocation2 + $0x98] sm:$0x1] }
 0x146   : > { %v2151_v11 = vrot.slane %v2150_v14, 4  ;;  %v2410_v35 = vsel %vm5609_vm4, %v2408_v15, %v2409_v46  ;;  %v887_v40 = vrot.slane %v883_v3, 4  ;;  %v894_v18 = vor.u32 %v892_v63, %v891_v60  ;;  %v2882_v21 = vld [vmem:[#allocation2 + $0x90] sm:$0xe]  ;;  %v6801_v46 = vpop.permute.xlu1 %3174 }
 0x147   : > { %v2161_v59 = vrot.slane %v2160_v4, 4  ;;  %v5024_v8 = vcombine.low %v6764_v26, %v2410_v35  ;;  %v2731_v19 = vrot.slane %v2729_v24, 4  ;;  %v1087_v28 = vsel %vm5664_vm11, %v886_v61, %v1086_v53  ;;  %v6805_v53 = vld [vmem:[#allocation2 + $0x90] sm:$0xe] }
 0x148   : > { %v2156_v16 = vsel %vm5644_vm10, %v2151_v11, %v2155_v49  ;;  %v2734_v36 = vrot.slane %v2732_v37, 5  ;;  %v2742_v20 = vshrl.u32 %v6766_v30, 16  ;;  %v895_v34 = vsel %vm5670_vm12, %v887_v40, %v894_v18  ;;  %1088 = vst [vmem:[#allocation2 + $0x9c] sm:$0xf] %v1087_v28  ;;  %v6808_v11 = vpop.permute.xlu0 %3348 }
 0x149   : > { %v2166_v62 = vsel %vm5644_vm10, %v2161_v59, %v2165_v13  ;;  %v5039_v56 = vcombine.low %v2460_v54, %v6766_v30  ;;  %v896_v27 = vrot.slane %v891_v60, 4  ;;  %1089 = vst.msk [vmem:[#allocation2 + $0xa0] sm:$0xf] %vm346_vm0, %v895_v34  ;;  %v2738_v10 = vshll.u32 %v6766_v30, 16 }
 0x14a   : > { %v5008_v63 = vcombine.low %v2156_v16, %v2166_v62  ;;  %v2735_v22 = vor.u32 %v2734_v36, %v2731_v19  ;;  %v2744_v47 = vrot.slane %v2742_v20, 4  ;;  %v2748_v5 = vshll.u32 %v6778_v43, 16 }
 0x14b   : > { %3612 = vrot.lane.b32.xlu0 %v5039_v56, %s5489_s12  ;;  %v1091_v45 = vsel %vm5688_vm13, %v896_v27, %v1090_v2  ;;  %v1557_v50 = vshrl.u32 %v1241_v31, 16  ;;  %v1560_v48 = vshll.u32 %v1241_v31, 16  ;;  %v2740_v51 = vrot.slane %v2738_v10, 5 }
 0x14c   : > { %3438 = vrot.lane.b32.xlu1 %v5008_v63, %s5492_s15  ;;  %1092 = vst [vmem:[#allocation2 + $0xa4] sm:$0x1] %v1091_v45  ;;  %v2736_v41 = vrot.slane %v2735_v22, 4  ;;  %v1566_v32 = vshll.u32 %v6785_v44, 16  ;;  %v1570_v23 = vshrl.u32 %v6785_v44, 16  ;;  %v2750_v54 = vrot.slane %v2748_v5, 5  ;;  %v6825_v22 = vpop.permute.xlu1 %3254 }
 0x14d   : > { %v1559_v49 = vrot.slane %v1557_v50, 4  ;;  %v1562_v29 = vrot.slane %v1560_v48, 5  ;;  %v1576_v13 = vshll.u32 %v6791_v57, 16  ;;  %v2745_v26 = vor.u32 %v2744_v47, %v2740_v51 }
 0x14e   : > { %v2741_v14 = vsel %vm5644_vm10, %v2736_v41, %v2740_v51  ;;  %v1568_v15 = vrot.slane %v1566_v32, 5  ;;  %v1572_v3 = vrot.slane %v1570_v23, 4  ;;  %v1808_v24 = vrot.slane %v6791_v57, 5  ;;  %v6832_v23 = vpop.permute.xlu0 %3428 }
 0x14f   : > { %v1563_v4 = vor.u32 %v1562_v29, %v1559_v49  ;;  %v1578_v60 = vrot.slane %v1576_v13, 5  ;;  %v4927_v37 = vrot.slane %v2882_v21, 9  ;;  %v2462_v35 = vld [vmem:[#allocation2 + $0x9c] sm:$0xf]  ;;  %v2746_v61 = vrot.slane %v2745_v26, 4 }
 0x150   : > { %3518 = vrot.lane.b32.xlu1 %v5024_v8, %s5490_s13  ;;  %v1573_v40 = vor.u32 %v1572_v3, %v1568_v15  ;;  %v3008_v59 = vrot.slane %v6766_v30, 5  ;;  %v3011_v18 = vrot.slane %v6778_v43, 5  ;;  %v6813_v19 = vld [vmem:[#allocation2 + $0xa0] sm:$0xf]  ;;  %v2753_v2 = vshrl.u32 %v2462_v35, 16 }
 0x151   : > { %v2756_v16 = vshll.u32 %v2462_v35, 16  ;;  %v1564_v28 = vrot.slane %v1563_v4, 4  ;;  %v4897_v36 = vrot.slane %v6805_v53, 9  ;;  %v2766_v20 = vshrl.u32 %v6813_v19, 16  ;;  %v1243_v34 = vld [vmem:[#allocation2 + $0x9c] sm:$0xf] }
 0x152   : > { %v5040_v31 = vcombine.low %v2462_v35, %v6813_v19  ;;  %v2762_v8 = vshll.u32 %v6813_v19, 16  ;;  %v2751_v62 = vsel %vm5644_vm10, %v2746_v61, %v2750_v54  ;;  %v2755_v30 = vrot.slane %v2753_v2, 4  ;;  %v1244_v51 = vld [vmem:[#allocation2 + $0xa0] sm:$0xf]  ;;  %v2883_v4 = vld [vmem:[#allocation2 + $0x9c] sm:$0xe] }
 0x153   : > { %v2758_v56 = vrot.slane %v2756_v16, 5  ;;  %v6821_v43 = vld [vmem:[#allocation2 + $0xa4] sm:$0x1]  ;;  %v5055_v27 = vcombine.low %v2741_v14, %v2751_v62  ;;  %v1569_v63 = vsel %vm5644_vm10, %v1564_v28, %v1568_v15  ;;  %v2768_v47 = vrot.slane %v2766_v20, 4  ;;  %v1665_v28 = vld [vmem:[#allocation2 + $0x9c] sm:$0xe]  ;;  %v6840_v20 = vpop.permute.xlu1 %3350 }
 0x154   : > { %3614 = vrot.lane.b32.xlu1 %v5040_v31, %s5489_s12  ;;  %v2764_v10 = vrot.slane %v2762_v8, 5  ;;  %v2772_v45 = vshll.u32 %v6821_v43, 16  ;;  %v1574_v5 = vrot.slane %v1573_v40, 4  ;;  %v3009_v48 = vsel %vm5609_vm4, %v4927_v37, %v3008_v59  ;;  %v1262_v29 = vld [vmem:[#allocation2 + $0xa4] sm:$0x1] }
 0x155   : > { %v2759_v50 = vor.u32 %v2758_v56, %v2755_v30  ;;  %3692 = vrot.lane.b32.xlu0 %v5055_v27, %s5493_s16  ;;  %v3010_v41 = vrot.slane %v3008_v59, 4  ;;  %v1581_v32 = vshrl.u32 %v1243_v34, 16  ;;  %v1584_v13 = vshll.u32 %v1243_v34, 16 }
 0x156   : > { %v2769_v21 = vor.u32 %v2768_v47, %v2764_v10  ;;  %v2774_v54 = vrot.slane %v2772_v45, 5  ;;  %v1579_v49 = vsel %vm5644_vm10, %v1574_v5, %v1578_v60  ;;  %v1590_v40 = vshll.u32 %v1244_v51, 16 }
 0x157   : > { %v2760_v14 = vrot.slane %v2759_v50, 4  ;;  %v4961_v26 = vcombine.low %v1569_v63, %v1579_v49  ;;  %v3012_v15 = vsel %vm5609_vm4, %v3010_v41, %v3011_v18  ;;  %v1583_v3 = vrot.slane %v1581_v32, 4  ;;  %v6847_v63 = vld [vmem:[%s5618_s28 + $0x70] sm:$0xff]  }
 0x158   : > { %v2770_v37 = vrot.slane %v2769_v21, 4  ;;  %v5071_v35 = vcombine.low %v3009_v48, %v3012_v15  ;;  %v1586_v61 = vrot.slane %v1584_v13, 5  ;;  %v1594_v2 = vshrl.u32 %v1244_v51, 16  ;;  %v6868_v15 = vpop.permute.xlu1 %3430 }
 0x159   : > { %v2765_v59 = vsel %vm5644_vm10, %v2760_v14, %v2764_v10  ;;  %v1600_v16 = vshll.u32 %v1262_v29, 16  ;;  %v1815_v60 = vrot.slane %v1262_v29, 5  ;;  %v1592_v8 = vrot.slane %v1590_v40, 5  ;;  %v6849_v10 = vpop.permute.xlu0 %3508  ;;  %v6859_v29 = vld [vmem:[#allocation2 + $0x9c] sm:$0xf] }
 0x15a   : > { %v2775_v31 = vsel %vm5644_vm10, %v2770_v37, %v2774_v54  ;;  %3772 = vrot.lane.b32.xlu0 %v5071_v35, %s5491_s14  ;;  %v1587_v18 = vor.u32 %v1586_v61, %v1583_v3  ;;  %v4928_v62 = vrot.slane %v2883_v4, 9  ;;  %v1596_v30 = vrot.slane %v1594_v2, 4  ;;  %v6873_v35 = vld [vmem:[#allocation2 + $0xa0] sm:$0xf] }
 0x15b   : > { %v5056_v34 = vcombine.low %v2765_v59, %v2775_v31  ;;  %v1602_v56 = vrot.slane %v1600_v16, 5  ;;  %v3015_v27 = vrot.slane %v6813_v19, 5  ;;  %v3018_v45 = vrot.slane %v6821_v43, 5 }
 0x15c   : > { %v1588_v47 = vrot.slane %v1587_v18, 4  ;;  %v4898_v5 = vrot.slane %v1665_v28, 9  ;;  %v1812_v50 = vrot.slane %v1244_v51, 5  ;;  %v1597_v48 = vor.u32 %v1596_v30, %v1592_v8  ;;  %v1875_v28 = vld [vmem:[#allocation2 + $0xa4] sm:$0x1] }
 0x15d   : > { %3694 = vrot.lane.b32.xlu1 %v5056_v34, %s5493_s16  ;;  %v3016_v41 = vsel %vm5609_vm4, %v4928_v62, %v3015_v27  ;;  %v3017_v32 = vrot.slane %v3015_v27, 4  ;;  %v1805_v21 = vrot.slane %v6785_v44, 5  ;;  %v571_v49 = vmax.f32 %v6740_v12, 0.0  ;;  %v6885_v59 = vpop.permute.xlu0 %3604  ;;  %v2275_v30 = vld [vmem:[#allocation2 + $0x9c] sm:$0xe] }
 0x15e   : > { %v1593_v19 = vsel %vm5644_vm10, %v1588_v47, %v1592_v8  ;;  %v1814_v54 = vrot.slane %v1812_v50, 4  ;;  %v5260_v43 = vunpack.c.l.bf16 %v6847_v63  ;;  %v1598_v51 = vrot.slane %v1597_v48, 4 }
 0x15f   : > { %v3019_v13 = vsel %vm5609_vm4, %v3017_v32, %v3018_v45  ;;  %v1806_v14 = vsel %vm5609_vm4, %v4897_v36, %v1805_v21  ;;  %v1807_v44 = vrot.slane %v1805_v21, 4  ;;  %v1813_v12 = vsel %vm5609_vm4, %v4898_v5, %v1812_v50  ;;  %v3511_v50 = vpop.permute.xlu1 %3510 }
 0x160   : > { %v5072_v3 = vcombine.low %v3016_v41, %v3019_v13  ;;  %v572_v4 = vmax.f32 %v6744_v0, 0.0  ;;  %v5160_v37 = vpack.c.bf16 %v571_v49, %v571_v49  ;;  %v1603_v53 = vsel %vm5644_vm10, %v1598_v51, %v1602_v56  ;;  %v1093_v56 = vld [vmem:[#allocation2 + $0xa8] sm:$0xf] }
 0x161   : > { %3184 = vrot.lane.b32.xlu1 %v4961_v26, %s5487_s10  ;;  %v1816_v36 = vsel %vm5609_vm4, %v1814_v54, %v1815_v60  ;;  %v1809_v61 = vsel %vm5609_vm4, %v1807_v44, %v1808_v24  ;;  %v2168_v40 = vshrl.u32 %v6859_v29, 16  ;;  %v4962_v0 = vcombine.low %v1593_v19, %v1603_v53  ;;  %v1097_v19 = vld [vmem:[#allocation2 + $0xb0] sm:$0x1] }
 0x162   : > { %3774 = vrot.lane.b32.xlu0 %v5072_v3, %s5491_s14  ;;  %v4977_v2 = vcombine.low %v1806_v14, %v1809_v61  ;;  %v5161_v26 = vpack.c.bf16 %v572_v4, %v572_v4  ;;  %v898_v16 = vshrl.u32 %v5160_v37, 16  ;;  %v901_v31 = vshll.u32 %v5160_v37, 16  ;;  %v6896_v14 = vpop.permute.xlu0 %3684 }
 0x163   : > { %v2170_v18 = vrot.slane %v2168_v40, 4  ;;  %v2171_v60 = vshll.u32 %v6859_v29, 16  ;;  %v2181_v57 = vshrl.u32 %v6873_v35, 16  ;;  %v4978_v8 = vcombine.low %v1813_v12, %v1816_v36 }
 0x164   : > { %v900_v62 = vrot.slane %v898_v16, 7  ;;  %v906_v24 = vshrl.u32 %v5161_v26, 16  ;;  %v909_v34 = vshll.u32 %v5161_v26, 16  ;;  %v2177_v47 = vshll.u32 %v6873_v35, 16 }
 0x165   : > { %3186 = vrot.lane.b32.xlu1 %v4962_v0, %s5487_s10  ;;  %v2173_v27 = vrot.slane %v2171_v60, 5  ;;  %v2183_v45 = vrot.slane %v2181_v57, 4  ;;  %v2187_v5 = vshll.u32 %v1875_v28, 16  ;;  %v4993_v21 = vcombine.low %v6859_v29, %v6873_v35 }
 0x166   : > { %3264 = vrot.lane.b32.xlu0 %v4977_v2, %s5486_s9  ;;  %v903_v48 = vor.u32 %v901_v31, %v900_v62  ;;  %v904_v41 = vrot.slane %v900_v62, 4  ;;  %v908_v32 = vrot.slane %v906_v24, 7  ;;  %v2179_v49 = vrot.slane %v2177_v47, 5  ;;  %v6950_v60 = vpop.permute.xlu0 %3764 }
 0x167   : > { %v2174_v54 = vor.u32 %v2173_v27, %v2170_v18  ;;  %v4913_v51 = vrot.slane %v2275_v30, 9  ;;  %v2413_v13 = vrot.slane %v6873_v35, 5  ;;  %v2416_v4 = vrot.slane %v1875_v28, 5 }
 0x168   : > { %v911_v44 = vor.u32 %v909_v34, %v908_v32  ;;  %v1094_v3 = vsel %vm5664_vm11, %v903_v48, %v1093_v56  ;;  %v913_v12 = vrot.slane %v908_v32, 4  ;;  %v2184_v53 = vor.u32 %v2183_v45, %v2179_v49 }
 0x169   : > { %3266 = vrot.lane.b32.xlu1 %v4978_v8, %s5486_s9  ;;  %1095 = vst [vmem:[#allocation2 + $0xa8] sm:$0xf] %v1094_v3  ;;  %v2175_v37 = vrot.slane %v2174_v54, 4  ;;  %v2189_v29 = vrot.slane %v2187_v5, 5  ;;  %v2415_v36 = vrot.slane %v2413_v13, 4  ;;  %v3805_v40 = vsel %vm3784_vm14, %v4939_v33, %v6771_v55  ;;  %v3607_v33 = vpop.permute.xlu1 %3606 }
 0x16a   : > { %v912_v61 = vsel %vm5670_vm12, %v904_v41, %v911_v44  ;;  %3360 = vrot.lane.b32.xlu0 %v4993_v21, %s5488_s11  ;;  %v1098_v35 = vsel %vm5688_vm13, %v913_v12, %v1097_v19  ;;  %v5261_v0 = vunpack.c.h.bf16 %v6847_v63  ;;  %v2185_v26 = vrot.slane %v2184_v53, 4  ;;  %v6943_v63 = vld [vmem:[%s7522_s3] ss:$0 sm:$0xff]  ;;  %v6977_v3 = vpop.permute.xlu0 %3766 }
 0x16b   : > { %1096 = vst.msk [vmem:[#allocation2 + $0xac] sm:$0xf] %vm346_vm0, %v912_v61  ;;  %1099 = vst [vmem:[#allocation2 + $0xb0] sm:$0x1] %v1098_v35  ;;  %v2180_v2 = vsel %vm5644_vm10, %v2175_v37, %v2179_v49  ;;  %v3808_v16 = vsel %vm3784_vm14, %v4940_v38, %v6801_v46  ;;  %v503_v25 = vmul.f32 %v6923_v9, %v5260_v43  ;;  %v6936_v38 = vld [vmem:[%s5618_s28 + $0x78] sm:$0xff]  }
 0x16c   : > { %v2414_v55 = vsel %vm5609_vm4, %v4913_v51, %v2413_v13  ;;  %v2417_v28 = vsel %vm5609_vm4, %v2415_v36, %v2416_v4  ;;  %v504_v6 = vmul.f32 %v6923_v9, %v5261_v0  ;;  %v3849_v58 = vsel %vm3833_vm15, %v3808_v16, %v6825_v22 }
 0x16d   : > { %v2190_v46 = vsel %vm5644_vm10, %v2185_v26, %v2189_v29  ;;  %v541_v43 = vadd.f32 %v6943_v63, %v503_v25  ;;  %v3847_v31 = vsel %vm3833_vm15, %v3805_v40, %v6787_v52  ;;  %v3882_v18 = vsel %vm3866_vm2, %v3849_v58, %v6840_v20 }
 0x16e   : > { %v5009_v22 = vcombine.low %v2180_v2, %v2190_v46  ;;  %v542_v57 = vadd.f32 %v6943_v63, %v504_v6  ;;  %v3880_v8 = vsel %vm3866_vm2, %v3847_v31, %v6808_v11  ;;  %v3915_v62 = vsel %vm3899_vm3, %v3882_v18, %v6868_v15  ;;  %v1100_v46 = vld [vmem:[#allocation2 + $0xb4] sm:$0xf] }
 0x16f   : > { %v573_v24 = vmax.f32 %v541_v43, 0.0  ;;  %v3913_v34 = vsel %vm3899_vm3, %v3880_v8, %v6832_v23  ;;  %v3948_v52 = vsel %vm3932_vm5, %v3915_v62, %v3511_v50  ;;  %v5264_v30 = vunpack.c.l.bf16 %v6936_v38  ;;  %v6971_v50 = vpop.permute.xlu1 %3686 }
 0x170   : > { %v1857_v20 = vld [vmem:[#allocation2 + $0xa8] sm:$0xf]  ;;  %3440 = vrot.lane.b32.xlu0 %v5009_v22, %s5492_s15  ;;  %v5025_v27 = vcombine.low %v2414_v55, %v2417_v28  ;;  %v574_v47 = vmax.f32 %v542_v57, 0.0  ;;  %v3946_v11 = vsel %vm3932_vm5, %v3913_v34, %v6849_v10  ;;  %v6965_v45 = vsel %vm3965_vm7, %v3948_v52, %v3607_v33 }
 0x171   : > { %v2276_v56 = vld [vmem:[#allocation2 + $0xa8] sm:$0xe]  ;;  %v2192_v15 = vshrl.u32 %v1857_v20, 16  ;;  %v2195_v5 = vshll.u32 %v1857_v20, 16  ;;  %v5162_v48 = vpack.c.bf16 %v573_v24, %v573_v24  ;;  %v6969_v23 = vsel %vm3965_vm7, %v3946_v11, %v6885_v59  ;;  %v6994_v24 = vpop.permute.xlu0 %3256 }
 0x172   : > { %v1858_v41 = vld [vmem:[#allocation2 + $0xac] sm:$0xf]  ;;  %v1876_v32 = vld [vmem:[#allocation2 + $0xb0] sm:$0x1]  ;;  %v4914_v21 = vrot.slane %v2276_v56, 9  ;;  %v5163_v19 = vpack.c.bf16 %v574_v47, %v574_v47  ;;  %v5265_v54 = vunpack.c.h.bf16 %v6936_v38  ;;  %v6975_v10 = vmul.f32 %v6923_v9, %v5264_v30 }
 0x173   : > { %v2194_v49 = vrot.slane %v2192_v15, 4  ;;  %v2197_v51 = vrot.slane %v2195_v5, 5  ;;  %v2205_v13 = vshrl.u32 %v1858_v41, 16  ;;  %v4994_v44 = vcombine.low %v1857_v20, %v1858_v41  ;;  %v2464_v35 = vld [vmem:[#allocation2 + $0xa8] sm:$0xf]  ;;  %v6985_v28 = vpop.permute.xlu1 %3176 }
 0x174   : > { %v2201_v12 = vshll.u32 %v1858_v41, 16  ;;  %v2211_v59 = vshll.u32 %v1876_v32, 16  ;;  %v2420_v4 = vrot.slane %v1858_v41, 5  ;;  %v2423_v37 = vrot.slane %v1876_v32, 5  ;;  %3520 = vrot.lane.b32.xlu0 %v5025_v27, %s5490_s13  ;;  %v6989_v43 = vld [vmem:[#allocation2 + $0xac] sm:$0xf] }
 0x175   : > { %3362 = vrot.lane.b32.xlu1 %v4994_v44, %s5488_s11  ;;  %v2198_v53 = vor.u32 %v2197_v51, %v2194_v49  ;;  %v2207_v29 = vrot.slane %v2205_v13, 4  ;;  %v915_v36 = vshrl.u32 %v5162_v48, 16  ;;  %v918_v61 = vshll.u32 %v5162_v48, 16  ;;  %v6996_v56 = vld [vmem:[#allocation2 + $0xb0] sm:$0x1] }
 0x176   : > { %v2203_v40 = vrot.slane %v2201_v12, 5  ;;  %v2213_v0 = vrot.slane %v2211_v59, 5  ;;  %v6983_v2 = vsel %vm5609_vm4, %v4914_v21, %v2420_v4  ;;  %v2422_v26 = vrot.slane %v2420_v4, 4  ;;  %v1104_v15 = vld [vmem:[#allocation2 + $0xbc] sm:$0x1] }
 0x177   : > { %v2199_v16 = vrot.slane %v2198_v53, 4  ;;  %v917_v25 = vrot.slane %v915_v36, 7  ;;  %v923_v33 = vshrl.u32 %v5163_v19, 16  ;;  %v926_v55 = vshll.u32 %v5163_v19, 16  ;;  %v7003_v48 = vld [vmem:[#allocation2 + $0xa8] sm:$0xf]  ;;  %v7013_v4 = vpop.permute.xlu1 %3178 }
 0x178   : > { %v2208_v6 = vor.u32 %v2207_v29, %v2203_v40  ;;  %v2424_v58 = vsel %vm5609_vm4, %v2422_v26, %v2423_v37  ;;  %v2777_v31 = vshrl.u32 %v2464_v35, 16  ;;  %v2780_v18 = vshll.u32 %v2464_v35, 16  ;;  %v7007_v49 = vld [vmem:[#allocation2 + $0xac] sm:$0xf]  ;;  %v7011_v59 = vld [vmem:[#allocation2 + $0xb0] sm:$0x1]  ;;  %v7024_v26 = vpop.permute.xlu0 %3352 }
 0x179   : > { %v2204_v22 = vsel %vm5644_vm10, %v2199_v16, %v2203_v40  ;;  %v5026_v57 = vcombine.low %v6983_v2, %v2424_v58  ;;  %v920_v8 = vor.u32 %v918_v61, %v917_v25  ;;  %v921_v62 = vrot.slane %v917_v25, 4  ;;  %v2884_v2 = vld [vmem:[#allocation2 + $0xa8] sm:$0xe] }
 0x17a   : > { %v2209_v34 = vrot.slane %v2208_v6, 4  ;;  %v925_v52 = vrot.slane %v923_v33, 7  ;;  %v2779_v30 = vrot.slane %v2777_v31, 4  ;;  %v2782_v20 = vrot.slane %v2780_v18, 5 }
 0x17b   : > { %v1101_v27 = vsel %vm5664_vm11, %v920_v8, %v1100_v46  ;;  %v2790_v47 = vshrl.u32 %v6989_v43, 16  ;;  %v5041_v11 = vcombine.low %v2464_v35, %v6989_v43  ;;  %v2786_v5 = vshll.u32 %v6989_v43, 16 }
 0x17c   : > { %v2214_v41 = vsel %vm5644_vm10, %v2209_v34, %v2213_v0  ;;  %v928_v32 = vor.u32 %v926_v55, %v925_v52  ;;  %1102 = vst [vmem:[#allocation2 + $0xb4] sm:$0xf] %v1101_v27  ;;  %v930_v21 = vrot.slane %v925_v52, 4  ;;  %v2783_v19 = vor.u32 %v2782_v20, %v2779_v30  ;;  %v7049_v20 = vpop.permute.xlu1 %3258 }
 0x17d   : > { %v5010_v51 = vcombine.low %v2204_v22, %v2214_v41  ;;  %3616 = vrot.lane.b32.xlu0 %v5041_v11, %s5489_s12  ;;  %v2788_v13 = vrot.slane %v2786_v5, 5  ;;  %v2792_v44 = vrot.slane %v2790_v47, 4  ;;  %v2796_v12 = vshll.u32 %v6996_v56, 16  ;;  %v7059_v5 = vpop.permute.xlu0 %3432 }
 0x17e   : > { %v929_v37 = vsel %vm5670_vm12, %v921_v62, %v928_v32  ;;  %v1105_v53 = vsel %vm5688_vm13, %v930_v21, %v1104_v15  ;;  %v2784_v29 = vrot.slane %v2783_v19, 4  ;;  %v1605_v36 = vshrl.u32 %v7003_v48, 16 }
 0x17f   : > { %3442 = vrot.lane.b32.xlu1 %v5010_v51, %s5492_s15  ;;  %1103 = vst.msk [vmem:[#allocation2 + $0xb8] sm:$0xf] %vm346_vm0, %v929_v37  ;;  %1106 = vst [vmem:[#allocation2 + $0xbc] sm:$0x1] %v1105_v53  ;;  %v2793_v61 = vor.u32 %v2792_v44, %v2788_v13  ;;  %v2798_v35 = vrot.slane %v2796_v12, 5  ;;  %v1608_v40 = vshll.u32 %v7003_v48, 16  ;;  %v506_v55 = vmul.f32 %v6923_v9, %v5265_v54 }
 0x180   : > { %v1614_v0 = vshll.u32 %v7007_v49, 16  ;;  %v1607_v16 = vrot.slane %v1605_v36, 4  ;;  %v1618_v25 = vshrl.u32 %v7007_v49, 16  ;;  %v1624_v33 = vshll.u32 %v7011_v59, 16 }
 0x181   : > { %v2789_v6 = vsel %vm5644_vm10, %v2784_v29, %v2788_v13  ;;  %v2794_v58 = vrot.slane %v2793_v61, 4  ;;  %v1610_v46 = vrot.slane %v1608_v40, 5  ;;  %v4929_v22 = vrot.slane %v2884_v2, 9 }
 0x182   : > { %v7033_v31 = vrot.slane %v1614_v0, 5  ;;  %v1620_v18 = vrot.slane %v1618_v25, 4  ;;  %v3022_v8 = vrot.slane %v6989_v43, 5  ;;  %v7039_v62 = vsel %vm3998_vm8, %v6965_v45, %v6971_v50  ;;  %v7081_v25 = vpop.permute.xlu1 %3354 }
 0x183   : > { %3522 = vrot.lane.b32.xlu1 %v5026_v57, %s5490_s13  ;;  %v2466_v38 = vld [vmem:[#allocation2 + $0xb4] sm:$0xf]  ;;  %v2799_v9 = vsel %vm5644_vm10, %v2794_v58, %v2798_v35  ;;  %v1611_v54 = vor.u32 %v1610_v46, %v1607_v16  ;;  %v7044_v34 = vrot.slane %v1624_v33, 5  ;;  %v3025_v52 = vrot.slane %v6996_v56, 5 }
 0x184   : > { %v7047_v30 = vld [vmem:[#allocation2 + $0xb4] sm:$0xf]  ;;  %v2801_v43 = vshrl.u32 %v2466_v38, 16  ;;  %v2804_v27 = vshll.u32 %v2466_v38, 16  ;;  %v5057_v47 = vcombine.low %v2789_v6, %v2799_v9  ;;  %v1621_v45 = vor.u32 %v1620_v18, %v7033_v31 }
 0x185   : > { %v7052_v50 = vrot.slane %v1611_v54, 4  ;;  %v3024_v57 = vrot.slane %v3022_v8, 4  ;;  %v1629_v11 = vshrl.u32 %v7047_v30, 16  ;;  %v7057_v15 = vadd.f32 %v6943_v63, %v6975_v10  ;;  %v2885_v16 = vld [vmem:[#allocation2 + $0xb4] sm:$0xe] }
 0x186   : > { %v2467_v56 = vld [vmem:[#allocation2 + $0xb8] sm:$0xf]  ;;  %v2803_v41 = vrot.slane %v2801_v43, 4  ;;  %v2806_v32 = vrot.slane %v2804_v27, 5  ;;  %v2485_v21 = vld [vmem:[#allocation2 + $0xbc] sm:$0x1]  ;;  %3696 = vrot.lane.b32.xlu0 %v5057_v47, %s5493_s16  ;;  %v3023_v19 = vsel %vm5609_vm4, %v4929_v22, %v3022_v8  ;;  %v7065_v51 = vadd.f32 %v6943_v63, %v506_v55  ;;  %v7090_v22 = vpop.permute.xlu0 %3512 }
 0x187   : > { %v2814_v13 = vshrl.u32 %v2467_v56, 16  ;;  %v5042_v44 = vcombine.low %v2466_v38, %v2467_v56  ;;  %v2810_v12 = vshll.u32 %v2467_v56, 16  ;;  %v2820_v37 = vshll.u32 %v2485_v21, 16  ;;  %v7069_v36 = vld [vmem:[#allocation2 + $0xb8] sm:$0xf] }
 0x188   : > { %v2807_v10 = vor.u32 %v2806_v32, %v2803_v41  ;;  %v1622_v53 = vrot.slane %v1621_v45, 4  ;;  %v3026_v29 = vsel %vm5609_vm4, %v3024_v57, %v3025_v52  ;;  %v7074_v61 = vsel %vm3998_vm8, %v6969_v23, %v6896_v14  ;;  %v1264_v2 = vld [vmem:[#allocation2 + $0xbc] sm:$0x1]  ;;  %v1667_v18 = vld [vmem:[#allocation2 + $0xb4] sm:$0xe] }
 0x189   : > { %3618 = vrot.lane.b32.xlu1 %v5042_v44, %s5489_s12  ;;  %v2812_v63 = vrot.slane %v2810_v12, 5  ;;  %v2816_v35 = vrot.slane %v2814_v13, 4  ;;  %v1617_v40 = vsel %vm5644_vm10, %v7052_v50, %v7033_v31  ;;  %v5073_v0 = vcombine.low %v3023_v19, %v3026_v29  ;;  %v7098_v44 = vpop.permute.xlu1 %3434 }
 0x18a   : > { %v2808_v33 = vrot.slane %v2807_v10, 4  ;;  %v2822_v55 = vrot.slane %v2820_v37, 5  ;;  %v1631_v6 = vrot.slane %v1629_v11, 4  ;;  %v1632_v14 = vshll.u32 %v7047_v30, 16  ;;  %v1666_v11 = vld [vmem:[#allocation2 + $0xa8] sm:$0xe] }
 0x18b   : > { %v2817_v23 = vor.u32 %v2816_v35, %v2812_v63  ;;  %v1627_v58 = vsel %vm5644_vm10, %v1622_v53, %v7044_v34  ;;  %3776 = vrot.lane.b32.xlu0 %v5073_v0, %s5491_s14  ;;  %v1638_v46 = vshll.u32 %v7069_v36, 16  ;;  %v1642_v31 = vshrl.u32 %v7069_v36, 16  ;;  %v7104_v35 = vpop.permute.xlu0 %3608 }
 0x18c   : > { %v2813_v8 = vsel %vm5644_vm10, %v2808_v33, %v2812_v63  ;;  %v1634_v38 = vrot.slane %v1632_v14, 5  ;;  %v1648_v9 = vshll.u32 %v1264_v2, 16  ;;  %v4930_v54 = vrot.slane %v2885_v16, 9 }
 0x18d   : > { %v2818_v52 = vrot.slane %v2817_v23, 4  ;;  %v1640_v43 = vrot.slane %v1638_v46, 5  ;;  %v1644_v27 = vrot.slane %v1642_v31, 4  ;;  %v3029_v47 = vrot.slane %v2467_v56, 5  ;;  %v7114_v31 = vld [vmem:[#allocation2 + $0xb8] sm:$0xf] }
 0x18e   : > { %v1635_v34 = vor.u32 %v1634_v38, %v1631_v6  ;;  %v1650_v45 = vrot.slane %v1648_v9, 5  ;;  %v3032_v50 = vrot.slane %v2485_v21, 5  ;;  %v4900_v57 = vrot.slane %v1667_v18, 9  ;;  %v1859_v6 = vld [vmem:[#allocation2 + $0xb4] sm:$0xf] }
 0x18f   : > { %v2823_v41 = vsel %vm5644_vm10, %v2818_v52, %v2822_v55  ;;  %v1645_v32 = vor.u32 %v1644_v27, %v1640_v43  ;;  %v3030_v19 = vsel %vm5609_vm4, %v4930_v54, %v3029_v47  ;;  %v3031_v13 = vrot.slane %v3029_v47, 4  ;;  %v7125_v52 = vpop.permute.xlu1 %3514 }
 0x190   : > { %v5058_v12 = vcombine.low %v2813_v8, %v2823_v41  ;;  %v1636_v37 = vrot.slane %v1635_v34, 4  ;;  %v1826_v10 = vrot.slane %v7069_v36, 5  ;;  %v1829_v56 = vrot.slane %v1264_v2, 5 }
 0x191   : > { %v1646_v53 = vrot.slane %v1645_v32, 4  ;;  %v3033_v21 = vsel %vm5609_vm4, %v3031_v13, %v3032_v50  ;;  %v4899_v29 = vrot.slane %v1666_v11, 9  ;;  %v1819_v63 = vrot.slane %v7007_v49, 5  ;;  %v7133_v11 = vpop.permute.xlu0 %3688 }
 0x192   : > { %3698 = vrot.lane.b32.xlu1 %v5058_v12, %s5493_s16  ;;  %v4963_v0 = vcombine.low %v1617_v40, %v1627_v58  ;;  %v1641_v16 = vsel %vm5644_vm10, %v1636_v37, %v1640_v43  ;;  %v5074_v33 = vcombine.low %v3030_v19, %v3033_v21  ;;  %v1828_v55 = vrot.slane %v1826_v10, 4  ;;  %v2277_v12 = vld [vmem:[#allocation2 + $0xb4] sm:$0xe] }
 0x193   : > { %v1651_v2 = vsel %vm5644_vm10, %v1646_v53, %v1650_v45  ;;  %v1820_v14 = vsel %vm5609_vm4, %v4899_v29, %v1819_v63  ;;  %v1821_v23 = vrot.slane %v1819_v63, 4  ;;  %v1822_v46 = vrot.slane %v7011_v59, 5 }
 0x194   : > { %v4964_v18 = vcombine.low %v1641_v16, %v1651_v2  ;;  %3778 = vrot.lane.b32.xlu0 %v5074_v33, %s5491_s14  ;;  %v1827_v40 = vsel %vm5609_vm4, %v4900_v57, %v1826_v10  ;;  %v575_v58 = vmax.f32 %v7057_v15, 0.0  ;;  %v576_v8 = vmax.f32 %v7065_v51, 0.0  ;;  %v7129_v15 = vld [vmem:[#allocation2 + $0xbc] sm:$0x1]  ;;  %v1111_v33 = vld [vmem:[#allocation2 + $0xc8] sm:$0x1] }
 0x195   : > { %v1830_v38 = vsel %vm5609_vm4, %v1828_v55, %v1829_v56  ;;  %v1823_v9 = vsel %vm5609_vm4, %v1821_v23, %v1822_v46  ;;  %v2216_v54 = vshrl.u32 %v1859_v6, 16  ;;  %v2219_v59 = vshll.u32 %v1859_v6, 16  ;;  %v7142_v23 = vpop.permute.xlu1 %3610 }
 0x196   : > { %3188 = vrot.lane.b32.xlu1 %v4963_v0, %s5487_s10  ;;  %v4979_v43 = vcombine.low %v1820_v14, %v1823_v9  ;;  %v5164_v27 = vpack.c.bf16 %v575_v58, %v575_v58  ;;  %v5165_v47 = vpack.c.bf16 %v576_v8, %v576_v8  ;;  %v2229_v34 = vshrl.u32 %v7114_v31, 16  ;;  %v1107_v0 = vld [vmem:[#allocation2 + $0xc0] sm:$0xf]  ;;  %v7149_v9 = vld [vmem:[#allocation2 + $0xcc] sm:$0xf] }
 0x197   : > { %v2218_v51 = vrot.slane %v2216_v54, 4  ;;  %v2221_v45 = vrot.slane %v2219_v59, 5  ;;  %v4995_v50 = vcombine.low %v1859_v6, %v7114_v31  ;;  %v2225_v57 = vshll.u32 %v7114_v31, 16  ;;  %v7151_v54 = vpop.permute.xlu0 %3768 }
 0x198   : > { %3268 = vrot.lane.b32.xlu0 %v4979_v43, %s5486_s9  ;;  %v932_v41 = vshrl.u32 %v5164_v27, 16  ;;  %v935_v32 = vshll.u32 %v5164_v27, 16  ;;  %v940_v19 = vshrl.u32 %v5165_v47, 16  ;;  %v943_v13 = vshll.u32 %v5165_v47, 16  ;;  %v5449_v47 = vld [vmem:[#allocation2 + $0x60] sm:$0xf] }
 0x199   : > { %v2222_v37 = vor.u32 %v2221_v45, %v2218_v51  ;;  %v2227_v10 = vrot.slane %v2225_v57, 5  ;;  %v2231_v56 = vrot.slane %v2229_v34, 4  ;;  %v2235_v53 = vshll.u32 %v7129_v15, 16  ;;  %v5450_v34 = vld [vmem:[#allocation2 + $0x64] sm:$0xf] }
 0x19a   : > { %3190 = vrot.lane.b32.xlu1 %v4964_v18, %s5487_s10  ;;  %v4980_v21 = vcombine.low %v1827_v40, %v1830_v38  ;;  %v934_v29 = vrot.slane %v932_v41, 7  ;;  %v942_v63 = vrot.slane %v940_v19, 7  ;;  %v4045_v16 = vsel %vm4031_vm9, %v7074_v61, %v6950_v60  ;;  %v7160_v51 = vld [vmem:[#allocation2 + $0xd0] sm:$0xf]  ;;  %s7316_s10 = scalar_lea.vmem %s7523_s4, %s5132_s25 }
 0x19b   : > { %v2223_v55 = vrot.slane %v2222_v37, 4  ;;  %v2232_v6 = vor.u32 %v2231_v56, %v2227_v10  ;;  %v2237_v2 = vrot.slane %v2235_v53, 5  ;;  %v4915_v14 = vrot.slane %v2277_v12, 9  ;;  %5324 = vmatprep.mubr.msk.bf16.mxu0 %vm4100_vm6, %v4045_v16  ;;  %v5452_v57 = vld [vmem:[#allocation2 + $0x70] sm:$0xf]  ;;  %v7176_v37 = vpop.permute.xlu1 %3690 }
 0x19c   : > { %v937_v46 = vor.u32 %v935_v32, %v934_v29  ;;  %v938_v58 = vrot.slane %v934_v29, 4  ;;  %v945_v18 = vor.u32 %v943_v13, %v942_v63  ;;  %3364 = vrot.lane.b32.xlu0 %v4995_v50, %s5488_s11  ;;  %v947_v40 = vrot.slane %v942_v63, 4  ;;  %v5451_v50 = vld [vmem:[#allocation2 + $0x6c] sm:$0xf] }
 0x19d   : > { %v2228_v8 = vsel %vm5644_vm10, %v2223_v55, %v2227_v10  ;;  %v2233_v38 = vrot.slane %v2232_v6, 4  ;;  %v2427_v60 = vrot.slane %v7114_v31, 5  ;;  %v2430_v61 = vrot.slane %v7129_v15, 5  ;;  %v7181_v10 = vpop.permute.xlu0 %3770 }
 0x19e   : > { %3270 = vrot.lane.b32.xlu1 %v4980_v21, %s5486_s9  ;;  %v946_v59 = vsel %vm5670_vm12, %v938_v58, %v945_v18  ;;  %v1108_v43 = vsel %vm5664_vm11, %v937_v46, %v1107_v0  ;;  %v1112_v27 = vsel %vm5688_vm13, %v947_v40, %v1111_v33  ;;  %v4941_v31 = vcombine.low %v5449_v47, %v5450_v34 }
 0x19f   : > { %1109 = vst [vmem:[#allocation2 + $0xc0] sm:$0xf] %v1108_v43  ;;  %1110 = vst.msk [vmem:[#allocation2 + $0xc4] sm:$0xf] %vm346_vm0, %v946_v59  ;;  %v2238_v15 = vsel %vm5644_vm10, %v2233_v38, %v2237_v2  ;;  %v2428_v17 = vsel %vm5609_vm4, %v4915_v14, %v2427_v60  ;;  %v2429_v7 = vrot.slane %v2427_v60, 4  ;;  %v4047_v42 = vsel %vm4031_vm9, %v7039_v62, %v6977_v3 }
 0x1a0   : > { %1113 = vst [vmem:[#allocation2 + $0xc8] sm:$0x1] %v1112_v27  ;;  %v5011_v45 = vcombine.low %v2228_v8, %v2238_v15  ;;  %v4942_v41 = vcombine.low %v5451_v50, %v5452_v57  ;;  %v2849_v32 = vshrl.u32 %v7149_v9, 16  ;;  %v2852_v19 = vshll.u32 %v7149_v9, 16  ;;  %5325 = vmatmul.mubr.msk.bf16.gmra.mrb[12].mxu0 %vm4100_vm6, %v4047_v42  ;;  %v7179_v62 = vld [vmem:[#allocation2 + $0xd4] sm:$0x1]  ;;  %v7204_v8 = vpop.permute.xlu1 %3180 }
 0x1a1   : > { %v2431_v13 = vsel %vm5609_vm4, %v2429_v7, %v2430_v61  ;;  %v2862_v12 = vshrl.u32 %v7160_v51, 16  ;;  %v3811_v56 = vsel %vm3784_vm14, %v4941_v31, %v6985_v28  ;;  %v2858_v0 = vshll.u32 %v7160_v51, 16  ;;  %v7211_v31 = vpop.permute.xlu0 %3260 }
 0x1a2   : > { %3444 = vrot.lane.b32.xlu0 %v5011_v45, %s5492_s15  ;;  %v5027_v3 = vcombine.low %v2428_v17, %v2431_v13  ;;  %v3814_v53 = vsel %vm3784_vm14, %v4942_v41, %v7013_v4  ;;  %v7187_v21 = vrot.slane %v2849_v32, 4  ;;  %v7189_v29 = vrot.slane %v2852_v19, 5 }
 0x1a3   : > { %v3853_v63 = vsel %vm3833_vm15, %v3814_v53, %v7049_v20  ;;  %v7194_v16 = vrot.slane %v2862_v12, 4  ;;  %v2868_v33 = vshll.u32 %v7179_v62, 16  ;;  %v5044_v28 = vcombine.low %v7149_v9, %v7160_v51  ;;  %v5454_v9 = vld [vmem:[#allocation2 + $0x7c] sm:$0xf] }
 0x1a4   : > { %v3851_v4 = vsel %vm3833_vm15, %v3811_v56, %v6994_v24  ;;  %v3886_v20 = vsel %vm3866_vm2, %v3853_v63, %v7081_v25  ;;  %v2855_v43 = vor.u32 %v7189_v29, %v7187_v21  ;;  %v7213_v42 = vrot.slane %v2858_v0, 5  ;;  %v7216_v29 = vpop.permute.xlu1 %3182 }
 0x1a5   : > { %v3884_v34 = vsel %vm3866_vm2, %v3851_v4, %v7024_v26  ;;  %v3043_v26 = vrot.slane %v7160_v51, 5  ;;  %v4948_v39 = vcombine.low %v7047_v30, %v7069_v36 }
 0x1a6   : > { %v1861_v55 = vld [vmem:[#allocation2 + $0xc0] sm:$0xf]  ;;  %v1862_v6 = vld [vmem:[#allocation2 + $0xc4] sm:$0xf]  ;;  %3524 = vrot.lane.b32.xlu0 %v5027_v3, %s5490_s13  ;;  %v2865_v0 = vor.u32 %v7194_v16, %v7213_v42 }
 0x1a7   : > { %v1878_v2 = vld [vmem:[#allocation2 + $0xc8] sm:$0x1]  ;;  %v2240_v14 = vshrl.u32 %v1861_v55, 16  ;;  %v2243_v46 = vshll.u32 %v1861_v55, 16  ;;  %v2253_v58 = vshrl.u32 %v1862_v6, 16  ;;  %v4996_v18 = vcombine.low %v1861_v55, %v1862_v6 }
 0x1a8   : > { %v2278_v40 = vld [vmem:[#allocation2 + $0xc0] sm:$0xe]  ;;  %v2249_v38 = vshll.u32 %v1862_v6, 16  ;;  %v2259_v60 = vshll.u32 %v1878_v2, 16  ;;  %v2434_v61 = vrot.slane %v1862_v6, 5  ;;  %v2437_v7 = vrot.slane %v1878_v2, 5 }
 0x1a9   : > { %v2468_v59 = vld [vmem:[#allocation2 + $0xc0] sm:$0xf]  ;;  %v2242_v27 = vrot.slane %v2240_v14, 4  ;;  %v2245_v47 = vrot.slane %v2243_v46, 5  ;;  %3366 = vrot.lane.b32.xlu1 %v4996_v18, %s5488_s11  ;;  %v2255_v24 = vrot.slane %v2253_v58, 4  ;;  %v4916_v17 = vrot.slane %v2278_v40, 9  ;;  %v7223_v18 = vpop.permute.xlu0 %3356 }
 0x1aa   : > { %v2469_v25 = vld [vmem:[#allocation2 + $0xc4] sm:$0xf]  ;;  %v2251_v15 = vrot.slane %v2249_v38, 5  ;;  %v2825_v50 = vshrl.u32 %v2468_v59, 16  ;;  %v2828_v57 = vshll.u32 %v2468_v59, 16  ;;  %v2261_v19 = vrot.slane %v2259_v60, 5 }
 0x1ab   : > { %v2246_v45 = vor.u32 %v2245_v47, %v2242_v27  ;;  %v2838_v41 = vshrl.u32 %v2469_v25, 16  ;;  %v2436_v13 = vrot.slane %v2434_v61, 4  ;;  %v5043_v12 = vcombine.low %v2468_v59, %v2469_v25  ;;  %v2486_v3 = vld [vmem:[#allocation2 + $0xc8] sm:$0x1]  ;;  %v2886_v2 = vld [vmem:[#allocation2 + $0xc0] sm:$0xe] }
 0x1ac   : > { %v2256_v32 = vor.u32 %v2255_v24, %v2251_v15  ;;  %v2827_v53 = vrot.slane %v2825_v50, 4  ;;  %v2830_v21 = vrot.slane %v2828_v57, 5  ;;  %v2870_v55 = vrot.slane %v2868_v33, 5 }
 0x1ad   : > { %v2247_v56 = vrot.slane %v2246_v45, 4  ;;  %3620 = vrot.lane.b32.xlu0 %v5043_v12, %s5489_s12  ;;  %v2834_v6 = vshll.u32 %v2469_v25, 16  ;;  %v2840_v46 = vrot.slane %v2838_v41, 4  ;;  %v2844_v58 = vshll.u32 %v2486_v3, 16  ;;  %v2887_v45 = vld [vmem:[#allocation2 + $0xcc] sm:$0xe] }
 0x1ae   : > { %v2257_v63 = vrot.slane %v2256_v32, 4  ;;  %v2831_v14 = vor.u32 %v2830_v21, %v2827_v53  ;;  %v2435_v38 = vsel %vm5609_vm4, %v4916_v17, %v2434_v61  ;;  %v2438_v16 = vsel %vm5609_vm4, %v2436_v13, %v2437_v7  ;;  %v3263_v32 = vpop.permute.xlu1 %3262 }
 0x1af   : > { %v2252_v4 = vsel %vm5644_vm10, %v2247_v56, %v2251_v15  ;;  %v2836_v33 = vrot.slane %v2834_v6, 5  ;;  %v4931_v27 = vrot.slane %v2886_v2, 9  ;;  %v3919_v47 = vsel %vm3899_vm3, %v3886_v20, %v7098_v44 }
 0x1b0   : > { %v2262_v40 = vsel %vm5644_vm10, %v2257_v63, %v2261_v19  ;;  %v2832_v59 = vrot.slane %v2831_v14, 4  ;;  %v2846_v15 = vrot.slane %v2844_v58, 5  ;;  %v3036_v50 = vrot.slane %v2469_v25, 5  ;;  %v5453_v58 = vld [vmem:[#allocation2 + $0x78] sm:$0xf] }
 0x1b1   : > { %v5012_v60 = vcombine.low %v2252_v4, %v2262_v40  ;;  %v2841_v24 = vor.u32 %v2840_v46, %v2836_v33  ;;  %v3917_v57 = vsel %vm3899_vm3, %v3884_v34, %v7059_v5  ;;  %v5028_v61 = vcombine.low %v2435_v38, %v2438_v16  ;;  %v3437_v34 = vpop.permute.xlu0 %3436 }
 0x1b2   : > { %v2856_v17 = vrot.slane %v2855_v43, 4  ;;  %v2866_v41 = vrot.slane %v2865_v0, 4  ;;  %v3039_v7 = vrot.slane %v2486_v3, 5  ;;  %v2837_v19 = vsel %vm5644_vm10, %v2832_v59, %v2836_v33  ;;  %v5455_v33 = vld [vmem:[#allocation2 + $0x84] sm:$0xf] }
 0x1b3   : > { %3446 = vrot.lane.b32.xlu1 %v5012_v60, %s5492_s15  ;;  %v2842_v13 = vrot.slane %v2841_v24, 4  ;;  %v3038_v12 = vrot.slane %v3036_v50, 4  ;;  %v3950_v44 = vsel %vm3932_vm5, %v3917_v57, %v7090_v22  ;;  %v4932_v20 = vrot.slane %v2887_v45, 9  ;;  %v5456_v60 = vld [vmem:[#allocation2 + $0x88] sm:$0xf]  ;;  %s7441_s15 = scalar_lea.vmem %s7525_s6, %s7541_s21 }
 0x1b4   : > { %v3037_v25 = vsel %vm5609_vm4, %v4931_v27, %v3036_v50  ;;  %v3952_v5 = vsel %vm3932_vm5, %v3919_v47, %v7125_v52  ;;  %v3983_v43 = vsel %vm3965_vm7, %v3950_v44, %v7104_v35  ;;  %v3046_v52 = vrot.slane %v7179_v62, 5 }
 0x1b5   : > { %v2847_v3 = vsel %vm5644_vm10, %v2842_v13, %v2846_v15  ;;  %v3040_v56 = vsel %vm5609_vm4, %v3038_v12, %v3039_v7  ;;  %v3985_v22 = vsel %vm3965_vm7, %v3952_v5, %v7142_v23  ;;  %v4016_v53 = vsel %vm3998_vm8, %v3983_v43, %v7133_v11  ;;  %v3517_v6 = vpop.permute.xlu0 %3516 }
 0x1b6   : > { %v5059_v21 = vcombine.low %v2837_v19, %v2847_v3  ;;  %v4018_v35 = vsel %vm3998_vm8, %v3985_v22, %v7176_v37  ;;  %v4049_v63 = vsel %vm4031_vm9, %v4016_v53, %v7151_v54  ;;  %v2861_v0 = vsel %vm5644_vm10, %v2856_v17, %v7213_v42  ;;  %v3359_v54 = vpop.permute.xlu1 %3358 }
 0x1b7   : > { %3526 = vrot.lane.b32.xlu1 %v5028_v61, %s5490_s13  ;;  %v2871_v23 = vsel %vm5644_vm10, %v2866_v41, %v2870_v55  ;;  %v3045_v11 = vrot.slane %v3043_v26, 4  ;;  %5328 = vmatprep.mubr.msk.bf16.mxu1 %vm4100_vm6, %v4049_v63  ;;  %v4051_v62 = vsel %vm4031_vm9, %v4018_v35, %v7181_v10  ;;  %v5075_v37 = vcombine.low %v3037_v25, %v3040_v56 }
 0x1b8   : > { %3700 = vrot.lane.b32.xlu0 %v5059_v21, %s5493_s16  ;;  %5329 = vmatmul.mubr.msk.bf16.vlgmr.msra.gmra.mrb[0].mxu1 %vm4100_vm6, %v4051_v62  ;;  %v4947_v42 = vcombine.low %v7003_v48, %v7007_v49  ;;  %v5060_v55 = vcombine.low %v2861_v0, %v2871_v23  ;;  %v3044_v10 = vsel %vm5609_vm4, %v4932_v20, %v3043_v26  ;;  %v5457_v23 = vld [vmem:[#allocation2 + $0x90] sm:$0xf] }
 0x1b9   : > { %v3047_v2 = vsel %vm5609_vm4, %v3045_v11, %v3046_v52  ;;  %v4944_v59 = vcombine.low %v5455_v33, %v5456_v60  ;;  %v5458_v11 = vld [vmem:[#allocation2 + $0x94] sm:$0xf] }
 0x1ba   : > { %v5076_v4 = vcombine.low %v3044_v10, %v3047_v2  ;;  %v4945_v62 = vcombine.low %v5457_v23, %v5458_v11 }
 0x1bb   : > { %3622 = vrot.lane.b32.xlu1 %v5044_v28, %s5489_s12  ;;  %v4943_v28 = vcombine.low %v5453_v58, %v5454_v9  ;;  %s7435_s12 = scalar_lea.vmem %s7524_s5, %s7541_s21 }
 0x1bc   : > { %3780 = vrot.lane.b32.xlu0 %v5075_v37, %s5491_s14 }
 0x1bd   : > { %v3613_v46 = vpop.permute.xlu0 %3612  ;;  %v3817_v51 = vsel %vm3784_vm14, %v4943_v28, %v7204_v8 }
 0x1be   : > { %v3439_v14 = vpop.permute.xlu1 %3438  ;;  %v3855_v1 = vsel %vm3833_vm15, %v3817_v51, %v7211_v31  ;;  %v3820_v31 = vsel %vm3784_vm14, %v4944_v59, %v7216_v29 }
 0x1bf   : > { %3702 = vrot.lane.b32.xlu1 %v5060_v55, %s5493_s16  ;;  %v3888_v38 = vsel %vm3866_vm2, %v3855_v1, %v7223_v18  ;;  %v3857_v18 = vsel %vm3833_vm15, %v3820_v31, %v3263_v32 }
 0x1c0   : > { %v3921_v16 = vsel %vm3899_vm3, %v3888_v38, %v3437_v34  ;;  %v3890_v50 = vsel %vm3866_vm2, %v3857_v18, %v3359_v54 }
 0x1c1   : > { %v3954_v27 = vsel %vm3932_vm5, %v3921_v16, %v3517_v6  ;;  %v3923_v57 = vsel %vm3899_vm3, %v3890_v50, %v3439_v14 }
 0x1c2   : > { %v3519_v40 = vpop.permute.xlu1 %3518  ;;  %v3987_v24 = vsel %vm3965_vm7, %v3954_v27, %v3613_v46 }
 0x1c3   : > { %3782 = vrot.lane.b32.xlu1 %v5076_v4, %s5491_s14  ;;  %v3956_v17 = vsel %vm3932_vm5, %v3923_v57, %v3519_v40 }
 0x1c6   : > { %v3615_v47 = vpop.permute.xlu1 %3614 }
 0x1c7   : > { %v3693_v26 = vpop.permute.xlu0 %3692  ;;  %v3989_v41 = vsel %vm3965_vm7, %v3956_v17, %v3615_v47 }
 0x1c8   : > { %v4020_v15 = vsel %vm3998_vm8, %v3987_v24, %v3693_v26 }
 0x1cc   : > { %v3773_v8 = vpop.permute.xlu0 %3772 }
 0x1cd   : > { %v4053_v45 = vsel %vm4031_vm9, %v4020_v15, %v3773_v8  ;;  %v5459_v8 = vld [vmem:[#allocation2 + $0x9c] sm:$0xf] }
 0x1ce   : > { %5332 = vmatprep.mubr.msk.bf16.mxu1 %vm4100_vm6, %v4053_v45  ;;  %v5460_v45 = vld [vmem:[#allocation2 + $0xa0] sm:$0xf] }
 0x1cf   : > { %v3695_v61 = vpop.permute.xlu1 %3694  ;;  %v4946_v31 = vcombine.low %v5459_v8, %v5460_v45 }
 0x1d0   : > { %v4022_v7 = vsel %vm3998_vm8, %v3989_v41, %v3695_v61 }
 0x1d3   : > { %v3185_v12 = vpop.permute.xlu1 %3184 }
 0x1d4   : > { %v3775_v19 = vpop.permute.xlu0 %3774  ;;  %v3823_v28 = vsel %vm3784_vm14, %v4945_v62, %v3185_v12 }
 0x1d5   : > { %v4055_v13 = vsel %vm4031_vm9, %v4022_v7, %v3775_v19 }
 0x1d6   : > { %5333 = vmatmul.mubr.msk.bf16.gmra.mrb[4].mxu1 %vm4100_vm6, %v4055_v13 }
 0x1d7   : > { %v3187_v44 = vpop.permute.xlu1 %3186 }
 0x1d8   : > { %v3265_v29 = vpop.permute.xlu0 %3264  ;;  %v3826_v41 = vsel %vm3784_vm14, %v4946_v31, %v3187_v44 }
 0x1d9   : > { %v3859_v1 = vsel %vm3833_vm15, %v3823_v28, %v3265_v29 }
 0x1db   : > { %v3267_v25 = vpop.permute.xlu1 %3266 }
 0x1dc   : > { %v3361_v32 = vpop.permute.xlu0 %3360  ;;  %v3861_v7 = vsel %vm3833_vm15, %v3826_v41, %v3267_v25 }
 0x1dd   : > { %v3892_v60 = vsel %vm3866_vm2, %v3859_v1, %v3361_v32 }
 0x1e2   : > { %v3441_v20 = vpop.permute.xlu0 %3440 }
 0x1e3   : > { %v3925_v27 = vsel %vm3899_vm3, %v3892_v60, %v3441_v20 }
 0x1e6   : > { %v3521_v5 = vpop.permute.xlu0 %3520 }
 0x1e7   : > { %v3363_v43 = vpop.permute.xlu1 %3362  ;;  %v3958_v24 = vsel %vm3932_vm5, %v3925_v27, %v3521_v5 }
 0x1e8   : > { %v3894_v19 = vsel %vm3866_vm2, %v3861_v7, %v3363_v43 }
 0x1ef   : > { %v5314_v34 = vpop.f32.mrb[0].mxu0  ;;  %v3617_v22 = vpop.permute.xlu0 %3616 }
 0x1f0   : > { %v5172_v3 = vpack.c.bf16 %v5314_v34, %v5314_v34  ;;  %v4171_v56 = vpop.f32.mrb[1].mxu0  ;;  %v4539_v6 = vmul.f32 %v5314_v34, %v5314_v34  ;;  %v4468_v4 = vsel %vm3784_vm14, %v5314_v34, 0.0  ;;  %v3991_v18 = vsel %vm3965_vm7, %v3958_v24, %v3617_v22 }
 0x1f1   : > { %v5170_v53 = vpack.c.bf16 %v4171_v56, %v4171_v56  ;;  %v5315_v21 = vpop.f32.mrb[2].mxu0  ;;  %v3443_v52 = vpop.permute.xlu1 %3442  ;;  %v4537_v35 = vmul.f32 %v4171_v56, %v4171_v56  ;;  %v4465_v37 = vsel %vm3784_vm14, %v4171_v56, 0.0 }
 0x1f2   : > { %4428 = vst.msk [vmem:[%s7316_s10 + $0x8] sm:$0xf] %vm346_vm0, %v5172_v3  ;;  %v5173_v63 = vpack.c.bf16 %v5315_v21, %v5315_v21  ;;  %v4174_v0 = vpop.f32.mrb[3].mxu0  ;;  %v4540_v46 = vmul.f32 %v5315_v21, %v5315_v21  ;;  %v4470_v40 = vsel %vm3784_vm14, %v5315_v21, 0.0  ;;  %v4572_v16 = vsel %vm3784_vm14, %v4539_v6, 0.0 }
 0x1f3   : > { %4426 = vst.msk [vmem:[%s7316_s10] sm:$0xf] %vm346_vm0, %v5170_v53  ;;  %v5171_v54 = vpack.c.bf16 %v4174_v0, %v4174_v0  ;;  %v4466_v55 = vsel %vm3784_vm14, %v4174_v0, 0.0  ;;  %v4538_v2 = vmul.f32 %v4174_v0, %v4174_v0  ;;  %v4569_v14 = vsel %vm3784_vm14, %v4537_v35, 0.0 }
 0x1f4   : > { %4429 = vst.msk [vmem:[%s7316_s10 + $0xc] sm:$0xf] %vm346_vm0, %v5173_v63  ;;  %v4467_v10 = vadd.f32 %v4466_v55, %v4465_v37  ;;  %v4574_v47 = vsel %vm3784_vm14, %v4540_v46, 0.0  ;;  %v3927_v13 = vsel %vm3899_vm3, %v3894_v19, %v3443_v52 }
 0x1f5   : > { %4427 = vst.msk [vmem:[%s7316_s10 + $0x4] sm:$0xf] %vm346_vm0, %v5171_v54  ;;  %v4570_v9 = vsel %vm3784_vm14, %v4538_v2, 0.0  ;;  %v3523_v26 = vpop.permute.xlu1 %3522 }
 0x1f6   : > { %v4469_v58 = vadd.f32 %v4468_v4, %v4467_v10  ;;  %v4571_v51 = vadd.f32 %v4570_v9, %v4569_v14  ;;  %v3960_v29 = vsel %vm3932_vm5, %v3927_v13, %v3523_v26 }
 0x1f8   : > { %v3697_v38 = vpop.permute.xlu0 %3696  ;;  %v4471_v33 = vadd.f32 %v4470_v40, %v4469_v58  ;;  %v4573_v59 = vadd.f32 %v4572_v16, %v4571_v51 }
 0x1f9   : > { %v4024_v50 = vsel %vm3998_vm8, %v3991_v18, %v3697_v38 }
 0x1fa   : > { %v4575_v15 = vadd.f32 %v4574_v47, %v4573_v59 }
 0x1fb   : > { %v3619_v61 = vpop.permute.xlu1 %3618 }
 0x1fc   : > { %v3993_v32 = vsel %vm3965_vm7, %v3960_v29, %v3619_v61 }
 0x1fd   : > { %v3777_v57 = vpop.permute.xlu0 %3776 }
 0x1fe   : > { %v4057_v17 = vsel %vm4031_vm9, %v4024_v50, %v3777_v57 }
 0x1ff   : > { %5336 = vmatprep.mubr.msk.bf16.mxu1 %vm4100_vm6, %v4057_v17 }
 0x204   : > { %v3699_v12 = vpop.permute.xlu1 %3698 }
 0x205   : > { %v4026_v20 = vsel %vm3998_vm8, %v3993_v32, %v3699_v12 }
 0x206   : > { %v3779_v5 = vpop.permute.xlu0 %3778 }
 0x207   : > { %v4059_v34 = vsel %vm4031_vm9, %v4026_v20, %v3779_v5  ;;  %v5318_v3 = vpop.f32.mrb[4].mxu0 }
 0x208   : > { %5337 = vmatmul.mubr.msk.bf16.gmra.mrb[8].mxu1 %vm4100_vm6, %v4059_v34  ;;  %v5176_v44 = vpack.c.bf16 %v5318_v3, %v5318_v3  ;;  %v4187_v25 = vpop.f32.mrb[5].mxu0  ;;  %v4543_v23 = vmul.f32 %v5318_v3, %v5318_v3  ;;  %v3189_v54 = vpop.permute.xlu1 %3188  ;;  %v4476_v10 = vsel %vm3784_vm14, %v5318_v3, 0.0 }
 0x209   : > { %v5174_v43 = vpack.c.bf16 %v4187_v25, %v4187_v25  ;;  %v4472_v56 = vsel %vm3784_vm14, %v4187_v25, 0.0  ;;  %v4541_v22 = vmul.f32 %v4187_v25, %v4187_v25  ;;  %v5319_v53 = vpop.f32.mrb[6].mxu0 }
 0x20a   : > { %4432 = vst.msk [vmem:[%s7316_s10 + $0x18] sm:$0xf] %vm346_vm0, %v5176_v44  ;;  %v4473_v21 = vadd.f32 %v4472_v56, %v4471_v33  ;;  %v5177_v52 = vpack.c.bf16 %v5319_v53, %v5319_v53  ;;  %v4190_v35 = vpop.f32.mrb[7].mxu0  ;;  %v3269_v55 = vpop.permute.xlu0 %3268  ;;  %v4544_v2 = vmul.f32 %v5319_v53, %v5319_v53  ;;  %v4580_v58 = vsel %vm3784_vm14, %v4543_v23, 0.0 }
 0x20b   : > { %4430 = vst.msk [vmem:[%s7316_s10 + $0x10] sm:$0xf] %vm346_vm0, %v5174_v43  ;;  %v4576_v63 = vsel %vm3784_vm14, %v4541_v22, 0.0  ;;  %v5175_v0 = vpack.c.bf16 %v4190_v35, %v4190_v35  ;;  %v4474_v62 = vsel %vm3784_vm14, %v4190_v35, 0.0  ;;  %v4542_v37 = vmul.f32 %v4190_v35, %v4190_v35 }
 0x20c   : > { %v4577_v11 = vadd.f32 %v4576_v63, %v4575_v15  ;;  %4433 = vst.msk [vmem:[%s7316_s10 + $0x1c] sm:$0xf] %vm346_vm0, %v5177_v52  ;;  %v4475_v6 = vadd.f32 %v4474_v62, %v4473_v21  ;;  %v4478_v9 = vsel %vm3784_vm14, %v5319_v53, 0.0  ;;  %v4582_v51 = vsel %vm3784_vm14, %v4544_v2, 0.0  ;;  %v3191_v1 = vpop.permute.xlu1 %3190 }
 0x20d   : > { %4431 = vst.msk [vmem:[%s7316_s10 + $0x14] sm:$0xf] %vm346_vm0, %v5175_v0  ;;  %v4578_v4 = vsel %vm3784_vm14, %v4542_v37, 0.0  ;;  %v3829_v52 = vsel %vm3784_vm14, %v4947_v42, %v3189_v54  ;;  %v3832_v48 = vsel %vm3784_vm14, %v4948_v39, %v3191_v1 }
 0x20e   : > { %v4477_v14 = vadd.f32 %v4476_v10, %v4475_v6  ;;  %v4579_v46 = vadd.f32 %v4578_v4, %v4577_v11  ;;  %v3365_v26 = vpop.permute.xlu0 %3364  ;;  %v3863_v63 = vsel %vm3833_vm15, %v3829_v52, %v3269_v55 }
 0x20f   : > { %v3896_v0 = vsel %vm3866_vm2, %v3863_v63, %v3365_v26 }
 0x210   : > { %v4581_v28 = vadd.f32 %v4580_v58, %v4579_v46  ;;  %v4479_v40 = vadd.f32 %v4478_v9, %v4477_v14  ;;  %v3271_v57 = vpop.permute.xlu1 %3270 }
 0x211   : > { %v3865_v54 = vsel %vm3833_vm15, %v3832_v48, %v3271_v57 }
 0x212   : > { %v4583_v38 = vadd.f32 %v4582_v51, %v4581_v28 }
 0x213   : > { %v5322_v16 = vpop.f32.mrb[8].mxu0 }
 0x214   : > { %v5180_v33 = vpack.c.bf16 %v5322_v16, %v5322_v16  ;;  %v4203_v60 = vpop.f32.mrb[9].mxu0  ;;  %v3445_v61 = vpop.permute.xlu0 %3444  ;;  %v4547_v17 = vmul.f32 %v5322_v16, %v5322_v16  ;;  %v4484_v13 = vsel %vm3784_vm14, %v5322_v16, 0.0 }
 0x215   : > { %v5178_v59 = vpack.c.bf16 %v4203_v60, %v4203_v60  ;;  %v4480_v27 = vsel %vm3784_vm14, %v4203_v60, 0.0  ;;  %v4545_v47 = vmul.f32 %v4203_v60, %v4203_v60  ;;  %v5323_v24 = vpop.f32.mrb[10].mxu0  ;;  %v3929_v11 = vsel %vm3899_vm3, %v3896_v0, %v3445_v61 }
 0x216   : > { %4436 = vst.msk [vmem:[%s7316_s10 + $0x28] sm:$0xf] %vm346_vm0, %v5180_v33  ;;  %v4481_v15 = vadd.f32 %v4480_v27, %v4479_v40  ;;  %v5181_v8 = vpack.c.bf16 %v5323_v24, %v5323_v24  ;;  %v4206_v45 = vpop.f32.mrb[11].mxu0  ;;  %v4548_v29 = vmul.f32 %v5323_v24, %v5323_v24  ;;  %v4486_v20 = vsel %vm3784_vm14, %v5323_v24, 0.0 }
 0x217   : > { %4434 = vst.msk [vmem:[%s7316_s10 + $0x20] sm:$0xf] %vm346_vm0, %v5178_v59  ;;  %v4584_v31 = vsel %vm3784_vm14, %v4545_v47, 0.0  ;;  %v5179_v18 = vpack.c.bf16 %v4206_v45, %v4206_v45  ;;  %v4482_v50 = vsel %vm3784_vm14, %v4206_v45, 0.0  ;;  %v4546_v19 = vmul.f32 %v4206_v45, %v4206_v45 }
 0x218   : > { %v4585_v41 = vadd.f32 %v4584_v31, %v4583_v38  ;;  %4437 = vst.msk [vmem:[%s7316_s10 + $0x2c] sm:$0xf] %vm346_vm0, %v5181_v8  ;;  %v4483_v7 = vadd.f32 %v4482_v50, %v4481_v15  ;;  %v4588_v34 = vsel %vm3784_vm14, %v4547_v17, 0.0  ;;  %v3525_v43 = vpop.permute.xlu0 %3524  ;;  %v4590_v56 = vsel %vm3784_vm14, %v4548_v29, 0.0 }
 0x219   : > { %4435 = vst.msk [vmem:[%s7316_s10 + $0x24] sm:$0xf] %vm346_vm0, %v5179_v18  ;;  %v4586_v32 = vsel %vm3784_vm14, %v4546_v19, 0.0  ;;  %v3962_v62 = vsel %vm3932_vm5, %v3929_v11, %v3525_v43 }
 0x21a   : > { %v4485_v12 = vadd.f32 %v4484_v13, %v4483_v7  ;;  %v4587_v5 = vadd.f32 %v4586_v32, %v4585_v41 }
 0x21b   : > { %v3367_v25 = vpop.permute.xlu1 %3366 }
 0x21c   : > { %v4487_v3 = vadd.f32 %v4486_v20, %v4485_v12  ;;  %v4589_v44 = vadd.f32 %v4588_v34, %v4587_v5  ;;  %v3898_v10 = vsel %vm3866_vm2, %v3865_v54, %v3367_v25 }
 0x21e   : > { %v4591_v22 = vadd.f32 %v4590_v56, %v4589_v44 }
 0x21f   : > { %v3621_v21 = vpop.permute.xlu0 %3620 }
 0x220   : > { %v3995_v6 = vsel %vm3965_vm7, %v3962_v62, %v3621_v21 }
 0x225   : > { %v3447_v53 = vpop.permute.xlu1 %3446 }
 0x226   : > { %v3931_v4 = vsel %vm3899_vm3, %v3898_v10, %v3447_v53 }
 0x229   : > { %v3527_v35 = vpop.permute.xlu1 %3526 }
 0x22a   : > { %v3701_v23 = vpop.permute.xlu0 %3700  ;;  %v3964_v14 = vsel %vm3932_vm5, %v3931_v4, %v3527_v35 }
 0x22b   : > { %v4028_v49 = vsel %vm3998_vm8, %v3995_v6, %v3701_v23  ;;  %v5494_v23 = vmov 0.0  }
 0x22c   : > { %4462 = vst.msk [vmem:[%s7435_s12] sm:$0x1] %vm349_vm1, %v5494_v23  ;;  %4463 = vst.msk [vmem:[%s7441_s15] sm:$0x1] %vm349_vm1, %v5494_v23 }
 0x22d   : > { %v3623_v37 = vpop.permute.xlu1 %3622 }
 0x22e   : > { %v3781_v42 = vpop.permute.xlu0 %3780  ;;  %v3997_v30 = vsel %vm3965_vm7, %v3964_v14, %v3623_v37 }
 0x22f   : > { %v4061_v55 = vsel %vm4031_vm9, %v4028_v49, %v3781_v42 }
 0x230   : > { %5340 = vmatprep.mubr.msk.bf16.mxu1 %vm4100_vm6, %v4061_v55 }
 0x231   : > { %v3703_v2 = vpop.permute.xlu1 %3702 }
 0x232   : > { %v4030_v36 = vsel %vm3998_vm8, %v3997_v30, %v3703_v2 }
 0x235   : > { %v3783_v39 = vpop.permute.xlu1 %3782 }
 0x236   : > { %v4063_v46 = vsel %vm4031_vm9, %v4030_v36, %v3783_v39 }
 0x237   : > { %5341 = vmatmul.mubr.msk.bf16.gmra.mrb[12].mxu1 %vm4100_vm6, %v4063_v46 }
 0x273   : > { %v5326_v58 = vpop.f32.mrb[12].mxu0 }
 0x274   : > { %v5184_v9 = vpack.c.bf16 %v5326_v58, %v5326_v58  ;;  %v4219_v28 = vpop.f32.mrb[13].mxu0  ;;  %v4551_v47 = vmul.f32 %v5326_v58, %v5326_v58  ;;  %v4492_v45 = vsel %vm3784_vm14, %v5326_v58, 0.0 }
 0x275   : > { %v5182_v40 = vpack.c.bf16 %v4219_v28, %v4219_v28  ;;  %v4488_v51 = vsel %vm3784_vm14, %v4219_v28, 0.0  ;;  %v4549_v1 = vmul.f32 %v4219_v28, %v4219_v28  ;;  %v5327_v26 = vpop.f32.mrb[14].mxu0 }
 0x276   : > { %4440 = vst.msk [vmem:[%s7316_s10 + $0x38] sm:$0xf] %vm346_vm0, %v5184_v9  ;;  %v4489_v38 = vadd.f32 %v4488_v51, %v4487_v3  ;;  %v5185_v16 = vpack.c.bf16 %v5327_v26, %v5327_v26  ;;  %v4222_v33 = vpop.f32.mrb[15].mxu0  ;;  %v4552_v31 = vmul.f32 %v5327_v26, %v5327_v26  ;;  %v4494_v57 = vsel %vm3784_vm14, %v5327_v26, 0.0 }
 0x277   : > { %4438 = vst.msk [vmem:[%s7316_s10 + $0x30] sm:$0xf] %vm346_vm0, %v5182_v40  ;;  %v4592_v60 = vsel %vm3784_vm14, %v4549_v1, 0.0  ;;  %v5183_v59 = vpack.c.bf16 %v4222_v33, %v4222_v33  ;;  %v4490_v27 = vsel %vm3784_vm14, %v4222_v33, 0.0  ;;  %v4550_v8 = vmul.f32 %v4222_v33, %v4222_v33 }
 0x278   : > { %v4593_v24 = vadd.f32 %v4592_v60, %v4591_v22  ;;  %4441 = vst.msk [vmem:[%s7316_s10 + $0x3c] sm:$0xf] %vm346_vm0, %v5185_v16  ;;  %v4491_v15 = vadd.f32 %v4490_v27, %v4489_v38  ;;  %v4596_v17 = vsel %vm3784_vm14, %v4551_v47, 0.0  ;;  %v4598_v19 = vsel %vm3784_vm14, %v4552_v31, 0.0 }
 0x279   : > { %4439 = vst.msk [vmem:[%s7316_s10 + $0x34] sm:$0xf] %vm346_vm0, %v5183_v59  ;;  %v4594_v50 = vsel %vm3784_vm14, %v4550_v8, 0.0 }
 0x27a   : > { %v4493_v18 = vadd.f32 %v4492_v45, %v4491_v15  ;;  %v4595_v61 = vadd.f32 %v4594_v50, %v4593_v24 }
 0x27c   : > { %v4495_v41 = vadd.f32 %v4494_v57, %v4493_v18  ;;  %v4597_v7 = vadd.f32 %v4596_v17, %v4595_v61 }
 0x27e   : > { %v4599_v13 = vadd.f32 %v4598_v19, %v4597_v7 }
 0x28b   : > { %v5330_v29 = vpop.f32.mrb[0].mxu1 }
 0x28c   : > { %v5188_v12 = vpack.c.bf16 %v5330_v29, %v5330_v29  ;;  %v4235_v32 = vpop.f32.mrb[1].mxu1  ;;  %v4555_v56 = vmul.f32 %v5330_v29, %v5330_v29  ;;  %v4500_v0 = vsel %vm3784_vm14, %v5330_v29, 0.0 }
 0x28d   : > { %v5186_v20 = vpack.c.bf16 %v4235_v32, %v4235_v32  ;;  %v4496_v5 = vsel %vm3784_vm14, %v4235_v32, 0.0  ;;  %v4553_v34 = vmul.f32 %v4235_v32, %v4235_v32  ;;  %v5331_v3 = vpop.f32.mrb[2].mxu1 }
 0x28e   : > { %4444 = vst.msk [vmem:[%s7316_s10 + $0x48] sm:$0xf] %vm346_vm0, %v5188_v12  ;;  %v4497_v44 = vadd.f32 %v4496_v5, %v4495_v41  ;;  %v5189_v25 = vpack.c.bf16 %v5331_v3, %v5331_v3  ;;  %v4238_v43 = vpop.f32.mrb[3].mxu1  ;;  %v4556_v11 = vmul.f32 %v5331_v3, %v5331_v3  ;;  %v4502_v6 = vsel %vm3784_vm14, %v5331_v3, 0.0 }
 0x28f   : > { %4442 = vst.msk [vmem:[%s7316_s10 + $0x40] sm:$0xf] %vm346_vm0, %v5186_v20  ;;  %v4600_v22 = vsel %vm3784_vm14, %v4553_v34, 0.0  ;;  %v5187_v53 = vpack.c.bf16 %v4238_v43, %v4238_v43  ;;  %v4498_v21 = vsel %vm3784_vm14, %v4238_v43, 0.0  ;;  %v4554_v63 = vmul.f32 %v4238_v43, %v4238_v43 }
 0x290   : > { %v4601_v52 = vadd.f32 %v4600_v22, %v4599_v13  ;;  %4445 = vst.msk [vmem:[%s7316_s10 + $0x4c] sm:$0xf] %vm346_vm0, %v5189_v25  ;;  %v4499_v35 = vadd.f32 %v4498_v21, %v4497_v44  ;;  %v4604_v49 = vsel %vm3784_vm14, %v4555_v56, 0.0  ;;  %v4606_v55 = vsel %vm3784_vm14, %v4556_v11, 0.0 }
 0x291   : > { %4443 = vst.msk [vmem:[%s7316_s10 + $0x44] sm:$0xf] %vm346_vm0, %v5187_v53  ;;  %v4602_v37 = vsel %vm3784_vm14, %v4554_v63, 0.0 }
 0x292   : > { %v4501_v62 = vadd.f32 %v4500_v0, %v4499_v35  ;;  %v4603_v48 = vadd.f32 %v4602_v37, %v4601_v52 }
 0x294   : > { %v4503_v42 = vadd.f32 %v4502_v6, %v4501_v62  ;;  %v4605_v54 = vadd.f32 %v4604_v49, %v4603_v48 }
 0x296   : > { %v4607_v10 = vadd.f32 %v4606_v55, %v4605_v54 }
 0x2a9   : > { %v5334_v2 = vpop.f32.mrb[4].mxu1 }
 0x2aa   : > { %v5192_v4 = vpack.c.bf16 %v5334_v2, %v5334_v2  ;;  %v4251_v14 = vpop.f32.mrb[5].mxu1  ;;  %v4559_v26 = vmul.f32 %v5334_v2, %v5334_v2  ;;  %v4508_v60 = vsel %vm3784_vm14, %v5334_v2, 0.0 }
 0x2ab   : > { %v5190_v30 = vpack.c.bf16 %v4251_v14, %v4251_v14  ;;  %v4504_v36 = vsel %vm3784_vm14, %v4251_v14, 0.0  ;;  %v4557_v39 = vmul.f32 %v4251_v14, %v4251_v14  ;;  %v5335_v46 = vpop.f32.mrb[6].mxu1 }
 0x2ac   : > { %4448 = vst.msk [vmem:[%s7316_s10 + $0x58] sm:$0xf] %vm346_vm0, %v5192_v4  ;;  %v4505_v58 = vadd.f32 %v4504_v36, %v4503_v42  ;;  %v5193_v9 = vpack.c.bf16 %v5335_v46, %v5335_v46  ;;  %v4254_v28 = vpop.f32.mrb[7].mxu1  ;;  %v4560_v59 = vmul.f32 %v5335_v46, %v5335_v46  ;;  %v4510_v24 = vsel %vm3784_vm14, %v5335_v46, 0.0 }
 0x2ad   : > { %4446 = vst.msk [vmem:[%s7316_s10 + $0x50] sm:$0xf] %vm346_vm0, %v5190_v30  ;;  %v4608_v40 = vsel %vm3784_vm14, %v4557_v39, 0.0  ;;  %v5191_v51 = vpack.c.bf16 %v4254_v28, %v4254_v28  ;;  %v4506_v1 = vsel %vm3784_vm14, %v4254_v28, 0.0  ;;  %v4558_v33 = vmul.f32 %v4254_v28, %v4254_v28 }
 0x2ae   : > { %v4609_v38 = vadd.f32 %v4608_v40, %v4607_v10  ;;  %4449 = vst.msk [vmem:[%s7316_s10 + $0x5c] sm:$0xf] %vm346_vm0, %v5193_v9  ;;  %v4507_v16 = vadd.f32 %v4506_v1, %v4505_v58  ;;  %v4612_v8 = vsel %vm3784_vm14, %v4559_v26, 0.0  ;;  %v4614_v18 = vsel %vm3784_vm14, %v4560_v59, 0.0 }
 0x2af   : > { %4447 = vst.msk [vmem:[%s7316_s10 + $0x54] sm:$0xf] %vm346_vm0, %v5191_v51  ;;  %v4610_v47 = vsel %vm3784_vm14, %v4558_v33, 0.0 }
 0x2b0   : > { %v4509_v27 = vadd.f32 %v4508_v60, %v4507_v16  ;;  %v4611_v15 = vadd.f32 %v4610_v47, %v4609_v38 }
 0x2b2   : > { %v4511_v45 = vadd.f32 %v4510_v24, %v4509_v27  ;;  %v4613_v31 = vadd.f32 %v4612_v8, %v4611_v15 }
 0x2b4   : > { %v4615_v50 = vadd.f32 %v4614_v18, %v4613_v31 }
 0x2db   : > { %v5338_v57 = vpop.f32.mrb[8].mxu1 }
 0x2dc   : > { %v5196_v61 = vpack.c.bf16 %v5338_v57, %v5338_v57  ;;  %v4267_v17 = vpop.f32.mrb[9].mxu1  ;;  %v4563_v3 = vmul.f32 %v5338_v57, %v5338_v57  ;;  %v4516_v56 = vsel %vm3784_vm14, %v5338_v57, 0.0  ;;  %v4464_v57 = vld [vmem:[%s7435_s12] sm:$0x1] }
 0x2dd   : > { %v5194_v41 = vpack.c.bf16 %v4267_v17, %v4267_v17  ;;  %v4512_v7 = vsel %vm3784_vm14, %v4267_v17, 0.0  ;;  %v4561_v19 = vmul.f32 %v4267_v17, %v4267_v17  ;;  %v5339_v13 = vpop.f32.mrb[10].mxu1 }
 0x2de   : > { %4452 = vst.msk [vmem:[%s7316_s10 + $0x68] sm:$0xf] %vm346_vm0, %v5196_v61  ;;  %v4513_v29 = vadd.f32 %v4512_v7, %v4511_v45  ;;  %v5197_v12 = vpack.c.bf16 %v5339_v13, %v5339_v13  ;;  %v4270_v32 = vpop.f32.mrb[11].mxu1  ;;  %v4564_v22 = vmul.f32 %v5339_v13, %v5339_v13  ;;  %v4518_v52 = vsel %vm3784_vm14, %v5339_v13, 0.0 }
 0x2df   : > { %4450 = vst.msk [vmem:[%s7316_s10 + $0x60] sm:$0xf] %vm346_vm0, %v5194_v41  ;;  %v4616_v20 = vsel %vm3784_vm14, %v4561_v19, 0.0  ;;  %v5195_v5 = vpack.c.bf16 %v4270_v32, %v4270_v32  ;;  %v4514_v34 = vsel %vm3784_vm14, %v4270_v32, 0.0  ;;  %v4562_v43 = vmul.f32 %v4270_v32, %v4270_v32  ;;  %v4536_v19 = vld [vmem:[%s7441_s15] sm:$0x1] }
 0x2e0   : > { %v4617_v44 = vadd.f32 %v4616_v20, %v4615_v50  ;;  %4453 = vst.msk [vmem:[%s7316_s10 + $0x6c] sm:$0xf] %vm346_vm0, %v5197_v12  ;;  %v4515_v25 = vadd.f32 %v4514_v34, %v4513_v29  ;;  %v4620_v63 = vsel %vm3784_vm14, %v4563_v3, 0.0  ;;  %v4622_v11 = vsel %vm3784_vm14, %v4564_v22, 0.0 }
 0x2e1   : > { %4451 = vst.msk [vmem:[%s7316_s10 + $0x64] sm:$0xf] %vm346_vm0, %v5195_v5  ;;  %v4618_v21 = vsel %vm3784_vm14, %v4562_v43, 0.0 }
 0x2e2   : > { %v4517_v53 = vadd.f32 %v4516_v56, %v4515_v25  ;;  %v4619_v35 = vadd.f32 %v4618_v21, %v4617_v44 }
 0x2e4   : > { %v4519_v0 = vadd.f32 %v4518_v52, %v4517_v53  ;;  %v4621_v23 = vadd.f32 %v4620_v63, %v4619_v35 }
 0x2e6   : > { %v4623_v62 = vadd.f32 %v4622_v11, %v4621_v23 }
 0x30a   : > { %v5342_v37 = vpop.f32.mrb[12].mxu1 }
 0x30b   : > { %v5200_v6 = vpack.c.bf16 %v5342_v37, %v5342_v37  ;;  %v4283_v48 = vpop.f32.mrb[13].mxu1  ;;  %v4567_v39 = vmul.f32 %v5342_v37, %v5342_v37  ;;  %v4524_v28 = vsel %vm3784_vm14, %v5342_v37, 0.0 }
 0x30c   : > { %v5198_v49 = vpack.c.bf16 %v4283_v48, %v4283_v48  ;;  %v4520_v42 = vsel %vm3784_vm14, %v4283_v48, 0.0  ;;  %v4565_v54 = vmul.f32 %v4283_v48, %v4283_v48  ;;  %v5343_v55 = vpop.f32.mrb[14].mxu1 }
 0x30d   : > { %4456 = vst.msk [vmem:[%s7316_s10 + $0x78] sm:$0xf] %vm346_vm0, %v5200_v6  ;;  %v4521_v10 = vadd.f32 %v4520_v42, %v4519_v0  ;;  %v5201_v2 = vpack.c.bf16 %v5343_v55, %v5343_v55  ;;  %v4286_v4 = vpop.f32.mrb[15].mxu1  ;;  %v4568_v40 = vmul.f32 %v5343_v55, %v5343_v55  ;;  %v4526_v26 = vsel %vm3784_vm14, %v5343_v55, 0.0 }
 0x30e   : > { %4454 = vst.msk [vmem:[%s7316_s10 + $0x70] sm:$0xf] %vm346_vm0, %v5198_v49  ;;  %v4624_v14 = vsel %vm3784_vm14, %v4565_v54, 0.0  ;;  %v5199_v30 = vpack.c.bf16 %v4286_v4, %v4286_v4  ;;  %v4522_v36 = vsel %vm3784_vm14, %v4286_v4, 0.0  ;;  %v4566_v9 = vmul.f32 %v4286_v4, %v4286_v4 }
 0x30f   : > { %v4625_v46 = vadd.f32 %v4624_v14, %v4623_v62  ;;  %4457 = vst.msk [vmem:[%s7316_s10 + $0x7c] sm:$0xf] %vm346_vm0, %v5201_v2  ;;  %v4523_v58 = vadd.f32 %v4522_v36, %v4521_v10  ;;  %v4628_v16 = vsel %vm3784_vm14, %v4567_v39, 0.0  ;;  %v4630_v59 = vsel %vm3784_vm14, %v4568_v40, 0.0 }
 0x310   : > { %4455 = vst.msk [vmem:[%s7316_s10 + $0x74] sm:$0xf] %vm346_vm0, %v5199_v30  ;;  %v4626_v1 = vsel %vm3784_vm14, %v4566_v9, 0.0 }
 0x311   : > { %v4525_v51 = vadd.f32 %v4524_v28, %v4523_v58  ;;  %v4627_v38 = vadd.f32 %v4626_v1, %v4625_v46 }
 0x313   : > { %v4527_v33 = vadd.f32 %v4526_v26, %v4525_v51  ;;  %v4629_v60 = vadd.f32 %v4628_v16, %v4627_v38 }
 0x315   : > { %v4528_v27 = vrot.slane %v4527_v33, 4  ;;  %v4631_v47 = vadd.f32 %v4630_v59, %v4629_v60 }
 0x317   : > { %v4529_v24 = vadd.f32 %v4528_v27, %v4527_v33  ;;  %v4632_v15 = vrot.slane %v4631_v47, 4 }
 0x319   : > { %v4530_v8 = vrot.slane %v4529_v24, 2  ;;  %v4633_v45 = vadd.f32 %v4632_v15, %v4631_v47 }
 0x31b   : > { %v4531_v31 = vadd.f32 %v4530_v8, %v4529_v24  ;;  %v4634_v18 = vrot.slane %v4633_v45, 2 }
 0x31d   : > { %v4532_v50 = vrot.slane %v4531_v31, 1  ;;  %v4635_v61 = vadd.f32 %v4634_v18, %v4633_v45 }
 0x31f   : > { %v4533_v17 = vadd.f32 %v4532_v50, %v4531_v31  ;;  %v4636_v41 = vrot.slane %v4635_v61, 1 }
 0x321   : > { %v4534_v7 = vadd.f32 %v4533_v17, %v4464_v57  ;;  %v4637_v13 = vadd.f32 %v4636_v41, %v4635_v61 }
 0x323   : > { %4535 = vst.msk [vmem:[%s7435_s12] sm:$0x1] %vm349_vm1, %v4534_v7  ;;  %v4638_v29 = vadd.f32 %v4637_v13, %v4536_v19 }
 0x325   : > { %4639 = vst.msk [vmem:[%s7441_s15] sm:$0x1] %vm349_vm1, %v4638_v29 }
 0x326 PF: > { %s17_s23 = sadd.s32 1, %s5483_s23   ;;  %s7536_s21 = smov %s5479_s22 }
 0x327   : > { %p14_p5 = scmp.ge.s32.totalorder %s17_s23, 4   ;;  %s7537_s22 = smov %s7539_s24 }
 0x329   :  { %16 = sbr.rel (!%p14_p5) target bundleno = 2 (0x2), region = 111 }

</bundles_post_ra>
